<compile_context>
chip_gen: v6e
topology: v6e:2x2x1
jax: 0.10.0
libtpu: 0.0.40
codegen_flags: <defaults>
</compile_context>

<pallas_src>
import math
from functools import partial

import jax
import jax.numpy as jnp
from jax.experimental import pallas as pl
from jax.experimental.pallas import tpu as pltpu

_INV_SQRT2 = 1.0 / math.sqrt(2.0)


# ----------------------------------------------------------------------------
# Fused DownSamplingResBlock2D kernel (one grid step per batch element)
# ----------------------------------------------------------------------------
def _down_block_kernel(ph_ref, gamma_t_ref, beta_ref, w0_ref, wsc_ref, w1_ref,
                       w2_ref, o_ref, *, K, Ho, Wo, sc_phase, sc_dh, sc_dw):
    # ph_ref:      (4*Hpp, Wpp, C_in)   zero-padded input phases (channels on lanes)
    # gamma_t_ref: (C_in, C_in)         GDN gamma, transposed
    # beta_ref:    (1, C_in)            GDN beta (> 0)
    # w0_ref:      (K*K, C_in, C_out)   KxK stride-2 conv taps, w0[kh*K+kw] = W[:, :, kh, kw].T
    # wsc_ref:     (C_in, C_out)        1x1 stride-2 shortcut weight (transposed)
    # w1_ref:      (C_out, 4*C_out)     1x1 conv (transposed)
    # w2_ref:      (4*C_out, C_out)     1x1 conv (transposed)
    # o_ref:       (Ho*Wo, C_out)
    PH, Wpp, Cin = ph_ref.shape
    Hpp = PH // 4
    Cout = o_ref.shape[-1]
    Tout = Ho * Wo

    # ---- GDN: y = x * rsqrt(beta + x^2 @ gamma^T) -- single MXU matmul ----
    x = ph_ref[...].astype(jnp.float32).reshape(PH * Wpp, Cin)
    norm = jnp.dot(x * x, gamma_t_ref[...].astype(jnp.float32),
                   preferred_element_type=jnp.float32)
    g = x * jax.lax.rsqrt(norm + beta_ref[...].astype(jnp.float32))
    g3 = g.reshape(PH, Wpp, Cin)   # (4*Hpp, Wpp, C_in); phase p*2+q at rows [(p*2+q)*Hpp, ...)

    def tap(phase, dh, dw):
        r0 = phase * Hpp + dh
        return g3[r0:r0 + Ho, dw:dw + Wo, :].reshape(Tout, Cin)

    # ---- conv0: KxK stride-2 SAME conv as K*K shifted-tap MXU matmuls ----
    acc = jnp.zeros((Tout, Cout), jnp.float32)
    for kh in range(K):
        p, dh = kh % 2, kh // 2
        for kw in range(K):
            q, dw = kw % 2, kw // 2
            acc = acc + jnp.dot(tap(2 * p + q, dh, dw), w0_ref[kh * K + kw],
                                preferred_element_type=jnp.float32)

    # ---- shortcut: 1x1 stride-2 conv on the GDN output (no padding) ----
    y_sc = jnp.dot(tap(sc_phase, sc_dh, sc_dw), wsc_ref[...],
                   preferred_element_type=jnp.float32)

    # ---- conv1 (1x1) -> exact GELU -> conv2 (1x1) -> residual add ----
    h = jnp.dot(acc, w1_ref[...], preferred_element_type=jnp.float32)
    h = 0.5 * h * (1.0 + jax.lax.erf(h * _INV_SQRT2))
    y = jnp.dot(h, w2_ref[...], preferred_element_type=jnp.float32)
    o_ref[...] = (y + y_sc).astype(o_ref.dtype)


def down_sampling_res_block(x, p, kernel_size=3, stride=2):
    """One DownSamplingResBlock2D.  x: (B, H, W, C_in) NHWC -> (B, Ho, Wo, C_out)."""
    assert stride == 2, "phase decomposition is specialized to stride=2 (module default)"
    B, H, W, Cin = x.shape
    K = kernel_size
    Cout = p["wsc"].shape[1]
    Chid = p["w1"].shape[1]
    Ho, Wo = (H + 1) // 2, (W + 1) // 2          # SAME output size, stride 2
    ext = (K - 1) // 2
    Hpp, Wpp = Ho + ext, Wo + ext                # phase-plane extent incl. conv halo

    # TF-style SAME padding for the KxK stride-2 conv (left = total//2, extra right/bottom).
    pl_h = max((Ho - 1) * 2 + K - H, 0) // 2
    pl_w = max((Wo - 1) * 2 + K - W, 0) // 2
    pr_h = 2 * Hpp - H - pl_h                    # >= SAME right pad; extras never read
    pr_w = 2 * Wpp - W - pl_w
    xp = jnp.pad(x, ((0, 0), (pl_h, pr_h), (pl_w, pr_w), (0, 0)))

    # Space-to-depth: ph[b, (2p+q)*Hpp + i, j, c] = xp[b, 2i+p, 2j+q, c]
    ph = xp.reshape(B, Hpp, 2, Wpp, 2, Cin)
    ph = ph.transpose(0, 2, 4, 1, 3, 5).reshape(B, 4 * Hpp, Wpp, Cin)

    # 1x1 stride-2 shortcut has zero SAME pad: reads x[2i, 2j] = xp[2i + pl_h, 2j + pl_w]
    sc_phase = (pl_h % 2) * 2 + (pl_w % 2)
    sc_dh, sc_dw = pl_h // 2, pl_w // 2

    kern = partial(_down_block_kernel, K=K, Ho=Ho, Wo=Wo,
                   sc_phase=sc_phase, sc_dh=sc_dh, sc_dw=sc_dw)
    out = pl.pallas_call(
        kern,
        out_shape=jax.ShapeDtypeStruct((B, Ho * Wo, Cout), x.dtype),
        grid=(B,),
        in_specs=[
            pl.BlockSpec((None, 4 * Hpp, Wpp, Cin), lambda b: (b, 0, 0, 0)),
            pl.BlockSpec((Cin, Cin), lambda b: (0, 0)),
            pl.BlockSpec((1, Cin), lambda b: (0, 0)),
            pl.BlockSpec((K * K, Cin, Cout), lambda b: (0, 0, 0)),
            pl.BlockSpec((Cin, Cout), lambda b: (0, 0)),
            pl.BlockSpec((Cout, Chid), lambda b: (0, 0)),
            pl.BlockSpec((Chid, Cout), lambda b: (0, 0)),
        ],
        out_specs=pl.BlockSpec((None, Ho * Wo, Cout), lambda b: (b, 0, 0)),
        compiler_params=pltpu.CompilerParams(
            dimension_semantics=("parallel",)),   # both TensorCores on v7x
    )(ph, p["gamma_t"], p["beta"].reshape(1, Cin),
      p["w0"], p["wsc"], p["w1"], p["w2"])
    return out.reshape(B, Ho, Wo, Cout)


# ----------------------------------------------------------------------------
# EncodingStack forward
# ----------------------------------------------------------------------------
def encoding_stack(x, params, kernel_size=3, stride=2):
    """x: (B, C_in, H, W) NCHW like the PyTorch module.  Returns NCHW."""
    h = jnp.transpose(x, (0, 2, 3, 1))            # NHWC: channels on TPU lanes
    for p in params:
        h = down_sampling_res_block(h, p, kernel_size, stride)
    return jnp.transpose(h, (0, 3, 1, 2))


# ----------------------------------------------------------------------------
# Parameter construction (weights stored directly in kernel layout)
# ----------------------------------------------------------------------------
def init_block_params(key, c_in, c_out, kernel_size):
    c_hid = 4 * c_out
    k = jax.random.split(key, 6)
    s0 = 1.0 / math.sqrt(c_in * kernel_size * kernel_size)
    s1 = 1.0 / math.sqrt(c_out)
    s2 = 1.0 / math.sqrt(c_hid)
    return {
        # GDN: y_i = x_i * rsqrt(beta_i + sum_j gamma[i, j] * x_j^2); gamma stored transposed.
        # TODO(synk): gdn.GDN's NonNegativeParametrizer reparameterization is assumed folded
        # into these effective beta/gamma values (forward math given effective params is identical).
        "gamma_t": 0.1 * jnp.eye(c_in, dtype=jnp.float32)
                   + 0.01 * jnp.abs(jax.random.normal(k[0], (c_in, c_in), jnp.float32)),
        "beta": 1.0 + 0.1 * jnp.abs(jax.random.normal(k[1], (c_in,), jnp.float32)),
        # conv0 (KxK, stride 2): w0[kh*K+kw, ci, co] == W_torch[co, ci, kh, kw]
        "w0": s0 * jax.random.normal(k[2], (kernel_size * kernel_size, c_in, c_out), jnp.float32),
        # shortcut 1x1 stride-2: (C_in, C_out) == W_torch[:, :, 0, 0].T
        "wsc": s0 * jax.random.normal(k[3], (c_in, c_out), jnp.float32),
        # 1x1 convs, stored transposed for channels-last matmuls
        "w1": s1 * jax.random.normal(k[4], (c_out, c_hid), jnp.float32),
        "w2": s2 * jax.random.normal(k[5], (c_hid, c_out), jnp.float32),
    }


def init_stack_params(key, c_in, c_out, num_blocks, kernel_size):
    keys = jax.random.split(key, num_blocks)
    params = [init_block_params(keys[0], c_in, c_out, kernel_size)]
    for i in range(1, num_blocks):
        params.append(init_block_params(keys[i], c_out, c_out, kernel_size))
    return params


if __name__ == "__main__":
    B, C_IN, C_OUT, H, W = 2, 4, 32, 16, 16
    NUM_BLOCKS, K = 2, 3

    key = jax.random.PRNGKey(0)
    kx, kp = jax.random.split(key)
    x = jax.random.normal(kx, (B, C_IN, H, W), jnp.float32)
    params = init_stack_params(kp, C_IN, C_OUT, NUM_BLOCKS, K)

    fwd = jax.jit(partial(encoding_stack, kernel_size=K, stride=2))
    out = fwd(x, params)
    jax.block_until_ready(out)

    assert out.shape == (B, C_OUT, H // (2 ** NUM_BLOCKS), W // (2 ** NUM_BLOCKS)), out.shape
    assert out.dtype == jnp.float32
    assert bool(jnp.all(jnp.isfinite(out)))
    print("KERNEL_OK")
</pallas_src>

<mosaic_0001>
module attributes {stable_mosaic.version = 11 : i64} {
  func.func @_down_block_kernel(%arg0: i32, %arg1: memref<1x36x9x4xf32, #tpu.memory_space<vmem>>, %arg2: memref<4x4xf32, #tpu.memory_space<vmem>>, %arg3: memref<1x4xf32, #tpu.memory_space<vmem>>, %arg4: memref<9x4x32xf32, #tpu.memory_space<vmem>>, %arg5: memref<4x32xf32, #tpu.memory_space<vmem>>, %arg6: memref<32x128xf32, #tpu.memory_space<vmem>>, %arg7: memref<128x32xf32, #tpu.memory_space<vmem>>, %arg8: memref<1x64x32xf32, #tpu.memory_space<vmem>>) attributes {dimension_semantics = [#tpu.dimension_semantics<parallel>], iteration_bounds = array<i64: 2>, scalar_prefetch = 0 : i64, scratch_operands = 0 : i64, tpu.core_type = #tpu.core_type<tc>, window_params = [{transform_indices = @transform_0, window_bounds = array<i64: 1, 36, 9, 4>}, {pipeline_mode = #tpu.pipeline_mode<synchronous>, transform_indices = @transform_1, window_bounds = array<i64: 4, 4>}, {pipeline_mode = #tpu.pipeline_mode<synchronous>, transform_indices = @transform_2, window_bounds = array<i64: 1, 4>}, {pipeline_mode = #tpu.pipeline_mode<synchronous>, transform_indices = @transform_3, window_bounds = array<i64: 9, 4, 32>}, {pipeline_mode = #tpu.pipeline_mode<synchronous>, transform_indices = @transform_4, window_bounds = array<i64: 4, 32>}, {pipeline_mode = #tpu.pipeline_mode<synchronous>, transform_indices = @transform_5, window_bounds = array<i64: 32, 128>}, {pipeline_mode = #tpu.pipeline_mode<synchronous>, transform_indices = @transform_6, window_bounds = array<i64: 128, 32>}, {transform_indices = @transform_7, window_bounds = array<i64: 1, 64, 32>}]} {
    %c0 = arith.constant 0 : index
    %c0_0 = arith.constant 0 : index
    %c0_1 = arith.constant 0 : index
    %c0_2 = arith.constant 0 : index
    %0 = vector.load %arg1[%c0, %c0_0, %c0_1, %c0_2] : memref<1x36x9x4xf32, #tpu.memory_space<vmem>>, vector<1x36x9x4xf32>
    %1 = vector.shape_cast %0 : vector<1x36x9x4xf32> to vector<36x9x4xf32>
    %2 = vector.shape_cast %1 : vector<36x9x4xf32> to vector<324x4xf32>
    %3 = arith.mulf %2, %2 : vector<324x4xf32>
    %c0_3 = arith.constant 0 : index
    %c0_4 = arith.constant 0 : index
    %4 = vector.load %arg2[%c0_3, %c0_4] : memref<4x4xf32, #tpu.memory_space<vmem>>, vector<4x4xf32>
    %cst = arith.constant dense<0.000000e+00> : vector<324x4xf32>
    %5 = tpu.matmul %3, %4, %cst {dimension_numbers = #tpu.dot_dimension_numbers<[1], [0], [0], [1], [0, 0, 1, 1], [], []>} : vector<324x4xf32>, vector<4x4xf32>, vector<324x4xf32> -> vector<324x4xf32>
    %c0_5 = arith.constant 0 : index
    %c0_6 = arith.constant 0 : index
    %6 = vector.load %arg3[%c0_5, %c0_6] : memref<1x4xf32, #tpu.memory_space<vmem>>, vector<1x4xf32>
    %7 = vector.broadcast %6 : vector<1x4xf32> to vector<324x4xf32>
    %8 = arith.addf %5, %7 : vector<324x4xf32>
    %9 = math.rsqrt %8 : vector<324x4xf32>
    %10 = arith.mulf %2, %9 : vector<324x4xf32>
    %11 = vector.shape_cast %10 : vector<324x4xf32> to vector<36x9x4xf32>
    %cst_7 = arith.constant 0.000000e+00 : f32
    %12 = vector.broadcast %cst_7 : f32 to vector<64x32xf32>
    %13 = vector.extract_strided_slice %11 {offsets = [0, 0, 0], sizes = [8, 8, 4], strides = [1, 1, 1]} : vector<36x9x4xf32> to vector<8x8x4xf32>
    %14 = vector.shape_cast %13 : vector<8x8x4xf32> to vector<64x4xf32>
    %c0_8 = arith.constant 0 : index
    %c0_9 = arith.constant 0 : index
    %c0_10 = arith.constant 0 : index
    %15 = vector.load %arg4[%c0_8, %c0_9, %c0_10] : memref<9x4x32xf32, #tpu.memory_space<vmem>>, vector<1x4x32xf32>
    %16 = vector.shape_cast %15 : vector<1x4x32xf32> to vector<4x32xf32>
    %cst_11 = arith.constant dense<0.000000e+00> : vector<64x32xf32>
    %17 = tpu.matmul %14, %16, %cst_11 {dimension_numbers = #tpu.dot_dimension_numbers<[1], [0], [0], [1], [0, 0, 1, 1], [], []>} : vector<64x4xf32>, vector<4x32xf32>, vector<64x32xf32> -> vector<64x32xf32>
    %18 = arith.addf %12, %17 : vector<64x32xf32>
    %19 = vector.extract_strided_slice %11 {offsets = [9, 0, 0], sizes = [8, 8, 4], strides = [1, 1, 1]} : vector<36x9x4xf32> to vector<8x8x4xf32>
    %20 = vector.shape_cast %19 : vector<8x8x4xf32> to vector<64x4xf32>
    %c1 = arith.constant 1 : index
    %c0_12 = arith.constant 0 : index
    %c0_13 = arith.constant 0 : index
    %21 = vector.load %arg4[%c1, %c0_12, %c0_13] : memref<9x4x32xf32, #tpu.memory_space<vmem>>, vector<1x4x32xf32>
    %22 = vector.shape_cast %21 : vector<1x4x32xf32> to vector<4x32xf32>
    %cst_14 = arith.constant dense<0.000000e+00> : vector<64x32xf32>
    %23 = tpu.matmul %20, %22, %cst_14 {dimension_numbers = #tpu.dot_dimension_numbers<[1], [0], [0], [1], [0, 0, 1, 1], [], []>} : vector<64x4xf32>, vector<4x32xf32>, vector<64x32xf32> -> vector<64x32xf32>
    %24 = arith.addf %18, %23 : vector<64x32xf32>
    %25 = vector.extract_strided_slice %11 {offsets = [0, 1, 0], sizes = [8, 8, 4], strides = [1, 1, 1]} : vector<36x9x4xf32> to vector<8x8x4xf32>
    %26 = vector.shape_cast %25 : vector<8x8x4xf32> to vector<64x4xf32>
    %c2 = arith.constant 2 : index
    %c0_15 = arith.constant 0 : index
    %c0_16 = arith.constant 0 : index
    %27 = vector.load %arg4[%c2, %c0_15, %c0_16] : memref<9x4x32xf32, #tpu.memory_space<vmem>>, vector<1x4x32xf32>
    %28 = vector.shape_cast %27 : vector<1x4x32xf32> to vector<4x32xf32>
    %cst_17 = arith.constant dense<0.000000e+00> : vector<64x32xf32>
    %29 = tpu.matmul %26, %28, %cst_17 {dimension_numbers = #tpu.dot_dimension_numbers<[1], [0], [0], [1], [0, 0, 1, 1], [], []>} : vector<64x4xf32>, vector<4x32xf32>, vector<64x32xf32> -> vector<64x32xf32>
    %30 = arith.addf %24, %29 : vector<64x32xf32>
    %31 = vector.extract_strided_slice %11 {offsets = [18, 0, 0], sizes = [8, 8, 4], strides = [1, 1, 1]} : vector<36x9x4xf32> to vector<8x8x4xf32>
    %32 = vector.shape_cast %31 : vector<8x8x4xf32> to vector<64x4xf32>
    %c3 = arith.constant 3 : index
    %c0_18 = arith.constant 0 : index
    %c0_19 = arith.constant 0 : index
    %33 = vector.load %arg4[%c3, %c0_18, %c0_19] : memref<9x4x32xf32, #tpu.memory_space<vmem>>, vector<1x4x32xf32>
    %34 = vector.shape_cast %33 : vector<1x4x32xf32> to vector<4x32xf32>
    %cst_20 = arith.constant dense<0.000000e+00> : vector<64x32xf32>
    %35 = tpu.matmul %32, %34, %cst_20 {dimension_numbers = #tpu.dot_dimension_numbers<[1], [0], [0], [1], [0, 0, 1, 1], [], []>} : vector<64x4xf32>, vector<4x32xf32>, vector<64x32xf32> -> vector<64x32xf32>
    %36 = arith.addf %30, %35 : vector<64x32xf32>
    %37 = vector.extract_strided_slice %11 {offsets = [27, 0, 0], sizes = [8, 8, 4], strides = [1, 1, 1]} : vector<36x9x4xf32> to vector<8x8x4xf32>
    %38 = vector.shape_cast %37 : vector<8x8x4xf32> to vector<64x4xf32>
    %c4 = arith.constant 4 : index
    %c0_21 = arith.constant 0 : index
    %c0_22 = arith.constant 0 : index
    %39 = vector.load %arg4[%c4, %c0_21, %c0_22] : memref<9x4x32xf32, #tpu.memory_space<vmem>>, vector<1x4x32xf32>
    %40 = vector.shape_cast %39 : vector<1x4x32xf32> to vector<4x32xf32>
    %cst_23 = arith.constant dense<0.000000e+00> : vector<64x32xf32>
    %41 = tpu.matmul %38, %40, %cst_23 {dimension_numbers = #tpu.dot_dimension_numbers<[1], [0], [0], [1], [0, 0, 1, 1], [], []>} : vector<64x4xf32>, vector<4x32xf32>, vector<64x32xf32> -> vector<64x32xf32>
    %42 = arith.addf %36, %41 : vector<64x32xf32>
    %43 = vector.extract_strided_slice %11 {offsets = [18, 1, 0], sizes = [8, 8, 4], strides = [1, 1, 1]} : vector<36x9x4xf32> to vector<8x8x4xf32>
    %44 = vector.shape_cast %43 : vector<8x8x4xf32> to vector<64x4xf32>
    %c5 = arith.constant 5 : index
    %c0_24 = arith.constant 0 : index
    %c0_25 = arith.constant 0 : index
    %45 = vector.load %arg4[%c5, %c0_24, %c0_25] : memref<9x4x32xf32, #tpu.memory_space<vmem>>, vector<1x4x32xf32>
    %46 = vector.shape_cast %45 : vector<1x4x32xf32> to vector<4x32xf32>
    %cst_26 = arith.constant dense<0.000000e+00> : vector<64x32xf32>
    %47 = tpu.matmul %44, %46, %cst_26 {dimension_numbers = #tpu.dot_dimension_numbers<[1], [0], [0], [1], [0, 0, 1, 1], [], []>} : vector<64x4xf32>, vector<4x32xf32>, vector<64x32xf32> -> vector<64x32xf32>
    %48 = arith.addf %42, %47 : vector<64x32xf32>
    %49 = vector.extract_strided_slice %11 {offsets = [1, 0, 0], sizes = [8, 8, 4], strides = [1, 1, 1]} : vector<36x9x4xf32> to vector<8x8x4xf32>
    %50 = vector.shape_cast %49 : vector<8x8x4xf32> to vector<64x4xf32>
    %c6 = arith.constant 6 : index
    %c0_27 = arith.constant 0 : index
    %c0_28 = arith.constant 0 : index
    %51 = vector.load %arg4[%c6, %c0_27, %c0_28] : memref<9x4x32xf32, #tpu.memory_space<vmem>>, vector<1x4x32xf32>
    %52 = vector.shape_cast %51 : vector<1x4x32xf32> to vector<4x32xf32>
    %cst_29 = arith.constant dense<0.000000e+00> : vector<64x32xf32>
    %53 = tpu.matmul %50, %52, %cst_29 {dimension_numbers = #tpu.dot_dimension_numbers<[1], [0], [0], [1], [0, 0, 1, 1], [], []>} : vector<64x4xf32>, vector<4x32xf32>, vector<64x32xf32> -> vector<64x32xf32>
    %54 = arith.addf %48, %53 : vector<64x32xf32>
    %55 = vector.extract_strided_slice %11 {offsets = [10, 0, 0], sizes = [8, 8, 4], strides = [1, 1, 1]} : vector<36x9x4xf32> to vector<8x8x4xf32>
    %56 = vector.shape_cast %55 : vector<8x8x4xf32> to vector<64x4xf32>
    %c7 = arith.constant 7 : index
    %c0_30 = arith.constant 0 : index
    %c0_31 = arith.constant 0 : index
    %57 = vector.load %arg4[%c7, %c0_30, %c0_31] : memref<9x4x32xf32, #tpu.memory_space<vmem>>, vector<1x4x32xf32>
    %58 = vector.shape_cast %57 : vector<1x4x32xf32> to vector<4x32xf32>
    %cst_32 = arith.constant dense<0.000000e+00> : vector<64x32xf32>
    %59 = tpu.matmul %56, %58, %cst_32 {dimension_numbers = #tpu.dot_dimension_numbers<[1], [0], [0], [1], [0, 0, 1, 1], [], []>} : vector<64x4xf32>, vector<4x32xf32>, vector<64x32xf32> -> vector<64x32xf32>
    %60 = arith.addf %54, %59 : vector<64x32xf32>
    %61 = vector.extract_strided_slice %11 {offsets = [1, 1, 0], sizes = [8, 8, 4], strides = [1, 1, 1]} : vector<36x9x4xf32> to vector<8x8x4xf32>
    %62 = vector.shape_cast %61 : vector<8x8x4xf32> to vector<64x4xf32>
    %c8 = arith.constant 8 : index
    %c0_33 = arith.constant 0 : index
    %c0_34 = arith.constant 0 : index
    %63 = vector.load %arg4[%c8, %c0_33, %c0_34] : memref<9x4x32xf32, #tpu.memory_space<vmem>>, vector<1x4x32xf32>
    %64 = vector.shape_cast %63 : vector<1x4x32xf32> to vector<4x32xf32>
    %cst_35 = arith.constant dense<0.000000e+00> : vector<64x32xf32>
    %65 = tpu.matmul %62, %64, %cst_35 {dimension_numbers = #tpu.dot_dimension_numbers<[1], [0], [0], [1], [0, 0, 1, 1], [], []>} : vector<64x4xf32>, vector<4x32xf32>, vector<64x32xf32> -> vector<64x32xf32>
    %66 = arith.addf %60, %65 : vector<64x32xf32>
    %67 = vector.extract_strided_slice %11 {offsets = [0, 0, 0], sizes = [8, 8, 4], strides = [1, 1, 1]} : vector<36x9x4xf32> to vector<8x8x4xf32>
    %68 = vector.shape_cast %67 : vector<8x8x4xf32> to vector<64x4xf32>
    %c0_36 = arith.constant 0 : index
    %c0_37 = arith.constant 0 : index
    %69 = vector.load %arg5[%c0_36, %c0_37] : memref<4x32xf32, #tpu.memory_space<vmem>>, vector<4x32xf32>
    %cst_38 = arith.constant dense<0.000000e+00> : vector<64x32xf32>
    %70 = tpu.matmul %68, %69, %cst_38 {dimension_numbers = #tpu.dot_dimension_numbers<[1], [0], [0], [1], [0, 0, 1, 1], [], []>} : vector<64x4xf32>, vector<4x32xf32>, vector<64x32xf32> -> vector<64x32xf32>
    %c0_39 = arith.constant 0 : index
    %c0_40 = arith.constant 0 : index
    %71 = vector.load %arg6[%c0_39, %c0_40] : memref<32x128xf32, #tpu.memory_space<vmem>>, vector<32x128xf32>
    %cst_41 = arith.constant dense<0.000000e+00> : vector<64x128xf32>
    %72 = tpu.matmul %66, %71, %cst_41 {dimension_numbers = #tpu.dot_dimension_numbers<[1], [0], [0], [1], [0, 0, 1, 1], [], []>} : vector<64x32xf32>, vector<32x128xf32>, vector<64x128xf32> -> vector<64x128xf32>
    %cst_42 = arith.constant 5.000000e-01 : f32
    %73 = vector.broadcast %cst_42 : f32 to vector<64x128xf32>
    %74 = arith.mulf %73, %72 : vector<64x128xf32>
    %cst_43 = arith.constant 0.707106769 : f32
    %75 = vector.broadcast %cst_43 : f32 to vector<64x128xf32>
    %76 = arith.mulf %72, %75 : vector<64x128xf32>
    %77 = math.erf %76 : vector<64x128xf32>
    %cst_44 = arith.constant 1.000000e+00 : f32
    %78 = vector.broadcast %cst_44 : f32 to vector<64x128xf32>
    %79 = arith.addf %78, %77 : vector<64x128xf32>
    %80 = arith.mulf %74, %79 : vector<64x128xf32>
    %c0_45 = arith.constant 0 : index
    %c0_46 = arith.constant 0 : index
    %81 = vector.load %arg7[%c0_45, %c0_46] : memref<128x32xf32, #tpu.memory_space<vmem>>, vector<128x32xf32>
    %cst_47 = arith.constant dense<0.000000e+00> : vector<64x32xf32>
    %82 = tpu.matmul %80, %81, %cst_47 {dimension_numbers = #tpu.dot_dimension_numbers<[1], [0], [0], [1], [0, 0, 1, 1], [], []>} : vector<64x128xf32>, vector<128x32xf32>, vector<64x32xf32> -> vector<64x32xf32>
    %83 = arith.addf %82, %70 : vector<64x32xf32>
    %c0_48 = arith.constant 0 : index
    %c0_49 = arith.constant 0 : index
    %c0_50 = arith.constant 0 : index
    %84 = vector.load %arg8[%c0_48, %c0_49, %c0_50] : memref<1x64x32xf32, #tpu.memory_space<vmem>>, vector<1x64x32xf32>
    %85 = vector.shape_cast %84 : vector<1x64x32xf32> to vector<64x32xf32>
    %86 = vector.shape_cast %83 : vector<64x32xf32> to vector<1x64x32xf32>
    tpu.vector_store %arg8[%c0_48, %c0_49, %c0_50], %86 {strides = array<i32>} : memref<1x64x32xf32, #tpu.memory_space<vmem>>, vector<1x64x32xf32>,
    return
  }
  func.func @transform_0(%arg0: i32) -> (i32, i32, i32, i32) {
    %c0_i32 = arith.constant 0 : i32
    %c0_i32_0 = arith.constant 0 : i32
    %c0_i32_1 = arith.constant 0 : i32
    %c0_i32_2 = arith.constant 0 : i32
    return %arg0, %c0_i32, %c0_i32_0, %c0_i32_1 : i32, i32, i32, i32
  }
  func.func @transform_1(%arg0: i32) -> (i32, i32) {
    %c0_i32 = arith.constant 0 : i32
    %c0_i32_0 = arith.constant 0 : i32
    %c0_i32_1 = arith.constant 0 : i32
    return %c0_i32, %c0_i32_0 : i32, i32
  }
  func.func @transform_2(%arg0: i32) -> (i32, i32) {
    %c0_i32 = arith.constant 0 : i32
    %c0_i32_0 = arith.constant 0 : i32
    %c0_i32_1 = arith.constant 0 : i32
    return %c0_i32, %c0_i32_0 : i32, i32
  }
  func.func @transform_3(%arg0: i32) -> (i32, i32, i32) {
    %c0_i32 = arith.constant 0 : i32
    %c0_i32_0 = arith.constant 0 : i32
    %c0_i32_1 = arith.constant 0 : i32
    %c0_i32_2 = arith.constant 0 : i32
    return %c0_i32, %c0_i32_0, %c0_i32_1 : i32, i32, i32
  }
  func.func @transform_4(%arg0: i32) -> (i32, i32) {
    %c0_i32 = arith.constant 0 : i32
    %c0_i32_0 = arith.constant 0 : i32
    %c0_i32_1 = arith.constant 0 : i32
    return %c0_i32, %c0_i32_0 : i32, i32
  }
  func.func @transform_5(%arg0: i32) -> (i32, i32) {
    %c0_i32 = arith.constant 0 : i32
    %c0_i32_0 = arith.constant 0 : i32
    %c0_i32_1 = arith.constant 0 : i32
    return %c0_i32, %c0_i32_0 : i32, i32
  }
  func.func @transform_6(%arg0: i32) -> (i32, i32) {
    %c0_i32 = arith.constant 0 : i32
    %c0_i32_0 = arith.constant 0 : i32
    %c0_i32_1 = arith.constant 0 : i32
    return %c0_i32, %c0_i32_0 : i32, i32
  }
  func.func @transform_7(%arg0: i32) -> (i32, i32, i32) {
    %c0_i32 = arith.constant 0 : i32
    %c0_i32_0 = arith.constant 0 : i32
    %c0_i32_1 = arith.constant 0 : i32
    return %arg0, %c0_i32, %c0_i32_0 : i32, i32, i32
  }
}

module attributes {stable_mosaic.version = 11 : i64} {
  func.func @_down_block_kernel(%arg0: i32, %arg1: memref<1x20x5x32xf32, #tpu.memory_space<vmem>>, %arg2: memref<32x32xf32, #tpu.memory_space<vmem>>, %arg3: memref<1x32xf32, #tpu.memory_space<vmem>>, %arg4: memref<9x32x32xf32, #tpu.memory_space<vmem>>, %arg5: memref<32x32xf32, #tpu.memory_space<vmem>>, %arg6: memref<32x128xf32, #tpu.memory_space<vmem>>, %arg7: memref<128x32xf32, #tpu.memory_space<vmem>>, %arg8: memref<1x16x32xf32, #tpu.memory_space<vmem>>) attributes {dimension_semantics = [#tpu.dimension_semantics<parallel>], iteration_bounds = array<i64: 2>, scalar_prefetch = 0 : i64, scratch_operands = 0 : i64, tpu.core_type = #tpu.core_type<tc>, window_params = [{transform_indices = @transform_0, window_bounds = array<i64: 1, 20, 5, 32>}, {pipeline_mode = #tpu.pipeline_mode<synchronous>, transform_indices = @transform_1, window_bounds = array<i64: 32, 32>}, {pipeline_mode = #tpu.pipeline_mode<synchronous>, transform_indices = @transform_2, window_bounds = array<i64: 1, 32>}, {pipeline_mode = #tpu.pipeline_mode<synchronous>, transform_indices = @transform_3, window_bounds = array<i64: 9, 32, 32>}, {pipeline_mode = #tpu.pipeline_mode<synchronous>, transform_indices = @transform_4, window_bounds = array<i64: 32, 32>}, {pipeline_mode = #tpu.pipeline_mode<synchronous>, transform_indices = @transform_5, window_bounds = array<i64: 32, 128>}, {pipeline_mode = #tpu.pipeline_mode<synchronous>, transform_indices = @transform_6, window_bounds = array<i64: 128, 32>}, {transform_indices = @transform_7, window_bounds = array<i64: 1, 16, 32>}]} {
    %c0 = arith.constant 0 : index
    %c0_0 = arith.constant 0 : index
    %c0_1 = arith.constant 0 : index
    %c0_2 = arith.constant 0 : index
    %0 = vector.load %arg1[%c0, %c0_0, %c0_1, %c0_2] : memref<1x20x5x32xf32, #tpu.memory_space<vmem>>, vector<1x20x5x32xf32>
    %1 = vector.shape_cast %0 : vector<1x20x5x32xf32> to vector<20x5x32xf32>
    %2 = vector.shape_cast %1 : vector<20x5x32xf32> to vector<100x32xf32>
    %3 = arith.mulf %2, %2 : vector<100x32xf32>
    %c0_3 = arith.constant 0 : index
    %c0_4 = arith.constant 0 : index
    %4 = vector.load %arg2[%c0_3, %c0_4] : memref<32x32xf32, #tpu.memory_space<vmem>>, vector<32x32xf32>
    %cst = arith.constant dense<0.000000e+00> : vector<100x32xf32>
    %5 = tpu.matmul %3, %4, %cst {dimension_numbers = #tpu.dot_dimension_numbers<[1], [0], [0], [1], [0, 0, 1, 1], [], []>} : vector<100x32xf32>, vector<32x32xf32>, vector<100x32xf32> -> vector<100x32xf32>
    %c0_5 = arith.constant 0 : index
    %c0_6 = arith.constant 0 : index
    %6 = vector.load %arg3[%c0_5, %c0_6] : memref<1x32xf32, #tpu.memory_space<vmem>>, vector<1x32xf32>
    %7 = vector.broadcast %6 : vector<1x32xf32> to vector<100x32xf32>
    %8 = arith.addf %5, %7 : vector<100x32xf32>
    %9 = math.rsqrt %8 : vector<100x32xf32>
    %10 = arith.mulf %2, %9 : vector<100x32xf32>
    %11 = vector.shape_cast %10 : vector<100x32xf32> to vector<20x5x32xf32>
    %cst_7 = arith.constant 0.000000e+00 : f32
    %12 = vector.broadcast %cst_7 : f32 to vector<16x32xf32>
    %13 = vector.extract_strided_slice %11 {offsets = [0, 0, 0], sizes = [4, 4, 32], strides = [1, 1, 1]} : vector<20x5x32xf32> to vector<4x4x32xf32>
    %14 = vector.shape_cast %13 : vector<4x4x32xf32> to vector<16x32xf32>
    %c0_8 = arith.constant 0 : index
    %c0_9 = arith.constant 0 : index
    %c0_10 = arith.constant 0 : index
    %15 = vector.load %arg4[%c0_8, %c0_9, %c0_10] : memref<9x32x32xf32, #tpu.memory_space<vmem>>, vector<1x32x32xf32>
    %16 = vector.shape_cast %15 : vector<1x32x32xf32> to vector<32x32xf32>
    %cst_11 = arith.constant dense<0.000000e+00> : vector<16x32xf32>
    %17 = tpu.matmul %14, %16, %cst_11 {dimension_numbers = #tpu.dot_dimension_numbers<[1], [0], [0], [1], [0, 0, 1, 1], [], []>} : vector<16x32xf32>, vector<32x32xf32>, vector<16x32xf32> -> vector<16x32xf32>
    %18 = arith.addf %12, %17 : vector<16x32xf32>
    %19 = vector.extract_strided_slice %11 {offsets = [5, 0, 0], sizes = [4, 4, 32], strides = [1, 1, 1]} : vector<20x5x32xf32> to vector<4x4x32xf32>
    %20 = vector.shape_cast %19 : vector<4x4x32xf32> to vector<16x32xf32>
    %c1 = arith.constant 1 : index
    %c0_12 = arith.constant 0 : index
    %c0_13 = arith.constant 0 : index
    %21 = vector.load %arg4[%c1, %c0_12, %c0_13] : memref<9x32x32xf32, #tpu.memory_space<vmem>>, vector<1x32x32xf32>
    %22 = vector.shape_cast %21 : vector<1x32x32xf32> to vector<32x32xf32>
    %cst_14 = arith.constant dense<0.000000e+00> : vector<16x32xf32>
    %23 = tpu.matmul %20, %22, %cst_14 {dimension_numbers = #tpu.dot_dimension_numbers<[1], [0], [0], [1], [0, 0, 1, 1], [], []>} : vector<16x32xf32>, vector<32x32xf32>, vector<16x32xf32> -> vector<16x32xf32>
    %24 = arith.addf %18, %23 : vector<16x32xf32>
    %25 = vector.extract_strided_slice %11 {offsets = [0, 1, 0], sizes = [4, 4, 32], strides = [1, 1, 1]} : vector<20x5x32xf32> to vector<4x4x32xf32>
    %26 = vector.shape_cast %25 : vector<4x4x32xf32> to vector<16x32xf32>
    %c2 = arith.constant 2 : index
    %c0_15 = arith.constant 0 : index
    %c0_16 = arith.constant 0 : index
    %27 = vector.load %arg4[%c2, %c0_15, %c0_16] : memref<9x32x32xf32, #tpu.memory_space<vmem>>, vector<1x32x32xf32>
    %28 = vector.shape_cast %27 : vector<1x32x32xf32> to vector<32x32xf32>
    %cst_17 = arith.constant dense<0.000000e+00> : vector<16x32xf32>
    %29 = tpu.matmul %26, %28, %cst_17 {dimension_numbers = #tpu.dot_dimension_numbers<[1], [0], [0], [1], [0, 0, 1, 1], [], []>} : vector<16x32xf32>, vector<32x32xf32>, vector<16x32xf32> -> vector<16x32xf32>
    %30 = arith.addf %24, %29 : vector<16x32xf32>
    %31 = vector.extract_strided_slice %11 {offsets = [10, 0, 0], sizes = [4, 4, 32], strides = [1, 1, 1]} : vector<20x5x32xf32> to vector<4x4x32xf32>
    %32 = vector.shape_cast %31 : vector<4x4x32xf32> to vector<16x32xf32>
    %c3 = arith.constant 3 : index
    %c0_18 = arith.constant 0 : index
    %c0_19 = arith.constant 0 : index
    %33 = vector.load %arg4[%c3, %c0_18, %c0_19] : memref<9x32x32xf32, #tpu.memory_space<vmem>>, vector<1x32x32xf32>
    %34 = vector.shape_cast %33 : vector<1x32x32xf32> to vector<32x32xf32>
    %cst_20 = arith.constant dense<0.000000e+00> : vector<16x32xf32>
    %35 = tpu.matmul %32, %34, %cst_20 {dimension_numbers = #tpu.dot_dimension_numbers<[1], [0], [0], [1], [0, 0, 1, 1], [], []>} : vector<16x32xf32>, vector<32x32xf32>, vector<16x32xf32> -> vector<16x32xf32>
    %36 = arith.addf %30, %35 : vector<16x32xf32>
    %37 = vector.extract_strided_slice %11 {offsets = [15, 0, 0], sizes = [4, 4, 32], strides = [1, 1, 1]} : vector<20x5x32xf32> to vector<4x4x32xf32>
    %38 = vector.shape_cast %37 : vector<4x4x32xf32> to vector<16x32xf32>
    %c4 = arith.constant 4 : index
    %c0_21 = arith.constant 0 : index
    %c0_22 = arith.constant 0 : index
    %39 = vector.load %arg4[%c4, %c0_21, %c0_22] : memref<9x32x32xf32, #tpu.memory_space<vmem>>, vector<1x32x32xf32>
    %40 = vector.shape_cast %39 : vector<1x32x32xf32> to vector<32x32xf32>
    %cst_23 = arith.constant dense<0.000000e+00> : vector<16x32xf32>
    %41 = tpu.matmul %38, %40, %cst_23 {dimension_numbers = #tpu.dot_dimension_numbers<[1], [0], [0], [1], [0, 0, 1, 1], [], []>} : vector<16x32xf32>, vector<32x32xf32>, vector<16x32xf32> -> vector<16x32xf32>
    %42 = arith.addf %36, %41 : vector<16x32xf32>
    %43 = vector.extract_strided_slice %11 {offsets = [10, 1, 0], sizes = [4, 4, 32], strides = [1, 1, 1]} : vector<20x5x32xf32> to vector<4x4x32xf32>
    %44 = vector.shape_cast %43 : vector<4x4x32xf32> to vector<16x32xf32>
    %c5 = arith.constant 5 : index
    %c0_24 = arith.constant 0 : index
    %c0_25 = arith.constant 0 : index
    %45 = vector.load %arg4[%c5, %c0_24, %c0_25] : memref<9x32x32xf32, #tpu.memory_space<vmem>>, vector<1x32x32xf32>
    %46 = vector.shape_cast %45 : vector<1x32x32xf32> to vector<32x32xf32>
    %cst_26 = arith.constant dense<0.000000e+00> : vector<16x32xf32>
    %47 = tpu.matmul %44, %46, %cst_26 {dimension_numbers = #tpu.dot_dimension_numbers<[1], [0], [0], [1], [0, 0, 1, 1], [], []>} : vector<16x32xf32>, vector<32x32xf32>, vector<16x32xf32> -> vector<16x32xf32>
    %48 = arith.addf %42, %47 : vector<16x32xf32>
    %49 = vector.extract_strided_slice %11 {offsets = [1, 0, 0], sizes = [4, 4, 32], strides = [1, 1, 1]} : vector<20x5x32xf32> to vector<4x4x32xf32>
    %50 = vector.shape_cast %49 : vector<4x4x32xf32> to vector<16x32xf32>
    %c6 = arith.constant 6 : index
    %c0_27 = arith.constant 0 : index
    %c0_28 = arith.constant 0 : index
    %51 = vector.load %arg4[%c6, %c0_27, %c0_28] : memref<9x32x32xf32, #tpu.memory_space<vmem>>, vector<1x32x32xf32>
    %52 = vector.shape_cast %51 : vector<1x32x32xf32> to vector<32x32xf32>
    %cst_29 = arith.constant dense<0.000000e+00> : vector<16x32xf32>
    %53 = tpu.matmul %50, %52, %cst_29 {dimension_numbers = #tpu.dot_dimension_numbers<[1], [0], [0], [1], [0, 0, 1, 1], [], []>} : vector<16x32xf32>, vector<32x32xf32>, vector<16x32xf32> -> vector<16x32xf32>
    %54 = arith.addf %48, %53 : vector<16x32xf32>
    %55 = vector.extract_strided_slice %11 {offsets = [6, 0, 0], sizes = [4, 4, 32], strides = [1, 1, 1]} : vector<20x5x32xf32> to vector<4x4x32xf32>
    %56 = vector.shape_cast %55 : vector<4x4x32xf32> to vector<16x32xf32>
    %c7 = arith.constant 7 : index
    %c0_30 = arith.constant 0 : index
    %c0_31 = arith.constant 0 : index
    %57 = vector.load %arg4[%c7, %c0_30, %c0_31] : memref<9x32x32xf32, #tpu.memory_space<vmem>>, vector<1x32x32xf32>
    %58 = vector.shape_cast %57 : vector<1x32x32xf32> to vector<32x32xf32>
    %cst_32 = arith.constant dense<0.000000e+00> : vector<16x32xf32>
    %59 = tpu.matmul %56, %58, %cst_32 {dimension_numbers = #tpu.dot_dimension_numbers<[1], [0], [0], [1], [0, 0, 1, 1], [], []>} : vector<16x32xf32>, vector<32x32xf32>, vector<16x32xf32> -> vector<16x32xf32>
    %60 = arith.addf %54, %59 : vector<16x32xf32>
    %61 = vector.extract_strided_slice %11 {offsets = [1, 1, 0], sizes = [4, 4, 32], strides = [1, 1, 1]} : vector<20x5x32xf32> to vector<4x4x32xf32>
    %62 = vector.shape_cast %61 : vector<4x4x32xf32> to vector<16x32xf32>
    %c8 = arith.constant 8 : index
    %c0_33 = arith.constant 0 : index
    %c0_34 = arith.constant 0 : index
    %63 = vector.load %arg4[%c8, %c0_33, %c0_34] : memref<9x32x32xf32, #tpu.memory_space<vmem>>, vector<1x32x32xf32>
    %64 = vector.shape_cast %63 : vector<1x32x32xf32> to vector<32x32xf32>
    %cst_35 = arith.constant dense<0.000000e+00> : vector<16x32xf32>
    %65 = tpu.matmul %62, %64, %cst_35 {dimension_numbers = #tpu.dot_dimension_numbers<[1], [0], [0], [1], [0, 0, 1, 1], [], []>} : vector<16x32xf32>, vector<32x32xf32>, vector<16x32xf32> -> vector<16x32xf32>
    %66 = arith.addf %60, %65 : vector<16x32xf32>
    %67 = vector.extract_strided_slice %11 {offsets = [0, 0, 0], sizes = [4, 4, 32], strides = [1, 1, 1]} : vector<20x5x32xf32> to vector<4x4x32xf32>
    %68 = vector.shape_cast %67 : vector<4x4x32xf32> to vector<16x32xf32>
    %c0_36 = arith.constant 0 : index
    %c0_37 = arith.constant 0 : index
    %69 = vector.load %arg5[%c0_36, %c0_37] : memref<32x32xf32, #tpu.memory_space<vmem>>, vector<32x32xf32>
    %cst_38 = arith.constant dense<0.000000e+00> : vector<16x32xf32>
    %70 = tpu.matmul %68, %69, %cst_38 {dimension_numbers = #tpu.dot_dimension_numbers<[1], [0], [0], [1], [0, 0, 1, 1], [], []>} : vector<16x32xf32>, vector<32x32xf32>, vector<16x32xf32> -> vector<16x32xf32>
    %c0_39 = arith.constant 0 : index
    %c0_40 = arith.constant 0 : index
    %71 = vector.load %arg6[%c0_39, %c0_40] : memref<32x128xf32, #tpu.memory_space<vmem>>, vector<32x128xf32>
    %cst_41 = arith.constant dense<0.000000e+00> : vector<16x128xf32>
    %72 = tpu.matmul %66, %71, %cst_41 {dimension_numbers = #tpu.dot_dimension_numbers<[1], [0], [0], [1], [0, 0, 1, 1], [], []>} : vector<16x32xf32>, vector<32x128xf32>, vector<16x128xf32> -> vector<16x128xf32>
    %cst_42 = arith.constant 5.000000e-01 : f32
    %73 = vector.broadcast %cst_42 : f32 to vector<16x128xf32>
    %74 = arith.mulf %73, %72 : vector<16x128xf32>
    %cst_43 = arith.constant 0.707106769 : f32
    %75 = vector.broadcast %cst_43 : f32 to vector<16x128xf32>
    %76 = arith.mulf %72, %75 : vector<16x128xf32>
    %77 = math.erf %76 : vector<16x128xf32>
    %cst_44 = arith.constant 1.000000e+00 : f32
    %78 = vector.broadcast %cst_44 : f32 to vector<16x128xf32>
    %79 = arith.addf %78, %77 : vector<16x128xf32>
    %80 = arith.mulf %74, %79 : vector<16x128xf32>
    %c0_45 = arith.constant 0 : index
    %c0_46 = arith.constant 0 : index
    %81 = vector.load %arg7[%c0_45, %c0_46] : memref<128x32xf32, #tpu.memory_space<vmem>>, vector<128x32xf32>
    %cst_47 = arith.constant dense<0.000000e+00> : vector<16x32xf32>
    %82 = tpu.matmul %80, %81, %cst_47 {dimension_numbers = #tpu.dot_dimension_numbers<[1], [0], [0], [1], [0, 0, 1, 1], [], []>} : vector<16x128xf32>, vector<128x32xf32>, vector<16x32xf32> -> vector<16x32xf32>
    %83 = arith.addf %82, %70 : vector<16x32xf32>
    %c0_48 = arith.constant 0 : index
    %c0_49 = arith.constant 0 : index
    %c0_50 = arith.constant 0 : index
    %84 = vector.load %arg8[%c0_48, %c0_49, %c0_50] : memref<1x16x32xf32, #tpu.memory_space<vmem>>, vector<1x16x32xf32>
    %85 = vector.shape_cast %84 : vector<1x16x32xf32> to vector<16x32xf32>
    %86 = vector.shape_cast %83 : vector<16x32xf32> to vector<1x16x32xf32>
    tpu.vector_store %arg8[%c0_48, %c0_49, %c0_50], %86 {strides = array<i32>} : memref<1x16x32xf32, #tpu.memory_space<vmem>>, vector<1x16x32xf32>,
    return
  }
  func.func @transform_0(%arg0: i32) -> (i32, i32, i32, i32) {
    %c0_i32 = arith.constant 0 : i32
    %c0_i32_0 = arith.constant 0 : i32
    %c0_i32_1 = arith.constant 0 : i32
    %c0_i32_2 = arith.constant 0 : i32
    return %arg0, %c0_i32, %c0_i32_0, %c0_i32_1 : i32, i32, i32, i32
  }
  func.func @transform_1(%arg0: i32) -> (i32, i32) {
    %c0_i32 = arith.constant 0 : i32
    %c0_i32_0 = arith.constant 0 : i32
    %c0_i32_1 = arith.constant 0 : i32
    return %c0_i32, %c0_i32_0 : i32, i32
  }
  func.func @transform_2(%arg0: i32) -> (i32, i32) {
    %c0_i32 = arith.constant 0 : i32
    %c0_i32_0 = arith.constant 0 : i32
    %c0_i32_1 = arith.constant 0 : i32
    return %c0_i32, %c0_i32_0 : i32, i32
  }
  func.func @transform_3(%arg0: i32) -> (i32, i32, i32) {
    %c0_i32 = arith.constant 0 : i32
    %c0_i32_0 = arith.constant 0 : i32
    %c0_i32_1 = arith.constant 0 : i32
    %c0_i32_2 = arith.constant 0 : i32
    return %c0_i32, %c0_i32_0, %c0_i32_1 : i32, i32, i32
  }
  func.func @transform_4(%arg0: i32) -> (i32, i32) {
    %c0_i32 = arith.constant 0 : i32
    %c0_i32_0 = arith.constant 0 : i32
    %c0_i32_1 = arith.constant 0 : i32
    return %c0_i32, %c0_i32_0 : i32, i32
  }
  func.func @transform_5(%arg0: i32) -> (i32, i32) {
    %c0_i32 = arith.constant 0 : i32
    %c0_i32_0 = arith.constant 0 : i32
    %c0_i32_1 = arith.constant 0 : i32
    return %c0_i32, %c0_i32_0 : i32, i32
  }
  func.func @transform_6(%arg0: i32) -> (i32, i32) {
    %c0_i32 = arith.constant 0 : i32
    %c0_i32_0 = arith.constant 0 : i32
    %c0_i32_1 = arith.constant 0 : i32
    return %c0_i32, %c0_i32_0 : i32, i32
  }
  func.func @transform_7(%arg0: i32) -> (i32, i32, i32) {
    %c0_i32 = arith.constant 0 : i32
    %c0_i32_0 = arith.constant 0 : i32
    %c0_i32_1 = arith.constant 0 : i32
    return %arg0, %c0_i32, %c0_i32_0 : i32, i32, i32
  }
}

</mosaic_0001>

<bundles_post_ra>
// kernel: encoding_stack.3
= control target key start
LH: loop header
LB: loop body
LE: loop exit
PB: predicated region body
PF: predicated region fallthrough
CT: control target
= control target key end

     0   :  { %12 = vsyncpa [#allocation3], 0  ;;  %s6858_s0 = inlined_call_operand.vmem [shape: f32[2,20,5,32], index: 0, kind: input, shape index: {}]   ;;  %s6859_s1 = inlined_call_operand.vmem [shape: f32[32,32], index: 1, kind: input, shape index: {}]   ;;  %s6860_s2 = inlined_call_operand.vmem [shape: f32[1,32], index: 2, kind: input, shape index: {}]   ;;  %s6861_s3 = inlined_call_operand.vmem [shape: f32[9,32,32], index: 3, kind: input, shape index: {}]   ;;  %s6862_s4 = inlined_call_operand.vmem [shape: f32[32,32], index: 4, kind: input, shape index: {}]   ;;  %s6863_s5 = inlined_call_operand.vmem [shape: f32[32,128], index: 5, kind: input, shape index: {}]   ;;  %s6864_s6 = inlined_call_operand.vmem [shape: f32[128,32], index: 6, kind: input, shape index: {}]   ;;  %s6865_s7 = inlined_call_operand.hbm [shape: f32[2,16,32], index: 7, kind: output, shape index: {}]  }
   0x1   :  { %14 = vsyncpa [#allocation3 + $0x1], 0  ;;  %s5387_s24 = smov 0   ;;  %s5389_s25 = smov 0  }
   0x2   :  { %s5391_s26 = smov 0   ;;  %s5393_s27 = smov 0  }
   0x3 LB: > { %s5408_s28 = sadd.s32 4294967295, %s5339_s27   ;;  %s4794_s29 = sadd.s32 4294967294, %s5339_s27   ;;  %s5339_s27 = sphi %s5393_s27, %s7003_s27   ;;  %s5335_s26 = sphi %s5391_s26, %s7002_s26   ;;  %s5331_s25 = sphi %s5389_s25, %s7001_s25   ;;  %s5327_s24 = sphi %s5387_s24, %s7000_s24  }
   0x4   : > { %s5412_s30 = sadd.s32 1, %s5339_s27   ;;  %s179_s8 = sadd.s32 1, %s5335_s26 }
   0x5   : > { %s176_s9 = ssub.s32 %s5339_s27, %s5412_s30  ;;  %p189_p0 = scmp.ne.s32.totalorder %s5335_s26, %s5331_s25 }
   0x6   : > { %p177_p1 = scmp.eq.s32.totalorder %s176_s9, 0  ;;  %p190_p2 = scmp.eq.s32.totalorder %s5408_s28, 1 }
   0x7   : > { %p195_p3 = scmp.ne.s32.totalorder %s5331_s25, %s5327_s24  ;;  %p196_p4 = scmp.eq.s32.totalorder %s4794_s29, 1 }
   0x8   : > { %s5423_s10 = scalar_select %p177_p1, %s5335_s26, %s179_s8  }
   0x9   : > { %p5425_p5 = por %p190_p2, %p189_p0  ;;  %p5429_p6 = por %p196_p4, %p195_p3 }
   0xa   : > { %p4797_p7 = scmp.ge.s32.totalorder %s5339_s27, 1  ;;  %p240_p8 = scmp.lt.s32.totalorder %s5339_s27, 3 }
   0xc   : > { %p241_p9 = pnand %p4797_p7, %p240_p8 }
   0xe   : > { %244 = sbr.rel (%p241_p9) target bundleno = 1024 (0x400), region = 48 }
  0x13   : > { %v1300_v0 = vld [vmem:[%s6859_s1 + $0x18] sm:$0xff]  ;;  %p272_p10 = scmp.lt.s32.totalorder %s5408_s28, 1  ;;  %v321_v1 = vlaneseq  ;;  %v6866_v2 = vmov 0.0   ;;  %v1299_v3 = vld [vmem:[%s6859_s1 + $0x10] sm:$0xff]  ;;  %vm5342_vm0 = vmmov 0   ;;  %v1298_v7 = vld [vmem:[%s6859_s1 + $0x8] sm:$0xff] }
  0x14   : > { %4975 = vmatprep.subr.mxu0 %v6866_v2  ;;  %4983 = vmatprep.mubr.msk.f32.mxu0 %vm5342_vm0, %v6866_v2  ;;  %v5343_v4 = vmov 1966171168   ;;  %v1297_v9 = vld [vmem:[%s6859_s1] sm:$0xff]  ;;  %vm2020_vm1 = vcmask 261120   ;;  %s269_s22 = sand.u32 1, %s5331_s25   ;;  %s4873_s9 = sshll.u32 %s5408_s28, 8 }
  0x15   : > { %4976 = vmatpush3.msra.mxu0 %v1300_v0  ;;  %s273_s17 = scalar_select %p272_p10, %s5408_s28, 1  ;;  %v319_v5 = vunpack.c.l.s4 %v5343_v4  ;;  %v322_v6 = vshrl.u32 %v321_v1, 7  ;;  %5178 = vmatprep.subr.mxu1 %v6866_v2 }
  0x16   : > { %4977 = vmatprep.subr.mxu0 %v6866_v2  ;;  %5182 = vmatpush3.msra.mxu1 %v1300_v0  ;;  %s4798_s23 = sshll.u32 %s269_s22, 4  ;;  %s6815_s15 = scalar_lea.hbm %s6865_s7, %s4873_s9 }
  0x17   : > { %4978 = vmatpush3.msra.mxu0 %v1299_v3  ;;  %s5186_s20 = smul.u32 160, %s273_s17  ;;  %v320_v8 = vunpack.c.0.s8 %v319_v5  ;;  %5179 = vmatprep.subr.mxu1 %v6866_v2  ;;  %s271_s29 = scalar_lea.vmem [#allocation2], %s4798_s23 }
  0x18   : > { %4979 = vmatprep.subr.mxu0 %v6866_v2  ;;  %5183 = vmatpush3.msra.mxu1 %v1299_v3  ;;  %s6818_s16 = scalar_lea.sflag [#allocation3], %s269_s22  ;;  %s5344_s17 = smov [#allocation2]  }
  0x19   : > { %4980 = vmatpush3.msra.mxu0 %v1298_v7  ;;  %s5459_s8 = scalar_lea.vmem %s6858_s0, %s5186_s20  ;;  %v5461_v10 = vsub.s32 %v320_v8, %v322_v6  ;;  %5180 = vmatprep.subr.mxu1 %v6866_v2  ;;  %s5283_s18 = sshll.u32 %s5344_s17, 4  ;;  %s5284_s18 = int_to_ptr.vmem [resolvable:$false] %s5283_s18 }
  0x1a   : > { %4981 = vmatprep.subr.mxu0 %v6866_v2  ;;  %v277_v11 = vld [vmem:[%s5459_s8] sm:$0x1f]  ;;  %v278_v12 = vld [vmem:[%s5459_s8 + $0x8] sm:$0x1f]  ;;  %v279_v13 = vld [vmem:[%s5459_s8 + $0x10] sm:$0x1f]  ;;  %5184 = vmatpush3.msra.mxu1 %v1298_v7 }
  0x1b   : > { %4982 = vmatpush3.msra.mxu0 %v1297_v9  ;;  %v317_v14 = vcombine.high %v277_v11, %v277_v11  ;;  %v324_v15 = vrot.slane %v277_v11, %v5461_v10  ;;  %v363_v16 = vrot.slane %v278_v12, %v5461_v10  ;;  %v280_v17 = vld [vmem:[%s5459_s8 + $0x18] sm:$0x1f]  ;;  %v356_v18 = vcombine.high %v278_v12, %v278_v12  ;;  %v281_v11 = vld [vmem:[%s5459_s8 + $0x20] sm:$0x1f]  ;;  %s5285_s19 = scalar_lea.vmem %s5284_s18, 512 }
  0x1c   : > { %v395_v19 = vcombine.high %v279_v13, %v279_v13  ;;  %v402_v20 = vrot.slane %v279_v13, %v5461_v10  ;;  %v5473_v21 = vrot.slane %v280_v17, %v5461_v10  ;;  %v434_v22 = vcombine.high %v280_v17, %v280_v17  ;;  %5181 = vmatprep.subr.mxu1 %v6866_v2 }
  0x1d   : > { %v331_v23 = vrot.slane %v317_v14, %v5461_v10  ;;  %v332_v24 = vcombine.high %v324_v15, %v324_v15  ;;  %v5478_v25 = vrot.slane %v324_v15, %v5461_v10  ;;  %v371_v26 = vcombine.high %v363_v16, %v363_v16  ;;  %5185 = vmatpush3.msra.mxu1 %v1297_v9 }
  0x1e   : > { %v5481_v27 = vrot.slane %v363_v16, %v5461_v10  ;;  %v370_v28 = vrot.slane %v356_v18, %v5461_v10  ;;  %v409_v29 = vrot.slane %v395_v19, %v5461_v10  ;;  %v410_v30 = vcombine.high %v402_v20, %v402_v20  ;;  %5013 = vmatprep.mubr.msk.f32.mxu1 %vm5342_vm0, %v6866_v2 }
  0x1f   : > { %v5488_v31 = vrot.slane %v331_v23, %v5461_v10  ;;  %v5491_v32 = vrot.slane %v332_v24, %v5461_v10  ;;  %v5495_v33 = vcombine.high %v5478_v25, %v5478_v25  ;;  %v5498_v34 = vrot.slane %v371_v26, %v5461_v10 }
  0x20   : > { %v5502_v35 = vcombine.high %v5481_v27, %v5481_v27  ;;  %v1197_v36 = vmul.f32 %v5478_v25, %v5478_v25  ;;  %v1202_v37 = vmul.f32 %v5481_v27, %v5481_v27  ;;  %v5509_v38 = vrot.slane %v370_v28, %v5461_v10 }
  0x21   : > { %v5513_v39 = vcombine.high %v5491_v32, %v5491_v32  ;;  %v1198_v40 = vmul.f32 %v5491_v32, %v5491_v32  ;;  %v1199_v41 = vmul.f32 %v5495_v33, %v5495_v33  ;;  %v1201_v42 = vmul.f32 %v5488_v31, %v5488_v31 }
  0x22   : > { %v1203_v43 = vmul.f32 %v5498_v34, %v5498_v34  ;;  %v1204_v44 = vmul.f32 %v5502_v35, %v5502_v35  ;;  %v5527_v45 = vcombine.high %v5498_v34, %v5498_v34  ;;  %v5530_v46 = vrot.slane %v402_v20, %v5461_v10 }
  0x23   : > { %v1200_v47 = vmul.f32 %v5513_v39, %v5513_v39  ;;  %v1408_v48 = vcombine.low %v1197_v36, %v1198_v40  ;;  %v1410_v49 = vcombine.low %v1201_v42, %v1202_v37  ;;  %v5535_v50 = vrot.slane %v409_v29, %v5461_v10 }
  0x24   : > { %v1411_v51 = vcombine.low %v1203_v43, %v1204_v44  ;;  %v5538_v52 = vrot.slane %v410_v30, %v5461_v10  ;;  %v5542_v53 = vcombine.high %v5530_v46, %v5530_v46  ;;  %v5546_v54 = vrot.slane %v5473_v21, %v5461_v10 }
  0x25   : > { %v1409_v55 = vcombine.low %v1199_v41, %v1200_v47  ;;  %v1418_v56 = vrot.slane %v1408_v48, %v5461_v10  ;;  %v1432_v57 = vrot.slane %v1410_v49, %v5461_v10  ;;  %v1205_v58 = vmul.f32 %v5527_v45, %v5527_v45 }
  0x26   : > { %v1439_v59 = vrot.slane %v1411_v51, %v5461_v10  ;;  %v5555_v60 = vcombine.high %v5538_v52, %v5538_v52  ;;  %v1206_v61 = vmul.f32 %v5509_v38, %v5509_v38  ;;  %v1207_v62 = vmul.f32 %v5530_v46, %v5530_v46 }
  0x27   : > { %v1425_v63 = vrot.slane %v1409_v55, %v5461_v10  ;;  %v1208_v0 = vmul.f32 %v5538_v52, %v5538_v52  ;;  %v1209_v1 = vmul.f32 %v5542_v53, %v5542_v53  ;;  %v1211_v3 = vmul.f32 %v5535_v50, %v5535_v50 }
  0x28   : > { %v1441_v4 = vcombine.low %v1432_v57, %v1439_v59  ;;  %v1210_v5 = vmul.f32 %v5555_v60, %v5555_v60  ;;  %v1212_v6 = vmul.f32 %v5546_v54, %v5546_v54  ;;  %v1457_v7 = vcombine.low %v1205_v58, %v1206_v61  ;;  %v282_v57 = vld [vmem:[%s5459_s8 + $0x28] sm:$0x1f]  ;;  %v283_v61 = vld [vmem:[%s5459_s8 + $0x30] sm:$0x1f] }
  0x29   : > { %v1440_v8 = vcombine.low %v1418_v56, %v1425_v63  ;;  %v1458_v9 = vcombine.low %v1207_v62, %v1208_v0  ;;  %v448_v12 = vrot.slane %v434_v22, %v5461_v10  ;;  %v449_v13 = vcombine.high %v5473_v21, %v5473_v21 }
  0x2a   : > { %v1455_v14 = vrot.slane %v1441_v4, %v5461_v10  ;;  %v1459_v15 = vcombine.low %v1209_v1, %v1210_v5  ;;  %v1460_v16 = vcombine.low %v1211_v3, %v1212_v6  ;;  %v1467_v17 = vrot.slane %v1457_v7, %v5461_v10 }
  0x2b   : > { %v1448_v18 = vrot.slane %v1440_v8, %v5461_v10  ;;  %v1474_v19 = vrot.slane %v1458_v9, %v5461_v10  ;;  %v5581_v20 = vrot.slane %v448_v12, %v5461_v10  ;;  %v5584_v23 = vrot.slane %v449_v13, %v5461_v10 }
  0x2c   : > { %v1481_v22 = vrot.slane %v1459_v15, %v5461_v10  ;;  %v1488_v21 = vrot.slane %v1460_v16, %v5461_v10  ;;  %v5590_v24 = vcombine.high %v5546_v54, %v5546_v54  ;;  %v480_v26 = vrot.slane %v281_v11, %v5461_v10 }
  0x2d   : > { %v1456_v28 = vcombine.low %v1448_v18, %v1455_v14  ;;  %v1489_v29 = vcombine.low %v1467_v17, %v1474_v19  ;;  %v5595_v30 = vcombine.high %v5584_v23, %v5584_v23  ;;  %v1213_v36 = vmul.f32 %v5584_v23, %v5584_v23 }
  0x2e   : > { %v1490_v37 = vcombine.low %v1481_v22, %v1488_v21  ;;  %v488_v40 = vcombine.high %v480_v26, %v480_v26  ;;  %v5600_v41 = vrot.slane %v480_v26, %v5461_v10  ;;  %v1214_v42 = vmul.f32 %v5590_v24, %v5590_v24 }
  0x2f   : > { %4984 = vmatmul.mubr.msk.f32.vlgmr.msra.gmra.mxu0 %vm2020_vm1, %v1456_v28  ;;  %v1497_v43 = vrot.slane %v1489_v29, %v5461_v10  ;;  %v1215_v44 = vmul.f32 %v5595_v30, %v5595_v30  ;;  %v1216_v47 = vmul.f32 %v5581_v20, %v5581_v20  ;;  %v473_v48 = vcombine.high %v281_v11, %v281_v11 }
  0x30   : > { %6913 = vst [vmem:[#allocation5_spill] sm:$0xff] %v5600_v41  ;;  %4986 = vmatprep.mubr.msk.f32.mxu0 %vm5342_vm0, %v6866_v2  ;;  %v1504_v49 = vrot.slane %v1490_v37, %v5461_v10  ;;  %v5614_v51 = vrot.slane %v488_v40, %v5461_v10  ;;  %v5618_v55 = vcombine.high %v5600_v41, %v5600_v41 }
  0x31   : > { %v1217_v56 = vmul.f32 %v5600_v41, %v5600_v41  ;;  %v1506_v58 = vcombine.low %v1213_v36, %v1214_v42  ;;  %v1507_v59 = vcombine.low %v1215_v44, %v1216_v47  ;;  %v487_v62 = vrot.slane %v473_v48, %v5461_v10 }
  0x32   : > { %6914 = vst [vmem:[#allocation6_spill] sm:$0xff] %v5614_v51  ;;  %6915 = vst [vmem:[#allocation7_spill] sm:$0xff] %v5618_v55  ;;  %v512_v63 = vcombine.high %v282_v57, %v282_v57  ;;  %v1505_v0 = vcombine.low %v1497_v43, %v1504_v49  ;;  %v5627_v1 = vcombine.high %v5614_v51, %v5614_v51 }
  0x33   : > { %v1218_v3 = vmul.f32 %v5614_v51, %v5614_v51  ;;  %v1219_v4 = vmul.f32 %v5618_v55, %v5618_v55  ;;  %v1516_v5 = vrot.slane %v1506_v58, %v5461_v10  ;;  %v1523_v6 = vrot.slane %v1507_v59, %v5461_v10  ;;  %v284_v59 = vld [vmem:[%s5459_s8 + $0x38] sm:$0x1f] }
  0x34   : > { %6916 = vst [vmem:[#allocation8_spill] sm:$0xff] %v5627_v1  ;;  %v5636_v7 = vrot.slane %v487_v62, %v5461_v10  ;;  %v519_v8 = vrot.slane %v282_v57, %v5461_v10  ;;  %4987 = vmatmul.mubr.msk.f32.gmra.mxu0 %vm2020_vm1, %v1505_v0  ;;  %v1220_v9 = vmul.f32 %v5627_v1, %v5627_v1 }
  0x35   : > { %v1508_v11 = vcombine.low %v1217_v56, %v1218_v3  ;;  %v526_v12 = vrot.slane %v512_v63, %v5461_v10  ;;  %v558_v13 = vrot.slane %v283_v61, %v5461_v10  ;;  %4989 = vmatprep.mubr.msk.f32.mxu0 %vm5342_vm0, %v6866_v2  ;;  %v1538_v14 = vcombine.low %v1516_v5, %v1523_v6 }
  0x36   : > { %6917 = vst [vmem:[#allocation9_spill] sm:$0xff] %v5636_v7  ;;  %v527_v15 = vcombine.high %v519_v8, %v519_v8  ;;  %v5647_v16 = vrot.slane %v519_v8, %v5461_v10  ;;  %v1221_v17 = vmul.f32 %v5636_v7, %v5636_v7  ;;  %v1509_v18 = vcombine.low %v1219_v4, %v1220_v9 }
  0x37   : > { %v1530_v19 = vrot.slane %v1508_v11, %v5461_v10  ;;  %v541_v22 = vrot.slane %v526_v12, %v5461_v10  ;;  %v566_v21 = vcombine.high %v558_v13, %v558_v13  ;;  %v1546_v26 = vrot.slane %v1538_v14, %v5461_v10 }
  0x38   : > { %v5655_v28 = vrot.slane %v527_v15, %v5461_v10  ;;  %v5659_v29 = vcombine.high %v5647_v16, %v5647_v16  ;;  %v5662_v36 = vrot.slane %v558_v13, %v5461_v10  ;;  %v1537_v37 = vrot.slane %v1509_v18, %v5461_v10 }
  0x39   : > { %v5666_v40 = vrot.slane %v566_v21, %v5461_v10  ;;  %v1222_v42 = vmul.f32 %v5647_v16, %v5647_v16  ;;  %v1226_v43 = vmul.f32 %v541_v22, %v541_v22  ;;  %v551_v62 = vcombine.high %v283_v61, %v283_v61 }
  0x3a   : > { %v5672_v44 = vcombine.high %v5655_v28, %v5655_v28  ;;  %v1223_v47 = vmul.f32 %v5655_v28, %v5655_v28  ;;  %v1224_v48 = vmul.f32 %v5659_v29, %v5659_v29  ;;  %v1227_v49 = vmul.f32 %v5662_v36, %v5662_v36 }
  0x3b   : > { %v1539_v56 = vcombine.low %v1530_v19, %v1537_v37  ;;  %v1228_v57 = vmul.f32 %v5666_v40, %v5666_v40  ;;  %v1555_v58 = vcombine.low %v1221_v17, %v1222_v42  ;;  %v5687_v3 = vcombine.high %v5662_v36, %v5662_v36  ;;  %v285_v42 = vld [vmem:[%s5459_s8 + $0x40] sm:$0x1f] }
  0x3c   : > { %v1225_v63 = vmul.f32 %v5672_v44, %v5672_v44  ;;  %v1556_v0 = vcombine.low %v1223_v47, %v1224_v48  ;;  %v5691_v4 = vcombine.high %v5666_v40, %v5666_v40  ;;  %v565_v61 = vrot.slane %v551_v62, %v5461_v10 }
  0x3d   : > { %v1553_v5 = vrot.slane %v1539_v56, %v5461_v10  ;;  %v1558_v6 = vcombine.low %v1227_v49, %v1228_v57  ;;  %v1565_v8 = vrot.slane %v1555_v58, %v5461_v10  ;;  %v590_v12 = vcombine.high %v284_v59, %v284_v59 }
  0x3e   : > { %v1557_v9 = vcombine.low %v1225_v63, %v1226_v43  ;;  %v1572_v11 = vrot.slane %v1556_v0, %v5461_v10  ;;  %v597_v13 = vrot.slane %v284_v59, %v5461_v10  ;;  %v580_v17 = vrot.slane %v565_v61, %v5461_v10 }
  0x3f   : > { %v1554_v14 = vcombine.low %v1546_v26, %v1553_v5  ;;  %v1586_v15 = vrot.slane %v1558_v6, %v5461_v10  ;;  %v1229_v18 = vmul.f32 %v5687_v3, %v5687_v3  ;;  %v604_v21 = vrot.slane %v590_v12, %v5461_v10 }
  0x40   : > { %v1579_v19 = vrot.slane %v1557_v9, %v5461_v10  ;;  %v1587_v22 = vcombine.low %v1565_v8, %v1572_v11  ;;  %v605_v37 = vcombine.high %v597_v13, %v597_v13  ;;  %v5707_v43 = vrot.slane %v597_v13, %v5461_v10  ;;  %v286_v9 = vld [vmem:[%s5459_s8 + $0x48] sm:$0x1f] }
  0x41   : > { %4990 = vmatmul.mubr.msk.f32.gmra.mxu0 %vm2020_vm1, %v1554_v14  ;;  %v1230_v26 = vmul.f32 %v5691_v4, %v5691_v4  ;;  %v1231_v47 = vmul.f32 %v580_v17, %v580_v17  ;;  %v629_v48 = vcombine.high %v285_v42, %v285_v42  ;;  %v619_v57 = vrot.slane %v604_v21, %v5461_v10 }
  0x42   : > { %4992 = vmatprep.mubr.msk.f32.mxu0 %vm5342_vm0, %v6866_v2  ;;  %v1588_v49 = vcombine.low %v1579_v19, %v1586_v15  ;;  %v1595_v56 = vrot.slane %v1587_v22, %v5461_v10  ;;  %v5716_v58 = vrot.slane %v605_v37, %v5461_v10  ;;  %v5720_v59 = vcombine.high %v5707_v43, %v5707_v43 }
  0x43   : > { %v1232_v62 = vmul.f32 %v5707_v43, %v5707_v43  ;;  %v1604_v63 = vcombine.low %v1229_v18, %v1230_v26  ;;  %v636_v0 = vrot.slane %v285_v42, %v5461_v10  ;;  %v1236_v61 = vmul.f32 %v619_v57, %v619_v57 }
  0x44   : > { %v1602_v5 = vrot.slane %v1588_v49, %v5461_v10  ;;  %v5728_v6 = vcombine.high %v5716_v58, %v5716_v58  ;;  %v1233_v8 = vmul.f32 %v5716_v58, %v5716_v58  ;;  %v1234_v11 = vmul.f32 %v5720_v59, %v5720_v59 }
  0x45   : > { %v1605_v12 = vcombine.low %v1231_v47, %v1232_v62  ;;  %v1614_v13 = vrot.slane %v1604_v63, %v5461_v10  ;;  %v643_v14 = vrot.slane %v629_v48, %v5461_v10  ;;  %v644_v18 = vcombine.high %v636_v0, %v636_v0 }
  0x46   : > { %v1603_v15 = vcombine.low %v1595_v56, %v1602_v5  ;;  %v1235_v17 = vmul.f32 %v5728_v6, %v5728_v6  ;;  %v5740_v19 = vrot.slane %v636_v0, %v5461_v10  ;;  %v1606_v22 = vcombine.low %v1233_v8, %v1234_v11 }
  0x47   : > { %v1621_v21 = vrot.slane %v1605_v12, %v5461_v10  ;;  %v658_v37 = vrot.slane %v643_v14, %v5461_v10  ;;  %v675_v42 = vrot.slane %v286_v9, %v5461_v10  ;;  %v5747_v47 = vrot.slane %v644_v18, %v5461_v10 }
  0x48   : > { %4993 = vmatmul.mubr.msk.f32.gmra.mxu0 %vm2020_vm1, %v1603_v15  ;;  %v1607_v26 = vcombine.low %v1235_v17, %v1236_v61  ;;  %v5751_v48 = vcombine.high %v5740_v19, %v5740_v19  ;;  %v1237_v49 = vmul.f32 %v5740_v19, %v5740_v19  ;;  %v1628_v56 = vrot.slane %v1606_v22, %v5461_v10 }
  0x49   : > { %4995 = vmatprep.mubr.msk.f32.mxu0 %vm5342_vm0, %v6866_v2  ;;  %v1636_v57 = vcombine.low %v1614_v13, %v1621_v21  ;;  %v683_v62 = vcombine.high %v675_v42, %v675_v42  ;;  %v5759_v63 = vrot.slane %v675_v42, %v5461_v10  ;;  %v5764_v5 = vcombine.high %v5747_v47, %v5747_v47  ;;  %v287_v21 = vld [vmem:[%s5459_s8 + $0x50] sm:$0x1f] }
  0x4a   : > { %v1635_v0 = vrot.slane %v1607_v26, %v5461_v10  ;;  %v1238_v8 = vmul.f32 %v5747_v47, %v5747_v47  ;;  %v1239_v61 = vmul.f32 %v5751_v48, %v5751_v48  ;;  %v1241_v14 = vmul.f32 %v658_v37, %v658_v37 }
  0x4b   : > { %6918 = vst [vmem:[#allocation10_spill] sm:$0xff] %v5759_v63  ;;  %6919 = vst [vmem:[#allocation11_spill] sm:$0xff] %v5764_v5  ;;  %v1644_v11 = vrot.slane %v1636_v57, %v5461_v10  ;;  %v5772_v12 = vrot.slane %v683_v62, %v5461_v10  ;;  %v5776_v13 = vcombine.high %v5759_v63, %v5759_v63  ;;  %v288_v57 = vld [vmem:[%s5459_s8 + $0x58] sm:$0x1f] }
  0x4c   : > { %v1637_v15 = vcombine.low %v1628_v56, %v1635_v0  ;;  %v1240_v17 = vmul.f32 %v5764_v5, %v5764_v5  ;;  %v1242_v18 = vmul.f32 %v5759_v63, %v5759_v63  ;;  %v1653_v22 = vcombine.low %v1237_v49, %v1238_v8 }
  0x4d   : > { %6920 = vst [vmem:[#allocation12_spill] sm:$0xff] %v5772_v12  ;;  %6921 = vst [vmem:[#allocation13_spill] sm:$0xff] %v5776_v13  ;;  %v1243_v42 = vmul.f32 %v5772_v12, %v5772_v12  ;;  %v1244_v26 = vmul.f32 %v5776_v13, %v5776_v13  ;;  %v668_v62 = vcombine.high %v286_v9, %v286_v9 }
  0x4e   : > { %v5790_v37 = vcombine.high %v5772_v12, %v5772_v12  ;;  %v1651_v56 = vrot.slane %v1637_v15, %v5461_v10  ;;  %v1654_v0 = vcombine.low %v1239_v61, %v1240_v17  ;;  %v1655_v2 = vcombine.low %v1241_v14, %v1242_v18 }
  0x4f   : > { %v1663_v41 = vrot.slane %v1653_v22, %v5461_v10  ;;  %v1656_v49 = vcombine.low %v1243_v42, %v1244_v26  ;;  %v682_v8 = vrot.slane %v668_v62, %v5461_v10  ;;  %v707_v7 = vcombine.high %v287_v21, %v287_v21 }
  0x50   : > { %6922 = vst [vmem:[#allocation14_spill] sm:$0xff] %v5790_v37  ;;  %v714_v1 = vrot.slane %v287_v21, %v5461_v10  ;;  %v1652_v55 = vcombine.low %v1644_v11, %v1651_v56  ;;  %v1670_v51 = vrot.slane %v1654_v0, %v5461_v10  ;;  %v1677_v9 = vrot.slane %v1655_v2, %v5461_v10 }
  0x51   : > { %v753_v13 = vrot.slane %v288_v57, %v5461_v10  ;;  %v1684_v12 = vrot.slane %v1656_v49, %v5461_v10  ;;  %v697_v61 = vrot.slane %v682_v8, %v5461_v10  ;;  %v721_v14 = vrot.slane %v707_v7, %v5461_v10 }
  0x52   : > { %v722_v15 = vcombine.high %v714_v1, %v714_v1  ;;  %4996 = vmatmul.mubr.msk.f32.gmra.mxu0 %vm2020_vm1, %v1652_v55  ;;  %v1685_v17 = vcombine.low %v1663_v41, %v1670_v51  ;;  %v5804_v18 = vrot.slane %v714_v1, %v5461_v10  ;;  %v1245_v2 = vmul.f32 %v5790_v37, %v5790_v37 }
  0x53   : > { %v5807_v11 = vrot.slane %v753_v13, %v5461_v10  ;;  %v6925_v22 = vmov 0.0   ;;  %v1686_v21 = vcombine.low %v1677_v9, %v1684_v12  ;;  %v5814_v7 = vrot.slane %v721_v14, %v5461_v10  ;;  %v289_v9 = vld [vmem:[%s5459_s8 + $0x60] sm:$0x1f] }
  0x54   : > { %6923 = vst [vmem:[#allocation15_spill] sm:$0xff] %v5804_v18  ;;  %4998 = vmatprep.mubr.msk.f32.mxu0 %vm5342_vm0, %v6925_v22  ;;  %v5817_v55 = vrot.slane %v722_v15, %v5461_v10  ;;  %v1246_v41 = vmul.f32 %v697_v61, %v697_v61  ;;  %v1693_v51 = vrot.slane %v1685_v17, %v5461_v10 }
  0x55   : > { %6924 = vst [vmem:[#allocation16_spill] sm:$0xff] %v5807_v11  ;;  %6926 = vst [vmem:[#allocation17_spill] sm:$0xff] %v5814_v7  ;;  %v5822_v1 = vcombine.high %v5804_v18, %v5804_v18  ;;  %v1247_v42 = vmul.f32 %v5804_v18, %v5804_v18  ;;  %v1252_v26 = vmul.f32 %v5807_v11, %v5807_v11 }
  0x56   : > { %6927 = vst [vmem:[#allocation18_spill] sm:$0xff] %v5817_v55  ;;  %v1700_v12 = vrot.slane %v1686_v21, %v5461_v10  ;;  %v5831_v62 = vcombine.high %v5817_v55, %v5817_v55  ;;  %v1248_v56 = vmul.f32 %v5817_v55, %v5817_v55  ;;  %v1251_v0 = vmul.f32 %v5814_v7, %v5814_v7 }
  0x57   : > { %6928 = vst [vmem:[#allocation19_spill] sm:$0xff] %v5822_v1  ;;  %v1249_v49 = vmul.f32 %v5822_v1, %v5822_v1  ;;  %v1702_v8 = vcombine.low %v1245_v2, %v1246_v41  ;;  %v746_v61 = vcombine.high %v288_v57, %v288_v57  ;;  %v761_v14 = vcombine.high %v753_v13, %v753_v13 }
  0x58   : > { %6929 = vst [vmem:[#allocation20_spill] sm:$0xff] %v5831_v62  ;;  %v1701_v15 = vcombine.low %v1693_v51, %v1700_v12  ;;  %v1250_v17 = vmul.f32 %v5831_v62, %v5831_v62  ;;  %v1703_v21 = vcombine.low %v1247_v42, %v1248_v56  ;;  %v1705_v18 = vcombine.low %v1251_v0, %v1252_v26 }
  0x59   : > { %v1712_v37 = vrot.slane %v1702_v8, %v5461_v10  ;;  %v760_v55 = vrot.slane %v746_v61, %v5461_v10  ;;  %v5845_v63 = vrot.slane %v761_v14, %v5461_v10  ;;  %v5849_v7 = vcombine.high %v5807_v11, %v5807_v11 }
  0x5a   : > { %4999 = vmatmul.mubr.msk.f32.gmra.mxu0 %vm2020_vm1, %v1701_v15  ;;  %v1704_v13 = vcombine.low %v1249_v49, %v1250_v17  ;;  %v1719_v57 = vrot.slane %v1703_v21, %v5461_v10  ;;  %v1733_v2 = vrot.slane %v1705_v18, %v5461_v10  ;;  %v792_v41 = vrot.slane %v289_v9, %v5461_v10 }
  0x5b   : > { %6930 = vst [vmem:[#allocation21_spill] sm:$0xff] %v5845_v63  ;;  %6931 = vst [vmem:[#allocation22_spill] sm:$0xff] %v5849_v7  ;;  %5001 = vmatprep.mubr.msk.f32.mxu0 %vm5342_vm0, %v6925_v22  ;;  %v5858_v51 = vrot.slane %v760_v55, %v5461_v10  ;;  %v5862_v42 = vcombine.high %v5845_v63, %v5845_v63  ;;  %v1253_v26 = vmul.f32 %v5845_v63, %v5845_v63 }
  0x5c   : > { %v1254_v12 = vmul.f32 %v5849_v7, %v5849_v7  ;;  %v1726_v18 = vrot.slane %v1704_v13, %v5461_v10  ;;  %v1734_v56 = vcombine.low %v1712_v37, %v1719_v57  ;;  %v800_v0 = vcombine.high %v792_v41, %v792_v41  ;;  %v290_v13 = vld [vmem:[%s5459_s8 + $0x68] sm:$0x1f] }
  0x5d   : > { %6932 = vst [vmem:[#allocation23_spill] sm:$0xff] %v5858_v51  ;;  %6933 = vst [vmem:[#allocation24_spill] sm:$0xff] %v5862_v42  ;;  %v5870_v49 = vrot.slane %v792_v41, %v5461_v10  ;;  %v1255_v55 = vmul.f32 %v5862_v42, %v5862_v42  ;;  %v1256_v8 = vmul.f32 %v5858_v51, %v5858_v51  ;;  %v291_v51 = vld [vmem:[%s5459_s8 + $0x70] sm:$0x1f] }
  0x5e   : > { %v1751_v61 = vcombine.low %v1253_v26, %v1254_v12  ;;  %v785_v14 = vcombine.high %v289_v9, %v289_v9  ;;  %v1735_v15 = vcombine.low %v1726_v18, %v1733_v2  ;;  %v1742_v17 = vrot.slane %v1734_v56, %v5461_v10 }
  0x5f   : > { %6934 = vst [vmem:[#allocation25_spill] sm:$0xff] %v5870_v49  ;;  %v5878_v21 = vrot.slane %v800_v0, %v5461_v10  ;;  %v5882_v37 = vcombine.high %v5870_v49, %v5870_v49  ;;  %v1257_v57 = vmul.f32 %v5870_v49, %v5870_v49  ;;  %v1752_v41 = vcombine.low %v1255_v55, %v1256_v8 }
  0x60   : > { %v1761_v42 = vrot.slane %v1751_v61, %v5461_v10  ;;  %v799_v9 = vrot.slane %v785_v14, %v5461_v10  ;;  %v1749_v2 = vrot.slane %v1735_v15, %v5461_v10  ;;  %v824_v55 = vcombine.high %v290_v13, %v290_v13 }
  0x61   : > { %6935 = vst [vmem:[#allocation26_spill] sm:$0xff] %v5878_v21  ;;  %6936 = vst [vmem:[#allocation27_spill] sm:$0xff] %v5882_v37  ;;  %v5893_v26 = vcombine.high %v5878_v21, %v5878_v21  ;;  %v1258_v12 = vmul.f32 %v5878_v21, %v5878_v21  ;;  %v1259_v18 = vmul.f32 %v5882_v37, %v5882_v37 }
  0x62   : > { %v1768_v56 = vrot.slane %v1752_v41, %v5461_v10  ;;  %v5901_v0 = vrot.slane %v799_v9, %v5461_v10  ;;  %v831_v8 = vrot.slane %v290_v13, %v5461_v10  ;;  %v1750_v61 = vcombine.low %v1742_v17, %v1749_v2 }
  0x63   : > { %6937 = vst [vmem:[#allocation28_spill] sm:$0xff] %v5893_v26  ;;  %v1260_v14 = vmul.f32 %v5893_v26, %v5893_v26  ;;  %v1753_v15 = vcombine.low %v1257_v57, %v1258_v12  ;;  %v870_v49 = vrot.slane %v291_v51, %v5461_v10  ;;  %v838_v21 = vrot.slane %v824_v55, %v5461_v10  ;;  %v292_v26 = vld [vmem:[%s5459_s8 + $0x78] sm:$0x1f] }
  0x64   : > { %6938 = vst [vmem:[#allocation29_spill] sm:$0xff] %v5901_v0  ;;  %v1783_v7 = vcombine.low %v1761_v42, %v1768_v56  ;;  %v839_v63 = vcombine.high %v831_v8, %v831_v8  ;;  %v5909_v37 = vrot.slane %v831_v8, %v5461_v10  ;;  %5002 = vmatmul.mubr.msk.f32.gmra.mxu0 %vm2020_vm1, %v1750_v61 }
  0x65   : > { %v1754_v41 = vcombine.low %v1259_v18, %v1260_v14  ;;  %v1775_v9 = vrot.slane %v1753_v15, %v5461_v10  ;;  %v878_v13 = vcombine.high %v870_v49, %v870_v49  ;;  %v885_v17 = vrot.slane %v870_v49, %v5461_v10  ;;  %5004 = vmatprep.mubr.msk.f32.mxu0 %vm5342_vm0, %v6925_v22 }
  0x66   : > { %6939 = vst [vmem:[#allocation30_spill] sm:$0xff] %v5909_v37  ;;  %v1791_v57 = vrot.slane %v1783_v7, %v5461_v10  ;;  %v5918_v42 = vrot.slane %v838_v21, %v5461_v10  ;;  %v5921_v2 = vrot.slane %v839_v63, %v5461_v10  ;;  %v5925_v12 = vcombine.high %v5909_v37, %v5909_v37 }
  0x67   : > { %v1782_v18 = vrot.slane %v1754_v41, %v5461_v10  ;;  %v899_v49 = vrot.slane %v878_v13, %v5461_v10  ;;  %v1261_v56 = vmul.f32 %v5901_v0, %v5901_v0  ;;  %v1262_v7 = vmul.f32 %v5909_v37, %v5909_v37 }
  0x68   : > { %6940 = vst [vmem:[#allocation31_spill] sm:$0xff] %v5918_v42  ;;  %6941 = vst [vmem:[#allocation32_spill] sm:$0xff] %v5921_v2  ;;  %v5935_v21 = vcombine.high %v5921_v2, %v5921_v2  ;;  %v1263_v63 = vmul.f32 %v5921_v2, %v5921_v2  ;;  %v1264_v55 = vmul.f32 %v5925_v12, %v5925_v12 }
  0x69   : > { %6942 = vst [vmem:[#allocation33_spill] sm:$0xff] %v5925_v12  ;;  %v1266_v8 = vmul.f32 %v5918_v42, %v5918_v42  ;;  %v1784_v61 = vcombine.low %v1775_v9, %v1782_v18  ;;  %v1267_v14 = vmul.f32 %v885_v17, %v885_v17  ;;  %v1268_v15 = vmul.f32 %v899_v49, %v899_v49 }
  0x6a   : > { %v1800_v41 = vcombine.low %v1261_v56, %v1262_v7  ;;  %v1265_v13 = vmul.f32 %v5935_v21, %v5935_v21  ;;  %v1801_v0 = vcombine.low %v1263_v63, %v1264_v55  ;;  %v863_v37 = vcombine.high %v291_v51, %v291_v51 }
  0x6b   : > { %v900_v11 = vcombine.high %v885_v17, %v885_v17  ;;  %v1798_v62 = vrot.slane %v1784_v61, %v5461_v10  ;;  %v1803_v2 = vcombine.low %v1267_v14, %v1268_v15  ;;  %v901_v1 = vcombine.high %v899_v49, %v899_v49  ;;  %v293_v49 = vld [vmem:[%s5459_s8 + $0x80] sm:$0x1f] }
  0x6c   : > { %v1810_v12 = vrot.slane %v1800_v41, %v5461_v10  ;;  %v1802_v5 = vcombine.low %v1265_v13, %v1266_v8  ;;  %v1817_v9 = vrot.slane %v1801_v0, %v5461_v10  ;;  %v877_v18 = vrot.slane %v863_v37, %v5461_v10 }
  0x6d   : > { %v902_v56 = vcombine.high %v292_v26, %v292_v26  ;;  %v1799_v7 = vcombine.low %v1791_v57, %v1798_v62  ;;  %v1831_v42 = vrot.slane %v1803_v2, %v5461_v10  ;;  %v909_v63 = vrot.slane %v292_v26, %v5461_v10 }
  0x6e   : > { %v1269_v51 = vmul.f32 %v900_v11, %v900_v11  ;;  %v1824_v17 = vrot.slane %v1802_v5, %v5461_v10  ;;  %v1832_v55 = vcombine.low %v1810_v12, %v1817_v9  ;;  %v892_v61 = vrot.slane %v877_v18, %v5461_v10 }
  0x6f   : > { %v916_v14 = vrot.slane %v902_v56, %v5461_v10  ;;  %5005 = vmatmul.mubr.msk.f32.gmra.mxu0 %vm2020_vm1, %v1799_v7  ;;  %v917_v0 = vcombine.high %v909_v63, %v909_v63  ;;  %v5958_v37 = vrot.slane %v909_v63, %v5461_v10  ;;  %v1270_v62 = vmul.f32 %v901_v1, %v901_v1 }
  0x70   : > { %v941_v57 = vcombine.high %v293_v49, %v293_v49  ;;  %5007 = vmatprep.mubr.msk.f32.mxu0 %vm5342_vm0, %v6925_v22  ;;  %v1833_v11 = vcombine.low %v1824_v17, %v1831_v42  ;;  %v1840_v5 = vrot.slane %v1832_v55, %v5461_v10  ;;  %v1271_v2 = vmul.f32 %v892_v61, %v892_v61  ;;  %v294_v17 = vld [vmem:[%s5459_s8 + $0x88] sm:$0x1f] }
  0x71   : > { %6943 = vst [vmem:[#allocation34_spill] sm:$0xff] %v5958_v37  ;;  %v931_v26 = vrot.slane %v916_v14, %v5461_v10  ;;  %v5965_v12 = vrot.slane %v917_v0, %v5461_v10  ;;  %v5969_v8 = vcombine.high %v5958_v37, %v5958_v37  ;;  %v1272_v1 = vmul.f32 %v5958_v37, %v5958_v37 }
  0x72   : > { %v1849_v15 = vcombine.low %v1269_v51, %v1270_v62  ;;  %v1847_v41 = vrot.slane %v1833_v11, %v5461_v10  ;;  %v948_v13 = vrot.slane %v293_v49, %v5461_v10  ;;  %v955_v9 = vrot.slane %v941_v57, %v5461_v10 }
  0x73   : > { %6944 = vst [vmem:[#allocation35_spill] sm:$0xff] %v5969_v8  ;;  %v1276_v42 = vmul.f32 %v931_v26, %v931_v26  ;;  %v5978_v18 = vcombine.high %v5965_v12, %v5965_v12  ;;  %v1273_v56 = vmul.f32 %v5965_v12, %v5965_v12  ;;  %v1274_v7 = vmul.f32 %v5969_v8, %v5969_v8  ;;  %v296_v8 = vld [vmem:[%s5459_s8 + $0x98] sm:$0x1f] }
  0x74   : > { %v1850_v63 = vcombine.low %v1271_v2, %v1272_v1  ;;  %v1848_v51 = vcombine.low %v1840_v5, %v1847_v41  ;;  %v1859_v55 = vrot.slane %v1849_v15, %v5461_v10  ;;  %v956_v61 = vcombine.high %v948_v13, %v948_v13 }
  0x75   : > { %6945 = vst [vmem:[#allocation36_spill] sm:$0xff] %v5978_v18  ;;  %v5987_v14 = vrot.slane %v948_v13, %v5461_v10  ;;  %v1275_v49 = vmul.f32 %v5978_v18, %v5978_v18  ;;  %v1851_v0 = vcombine.low %v1273_v56, %v1274_v7  ;;  %v970_v57 = vrot.slane %v955_v9, %v5461_v10 }
  0x76   : > { %v1866_v62 = vrot.slane %v1850_v63, %v5461_v10  ;;  %5008 = vmatmul.mubr.msk.f32.gmra.mxu0 %vm2020_vm1, %v1848_v51  ;;  %v5995_v11 = vrot.slane %v956_v61, %v5461_v10  ;;  %v987_v26 = vrot.slane %v294_v17, %v5461_v10  ;;  %v980_v61 = vcombine.high %v294_v17, %v294_v17 }
  0x77   : > { %6946 = vst [vmem:[#allocation37_spill] sm:$0xff] %v5987_v14  ;;  %v5999_v5 = vcombine.high %v5987_v14, %v5987_v14  ;;  %v1277_v2 = vmul.f32 %v5987_v14, %v5987_v14  ;;  %5010 = vmatprep.mubr.msk.f32.mxu0 %vm5342_vm0, %v6925_v22  ;;  %v1852_v1 = vcombine.low %v1275_v49, %v1276_v42 }
  0x78   : > { %6947 = vst [vmem:[#allocation38_spill] sm:$0xff] %v5995_v11  ;;  %v1873_v15 = vrot.slane %v1851_v0, %v5461_v10  ;;  %v1881_v41 = vcombine.low %v1859_v55, %v1866_v62  ;;  %v1281_v13 = vmul.f32 %v970_v57, %v970_v57  ;;  %v6009_v9 = vcombine.high %v5995_v11, %v5995_v11 }
  0x79   : > { %6948 = vst [vmem:[#allocation39_spill] sm:$0xff] %v5999_v5  ;;  %v995_v56 = vcombine.high %v987_v26, %v987_v26  ;;  %v6012_v7 = vrot.slane %v987_v26, %v5461_v10  ;;  %v1278_v63 = vmul.f32 %v5995_v11, %v5995_v11  ;;  %v1880_v51 = vrot.slane %v1852_v1, %v5461_v10  ;;  %v295_v26 = vld [vmem:[%s5459_s8 + $0x90] sm:$0x1f]  ;;  %s4732_s8 = sshll.u32 %s271_s29, 4  ;;  %s6809_s8 = int_to_ptr.vmem [resolvable:$true] %s4732_s8 }
  0x7a   : > { %6949 = vst [vmem:[#allocation40_spill] sm:$0xff] %v6009_v9  ;;  %v1889_v42 = vrot.slane %v1881_v41, %v5461_v10  ;;  %v1279_v55 = vmul.f32 %v5999_v5, %v5999_v5  ;;  %v1280_v62 = vmul.f32 %v6009_v9, %v6009_v9  ;;  %v994_v11 = vrot.slane %v980_v61, %v5461_v10  ;;  %s5279_s28 = scalar_lea.vmem %s6809_s8, 256  ;;  %p5286_p0 = scmp.lt.s32.totalorder %s6809_s8, %s5284_s18 }
  0x7b   : > { %6950 = vst [vmem:[#allocation41_spill] sm:$0xff] %v6012_v7  ;;  %v6021_v49 = vrot.slane %v995_v56, %v5461_v10  ;;  %v6025_v0 = vcombine.high %v6012_v7, %v6012_v7  ;;  %v1282_v57 = vmul.f32 %v6012_v7, %v6012_v7  ;;  %v1882_v1 = vcombine.low %v1873_v15, %v1880_v51  ;;  %p5280_p11 = scmp.ne.s32.totalorder %s6809_s8, %s5279_s28  ;;  %p5287_p1 = scmp.lt.s32.totalorder %s5285_s19, %s5279_s28 }
  0x7c   : > { %v1898_v41 = vcombine.low %v1277_v2, %v1278_v63  ;;  %v1019_v5 = vcombine.high %v295_v26, %v295_v26  ;;  %v1899_v14 = vcombine.low %v1279_v55, %v1280_v62  ;;  %v1009_v7 = vrot.slane %v994_v11, %v5461_v10 }
  0x7d   : > { %6951 = vst [vmem:[#allocation42_spill] sm:$0xff] %v6025_v0  ;;  %v1283_v17 = vmul.f32 %v6021_v49, %v6021_v49  ;;  %v1284_v56 = vmul.f32 %v6025_v0, %v6025_v0  ;;  %v1900_v18 = vcombine.low %v1281_v13, %v1282_v57  ;;  %v1896_v9 = vrot.slane %v1882_v1, %v5461_v10  ;;  %p5281_p12 = pnand %p5280_p11, %p5425_p5  ;;  %p5288_p2 = por %p5287_p1, %p5286_p0 }
  0x7e   : > { %v1908_v37 = vrot.slane %v1898_v41, %v5461_v10  ;;  %v6043_v2 = vcombine.high %v6021_v49, %v6021_v49  ;;  %v1915_v63 = vrot.slane %v1899_v14, %v5461_v10  ;;  %v1026_v61 = vrot.slane %v295_v26, %v5461_v10 }
  0x7f   : > { %v1901_v15 = vcombine.low %v1283_v17, %v1284_v56  ;;  %v1922_v51 = vrot.slane %v1900_v18, %v5461_v10  ;;  %v1897_v55 = vcombine.low %v1889_v42, %v1896_v9  ;;  %v1033_v13 = vrot.slane %v1019_v5, %v5461_v10  ;;  %p5282_p13 = pneg %p5281_p12 }
  0x80   : > { %6952 = vst [vmem:[#allocation43_spill] sm:$0xff] %v6043_v2  ;;  %v1065_v62 = vrot.slane %v296_v8, %v5461_v10  ;;  %v1285_v57 = vmul.f32 %v6043_v2, %v6043_v2  ;;  %v1930_v1 = vcombine.low %v1908_v37, %v1915_v63  ;;  %v1034_v41 = vcombine.high %v1026_v61, %v1026_v61 }
  0x81   : > { %v1929_v11 = vrot.slane %v1901_v15, %v5461_v10  ;;  %v6054_v17 = vrot.slane %v1026_v61, %v5461_v10  ;;  %5011 = vmatmul.mubr.msk.f32.gmra.mxu0 %vm2020_vm1, %v1897_v55  ;;  %v1048_v18 = vrot.slane %v1033_v13, %v5461_v10  ;;  %v1286_v9 = vmul.f32 %v1009_v7, %v1009_v7  ;;  %p5289_p3 = pnand %p5288_p2, %p5282_p13 }
  0x82   : > { %v1080_v14 = vrot.slane %v1065_v62, %v5461_v10  ;;  %v1938_v42 = vrot.slane %v1930_v1, %v5461_v10  ;;  %v6061_v26 = vrot.slane %v1034_v41, %v5461_v10 }
  0x83   : > { %6953 = vst [vmem:[#allocation44_spill] sm:$0xff] %v6054_v17  ;;  %v1931_v5 = vcombine.low %v1922_v51, %v1929_v11  ;;  %v6065_v37 = vcombine.high %v6054_v17, %v6054_v17  ;;  %v1287_v56 = vmul.f32 %v6054_v17, %v6054_v17  ;;  %v1291_v15 = vmul.f32 %v1048_v18, %v1048_v18 }
  0x84   : > { %6954 = vst [vmem:[#allocation45_spill] sm:$0xff] %v6061_v26  ;;  %v1292_v63 = vmul.f32 %v1080_v14, %v1080_v14  ;;  %v1947_v61 = vcombine.low %v1285_v57, %v1286_v9  ;;  %v6072_v7 = vcombine.high %v6061_v26, %v6061_v26  ;;  %v1288_v51 = vmul.f32 %v6061_v26, %v6061_v26 }
  0x85   : > { %6955 = vst [vmem:[#allocation46_spill] sm:$0xff] %v6065_v37  ;;  %v1945_v55 = vrot.slane %v1931_v5, %v5461_v10  ;;  %v1289_v13 = vmul.f32 %v6065_v37, %v6065_v37 }
  0x86   : > { %6956 = vst [vmem:[#allocation47_spill] sm:$0xff] %v6072_v7  ;;  %v1950_v11 = vcombine.low %v1291_v15, %v1292_v63  ;;  %v1290_v41 = vmul.f32 %v6072_v7, %v6072_v7  ;;  %v1948_v18 = vcombine.low %v1287_v56, %v1288_v51  ;;  %v1957_v57 = vrot.slane %v1947_v61, %v5461_v10 }
  0x87   : > { %v1946_v1 = vcombine.low %v1938_v42, %v1945_v55  ;;  %v1058_v61 = vcombine.high %v296_v8, %v296_v8  ;;  %v1073_v51 = vcombine.high %v1065_v62, %v1065_v62  ;;  %v4817_v62 = vld [vmem:[%s6861_s3 + $0x38] sm:$0xff] }
  0x88   : > { %v1949_v9 = vcombine.low %v1289_v13, %v1290_v41  ;;  %v1964_v5 = vrot.slane %v1948_v18, %v5461_v10  ;;  %v1978_v17 = vrot.slane %v1950_v11, %v5461_v10  ;;  %v1095_v41 = vcombine.high %v1080_v14, %v1080_v14  ;;  %5022 = vmatprep.subr.mxu1 %v4817_v62  ;;  %v4816_v14 = vld [vmem:[%s6861_s3 + $0x30] sm:$0xff] }
  0x89   : > { %5014 = vmatmul.mubr.msk.f32.vlgmr.msra.gmra.mxu1 %vm2020_vm1, %v1946_v1  ;;  %v1072_v13 = vrot.slane %v1058_v61, %v5461_v10  ;;  %v1094_v11 = vrot.slane %v1073_v51, %v5461_v10  ;;  %v4854_v61 = vld [vmem:[%s6861_s3 + $0xf0] sm:$0xff]  ;;  %v4814_v51 = vld [vmem:[%s6861_s3 + $0x20] sm:$0xff] }
  0x8a   : > { %5016 = vmatprep.mubr.msk.f32.mxu1 %vm5342_vm0, %v6925_v22  ;;  %v1971_v26 = vrot.slane %v1949_v9, %v5461_v10  ;;  %v1979_v15 = vcombine.low %v1957_v57, %v1964_v5  ;;  %v1294_v18 = vmul.f32 %v1095_v41, %v1095_v41  ;;  %5023 = vmatpush3.msra.mxu1 %v4817_v62  ;;  %v6132_v41 = vld [vmem:[%s6862_s4 + $0x18] sm:$0xff] }
  0x8b   : > { %v1087_v1 = vrot.slane %v1072_v13, %v5461_v10  ;;  %5024 = vmatprep.subr.mxu1 %v4816_v14  ;;  %v4853_v13 = vld [vmem:[%s6861_s3 + $0xe8] sm:$0xff] }
  0x8c   : > { %v1980_v42 = vcombine.low %v1971_v26, %v1978_v17  ;;  %v1987_v63 = vrot.slane %v1979_v15, %v5461_v10  ;;  %v1096_v17 = vcombine.high %v1094_v11, %v1094_v11  ;;  %v1293_v26 = vmul.f32 %v1094_v11, %v1094_v11  ;;  %5025 = vmatpush3.msra.mxu1 %v4816_v14  ;;  %v6123_v11 = vld [vmem:[%s6861_s3 + $0x18] sm:$0xff] }
  0x8d   : > { %v1296_v9 = vmul.f32 %v1087_v1, %v1087_v1  ;;  %v4852_v1 = vld [vmem:[%s6861_s3 + $0xe0] sm:$0xff] }
  0x8e   : > { %v1994_v56 = vrot.slane %v1980_v42, %v5461_v10  ;;  %v1295_v57 = vmul.f32 %v1096_v17, %v1096_v17  ;;  %v1996_v5 = vcombine.low %v1293_v26, %v1294_v18  ;;  %v6138_v17 = vld [vmem:[%s6860_s2] ss:$0 sm:$0xff] }
  0x90   : > { %v1995_v55 = vcombine.low %v1987_v63, %v1994_v56  ;;  %v1997_v15 = vcombine.low %v1295_v57, %v1296_v9  ;;  %v2004_v42 = vrot.slane %v1996_v5, %v5461_v10  ;;  %v4855_v56 = vld [vmem:[%s6861_s3 + $0xf8] sm:$0xff] }
  0x91   : > { %5099 = vmatprep.subr.mxu0 %v4855_v56 }
  0x92   : > { %5017 = vmatmul.mubr.msk.f32.gmra.mxu1 %vm2020_vm1, %v1995_v55  ;;  %v4815_v55 = vld [vmem:[%s6861_s3 + $0x28] sm:$0xff]  ;;  %5100 = vmatpush3.msra.mxu0 %v4855_v56 }
  0x93   : > { %5019 = vmatprep.mubr.msk.f32.mxu1 %vm5342_vm0, %v6925_v22  ;;  %v2011_v22 = vrot.slane %v1997_v15, %v5461_v10  ;;  %5026 = vmatprep.subr.mxu1 %v4815_v55 }
  0x94   : > { %5027 = vmatpush3.msra.mxu1 %v4815_v55  ;;  %5101 = vmatprep.subr.mxu0 %v4854_v61 }
  0x95   : > { %v2012_v8 = vcombine.low %v2004_v42, %v2011_v22  ;;  %5028 = vmatprep.subr.mxu1 %v4814_v51  ;;  %5102 = vmatpush3.msra.mxu0 %v4854_v61 }
  0x96   : > { %5029 = vmatpush3.msra.mxu1 %v4814_v51  ;;  %5103 = vmatprep.subr.mxu0 %v4853_v13 }
  0x97   : > { %v2019_v63 = vrot.slane %v2012_v8, %v5461_v10  ;;  %5104 = vmatpush3.msra.mxu0 %v4853_v13  ;;  %5033 = vmatprep.subr.mxu1 %v6123_v11 }
  0x98   : > { %5105 = vmatprep.subr.mxu0 %v4852_v1 }
  0x99   : > { %5020 = vmatmul.mubr.msk.f32.gmra.mxu1 %vm2020_vm1, %v2019_v63  ;;  %5106 = vmatpush3.msra.mxu0 %v4852_v1 }
  0x9a   : > { %5121 = vmatprep.subr.mxu0 %v6132_v41 }
  0xef   : > { %v2113_v26 = vpop.f32.mrf.mxu0 }
  0xf0   : > { %v2114_v18 = vadd.f32 %v6138_v17, %v2113_v26 }
  0xf1   : > { %v4985_v57 = vpop.f32.mrf.mxu0 }
  0xf2   : > { %5251 = vrsqrt.f32 %v2114_v18 }
  0xf4   : > { %v2118_v9 = vpop.f32.mrf.mxu0 }
  0xf5   : > { %v2119_v5 = vadd.f32 %v6138_v17, %v2118_v9 }
  0xf6   : > { %v4988_v15 = vpop.f32.mrf.mxu0 }
  0xf7   : > { %5253 = vrsqrt.f32 %v2119_v5 }
  0xff   : > { %v5252_v42 = vpop.eup %5251 }
 0x100   : > { %v2200_v22 = vcombine.high %v5252_v42, %v5252_v42  ;;  %v2207_v8 = vrot.slane %v5252_v42, %v5461_v10 }
 0x101   : > { %v2123_v62 = vpop.f32.mrf.mxu0 }
 0x102   : > { %v2124_v63 = vadd.f32 %v6138_v17, %v2123_v62  ;;  %v2214_v14 = vrot.slane %v2200_v22, %v5461_v10  ;;  %v2215_v56 = vcombine.high %v2207_v8, %v2207_v8  ;;  %v2223_v55 = vrot.slane %v2207_v8, %v5461_v10 }
 0x103   : > { %v4991_v61 = vpop.f32.mrf.mxu0 }
 0x104   : > { %5255 = vrsqrt.f32 %v2124_v63  ;;  %v5254_v51 = vpop.eup %5253  ;;  %v2216_v13 = vcombine.high %v2214_v14, %v2214_v14  ;;  %v2230_v1 = vrot.slane %v2214_v14, %v5461_v10  ;;  %v2237_v26 = vrot.slane %v2215_v56, %v5461_v10 }
 0x105   : > { %v2249_v18 = vcombine.high %v5254_v51, %v5254_v51  ;;  %v2256_v57 = vrot.slane %v5254_v51, %v5461_v10  ;;  %v2245_v9 = vcombine.high %v2223_v55, %v2223_v55 }
 0x106   : > { %v2244_v5 = vrot.slane %v2216_v13, %v5461_v10  ;;  %v2247_v15 = vcombine.high %v2237_v26, %v2237_v26  ;;  %v2246_v63 = vcombine.high %v2230_v1, %v2230_v1  ;;  %v2854_v13 = vmul.f32 %v2223_v55, %v5478_v25 }
 0x107   : > { %v2263_v42 = vrot.slane %v2249_v18, %v5461_v10  ;;  %v2264_v22 = vcombine.high %v2256_v57, %v2256_v57  ;;  %v2272_v8 = vrot.slane %v2256_v57, %v5461_v10  ;;  %v6159_v2 = vmul.f32 %v2237_v26, %v5491_v32 }
 0x108   : > { %v2128_v62 = vpop.f32.mrf.mxu0  ;;  %v2248_v7 = vcombine.high %v2244_v5, %v2244_v5  ;;  %v6154_v14 = vmul.f32 %v2247_v15, %v5513_v39  ;;  %v6162_v18 = vmul.f32 %v2245_v9, %v5495_v33  ;;  %v2859_v57 = vmul.f32 %v2244_v5, %v5481_v27 }
 0x109   : > { %v2129_v61 = vadd.f32 %v6138_v17, %v2128_v62  ;;  %v2265_v56 = vcombine.high %v2263_v42, %v2263_v42  ;;  %v2286_v51 = vrot.slane %v2264_v22, %v5461_v10  ;;  %v6170_v22 = vmul.f32 %v2246_v63, %v5498_v34 }
 0x10a   : > { %v4994_v37 = vpop.f32.mrf.mxu0  ;;  %v6166_v62 = vmul.f32 %v2248_v7, %v5502_v35  ;;  %v6173_v25 = vmul.f32 %v2272_v8, %v5527_v45  ;;  %v6176_v32 = vrot.slane %v2263_v42, %v5461_v10  ;;  %v3154_v33 = vcombine.low %v6162_v18, %v6154_v14 }
 0x10b   : > { %5257 = vrsqrt.f32 %v2129_v61  ;;  %v2293_v39 = vrot.slane %v2265_v56, %v5461_v10  ;;  %v2296_v15 = vcombine.high %v2286_v51, %v2286_v51  ;;  %v2294_v37 = vcombine.high %v2272_v8, %v2272_v8 }
 0x10c   : > { %v3153_v27 = vcombine.low %v2854_v13, %v6159_v2  ;;  %v3156_v35 = vcombine.low %v6166_v62, %v6173_v25  ;;  %v3155_v45 = vcombine.low %v2859_v57, %v6170_v22  ;;  %v3170_v55 = vrot.slane %v3154_v33, %v5461_v10 }
 0x10d   : > { %v6184_v7 = vmul.f32 %v2296_v15, %v5538_v52  ;;  %v6187_v34 = vmul.f32 %v2293_v39, %v5555_v60  ;;  %v2864_v9 = vmul.f32 %v2294_v37, %v5530_v46  ;;  %v6194_v5 = vmul.f32 %v6176_v32, %v5542_v53 }
 0x10e   : > { %v3163_v52 = vrot.slane %v3153_v27, %v5461_v10  ;;  %v3184_v63 = vrot.slane %v3156_v35, %v5461_v10  ;;  %v2297_v60 = vcombine.high %v2293_v39, %v2293_v39  ;;  %v3177_v15 = vrot.slane %v3155_v45, %v5461_v10 }
 0x10f   : > { %v3202_v56 = vcombine.low %v2864_v9, %v6184_v7  ;;  %v3203_v13 = vcombine.low %v6194_v5, %v6187_v34  ;;  %v2295_v9 = vcombine.high %v6176_v32, %v6176_v32 }
 0x110   : > { %v3185_v37 = vcombine.low %v3163_v52, %v3170_v55  ;;  %v3186_v35 = vcombine.low %v3177_v15, %v3184_v63  ;;  %v2869_v0 = vmul.f32 %v2297_v60, %v5546_v54  ;;  %v3339_v52 = vcombine.low %v6159_v2, %v6162_v18 }
 0x111   : > { %v5256_v26 = vpop.eup %5255 }
 0x112   : > { %v2305_v42 = vrot.slane %v5256_v26, %v5461_v10  ;;  %v2133_v8 = vpop.f32.mrf.mxu0  ;;  %v2298_v33 = vcombine.high %v5256_v26, %v5256_v26  ;;  %v3193_v55 = vrot.slane %v3185_v37, %v5461_v10  ;;  %v2863_v26 = vmul.f32 %v2286_v51, %v5509_v38 }
 0x113   : > { %v2134_v61 = vadd.f32 %v6138_v17, %v2133_v8  ;;  %v2858_v8 = vmul.f32 %v2230_v1, %v5488_v31 }
 0x114   : > { %v2313_v46 = vcombine.high %v2305_v42, %v2305_v42  ;;  %v2321_v57 = vrot.slane %v2305_v42, %v5461_v10  ;;  %v4997_v53 = vpop.f32.mrf.mxu0  ;;  %v3212_v42 = vrot.slane %v3202_v56, %v5461_v10  ;;  %v6220_v31 = vrot.slane %v2298_v33, %v5461_v10 }
 0x115   : > { %5259 = vrsqrt.f32 %v2134_v61  ;;  %v3219_v53 = vrot.slane %v3203_v13, %v5461_v10  ;;  %v3340_v63 = vcombine.low %v6154_v14, %v2858_v8  ;;  %v3341_v61 = vcombine.low %v6170_v22, %v6166_v62 }
 0x116   : > { %v6206_v27 = vrot.slane %v2313_v46, %v5461_v10  ;;  %v2343_v39 = vcombine.high %v2321_v57, %v2321_v57  ;;  %v6234_v14 = vrot.slane %v3186_v35, %v5461_v10  ;;  %v6241_v22 = vmul.f32 %v2321_v57, %v5584_v23 }
 0x117   : > { %v3234_v62 = vcombine.low %v3212_v42, %v3219_v53  ;;  %v2314_v35 = vcombine.high %v6220_v31, %v6220_v31  ;;  %v6255_v23 = vrot.slane %v6220_v31, %v5461_v10  ;;  %v6965_v31 = vld [vmem:[#allocation20_spill] sm:$0xff] }
 0x118   : > { %v5258_v45 = vpop.eup %5257  ;;  %v6227_v56 = vmul.f32 %v6206_v27, %v5590_v24  ;;  %v6230_v38 = vmul.f32 %v2343_v39, %v5595_v30  ;;  %v3342_v24 = vcombine.low %v6173_v25, %v2863_v26  ;;  %v6245_v30 = vrot.slane %v3339_v52, %v5461_v10 }
 0x119   : > { %v2347_v1 = vcombine.high %v5258_v45, %v5258_v45  ;;  %v2354_v54 = vrot.slane %v5258_v45, %v5461_v10  ;;  %v3204_v25 = vcombine.low %v2869_v0, %v6241_v22  ;;  %v6262_v45 = vcombine.low %v3193_v55, %v6234_v14 }
 0x11a   : > { %v2138_v60 = vpop.f32.mrf.mxu0  ;;  %v3205_v57 = vcombine.low %v6227_v56, %v6230_v38 }
 0x11b   : > { %v2139_v2 = vadd.f32 %v6138_v17, %v2138_v60  ;;  %v2361_v51 = vrot.slane %v2347_v1, %v5461_v10  ;;  %v2362_v18 = vcombine.high %v2354_v54, %v2354_v54  ;;  %v6238_v13 = vrot.slane %v2354_v54, %v5461_v10 }
 0x11c   : > { %v5000_v46 = vpop.f32.mrf.mxu0  ;;  %v6267_v1 = vrot.slane %v3234_v62, %v5461_v10  ;;  %v6270_v54 = vrot.slane %v3340_v63, %v5461_v10  ;;  %v6285_v63 = vrot.slane %v3342_v24, %v5461_v10 }
 0x11d   : > { %5261 = vrsqrt.f32 %v2139_v2  ;;  %v2363_v15 = vcombine.high %v2361_v51, %v2361_v51  ;;  %v2377_v37 = vrot.slane %v2361_v51, %v5461_v10  ;;  %v2384_v33 = vrot.slane %v2362_v18, %v5461_v10 }
 0x11e   : > { %v2392_v39 = vcombine.high %v6238_v13, %v6238_v13  ;;  %v6275_v51 = vrot.slane %v3341_v61, %v5461_v10 }
 0x11f   : > { %v2391_v8 = vrot.slane %v2363_v15, %v5461_v10  ;;  %v2393_v42 = vcombine.high %v2377_v37, %v2377_v37  ;;  %v2394_v53 = vcombine.high %v2384_v33, %v2384_v33  ;;  %v2879_v26 = vmul.f32 %v2384_v33, %v5647_v16 }
 0x120   : > { %v2880_v52 = vmul.f32 %v2392_v39, %v5655_v28  ;;  %v2882_v2 = vmul.f32 %v2377_v37, %v5672_v44  ;;  %v6279_v16 = vrot.slane %v3204_v25, %v5461_v10  ;;  %v6282_v28 = vrot.slane %v3205_v57, %v5461_v10 }
 0x121   : > { %v2395_v0 = vcombine.high %v2391_v8, %v2391_v8  ;;  %v2881_v60 = vmul.f32 %v2394_v53, %v5659_v29  ;;  %v2883_v18 = vmul.f32 %v2393_v42, %v5662_v36  ;;  %v2345_v15 = vcombine.high %v6206_v27, %v6206_v27 }
 0x122   : > { %v5260_v55 = vpop.eup %5259  ;;  %v2960_v37 = vcombine.low %v2879_v26, %v2880_v52  ;;  %v3371_v33 = vcombine.low %v6245_v30, %v6270_v54  ;;  %v3235_v42 = vcombine.low %v6279_v16, %v6282_v28  ;;  %v3372_v27 = vcombine.low %v6275_v51, %v6285_v63  ;;  %v2936_v16 = vld [vmem:[%s6861_s3 + $0x8] sm:$0xff] }
 0x123   : > { %v2396_v46 = vcombine.high %v5260_v55, %v5260_v55  ;;  %v2403_v29 = vrot.slane %v5260_v55, %v5461_v10  ;;  %v2884_v44 = vmul.f32 %v2395_v0, %v5666_v40  ;;  %v2961_v61 = vcombine.low %v2881_v60, %v2882_v2 }
 0x124   : > { %v2143_v62 = vpop.f32.mrf.mxu0  ;;  %v6307_v0 = vmul.f32 %v2295_v9, %v5535_v50  ;;  %v2970_v2 = vrot.slane %v2960_v37, %v5461_v10  ;;  %v6399_v51 = vrot.slane %v3371_v33, %v5461_v10 }
 0x125   : > { %v2144_v36 = vadd.f32 %v6138_v17, %v2143_v62  ;;  %v2410_v39 = vrot.slane %v2396_v46, %v5461_v10  ;;  %v2411_v24 = vcombine.high %v2403_v29, %v2403_v29  ;;  %v2419_v25 = vrot.slane %v2403_v29, %v5461_v10 }
 0x126   : > { %v5003_v57 = vpop.f32.mrf.mxu0  ;;  %v2962_v8 = vcombine.low %v2883_v18, %v2884_v44  ;;  %v2977_v40 = vrot.slane %v2961_v61, %v5461_v10  ;;  %v6313_v18 = vmul.f32 %v2345_v15, %v5581_v20 }
 0x127   : > { %5263 = vrsqrt.f32 %v2144_v36  ;;  %v2412_v53 = vcombine.high %v2410_v39, %v2410_v39  ;;  %v2426_v26 = vrot.slane %v2410_v39, %v5461_v10  ;;  %v2433_v52 = vrot.slane %v2411_v24, %v5461_v10 }
 0x128   : > { %v2885_v60 = vmul.f32 %v2419_v25, %v5687_v3  ;;  %v2984_v55 = vrot.slane %v2962_v8, %v5461_v10  ;;  %v2992_v32 = vcombine.low %v2970_v2, %v2977_v40  ;;  %v3388_v25 = vcombine.low %v6184_v7, %v6194_v5 }
 0x129   : > { %v2886_v29 = vmul.f32 %v2433_v52, %v5691_v4  ;;  %v2440_v62 = vrot.slane %v2412_v53, %v5461_v10  ;;  %v2441_v44 = vcombine.high %v2426_v26, %v2426_v26  ;;  %v2442_v61 = vcombine.high %v2433_v52, %v2433_v52 }
 0x12a   : > { %v5262_v46 = vpop.eup %5261  ;;  %v2888_v3 = vmul.f32 %v2426_v26, %v5716_v58  ;;  %v3000_v7 = vrot.slane %v2992_v32, %v5461_v10  ;;  %v3390_v32 = vcombine.low %v6241_v22, %v6227_v56 }
 0x12b   : > { %v2443_v36 = vcombine.high %v5262_v46, %v5262_v46  ;;  %v2450_v50 = vrot.slane %v5262_v46, %v5461_v10  ;;  %v2963_v9 = vcombine.low %v2885_v60, %v2886_v29  ;;  %v2887_v37 = vmul.f32 %v2442_v61, %v5707_v43 }
 0x12c   : > { %v2889_v39 = vmul.f32 %v2440_v62, %v5720_v59  ;;  %v2890_v20 = vmul.f32 %v2441_v44, %v5728_v6  ;;  %v3389_v43 = vcombine.low %v6187_v34, %v6307_v0 }
 0x12d   : > { %v2457_v15 = vrot.slane %v2443_v36, %v5461_v10  ;;  %v2458_v4 = vcombine.high %v2450_v50, %v2450_v50  ;;  %v2466_v24 = vrot.slane %v2450_v50, %v5461_v10  ;;  %v2991_v8 = vrot.slane %v2963_v9, %v5461_v10 }
 0x12e   : > { %v3009_v40 = vcombine.low %v2887_v37, %v2888_v3  ;;  %v3010_v58 = vcombine.low %v2889_v39, %v2890_v20  ;;  %v3391_v3 = vcombine.low %v6230_v38, %v6313_v18 }
 0x12f   : > { %v2148_v57 = vpop.f32.mrf.mxu0  ;;  %v2459_v53 = vcombine.high %v2457_v15, %v2457_v15  ;;  %v2473_v59 = vrot.slane %v2457_v15, %v5461_v10  ;;  %v2480_v6 = vrot.slane %v2458_v4, %v5461_v10  ;;  %v2488_v26 = vcombine.high %v2466_v24, %v2466_v24 }
 0x130   : > { %v2149_v52 = vadd.f32 %v6138_v17, %v2148_v57  ;;  %v2993_v2 = vcombine.low %v2984_v55, %v2991_v8  ;;  %v3019_v5 = vrot.slane %v3009_v40, %v5461_v10  ;;  %v2891_v62 = vmul.f32 %v2466_v24, %v5740_v19  ;;  %v6957_v55 = vld [vmem:[#allocation11_spill] sm:$0xff]  ;;  %v6958_v57 = vld [vmem:[#allocation10_spill] sm:$0xff]  ;;  %v6959_v40 = vld [vmem:[#allocation12_spill] sm:$0xff] }
 0x131   : > { %v5006_v60 = vpop.f32.mrf.mxu0  ;;  %v2487_v46 = vrot.slane %v2459_v53, %v5461_v10  ;;  %v2490_v29 = vcombine.high %v2480_v6, %v2480_v6  ;;  %v2892_v34 = vmul.f32 %v2480_v6, %v5747_v47  ;;  %v2489_v0 = vcombine.high %v2473_v59, %v2473_v59 }
 0x132   : > { %5265 = vrsqrt.f32 %v2149_v52  ;;  %v3007_v44 = vrot.slane %v2993_v2, %v5461_v10  ;;  %v3026_v61 = vrot.slane %v3010_v58, %v5461_v10  ;;  %v2893_v36 = vmul.f32 %v2488_v26, %v5751_v48 }
 0x133   : > { %v2894_v50 = vmul.f32 %v2490_v29, %v6957_v55  ;;  %v2491_v19 = vcombine.high %v2487_v46, %v2487_v46  ;;  %v3011_v47 = vcombine.low %v2891_v62, %v2892_v34  ;;  %v6347_v48 = vrot.slane %v3388_v25, %v5461_v10  ;;  %v6960_v25 = vld [vmem:[#allocation13_spill] sm:$0xff]  ;;  %v6961_v62 = vld [vmem:[#allocation14_spill] sm:$0xff] }
 0x134   : > { %v5264_v9 = vpop.eup %5263  ;;  %v3008_v37 = vcombine.low %v3000_v7, %v3007_v44  ;;  %v3041_v39 = vcombine.low %v3019_v5, %v3026_v61  ;;  %v2895_v8 = vmul.f32 %v2487_v46, %v6958_v57  ;;  %v2896_v56 = vmul.f32 %v2489_v0, %v6959_v40 }
 0x135   : > { %v2492_v20 = vcombine.high %v5264_v9, %v5264_v9  ;;  %v2499_v15 = vrot.slane %v5264_v9, %v5461_v10  ;;  %v3012_v24 = vcombine.low %v2893_v36, %v2894_v50  ;;  %v2897_v26 = vmul.f32 %v2491_v19, %v6960_v25  ;;  %v6962_v50 = vld [vmem:[#allocation15_spill] sm:$0xff] }
 0x136   : > { %v2153_v4 = vpop.f32.mrf.mxu0  ;;  %5030 = vmatprep.mubr.msk.f32.mxu1 %vm2020_vm1, %v3008_v37  ;;  %v3049_v38 = vrot.slane %v3041_v39, %v5461_v10  ;;  %v3033_v52 = vrot.slane %v3011_v47, %v5461_v10  ;;  %v3405_v46 = vrot.slane %v3389_v43, %v5461_v10  ;;  %v4232_v61 = vcombine.low %v2895_v8, %v2896_v56  ;;  %v6963_v47 = vld [vmem:[#allocation19_spill] sm:$0xff] }
 0x137   : > { %v2154_v22 = vadd.f32 %v6138_v17, %v2153_v4  ;;  %v2506_v18 = vrot.slane %v2492_v20, %v5461_v10  ;;  %v2507_v58 = vcombine.high %v2499_v15, %v2499_v15  ;;  %v2515_v53 = vrot.slane %v2499_v15, %v5461_v10  ;;  %v6964_v15 = vld [vmem:[#allocation18_spill] sm:$0xff] }
 0x138   : > { %v5009_v59 = vpop.f32.mrf.mxu0  ;;  %v3040_v6 = vrot.slane %v3012_v24, %v5461_v10  ;;  %v4231_v60 = vcombine.low %v3007_v44, %v3049_v38  ;;  %v3419_v36 = vrot.slane %v3391_v3, %v5461_v10  ;;  %v6373_v43 = vrot.slane %v2314_v35, %v5461_v10 }
 0x139   : > { %5267 = vrsqrt.f32 %v2154_v22  ;;  %v2508_v2 = vcombine.high %v2506_v18, %v2506_v18  ;;  %v2529_v7 = vrot.slane %v2507_v58, %v5461_v10  ;;  %v2537_v5 = vcombine.high %v2515_v53, %v2515_v53 }
 0x13a   : > { %v6362_v29 = vrot.slane %v2506_v18, %v5461_v10  ;;  %v2898_v34 = vmul.f32 %v2515_v53, %v6961_v62  ;;  %v3042_v0 = vcombine.low %v3033_v52, %v3040_v6  ;;  %5107 = vmatprep.mubr.msk.f32.mxu0 %vm2020_vm1, %v4231_v60  ;;  %v6384_v3 = vrot.slane %v3372_v27, %v5461_v10  ;;  %v2937_v27 = vld [vmem:[%s6861_s3 + $0x10] sm:$0xff] }
 0x13b   : > { %v2536_v55 = vrot.slane %v2508_v2, %v5461_v10  ;;  %v2539_v44 = vcombine.high %v2529_v7, %v2529_v7  ;;  %v2899_v9 = vmul.f32 %v2537_v5, %v6962_v50  ;;  %v3412_v20 = vrot.slane %v3390_v32, %v5461_v10 }
 0x13c   : > { %v4233_v19 = vcombine.low %v2897_v26, %v2898_v34  ;;  %v3056_v37 = vrot.slane %v3042_v0, %v5461_v10  ;;  %v6378_v39 = vmul.f32 %v6362_v29, %v6963_v47  ;;  %v4240_v57 = vrot.slane %v4232_v61, %v5461_v10  ;;  %v6966_v61 = vld [vmem:[#allocation16_spill] sm:$0xff]  ;;  %v4453_v47 = vld [vmem:[%s6862_s4 + $0x10] sm:$0xff] }
 0x13d   : > { %v6388_v4 = vmul.f32 %v2539_v44, %v6964_v15  ;;  %v6391_v35 = vmul.f32 %v2536_v55, %v6965_v31  ;;  %v6408_v32 = vrot.slane %v3235_v42, %v5461_v10  ;;  %v3420_v40 = vcombine.low %v6347_v48, %v3405_v46  ;;  %v4825_v31 = vld [vmem:[%s6861_s3 + $0x58] sm:$0xff] }
 0x13e   : > { %v3057_v24 = vcombine.low %v3049_v38, %v3056_v37  ;;  %v4247_v8 = vrot.slane %v4233_v19, %v5461_v10  ;;  %v3421_v56 = vcombine.low %v3412_v20, %v3419_v36  ;;  %v3387_v28 = vcombine.low %v6399_v51, %v6384_v3 }
 0x13f   : > { %v5266_v63 = vpop.eup %5265  ;;  %v3539_v22 = vcombine.low %v2899_v9, %v6388_v4  ;;  %v3540_v18 = vcombine.low %v6378_v39, %v6391_v35  ;;  %v2540_v42 = vcombine.high %v2536_v55, %v2536_v55  ;;  %v6433_v26 = vcombine.low %v6267_v1, %v6408_v32  ;;  %v6967_v55 = vld [vmem:[#allocation21_spill] sm:$0xff] }
 0x140   : > { %v2541_v38 = vcombine.high %v5266_v63, %v5266_v63  ;;  %v2548_v30 = vrot.slane %v5266_v63, %v5461_v10  ;;  %v4248_v33 = vcombine.low %v4240_v57, %v4247_v8  ;;  %5031 = vmatmul.mubr.msk.f32.vlgmr.msra.gmra.mxu1 %vm2020_vm1, %v3057_v24  ;;  %v6436_v52 = vrot.slane %v3420_v40, %v5461_v10  ;;  %v6968_v24 = vld [vmem:[#allocation22_spill] sm:$0xff]  ;;  %v6969_v8 = vld [vmem:[#allocation24_spill] sm:$0xff] }
 0x141   : > { %v2158_v54 = vpop.f32.mrf.mxu0  ;;  %5034 = vmatpush3.msra.mxu1 %v6123_v11  ;;  %5041 = vmatprep.mubr.msk.f32.mxu1 %vm2020_vm1, %v6262_v45  ;;  %v2935_v11 = vld [vmem:[%s6861_s3] sm:$0xff]  ;;  %v6439_v60 = vrot.slane %v3421_v56, %v5461_v10  ;;  %v6442_v5 = vrot.slane %v3539_v22, %v5461_v10  ;;  %v6445_v46 = vrot.slane %v3540_v18, %v5461_v10  ;;  %v4452_v56 = vld [vmem:[%s6862_s4 + $0x8] sm:$0xff] }
 0x142   : > { %v2159_v58 = vadd.f32 %v6138_v17, %v2158_v54  ;;  %v2555_v48 = vrot.slane %v2541_v38, %v5461_v10  ;;  %v2556_v53 = vcombine.high %v2548_v30, %v2548_v30  ;;  %v2564_v59 = vrot.slane %v2548_v30, %v5461_v10  ;;  %5035 = vmatprep.subr.mxu1 %v2937_v27  ;;  %v4451_v18 = vld [vmem:[%s6862_s4] sm:$0xff] }
 0x143   : > { %v5012_v6 = vpop.f32.mrf.mxu0  ;;  %v4255_v25 = vrot.slane %v4248_v33, %v5461_v10  ;;  %5036 = vmatpush3.msra.mxu1 %v2937_v27  ;;  %v2904_v36 = vmul.f32 %v2540_v42, %v6966_v61  ;;  %v2538_v20 = vcombine.high %v6362_v29, %v6362_v29  ;;  %v3571_v22 = vcombine.low %v6442_v5, %v6445_v46  ;;  %v6971_v5 = vld [vmem:[#allocation30_spill] sm:$0xff]  ;;  %v4837_v29 = vld [vmem:[%s6861_s3 + $0x98] sm:$0xff] }
 0x144   : > { %5269 = vrsqrt.f32 %v2159_v58  ;;  %v2557_v2 = vcombine.high %v2555_v48, %v2555_v48  ;;  %v2586_v7 = vcombine.high %v2564_v59, %v2564_v59  ;;  %5037 = vmatprep.subr.mxu1 %v2936_v16  ;;  %v6448_v34 = vrot.slane %v2556_v53, %v5461_v10  ;;  %v4824_v58 = vld [vmem:[%s6861_s3 + $0x50] sm:$0xff] }
 0x145   : > { %v4256_v0 = vcombine.low %v3056_v37, %v4255_v25  ;;  %5038 = vmatpush3.msra.mxu1 %v2936_v16  ;;  %v6452_v44 = vmul.f32 %v2564_v59, %v6967_v55  ;;  %v2571_v50 = vrot.slane %v2555_v48, %v5461_v10  ;;  %v6970_v59 = vld [vmem:[#allocation25_spill] sm:$0xff] }
 0x146   : > { %v5268_v62 = vpop.eup %5267  ;;  %v2585_v9 = vrot.slane %v2557_v2, %v5461_v10  ;;  %5039 = vmatprep.subr.mxu1 %v2935_v11  ;;  %v6468_v57 = vmul.f32 %v6448_v34, %v6968_v24  ;;  %v6471_v63 = vmul.f32 %v2586_v7, %v6969_v8  ;;  %v4831_v24 = vld [vmem:[%s6861_s3 + $0x78] sm:$0xff] }
 0x147   : > { %v2590_v19 = vcombine.high %v5268_v62, %v5268_v62  ;;  %v2597_v37 = vrot.slane %v5268_v62, %v5461_v10  ;;  %5108 = vmatmul.mubr.msk.f32.vlgmr.msra.gmra.mxu0 %vm2020_vm1, %v4256_v0  ;;  %5040 = vmatpush3.msra.mxu1 %v2935_v11  ;;  %v2587_v33 = vcombine.high %v2571_v50, %v2571_v50  ;;  %v4823_v11 = vld [vmem:[%s6861_s3 + $0x48] sm:$0xff]  ;;  %v6972_v62 = vld [vmem:[#allocation32_spill] sm:$0xff] }
 0x148   : > { %5122 = vmatpush3.msra.mxu0 %v6132_v41  ;;  %5129 = vmatprep.mubr.msk.f32.mxu0 %vm2020_vm1, %v6262_v45  ;;  %v3541_v41 = vcombine.low %v2904_v36, %v6452_v44  ;;  %v3542_v16 = vcombine.low %v6468_v57, %v6471_v63  ;;  %v2589_v42 = vcombine.high %v2585_v9, %v2585_v9  ;;  %v6974_v36 = vld [vmem:[#allocation27_spill] sm:$0xff] }
 0x149   : > { %v2163_v15 = vpop.f32.mrf.mxu1  ;;  %v6474_v27 = vrot.slane %v2590_v19, %v5461_v10  ;;  %v2605_v38 = vcombine.high %v2597_v37, %v2597_v37  ;;  %v6486_v30 = vrot.slane %v2597_v37, %v5461_v10  ;;  %5123 = vmatprep.subr.mxu0 %v4453_v47  ;;  %5042 = vmatmul.mubr.msk.f32.vlgmr.msra.gmra.mxu1 %vm2020_vm1, %v6433_v26 }
 0x14a   : > { %v2164_v40 = vadd.f32 %v6138_v17, %v2163_v15  ;;  %5124 = vmatpush3.msra.mxu0 %v4453_v47  ;;  %5044 = vmatprep.subr.mxu1 %v4825_v31  ;;  %v2909_v6 = vmul.f32 %v2571_v50, %v6970_v59  ;;  %v3563_v2 = vrot.slane %v3541_v41, %v5461_v10  ;;  %v6975_v50 = vld [vmem:[#allocation28_spill] sm:$0xff]  ;;  %v6976_v47 = vld [vmem:[#allocation33_spill] sm:$0xff] }
 0x14b   : > { %v5015_v54 = vpop.f32.mrf.mxu1  ;;  %v2620_v45 = vrot.slane %v6474_v27, %v5461_v10  ;;  %v2627_v48 = vrot.slane %v2605_v38, %v5461_v10  ;;  %v2635_v53 = vcombine.high %v6486_v30, %v6486_v30  ;;  %5125 = vmatprep.subr.mxu0 %v4452_v56  ;;  %5045 = vmatpush3.msra.mxu1 %v4825_v31 }
 0x14c   : > { %5271 = vrsqrt.f32 %v2164_v40  ;;  %5126 = vmatpush3.msra.mxu0 %v4452_v56  ;;  %5052 = vmatprep.mubr.msk.f32.mxu1 %vm2020_vm1, %v3387_v28  ;;  %v3570_v51 = vrot.slane %v3542_v16, %v5461_v10  ;;  %v6973_v28 = vld [vmem:[#allocation26_spill] sm:$0xff]  ;;  %v6528_v55 = vmul.f32 %v2587_v33, %v6974_v36  ;;  %v6533_v19 = vmul.f32 %v2589_v42, %v6975_v50  ;;  %v6977_v36 = vld [vmem:[#allocation17_spill] sm:$0xff] }
 0x14d   : > { %v6506_v25 = vmul.f32 %v2620_v45, %v5935_v21  ;;  %v2636_v7 = vcombine.high %v2627_v48, %v2627_v48  ;;  %v2914_v46 = vmul.f32 %v2627_v48, %v6971_v5  ;;  %v6518_v0 = vmul.f32 %v2635_v53, %v6972_v62  ;;  %5127 = vmatprep.subr.mxu0 %v4451_v18  ;;  %v4822_v21 = vld [vmem:[%s6861_s3 + $0x40] sm:$0xff] }
 0x14e   : > { %5046 = vmatprep.subr.mxu1 %v4824_v58  ;;  %5128 = vmatpush3.msra.mxu0 %v4451_v18  ;;  %v6525_v61 = vmul.f32 %v2585_v9, %v6973_v28  ;;  %v3436_v9 = vcombine.low %v6436_v52, %v6439_v60  ;;  %v3572_v8 = vcombine.low %v3563_v2, %v3570_v51 }
 0x14f   : > { %5047 = vmatpush3.msra.mxu1 %v4824_v58  ;;  %5130 = vmatmul.mubr.msk.f32.vlgmr.msra.gmra.mxu0 %vm2020_vm1, %v6433_v26  ;;  %v6536_v37 = vmul.f32 %v2636_v7, %v6976_v47  ;;  %v3590_v15 = vcombine.low %v2914_v46, %v6518_v0  ;;  %v3579_v26 = vrot.slane %v3571_v22, %v5461_v10  ;;  %v4830_v22 = vld [vmem:[%s6861_s3 + $0x70] sm:$0xff] }
 0x150   : > { %5048 = vmatprep.subr.mxu1 %v4823_v11  ;;  %v3588_v40 = vcombine.low %v2909_v6, %v6525_v61  ;;  %v3589_v41 = vcombine.low %v6528_v55, %v6533_v19  ;;  %v3586_v18 = vrot.slane %v3572_v8, %v5461_v10  ;;  %v2344_v59 = vcombine.high %v6255_v23, %v6255_v23 }
 0x151   : > { %v5270_v31 = vpop.eup %5269  ;;  %5049 = vmatpush3.msra.mxu1 %v4823_v11  ;;  %v3591_v33 = vcombine.low %v6536_v37, %v6506_v25  ;;  %v3612_v16 = vrot.slane %v3590_v15, %v5461_v10  ;;  %v4829_v11 = vld [vmem:[%s6861_s3 + $0x68] sm:$0xff]  ;;  %v2588_v28 = vcombine.high %v6448_v34, %v6448_v34  ;;  %v6579_v50 = vmul.f32 %v2538_v20, %v6977_v36 }
 0x152   : > { %v2637_v56 = vcombine.high %v5270_v31, %v5270_v31  ;;  %v2644_v38 = vrot.slane %v5270_v31, %v5461_v10  ;;  %v2168_v54 = vpop.f32.mrf.mxu1  ;;  %5050 = vmatprep.subr.mxu1 %v4822_v21  ;;  %v3598_v58 = vrot.slane %v3588_v40, %v5461_v10  ;;  %v3587_v6 = vcombine.low %v3579_v26, %v3586_v18  ;;  %v6978_v40 = vld [vmem:[#allocation34_spill] sm:$0xff] }
 0x153   : > { %v2169_v45 = vadd.f32 %v6138_v17, %v2168_v54  ;;  %5051 = vmatpush3.msra.mxu1 %v4822_v21  ;;  %v3605_v17 = vrot.slane %v3589_v41, %v5461_v10  ;;  %v3619_v2 = vrot.slane %v3591_v33, %v5461_v10  ;;  %v4828_v21 = vld [vmem:[%s6861_s3 + $0x60] sm:$0xff]  ;;  %v6980_v41 = vld [vmem:[#allocation36_spill] sm:$0xff] }
 0x154   : > { %v2651_v42 = vrot.slane %v2637_v56, %v5461_v10  ;;  %v2652_v48 = vcombine.high %v2644_v38, %v2644_v38  ;;  %v5018_v53 = vpop.f32.mrf.mxu1  ;;  %5053 = vmatmul.mubr.msk.f32.vlgmr.msra.gmra.mxu1 %vm2020_vm1, %v3436_v9  ;;  %5055 = vmatprep.subr.mxu1 %v4831_v24  ;;  %v6979_v38 = vld [vmem:[#allocation35_spill] sm:$0xff] }
 0x155   : > { %5273 = vrsqrt.f32 %v2169_v45  ;;  %5056 = vmatpush3.msra.mxu1 %v4831_v24  ;;  %v3620_v62 = vcombine.low %v3598_v58, %v3605_v17  ;;  %5063 = vmatprep.mubr.msk.f32.mxu1 %vm2020_vm1, %v3587_v6  ;;  %v3621_v51 = vcombine.low %v3612_v16, %v3619_v2  ;;  %v3927_v45 = vcombine.low %v6388_v4, %v6378_v39  ;;  %v4836_v53 = vld [vmem:[%s6861_s3 + $0x90] sm:$0xff] }
 0x156   : > { %v2653_v7 = vcombine.high %v2651_v42, %v2651_v42  ;;  %v2660_v5 = vrot.slane %v2651_v42, %v5461_v10  ;;  %v2667_v46 = vrot.slane %v2652_v48, %v5461_v10  ;;  %5057 = vmatprep.subr.mxu1 %v4830_v22  ;;  %v6981_v17 = vld [vmem:[#allocation23_spill] sm:$0xff] }
 0x157   : > { %5058 = vmatpush3.msra.mxu1 %v4830_v22  ;;  %v3628_v31 = vrot.slane %v3620_v62, %v5461_v10  ;;  %v3635_v34 = vrot.slane %v3621_v51, %v5461_v10  ;;  %v2908_v6 = vmul.f32 %v2588_v28, %v6981_v17  ;;  %v4835_v62 = vld [vmem:[%s6861_s3 + $0x88] sm:$0xff] }
 0x158   : > { %v2676_v15 = vcombine.high %v2667_v46, %v2667_v46  ;;  %5059 = vmatprep.subr.mxu1 %v4829_v11  ;;  %v2674_v9 = vrot.slane %v2653_v7, %v5461_v10  ;;  %v2675_v24 = vcombine.high %v2660_v5, %v2660_v5  ;;  %v2920_v20 = vmul.f32 %v2660_v5, %v5965_v12  ;;  %v6982_v7 = vld [vmem:[#allocation37_spill] sm:$0xff] }
 0x159   : > { %v5272_v47 = vpop.eup %5271  ;;  %5060 = vmatpush3.msra.mxu1 %v4829_v11  ;;  %v3636_v16 = vcombine.low %v3628_v31, %v3635_v34  ;;  %v2606_v12 = vcombine.high %v6474_v27, %v6474_v27  ;;  %v2346_v31 = vcombine.high %v6373_v43, %v6373_v43  ;;  %v6985_v34 = vld [vmem:[#allocation40_spill] sm:$0xff] }
 0x15a   : > { %v2677_v8 = vcombine.high %v5272_v47, %v5272_v47  ;;  %v2684_v26 = vrot.slane %v5272_v47, %v5461_v10  ;;  %5061 = vmatprep.subr.mxu1 %v4828_v21  ;;  %v2919_v56 = vmul.f32 %v2676_v15, %v6978_v40  ;;  %v2921_v54 = vmul.f32 %v2674_v9, %v6979_v38  ;;  %v6983_v47 = vld [vmem:[#allocation38_spill] sm:$0xff]  ;;  %v6984_v9 = vld [vmem:[#allocation39_spill] sm:$0xff] }
 0x15b   : > { %v2922_v33 = vmul.f32 %v2675_v24, %v6980_v41  ;;  %5062 = vmatpush3.msra.mxu1 %v4828_v21  ;;  %v3928_v21 = vcombine.low %v6391_v35, %v6579_v50  ;;  %v3929_v35 = vcombine.low %v6452_v44, %v6468_v57  ;;  %v3930_v50 = vcombine.low %v6471_v63, %v2908_v6  ;;  %v6634_v44 = vld [vmem:[%s6861_s3 + $0xb8] sm:$0xff] }
 0x15c   : > { %v2691_v18 = vrot.slane %v2677_v8, %v5461_v10  ;;  %v2692_v22 = vcombine.high %v2684_v26, %v2684_v26  ;;  %v2700_v58 = vrot.slane %v2684_v26, %v5461_v10  ;;  %5066 = vmatprep.subr.mxu1 %v4837_v29  ;;  %v3739_v42 = vcombine.low %v2919_v56, %v2920_v20  ;;  %v4834_v8 = vld [vmem:[%s6861_s3 + $0x80] sm:$0xff] }
 0x15d   : > { %v3740_v48 = vcombine.low %v2921_v54, %v2922_v33  ;;  %5064 = vmatmul.mubr.msk.f32.vlgmr.msra.gmra.mxu1 %vm2020_vm1, %v3636_v16  ;;  %v2634_v26 = vrot.slane %v2606_v12, %v5461_v10  ;;  %v6627_v40 = vrot.slane %v3927_v45, %v5461_v10  ;;  %v6986_v33 = vld [vmem:[#allocation41_spill] sm:$0xff]  ;;  %v3944_v45 = vrot.slane %v3928_v21, %v5461_v10  ;;  %v6990_v21 = vld [vmem:[#allocation43_spill] sm:$0xff] }
 0x15e   : > { %v2693_v39 = vcombine.high %v2691_v18, %v2691_v18  ;;  %v2707_v4 = vrot.slane %v2691_v18, %v5461_v10  ;;  %v2714_v11 = vrot.slane %v2692_v22, %v5461_v10  ;;  %v2722_v2 = vcombine.high %v2700_v58, %v2700_v58  ;;  %5067 = vmatpush3.msra.mxu1 %v4837_v29 }
 0x15f   : > { %v2923_v27 = vmul.f32 %v2700_v58, %v6982_v7  ;;  %v3749_v5 = vrot.slane %v3739_v42, %v5461_v10  ;;  %v3756_v46 = vrot.slane %v3740_v48, %v5461_v10  ;;  %5068 = vmatprep.subr.mxu1 %v4836_v53  ;;  %v6987_v58 = vld [vmem:[#allocation29_spill] sm:$0xff]  ;;  %v3951_v12 = vrot.slane %v3929_v35, %v5461_v10  ;;  %v6992_v35 = vld [vmem:[#allocation46_spill] sm:$0xff] }
 0x160   : > { %v2721_v51 = vrot.slane %v2693_v39, %v5461_v10  ;;  %v2723_v28 = vcombine.high %v2707_v4, %v2707_v4  ;;  %v2724_v36 = vcombine.high %v2714_v11, %v2714_v11  ;;  %v2924_v15 = vmul.f32 %v2714_v11, %v6983_v47  ;;  %5069 = vmatpush3.msra.mxu1 %v4836_v53  ;;  %v6988_v4 = vld [vmem:[#allocation42_spill] sm:$0xff] }
 0x161   : > { %v2925_v24 = vmul.f32 %v2722_v2, %v6984_v9  ;;  %5070 = vmatprep.subr.mxu1 %v4835_v62  ;;  %v3771_v41 = vcombine.low %v3749_v5, %v3756_v46  ;;  %v2913_v16 = vmul.f32 %v6486_v30, %v6987_v58  ;;  %v3958_v42 = vrot.slane %v3930_v50, %v5461_v10  ;;  %v6989_v2 = vld [vmem:[#allocation31_spill] sm:$0xff] }
 0x162   : > { %v2926_v29 = vmul.f32 %v2724_v36, %v6985_v34  ;;  %v3741_v20 = vcombine.low %v2923_v27, %v2924_v15  ;;  %v5274_v56 = vpop.eup %5273  ;;  %v2725_v38 = vcombine.high %v2721_v51, %v2721_v51  ;;  %v2928_v54 = vmul.f32 %v2723_v28, %v6021_v49  ;;  %5071 = vmatpush3.msra.mxu1 %v4835_v62 }
 0x163   : > { %v2927_v18 = vmul.f32 %v2721_v51, %v6986_v33  ;;  %v2726_v57 = vcombine.high %v5274_v56, %v5274_v56  ;;  %v2733_v63 = vrot.slane %v5274_v56, %v5461_v10  ;;  %5072 = vmatprep.subr.mxu1 %v4834_v8  ;;  %v3779_v39 = vrot.slane %v3771_v41, %v5461_v10  ;;  %v6993_v56 = vld [vmem:[#allocation45_spill] sm:$0xff]  ;;  %v6996_v41 = vld [vmem:[#allocation7_spill] sm:$0xff] }
 0x164   : > { %v3742_v22 = vcombine.low %v2925_v24, %v2926_v29  ;;  %v3763_v49 = vrot.slane %v3741_v20, %v5461_v10  ;;  %5073 = vmatpush3.msra.mxu1 %v4834_v8  ;;  %v2929_v30 = vmul.f32 %v2725_v38, %v6988_v4  ;;  %v2918_v7 = vmul.f32 %v2634_v26, %v6989_v2  ;;  %v6991_v24 = vld [vmem:[#allocation44_spill] sm:$0xff] }
 0x165   : > { %v2740_v48 = vrot.slane %v2726_v57, %v5461_v10  ;;  %v2741_v53 = vcombine.high %v2733_v63, %v2733_v63  ;;  %v2749_v17 = vrot.slane %v2733_v63, %v5461_v10  ;;  %5077 = vmatprep.subr.mxu1 %v6634_v44  ;;  %v3788_v11 = vcombine.low %v2927_v18, %v2928_v54 }
 0x166   : > { %v3770_v6 = vrot.slane %v3742_v22, %v5461_v10  ;;  %v3976_v36 = vcombine.low %v6525_v61, %v6528_v55  ;;  %v3977_v47 = vcombine.low %v6533_v19, %v2913_v16  ;;  %v3978_v20 = vcombine.low %v6518_v0, %v6536_v37  ;;  %v6994_v61 = vld [vmem:[#allocation47_spill] sm:$0xff]  ;;  %v6995_v19 = vld [vmem:[#allocation6_spill] sm:$0xff]  ;;  %v6997_v22 = vld [vmem:[#allocation8_spill] sm:$0xff] }
 0x167   : > { %v2742_v27 = vcombine.high %v2740_v48, %v2740_v48  ;;  %v2756_v5 = vrot.slane %v2740_v48, %v5461_v10  ;;  %v2763_v46 = vrot.slane %v2741_v53, %v5461_v10  ;;  %v2771_v62 = vcombine.high %v2749_v17, %v2749_v17  ;;  %v6998_v0 = vld [vmem:[#allocation9_spill] sm:$0xff] }
 0x168   : > { %v2930_v51 = vmul.f32 %v2749_v17, %v6990_v21  ;;  %v3772_v28 = vcombine.low %v3763_v49, %v3770_v6  ;;  %v3798_v29 = vrot.slane %v3788_v11, %v5461_v10  ;;  %v2875_v54 = vmul.f32 %v6373_v43, %v6995_v19  ;;  %v4859_v19 = vld [vmem:[%s6861_s3 + $0x108] sm:$0xff] }
 0x169   : > { %v2770_v15 = vrot.slane %v2742_v27, %v5461_v10  ;;  %v2772_v9 = vcombine.high %v2763_v46, %v2763_v46  ;;  %v2931_v8 = vmul.f32 %v2771_v62, %v6991_v24  ;;  %v2933_v50 = vmul.f32 %v2756_v5, %v6992_v35  ;;  %v6999_v27 = vld [vmem:[#allocation5_spill] sm:$0xff]  ;;  %v4849_v35 = vld [vmem:[%s6861_s3 + $0xd8] sm:$0xff] }
 0x16a   : > { %v3786_v26 = vrot.slane %v3772_v28, %v5461_v10  ;;  %v3789_v34 = vcombine.low %v2929_v30, %v2930_v51  ;;  %v2876_v33 = vmul.f32 %v2344_v59, %v6996_v41  ;;  %v3979_v63 = vcombine.low %v6506_v25, %v2918_v7 }
 0x16b   : > { %v2932_v38 = vmul.f32 %v2772_v9, %v6993_v56  ;;  %v2934_v55 = vmul.f32 %v2770_v15, %v6994_v61  ;;  %v2877_v58 = vmul.f32 %v2346_v31, %v6997_v22  ;;  %v2878_v37 = vmul.f32 %v6238_v13, %v6998_v0  ;;  %v4638_v22 = vld [vmem:[%s6864_s6 + $0x68] sm:$0xff] }
 0x16c   : > { %v3787_v18 = vcombine.low %v3779_v39, %v3786_v26  ;;  %v3805_v57 = vrot.slane %v3789_v34, %v5461_v10  ;;  %v3959_v48 = vcombine.low %v6627_v40, %v3944_v45  ;;  %v3960_v53 = vcombine.low %v3951_v12, %v3958_v42 }
 0x16d   : > { %v3790_v16 = vcombine.low %v2931_v8, %v2932_v38  ;;  %v3791_v49 = vcombine.low %v2933_v50, %v2934_v55  ;;  %v4345_v17 = vcombine.low %v2875_v54, %v2876_v33  ;;  %v4346_v39 = vcombine.low %v2877_v58, %v2878_v37  ;;  %v4840_v8 = vld [vmem:[%s6861_s3 + $0xa0] sm:$0xff]  ;;  %v4860_v55 = vld [vmem:[%s6861_s3 + $0x110] sm:$0xff] }
 0x16e   : > { %5074 = vmatprep.mubr.msk.f32.mxu1 %vm2020_vm1, %v3787_v18  ;;  %v3820_v43 = vcombine.low %v3798_v29, %v3805_v57  ;;  %v3986_v25 = vrot.slane %v3976_v36, %v5461_v10  ;;  %v3993_v31 = vrot.slane %v3977_v47, %v5461_v10  ;;  %v4000_v13 = vrot.slane %v3978_v20, %v5461_v10  ;;  %v4842_v36 = vld [vmem:[%s6861_s3 + $0xb0] sm:$0xff]  ;;  %v4847_v20 = vld [vmem:[%s6861_s3 + $0xc8] sm:$0xff]  ;;  %v4530_v18 = vld [vmem:[%s6863_s5] sm:$0xff] }
 0x16f   : > { %v3812_v59 = vrot.slane %v3790_v16, %v5461_v10  ;;  %v3819_v6 = vrot.slane %v3791_v49, %v5461_v10  ;;  %v4007_v4 = vrot.slane %v3979_v63, %v5461_v10  ;;  %v4353_v40 = vrot.slane %v4345_v17, %v5461_v10  ;;  %v4848_v29 = vld [vmem:[%s6861_s3 + $0xd0] sm:$0xff]  ;;  %v4640_v57 = vld [vmem:[%s6864_s6 + $0x78] sm:$0xff] }
 0x170   : > { %v3828_v11 = vrot.slane %v3820_v43, %v5461_v10  ;;  %v4360_v45 = vrot.slane %v4346_v39, %v5461_v10  ;;  %v3967_v12 = vrot.slane %v3959_v48, %v5461_v10  ;;  %v3974_v42 = vrot.slane %v3960_v53, %v5461_v10  ;;  %v4639_v63 = vld [vmem:[%s6864_s6 + $0x70] sm:$0xff]  ;;  %5143 = vmatprep.subr.mxu0 %v4640_v57 }
 0x171   : > { %v3821_v30 = vcombine.low %v3812_v59, %v3819_v6  ;;  %v2874_v5 = vmul.f32 %v6255_v23, %v6999_v27  ;;  %v4008_v62 = vcombine.low %v3986_v25, %v3993_v31  ;;  %v4009_v21 = vcombine.low %v4000_v13, %v4007_v4  ;;  %v4841_v23 = vld [vmem:[%s6861_s3 + $0xa8] sm:$0xff]  ;;  %5144 = vmatpush3.msra.mxu0 %v4640_v57 }
 0x172   : > { %v4361_v7 = vcombine.low %v4353_v40, %v4360_v45  ;;  %v4117_v51 = vcombine.low %v2876_v33, %v2877_v58  ;;  %v3975_v28 = vcombine.low %v3967_v12, %v3974_v42  ;;  %v4115_v34 = vcombine.low %v6234_v14, %v6267_v1  ;;  %v4846_v14 = vld [vmem:[%s6861_s3 + $0xc0] sm:$0xff]  ;;  %v4861_v1 = vld [vmem:[%s6861_s3 + $0x118] sm:$0xff]  ;;  %5145 = vmatprep.subr.mxu0 %v4639_v63 }
 0x173   : > { %v3835_v2 = vrot.slane %v3821_v30, %v5461_v10  ;;  %v4116_v47 = vcombine.low %v2874_v5, %v2875_v54  ;;  %v4016_v15 = vrot.slane %v4008_v62, %v5461_v10  ;;  %v4023_v9 = vrot.slane %v4009_v21, %v5461_v10  ;;  %v2173_v54 = vpop.f32.mrf.mxu1  ;;  %v4533_v33 = vld [vmem:[%s6863_s5 + $0x18] sm:$0xff]  ;;  %5146 = vmatpush3.msra.mxu0 %v4639_v63  ;;  %v4637_v58 = vld [vmem:[%s6864_s6 + $0x60] sm:$0xff] }
 0x174   : > { %v4131_v24 = vrot.slane %v4117_v51, %v5461_v10  ;;  %v4344_v61 = vcombine.low %v6384_v3, %v6436_v52  ;;  %v4858_v3 = vld [vmem:[%s6861_s3 + $0x100] sm:$0xff]  ;;  %5147 = vmatprep.subr.mxu0 %v4638_v22 }
 0x175   : > { %v3836_v46 = vcombine.low %v3828_v11, %v3835_v2  ;;  %v4024_v50 = vcombine.low %v4016_v15, %v4023_v9  ;;  %v5021_v41 = vpop.f32.mrf.mxu1  ;;  %5148 = vmatpush3.msra.mxu0 %v4638_v22  ;;  %v4636_v9 = vld [vmem:[%s6864_s6 + $0x58] sm:$0xff] }
 0x176   : > { %5149 = vmatprep.subr.mxu0 %v4637_v58 }
 0x177   : > { %5075 = vmatmul.mubr.msk.f32.vlgmr.msra.gmra.mxu1 %vm2020_vm1, %v3836_v46  ;;  %5150 = vmatpush3.msra.mxu0 %v4637_v58 }
 0x178   : > { %5078 = vmatpush3.msra.mxu1 %v6634_v44  ;;  %5085 = vmatprep.mubr.msk.f32.mxu1 %vm2020_vm1, %v3975_v28  ;;  %v4124_v44 = vrot.slane %v4116_v47, %v5461_v10 }
 0x179   : > { %5079 = vmatprep.subr.mxu1 %v4842_v36  ;;  %5151 = vmatprep.subr.mxu0 %v4636_v9 }
 0x17a   : > { %5080 = vmatpush3.msra.mxu1 %v4842_v36  ;;  %v4132_v26 = vcombine.low %v4124_v44, %v4131_v24  ;;  %5152 = vmatpush3.msra.mxu0 %v4636_v9  ;;  %v4635_v24 = vld [vmem:[%s6864_s6 + $0x50] sm:$0xff]  ;;  %v4633_v44 = vld [vmem:[%s6864_s6 + $0x40] sm:$0xff] }
 0x17b   : > { %5081 = vmatprep.subr.mxu1 %v4841_v23  ;;  %5153 = vmatprep.subr.mxu0 %v4635_v24 }
 0x17c   : > { %5082 = vmatpush3.msra.mxu1 %v4841_v23  ;;  %v4139_v56 = vrot.slane %v4132_v26, %v5461_v10  ;;  %5154 = vmatpush3.msra.mxu0 %v4635_v24  ;;  %v4630_v26 = vld [vmem:[%s6864_s6 + $0x28] sm:$0xff] }
 0x17d   : > { %5083 = vmatprep.subr.mxu1 %v4840_v8 }
 0x17e   : > { %5084 = vmatpush3.msra.mxu1 %v4840_v8  ;;  %v4140_v38 = vcombine.low %v6408_v32, %v4139_v56  ;;  %v4368_v32 = vrot.slane %v4361_v7, %v5461_v10  ;;  %v4532_v10 = vld [vmem:[%s6863_s5 + $0x10] sm:$0xff]  ;;  %v4634_v8 = vld [vmem:[%s6864_s6 + $0x48] sm:$0xff] }
 0x17f   : > { %5086 = vmatmul.mubr.msk.f32.vlgmr.msra.gmra.mxu1 %vm2020_vm1, %v4024_v50  ;;  %5088 = vmatprep.subr.mxu1 %v4849_v35  ;;  %v4631_v50 = vld [vmem:[%s6864_s6 + $0x30] sm:$0xff]  ;;  %v4626_v56 = vld [vmem:[%s6864_s6 + $0x8] sm:$0xff] }
 0x180   : > { %5089 = vmatpush3.msra.mxu1 %v4849_v35  ;;  %5096 = vmatprep.mubr.msk.f32.mxu1 %vm2020_vm1, %v4115_v34  ;;  %v4369_v52 = vcombine.low %v6439_v60, %v4368_v32  ;;  %v4531_v60 = vld [vmem:[%s6863_s5 + $0x8] sm:$0xff]  ;;  %v4632_v35 = vld [vmem:[%s6864_s6 + $0x38] sm:$0xff]  ;;  %v4629_v34 = vld [vmem:[%s6864_s6 + $0x20] sm:$0xff] }
 0x181   : > { %5090 = vmatprep.subr.mxu1 %v4848_v29  ;;  %5155 = vmatprep.subr.mxu0 %v4634_v8 }
 0x182   : > { %5091 = vmatpush3.msra.mxu1 %v4848_v29  ;;  %5156 = vmatpush3.msra.mxu0 %v4634_v8  ;;  %v4628_v29 = vld [vmem:[%s6864_s6 + $0x18] sm:$0xff] }
 0x183   : > { %5092 = vmatprep.subr.mxu1 %v4847_v20  ;;  %5157 = vmatprep.subr.mxu0 %v4633_v44 }
 0x184   : > { %5093 = vmatpush3.msra.mxu1 %v4847_v20  ;;  %5158 = vmatpush3.msra.mxu0 %v4633_v44  ;;  %v4627_v20 = vld [vmem:[%s6864_s6 + $0x10] sm:$0xff] }
 0x185   : > { %5094 = vmatprep.subr.mxu1 %v4846_v14  ;;  %5159 = vmatprep.subr.mxu0 %v4632_v35 }
 0x186   : > { %5095 = vmatpush3.msra.mxu1 %v4846_v14  ;;  %5160 = vmatpush3.msra.mxu0 %v4632_v35  ;;  %v4625_v14 = vld [vmem:[%s6864_s6] sm:$0xff] }
 0x187   : > { %5097 = vmatmul.mubr.msk.f32.vlgmr.msra.gmra.mxu1 %vm2020_vm1, %v4140_v38  ;;  %5110 = vmatprep.subr.mxu1 %v4861_v1 }
 0x188   : > { %5111 = vmatpush3.msra.mxu1 %v4861_v1  ;;  %5118 = vmatprep.mubr.msk.f32.mxu1 %vm2020_vm1, %v4344_v61 }
 0x189   : > { %5112 = vmatprep.subr.mxu1 %v4860_v55  ;;  %5161 = vmatprep.subr.mxu0 %v4631_v50 }
 0x18a   : > { %5113 = vmatpush3.msra.mxu1 %v4860_v55  ;;  %5162 = vmatpush3.msra.mxu0 %v4631_v50 }
 0x18b   : > { %5114 = vmatprep.subr.mxu1 %v4859_v19  ;;  %5163 = vmatprep.subr.mxu0 %v4630_v26 }
 0x18c   : > { %5115 = vmatpush3.msra.mxu1 %v4859_v19  ;;  %5164 = vmatpush3.msra.mxu0 %v4630_v26 }
 0x18d   : > { %5116 = vmatprep.subr.mxu1 %v4858_v3  ;;  %5165 = vmatprep.subr.mxu0 %v4629_v34 }
 0x18e   : > { %5117 = vmatpush3.msra.mxu1 %v4858_v3  ;;  %5166 = vmatpush3.msra.mxu0 %v4629_v34 }
 0x18f   : > { %5119 = vmatmul.mubr.msk.f32.vlgmr.msra.gmra.mxu1 %vm2020_vm1, %v4369_v52  ;;  %5132 = vmatprep.subr.mxu1 %v4533_v33 }
 0x190   : > { %5133 = vmatpush3.msra.mxu1 %v4533_v33  ;;  %5167 = vmatprep.subr.mxu0 %v4628_v29 }
 0x191   : > { %5134 = vmatprep.subr.mxu1 %v4532_v10  ;;  %5168 = vmatpush3.msra.mxu0 %v4628_v29 }
 0x192   : > { %5135 = vmatpush3.msra.mxu1 %v4532_v10  ;;  %5169 = vmatprep.subr.mxu0 %v4627_v20 }
 0x193   : > { %5136 = vmatprep.subr.mxu1 %v4531_v60  ;;  %5170 = vmatpush3.msra.mxu0 %v4627_v20 }
 0x194   : > { %5137 = vmatpush3.msra.mxu1 %v4531_v60  ;;  %5171 = vmatprep.subr.mxu0 %v4626_v56 }
 0x195   : > { %5138 = vmatprep.subr.mxu1 %v4530_v18  ;;  %5172 = vmatpush3.msra.mxu0 %v4626_v56 }
 0x196   : > { %5139 = vmatpush3.msra.mxu1 %v4530_v18  ;;  %5173 = vmatprep.subr.mxu0 %v4625_v14 }
 0x197   : > { %5174 = vmatpush3.msra.mxu0 %v4625_v14 }
 0x200   : > { %v5032_v0 = vpop.f32.mrf.mxu1 }
 0x202   : > { %v3128_v37 = vpop.f32.mrf.mxu1 }
 0x207   : > { %v5109_v27 = vpop.f32.mrf.mxu0 }
 0x209   : > { %v5043_v16 = vpop.f32.mrf.mxu1  ;;  %v4327_v21 = vpop.f32.mrf.mxu0 }
 0x20a   : > { %v3327_v31 = vadd.f32 %v5043_v16, %v5032_v0 }
 0x20b   : > { %v3321_v49 = vpop.f32.mrf.mxu1 }
 0x20c   : > { %v3322_v25 = vadd.f32 %v3321_v49, %v3128_v37 }
 0x20f   : > { %v5131_v60 = vpop.f32.mrf.mxu0 }
 0x211   : > { %v4521_v18 = vpop.f32.mrf.mxu0 }
 0x214   : > { %v5054_v43 = vpop.f32.mrf.mxu1 }
 0x215   : > { %v3517_v4 = vadd.f32 %v5054_v43, %v3327_v31 }
 0x216   : > { %v3507_v48 = vpop.f32.mrf.mxu1 }
 0x217   : > { %v3516_v13 = vadd.f32 %v3507_v48, %v3322_v25 }
 0x21d   : > { %v5065_v53 = vpop.f32.mrf.mxu1 }
 0x21e   : > { %v3717_v40 = vadd.f32 %v5065_v53, %v3517_v4 }
 0x21f   : > { %v3707_v17 = vpop.f32.mrf.mxu1 }
 0x220   : > { %v3716_v11 = vadd.f32 %v3707_v17, %v3516_v13 }
 0x237   : > { %v5076_v59 = vpop.f32.mrf.mxu1 }
 0x238   : > { %v3917_v42 = vadd.f32 %v5076_v59, %v3717_v40 }
 0x239   : > { %v3907_v6 = vpop.f32.mrf.mxu1 }
 0x23a   : > { %v3916_v12 = vadd.f32 %v3907_v6, %v3716_v11 }
 0x23f   : > { %v5087_v39 = vpop.f32.mrf.mxu1 }
 0x240   : > { %v4105_v5 = vadd.f32 %v5087_v39, %v3917_v42 }
 0x241   : > { %v4095_v30 = vpop.f32.mrf.mxu1 }
 0x242   : > { %v4104_v7 = vadd.f32 %v4095_v30, %v3916_v12 }
 0x247   : > { %v5098_v45 = vpop.f32.mrf.mxu1 }
 0x248   : > { %v4221_v62 = vadd.f32 %v5098_v45, %v4105_v5 }
 0x249   : > { %v4211_v2 = vpop.f32.mrf.mxu1 }
 0x24a   : > { %v4220_v46 = vadd.f32 %v4211_v2, %v4104_v7  ;;  %v4337_v36 = vadd.f32 %v5109_v27, %v4221_v62 }
 0x24c   : > { %v4336_v28 = vadd.f32 %v4327_v21, %v4220_v46 }
 0x24f   : > { %v5120_v51 = vpop.f32.mrf.mxu1 }
 0x250   : > { %v4450_v15 = vadd.f32 %v5120_v51, %v4337_v36 }
 0x251   : > { %v4440_v47 = vpop.f32.mrf.mxu1 }
 0x252   : > { %v4449_v23 = vadd.f32 %v4440_v47, %v4336_v28 }
 0x254   : > { %5140 = vmatprep.mubr.msk.f32.mxu1 %vm2020_vm1, %v4449_v23 }
 0x255   : > { %5141 = vmatmul.mubr.msk.f32.vlgmr.msra.gmra.mxu1 %vm2020_vm1, %v4450_v15 }
 0x315   : > { %v5142_v1 = vpop.f32.mrf.mxu1 }
 0x316   : > { %v4618_v38 = vmul.f32 0.70710677, %v5142_v1  ;;  %v4616_v41 = vmul.f32 0.5, %v5142_v1 }
 0x317   : > { %v4606_v61 = vpop.f32.mrf.mxu1 }
 0x318   : > { %5275 = verf.f32 %v4618_v38  ;;  %v4617_v55 = vmul.f32 0.70710677, %v4606_v61  ;;  %v4615_v52 = vmul.f32 0.5, %v4606_v61 }
 0x31a   : > { %5277 = verf.f32 %v4617_v55 }
 0x325   : > { %v5276_v19 = vpop.eup %5275 }
 0x326   : > { %v4622_v3 = vadd.f32 1.0, %v5276_v19 }
 0x327   : > { %v5278_v32 = vpop.eup %5277 }
 0x328   : > { %v4621_v54 = vadd.f32 1.0, %v5278_v32  ;;  %v4624_v10 = vmul.f32 %v4622_v3, %v4616_v41 }
 0x32a   : > { %v4623_v33 = vmul.f32 %v4621_v54, %v4615_v52 }
 0x32c   : > { %5175 = vmatprep.mubr.f32.mxu0 %v4623_v33 }
 0x32d   : > { %5176 = vmatmul.mubr.f32.vlgmr.msra.gmra.mxu0 %v4624_v10 }
 0x3ed   : > { %v5177_v57 = vpop.f32.mrf.mxu0 }
 0x3ee   : > { %v4713_v63 = vadd.f32 %v5177_v57, %v5131_v60 }
 0x3ef   : > { %v4707_v22 = vpop.f32.mrf.mxu0 }
 0x3f0   : > { %4717 = vst.msk [vmem:[%s271_s29 + $0x8] sm:$0xff] %vm2020_vm1, %v4713_v63  ;;  %v4708_v58 = vadd.f32 %v4707_v22, %v4521_v18 }
 0x3f2   : > { %4716 = vst.msk [vmem:[%s271_s29] sm:$0xff] %vm2020_vm1, %v4708_v58 }
 0x3f3   : > { %5292 = shalt.err (!%p5289_p3)
}
 0x3f4   : > { %s5293_s20 = scalar_lea.hbm %s6815_s15, 256  ;;  %s5297_s23 = scalar_lea.hbm %s6865_s7, 512 }
 0x3f5   : > { %p5294_p4 = scmp.ne.s32.totalorder %s6815_s15, %s5293_s20  ;;  %p5298_p9 = scmp.lt.s32.totalorder %s6815_s15, %s6865_s7 }
 0x3f6   : > { %p5299_p10 = scmp.lt.s32.totalorder %s5297_s23, %s5293_s20 }
 0x3f7   : > { %p5295_p7 = pnand %p5294_p4, %p5425_p5 }
 0x3f8   : > { %p5300_p11 = por %p5299_p10, %p5298_p9 }
 0x3f9   : > { %p5296_p8 = pneg %p5295_p7 }
 0x3fb   : > { %p5301_p12 = pnand %p5300_p11, %p5296_p8 }
 0x3fd   : > { %5304 = shalt.err (!%p5301_p12)
}
 0x3fe   : > { %s5345_s13 = smov 128   ;;  %s5346_s14 = smov 8  }
 0x3ff   : > { %5187 = dma.vmem_to_hbm [thread:$0]  (%p5425_p5), %s6809_s8, 256, %s6815_s15, %s6818_s16, %s5345_s13, %s5345_s13, %s5346_s14  }
 0x400 PF: > { %p5193_p13 = scmp.ge.s32.totalorder %s5339_s27, 2  ;;  %s4747_s28 = sand.u32 1, %s5327_s24  }
 0x401   : > { %s4748_s17 = scalar_lea.sflag [#allocation3], %s4747_s28 }
 0x402   : > { %p5190_p0 = pnand %p5193_p13, %p5429_p6 }
 0x404   : > { %p5191_p1 = pneg %p5190_p0 }
 0x406   : > { %5322 = dma.done.wait (%p5191_p1), %s4748_s17, 256  }
 0x407   : > { %5324 = vsyncadd (%p5191_p1), %s4748_s17, 4294967040  ;;  %p17_p2 = scmp.ge.s32.totalorder %s5412_s30, 4   ;;  %s7000_s24 = smov %s5331_s25 }
 0x408   : > { %s7001_s25 = smov %s5335_s26  ;;  %s7002_s26 = smov %s5423_s10 }
 0x409   : > { %s7003_s27 = smov %s5412_s30  ;;  %19 = sbr.rel (!%p17_p2) target bundleno = 3 (0x3), region = 91 }
 0x40e   :  { %4753 = vsyncpa [#allocation3], 1 }
 0x40f   :  { %4755 = vsyncpa [#allocation3 + $0x1], 1 }

// kernel: encoding_stack.2
= control target key start
LH: loop header
LB: loop body
LE: loop exit
PB: predicated region body
PF: predicated region fallthrough
CT: control target
= control target key end

     0   :  { %s13852_s24 = smov 0   ;;  %s18923_s0 = inlined_call_operand.vmem [shape: f32[2,36,9,4], index: 0, kind: input, shape index: {}]   ;;  %s18924_s1 = inlined_call_operand.vmem [shape: f32[4,4], index: 1, kind: input, shape index: {}]   ;;  %s18925_s2 = inlined_call_operand.vmem [shape: f32[1,4], index: 2, kind: input, shape index: {}]   ;;  %s18926_s3 = inlined_call_operand.vmem [shape: f32[9,4,32], index: 3, kind: input, shape index: {}]   ;;  %s18927_s4 = inlined_call_operand.vmem [shape: f32[4,32], index: 4, kind: input, shape index: {}]   ;;  %s18928_s5 = inlined_call_operand.vmem [shape: f32[32,128], index: 5, kind: input, shape index: {}]   ;;  %s18929_s6 = inlined_call_operand.vmem [shape: f32[128,32], index: 6, kind: input, shape index: {}]   ;;  %s18930_s7 = inlined_call_operand.vmem [shape: f32[2,64,32], index: 7, kind: output, shape index: {}]  }
   0x1 LB: > { %s12962_s25 = sadd.s32 4294967295, %s13807_s24   ;;  %p12966_p0 = scmp.ge.s32.totalorder %s13807_s24, 1  ;;  %s13807_s24 = sphi %s13852_s24, %s17_s24  }
   0x2   : > { %p237_p1 = scmp.lt.s32.totalorder %s13807_s24, 3 }
   0x4   : > { %p238_p2 = pnand %p12966_p0, %p237_p1 }
   0x6   : > { %241 = sbr.rel (%p238_p2) target bundleno = 1427 (0x593), region = 48 }
   0xb   : > { %v3339_v0 = vld [vmem:[%s18924_s1] sm:$0xf]  ;;  %vm5738_vm0 = vcmask 1043456   ;;  %p269_p3 = scmp.lt.s32.totalorder %s12962_s25, 1  ;;  %v427_v1 = vlaneseq  ;;  %v18933_v2 = vmov 0.0   ;;  %vm13810_vm1 = vmmov 0  }
   0xc   : > { %13326 = vmatprep.subr.mxu0 %v18933_v2  ;;  %13328 = vmatprep.mubr.msk.f32.mxu0 %vm13810_vm1, %v18933_v2  ;;  %v13811_v3 = vmov 1966171168   ;;  %vm5655_vm2 = vcmask 31744   ;;  %vm12608_vm3 = vcmask 261120  }
   0xd   : > { %13327 = vmatpush3.msk.msra.mxu0 %vm5738_vm0, %v3339_v0  ;;  %s20410_s25 = smov (!%p269_p3, %s12962_s25), 1  ;;  %v425_v4 = vunpack.c.l.s4 %v13811_v3  ;;  %v428_v5 = vshrl.u32 %v427_v1, 7 }
   0xe   : > { %s13655_s28 = smul.u32 576, %s20410_s25 }
   0xf   : > { %v426_v6 = vunpack.c.0.s8 %v425_v4 }
  0x10   : > { %s13873_s8 = scalar_lea.vmem %s18923_s0, %s13655_s28 }
  0x11   : > { %v13875_v7 = vsub.s32 %v426_v6, %v428_v5  ;;  %v279_v8 = vld [vmem:[%s13873_s8] sm:$0xff]  ;;  %v12970_v9 = vld.sshfl [vmem:[%s13873_s8 + $0x8] sm:$0x1 pattern:$0x75316420]  ;;  %v281_v10 = vld [vmem:[%s13873_s8 + $0x10] sm:$0xff] }
  0x12   : > { %v423_v11 = vcombine.high %v279_v8, %v279_v8  ;;  %v486_v14 = vcombine.high %v281_v10, %v281_v10  ;;  %v12971_v15 = vld.sshfl [vmem:[%s13873_s8 + $0x18] sm:$0x1 pattern:$0x75316420]  ;;  %v283_v16 = vld [vmem:[%s13873_s8 + $0x20] sm:$0xff] }
  0x13   : > { %v430_v12 = vrot.slane %v279_v8, %v13875_v7  ;;  %v13882_v13 = vrot.slane %v12970_v9, %v13875_v7  ;;  %v493_v17 = vrot.slane %v281_v10, %v13875_v7  ;;  %v13888_v18 = vrot.slane %v12971_v15, %v13875_v7 }
  0x14   : > { %v549_v19 = vcombine.high %v283_v16, %v283_v16  ;;  %v13891_v20 = vrot.slane %v283_v16, %v13875_v7  ;;  %v437_v21 = vrot.slane %v423_v11, %v13875_v7  ;;  %v500_v24 = vrot.slane %v486_v14, %v13875_v7 }
  0x15   : > { %19418 = vst [vmem:[#allocation2_spill] sm:$0xff] %v13882_v13  ;;  %v438_v22 = vcombine.high %v430_v12, %v430_v12  ;;  %v13895_v23 = vrot.slane %v430_v12, %v13875_v7  ;;  %v501_v25 = vcombine.high %v493_v17, %v493_v17  ;;  %v13899_v26 = vrot.slane %v493_v17, %v13875_v7 }
  0x16   : > { %v3023_v27 = vmul.f32 %v13882_v13, %v13882_v13  ;;  %v563_v28 = vrot.slane %v549_v19, %v13875_v7  ;;  %v439_v29 = vcombine.high %v437_v21, %v437_v21  ;;  %v13905_v30 = vrot.slane %v437_v21, %v13875_v7 }
  0x17   : > { %19419 = vst [vmem:[#allocation3_spill] sm:$0xff] %v13895_v23  ;;  %v13908_v31 = vrot.slane %v438_v22, %v13875_v7  ;;  %v13912_v32 = vcombine.high %v13895_v23, %v13895_v23  ;;  %v3015_v33 = vmul.f32 %v13895_v23, %v13895_v23  ;;  %v502_v34 = vcombine.high %v500_v24, %v500_v24 }
  0x18   : > { %19420 = vst [vmem:[#allocation4_spill] sm:$0xff] %v13905_v30  ;;  %v13917_v35 = vrot.slane %v500_v24, %v13875_v7  ;;  %v13920_v36 = vrot.slane %v501_v25, %v13875_v7  ;;  %v13923_v37 = vrot.slane %v439_v29, %v13875_v7  ;;  %v13927_v38 = vcombine.high %v13905_v30, %v13905_v30 }
  0x19   : > { %19421 = vst [vmem:[#allocation5_spill] sm:$0xff] %v13908_v31  ;;  %19422 = vst [vmem:[#allocation6_spill] sm:$0xff] %v13912_v32  ;;  %v13931_v39 = vcombine.high %v13908_v31, %v13908_v31  ;;  %v3016_v40 = vmul.f32 %v13908_v31, %v13908_v31  ;;  %v3017_v41 = vmul.f32 %v13912_v32, %v13912_v32  ;;  %v307_v31 = vld [vmem:[%s13873_s8 + $0xe0] sm:$0xff] }
  0x1a   : > { %19423 = vst [vmem:[#allocation7_spill] sm:$0xff] %v13923_v37  ;;  %19424 = vst [vmem:[#allocation8_spill] sm:$0xff] %v13927_v38  ;;  %v3019_v42 = vmul.f32 %v13905_v30, %v13905_v30  ;;  %v13940_v43 = vrot.slane %v502_v34, %v13875_v7  ;;  %v13944_v44 = vcombine.high %v13899_v26, %v13899_v26 }
  0x1b   : > { %19425 = vst [vmem:[#allocation9_spill] sm:$0xff] %v13931_v39  ;;  %v13948_v45 = vcombine.high %v13923_v37, %v13923_v37  ;;  %v3018_v46 = vmul.f32 %v13931_v39, %v13931_v39  ;;  %v3020_v47 = vmul.f32 %v13923_v37, %v13923_v37  ;;  %v3021_v48 = vmul.f32 %v13927_v38, %v13927_v38 }
  0x1c   : > { %v3671_v49 = vcombine.low %v3015_v33, %v3016_v40  ;;  %v13958_v50 = vcombine.high %v13917_v35, %v13917_v35  ;;  %v13962_v51 = vcombine.high %v13920_v36, %v13920_v36  ;;  %v3024_v52 = vmul.f32 %v13899_v26, %v13899_v26 }
  0x1d   : > { %19426 = vst [vmem:[#allocation10_spill] sm:$0xff] %v13948_v45  ;;  %v3022_v53 = vmul.f32 %v13948_v45, %v13948_v45  ;;  %v3672_v54 = vcombine.low %v3017_v41, %v3018_v46  ;;  %v3673_v55 = vcombine.low %v3019_v42, %v3020_v47  ;;  %v3025_v56 = vmul.f32 %v13920_v36, %v13920_v36 }
  0x1e   : > { %v3681_v57 = vrot.slane %v3671_v49, %v13875_v7  ;;  %v3026_v58 = vmul.f32 %v13944_v44, %v13944_v44  ;;  %v3027_v59 = vmul.f32 %v13962_v51, %v13962_v51  ;;  %v3028_v60 = vmul.f32 %v13917_v35, %v13917_v35 }
  0x1f   : > { %v3674_v61 = vcombine.low %v3021_v48, %v3022_v53  ;;  %v3688_v62 = vrot.slane %v3672_v54, %v13875_v7  ;;  %v3695_v63 = vrot.slane %v3673_v55, %v13875_v7  ;;  %v3029_v0 = vmul.f32 %v13940_v43, %v13940_v43 }
  0x20   : > { %v3030_v1 = vmul.f32 %v13958_v50, %v13958_v50  ;;  %v3720_v3 = vcombine.low %v3023_v27, %v3024_v52  ;;  %v3721_v4 = vcombine.low %v3025_v56, %v3026_v58  ;;  %v3722_v5 = vcombine.low %v3027_v59, %v3028_v60  ;;  %v12972_v52 = vld.sshfl [vmem:[%s13873_s8 + $0x28] sm:$0x1 pattern:$0x75316420] }
  0x21   : > { %v3702_v6 = vrot.slane %v3674_v61, %v13875_v7  ;;  %v3703_v8 = vcombine.low %v3681_v57, %v3688_v62  ;;  %v13986_v9 = vcombine.high %v13940_v43, %v13940_v43  ;;  %v564_v10 = vcombine.high %v13891_v20, %v13891_v20  ;;  %v285_v57 = vld [vmem:[%s13873_s8 + $0x30] sm:$0xff] }
  0x22   : > { %v3723_v11 = vcombine.low %v3029_v0, %v3030_v1  ;;  %v3730_v12 = vrot.slane %v3720_v3, %v13875_v7  ;;  %v3737_v14 = vrot.slane %v3721_v4, %v13875_v7  ;;  %v3744_v15 = vrot.slane %v3722_v5, %v13875_v7 }
  0x23   : > { %v3704_v16 = vcombine.low %v3695_v63, %v3702_v6  ;;  %v3711_v17 = vrot.slane %v3703_v8, %v13875_v7  ;;  %v565_v19 = vcombine.high %v563_v28, %v563_v28  ;;  %v13996_v21 = vrot.slane %v13891_v20, %v13875_v7  ;;  %v12973_v8 = vld.sshfl [vmem:[%s13873_s8 + $0x38] sm:$0x1 pattern:$0x75316420] }
  0x24   : > { %v3751_v22 = vrot.slane %v3723_v11, %v13875_v7  ;;  %v3752_v24 = vcombine.low %v3730_v12, %v3737_v14  ;;  %v14000_v25 = vrot.slane %v563_v28, %v13875_v7  ;;  %v14003_v27 = vrot.slane %v564_v10, %v13875_v7 }
  0x25   : > { %19427 = vst [vmem:[#allocation11_spill] sm:$0xff] %v13996_v21  ;;  %v3718_v29 = vrot.slane %v3704_v16, %v13875_v7  ;;  %v14007_v33 = vrot.slane %v565_v19, %v13875_v7  ;;  %v14011_v20 = vcombine.high %v13996_v21, %v13996_v21  ;;  %v3031_v34 = vmul.f32 %v13986_v9, %v13986_v9 }
  0x26   : > { %19428 = vst [vmem:[#allocation12_spill] sm:$0xff] %v14000_v25  ;;  %19429 = vst [vmem:[#allocation13_spill] sm:$0xff] %v14003_v27  ;;  %v3753_v40 = vcombine.low %v3744_v15, %v3751_v22  ;;  %v3760_v28 = vrot.slane %v3752_v24, %v13875_v7  ;;  %v14018_v41 = vcombine.high %v14003_v27, %v14003_v27 }
  0x27   : > { %19430 = vst [vmem:[#allocation14_spill] sm:$0xff] %v14007_v33  ;;  %19431 = vst [vmem:[#allocation15_spill] sm:$0xff] %v14011_v20  ;;  %v3032_v42 = vmul.f32 %v13888_v18, %v13888_v18  ;;  %v3719_v46 = vcombine.low %v3711_v17, %v3718_v29  ;;  %v3033_v47 = vmul.f32 %v13996_v21, %v13996_v21 }
  0x28   : > { %19432 = vst [vmem:[#allocation16_spill] sm:$0xff] %v14018_v41  ;;  %v3034_v48 = vmul.f32 %v14003_v27, %v14003_v27  ;;  %v3035_v49 = vmul.f32 %v14011_v20, %v14011_v20  ;;  %v3767_v53 = vrot.slane %v3753_v40, %v13875_v7  ;;  %v3036_v54 = vmul.f32 %v14018_v41, %v14018_v41 }
  0x29   : > { %v3037_v55 = vmul.f32 %v14000_v25, %v14000_v25  ;;  %v3038_v56 = vmul.f32 %v14007_v33, %v14007_v33  ;;  %13329 = vmatmul.mubr.msk.f32.vlgmr.msra.gmra.mxu0 %vm5655_vm2, %v3719_v46  ;;  %v3769_v58 = vcombine.low %v3031_v34, %v3032_v42  ;;  %v14040_v60 = vcombine.high %v14000_v25, %v14000_v25 }
  0x2a   : > { %v3770_v59 = vcombine.low %v3033_v47, %v3034_v48  ;;  %v14044_v61 = vcombine.high %v14007_v33, %v14007_v33  ;;  %13331 = vmatprep.mubr.msk.f32.mxu0 %vm13810_vm1, %v18933_v2  ;;  %v3768_v62 = vcombine.low %v3760_v28, %v3767_v53  ;;  %v3771_v63 = vcombine.low %v3035_v49, %v3036_v54 }
  0x2b   : > { %19433 = vst [vmem:[#allocation17_spill] sm:$0xff] %v14040_v60  ;;  %v3772_v0 = vcombine.low %v3037_v55, %v3038_v56  ;;  %v14049_v1 = vrot.slane %v12972_v52, %v13875_v7  ;;  %v3779_v3 = vrot.slane %v3769_v58, %v13875_v7  ;;  %v612_v5 = vcombine.high %v285_v57, %v285_v57  ;;  %v287_v52 = vld [vmem:[%s13873_s8 + $0x40] sm:$0xff] }
  0x2c   : > { %19434 = vst [vmem:[#allocation18_spill] sm:$0xff] %v14044_v61  ;;  %v3786_v4 = vrot.slane %v3770_v59, %v13875_v7  ;;  %v619_v6 = vrot.slane %v285_v57, %v13875_v7  ;;  %v3793_v10 = vrot.slane %v3771_v63, %v13875_v7  ;;  %v3039_v12 = vmul.f32 %v14040_v60, %v14040_v60 }
  0x2d   : > { %19435 = vst [vmem:[#allocation19_spill] sm:$0xff] %v14049_v1  ;;  %v3800_v11 = vrot.slane %v3772_v0, %v13875_v7  ;;  %v3040_v14 = vmul.f32 %v14044_v61, %v14044_v61  ;;  %13332 = vmatmul.mubr.msk.f32.gmra.mxu0 %vm5655_vm2, %v3768_v62  ;;  %v626_v16 = vrot.slane %v612_v5, %v13875_v7 }
  0x2e   : > { %v3801_v15 = vcombine.low %v3779_v3, %v3786_v4  ;;  %v627_v17 = vcombine.high %v619_v6, %v619_v6  ;;  %v14064_v19 = vrot.slane %v619_v6, %v13875_v7  ;;  %13334 = vmatprep.mubr.msk.f32.mxu0 %vm13810_vm1, %v18933_v2  ;;  %v3041_v24 = vmul.f32 %v14049_v1, %v14049_v1 }
  0x2f   : > { %v3802_v22 = vcombine.low %v3793_v10, %v3800_v11  ;;  %v3818_v29 = vcombine.low %v3039_v12, %v3040_v14  ;;  %v14071_v34 = vrot.slane %v12973_v8, %v13875_v7  ;;  %v14075_v28 = vrot.slane %v626_v16, %v13875_v7 }
  0x30   : > { %19436 = vst [vmem:[#allocation20_spill] sm:$0xff] %v14064_v19  ;;  %v3809_v40 = vrot.slane %v3801_v15, %v13875_v7  ;;  %v14078_v42 = vrot.slane %v627_v17, %v13875_v7  ;;  %v14082_v46 = vcombine.high %v14064_v19, %v14064_v19  ;;  %v3042_v48 = vmul.f32 %v14064_v19, %v14064_v19 }
  0x31   : > { %19437 = vst [vmem:[#allocation21_spill] sm:$0xff] %v14071_v34  ;;  %19438 = vst [vmem:[#allocation22_spill] sm:$0xff] %v14075_v28  ;;  %v3816_v47 = vrot.slane %v3802_v22, %v13875_v7  ;;  %v3828_v49 = vrot.slane %v3818_v29, %v13875_v7  ;;  %v628_v53 = vcombine.high %v626_v16, %v626_v16 }
  0x32   : > { %19439 = vst [vmem:[#allocation23_spill] sm:$0xff] %v14078_v42  ;;  %19440 = vst [vmem:[#allocation24_spill] sm:$0xff] %v14082_v46  ;;  %v14091_v54 = vcombine.high %v14078_v42, %v14078_v42  ;;  %v3043_v55 = vmul.f32 %v14078_v42, %v14078_v42  ;;  %v3044_v56 = vmul.f32 %v14082_v46, %v14082_v46 }
  0x33   : > { %v3046_v57 = vmul.f32 %v14075_v28, %v14075_v28  ;;  %v3817_v58 = vcombine.low %v3809_v40, %v3816_v47  ;;  %v3819_v59 = vcombine.low %v3041_v24, %v3042_v48  ;;  %v14100_v62 = vrot.slane %v628_v53, %v13875_v7 }
  0x34   : > { %19441 = vst [vmem:[#allocation25_spill] sm:$0xff] %v14091_v54  ;;  %v14104_v63 = vcombine.high %v14075_v28, %v14075_v28  ;;  %v3045_v0 = vmul.f32 %v14091_v54, %v14091_v54  ;;  %v3820_v3 = vcombine.low %v3043_v55, %v3044_v56  ;;  %v682_v4 = vrot.slane %v287_v52, %v13875_v7  ;;  %v12974_v55 = vld.sshfl [vmem:[%s13873_s8 + $0x48] sm:$0x1 pattern:$0x75316420] }
  0x35   : > { %19442 = vst [vmem:[#allocation26_spill] sm:$0xff] %v14100_v62  ;;  %v3050_v5 = vmul.f32 %v14071_v34, %v14071_v34  ;;  %13335 = vmatmul.mubr.msk.f32.gmra.mxu0 %vm5655_vm2, %v3817_v58  ;;  %v3835_v6 = vrot.slane %v3819_v59, %v13875_v7  ;;  %v14115_v8 = vcombine.high %v14100_v62, %v14100_v62  ;;  %v289_v58 = vld [vmem:[%s13873_s8 + $0x50] sm:$0xff] }
  0x36   : > { %19443 = vst [vmem:[#allocation27_spill] sm:$0xff] %v14104_v63  ;;  %v3047_v10 = vmul.f32 %v14100_v62, %v14100_v62  ;;  %v3048_v11 = vmul.f32 %v14104_v63, %v14104_v63  ;;  %13337 = vmatprep.mubr.msk.f32.mxu0 %vm13810_vm1, %v18933_v2  ;;  %v3821_v12 = vcombine.low %v3045_v0, %v3046_v57 }
  0x37   : > { %19444 = vst [vmem:[#allocation28_spill] sm:$0xff] %v14115_v8  ;;  %v3842_v14 = vrot.slane %v3820_v3, %v13875_v7  ;;  %v690_v15 = vcombine.high %v682_v4, %v682_v4  ;;  %v14125_v16 = vrot.slane %v682_v4, %v13875_v7  ;;  %v3850_v17 = vcombine.low %v3828_v49, %v3835_v6 }
  0x38   : > { %v3049_v22 = vmul.f32 %v14115_v8, %v14115_v8  ;;  %v3867_v24 = vcombine.low %v3047_v10, %v3048_v11  ;;  %v675_v29 = vcombine.high %v287_v52, %v287_v52  ;;  %v3849_v40 = vrot.slane %v3821_v12, %v13875_v7 }
  0x39   : > { %19445 = vst [vmem:[#allocation29_spill] sm:$0xff] %v14125_v16  ;;  %v14131_v47 = vrot.slane %v690_v15, %v13875_v7  ;;  %v14135_v48 = vcombine.high %v14125_v16, %v14125_v16  ;;  %v3051_v53 = vmul.f32 %v14125_v16, %v14125_v16  ;;  %v3858_v49 = vrot.slane %v3850_v17, %v13875_v7 }
  0x3a   : > { %v3868_v56 = vcombine.low %v3049_v22, %v3050_v5  ;;  %v3877_v57 = vrot.slane %v3867_v24, %v13875_v7  ;;  %v689_v52 = vrot.slane %v675_v29, %v13875_v7  ;;  %v3851_v59 = vcombine.low %v3842_v14, %v3849_v40 }
  0x3b   : > { %19446 = vst [vmem:[#allocation30_spill] sm:$0xff] %v14131_v47  ;;  %19447 = vst [vmem:[#allocation31_spill] sm:$0xff] %v14135_v48  ;;  %v14146_v0 = vcombine.high %v14131_v47, %v14131_v47  ;;  %v3052_v3 = vmul.f32 %v14131_v47, %v14131_v47  ;;  %v3053_v4 = vmul.f32 %v14135_v48, %v14135_v48 }
  0x3c   : > { %v3884_v6 = vrot.slane %v3868_v56, %v13875_v7  ;;  %v691_v10 = vcombine.high %v689_v52, %v689_v52  ;;  %v14154_v5 = vrot.slane %v689_v52, %v13875_v7  ;;  %v14157_v11 = vrot.slane %v12974_v55, %v13875_v7 }
  0x3d   : > { %19448 = vst [vmem:[#allocation32_spill] sm:$0xff] %v14146_v0  ;;  %v3865_v12 = vrot.slane %v3851_v59, %v13875_v7  ;;  %v3054_v14 = vmul.f32 %v14146_v0, %v14146_v0  ;;  %v3869_v15 = vcombine.low %v3051_v53, %v3052_v3  ;;  %v745_v17 = vrot.slane %v289_v58, %v13875_v7 }
  0x3e   : > { %19449 = vst [vmem:[#allocation33_spill] sm:$0xff] %v14154_v5  ;;  %19450 = vst [vmem:[#allocation34_spill] sm:$0xff] %v14157_v11  ;;  %v3899_v22 = vcombine.low %v3877_v57, %v3884_v6  ;;  %v14164_v24 = vrot.slane %v691_v10, %v13875_v7  ;;  %v14168_v29 = vcombine.high %v14154_v5, %v14154_v5 }
  0x3f   : > { %v3055_v40 = vmul.f32 %v14154_v5, %v14154_v5  ;;  %v3866_v55 = vcombine.low %v3858_v49, %v3865_v12  ;;  %v3870_v56 = vcombine.low %v3053_v4, %v3054_v14  ;;  %v3891_v52 = vrot.slane %v3869_v15, %v13875_v7  ;;  %v293_v5 = vld [vmem:[%s13873_s8 + $0x70] sm:$0xff] }
  0x40   : > { %19451 = vst [vmem:[#allocation35_spill] sm:$0xff] %v14164_v24  ;;  %19452 = vst [vmem:[#allocation36_spill] sm:$0xff] %v14168_v29  ;;  %v753_v59 = vcombine.high %v745_v17, %v745_v17  ;;  %v3907_v53 = vrot.slane %v3899_v22, %v13875_v7  ;;  %v14176_v57 = vcombine.high %v14164_v24, %v14164_v24 }
  0x41   : > { %v14179_v3 = vrot.slane %v745_v17, %v13875_v7  ;;  %v3056_v6 = vmul.f32 %v14164_v24, %v14164_v24  ;;  %13338 = vmatmul.mubr.msk.f32.gmra.mxu0 %vm5655_vm2, %v3866_v55  ;;  %v3898_v49 = vrot.slane %v3870_v56, %v13875_v7  ;;  %v3057_v10 = vmul.f32 %v14168_v29, %v14168_v29  ;;  %v12975_v55 = vld.sshfl [vmem:[%s13873_s8 + $0x58] sm:$0x1 pattern:$0x75316420]  ;;  %v291_v56 = vld [vmem:[%s13873_s8 + $0x60] sm:$0xff] }
  0x42   : > { %19453 = vst [vmem:[#allocation37_spill] sm:$0xff] %v14176_v57  ;;  %v14186_v4 = vrot.slane %v753_v59, %v13875_v7  ;;  %v3059_v12 = vmul.f32 %v14157_v11, %v14157_v11  ;;  %13340 = vmatprep.mubr.msk.f32.mxu0 %vm13810_vm1, %v18933_v2  ;;  %v3058_v15 = vmul.f32 %v14176_v57, %v14176_v57 }
  0x43   : > { %19454 = vst [vmem:[#allocation38_spill] sm:$0xff] %v14179_v3  ;;  %v14196_v14 = vcombine.high %v14179_v3, %v14179_v3  ;;  %v3060_v17 = vmul.f32 %v14179_v3, %v14179_v3  ;;  %v3916_v22 = vcombine.low %v3055_v40, %v3056_v6  ;;  %v3900_v59 = vcombine.low %v3891_v52, %v3898_v49 }
  0x44   : > { %19455 = vst [vmem:[#allocation39_spill] sm:$0xff] %v14186_v4  ;;  %v3061_v11 = vmul.f32 %v14186_v4, %v14186_v4  ;;  %v738_v34 = vcombine.high %v289_v58, %v289_v58  ;;  %v14208_v2 = vcombine.high %v14186_v4, %v14186_v4  ;;  %v3917_v13 = vcombine.low %v3057_v10, %v3058_v15 }
  0x45   : > { %19456 = vst [vmem:[#allocation40_spill] sm:$0xff] %v14196_v14  ;;  %v3062_v1 = vmul.f32 %v14196_v14, %v14196_v14  ;;  %v3918_v57 = vcombine.low %v3059_v12, %v3060_v17  ;;  %v3926_v29 = vrot.slane %v3916_v22, %v13875_v7  ;;  %v3914_v40 = vrot.slane %v3900_v59, %v13875_v7 }
  0x46   : > { %19457 = vst [vmem:[#allocation41_spill] sm:$0xff] %v14208_v2  ;;  %v752_v6 = vrot.slane %v738_v34, %v13875_v7  ;;  %v14216_v52 = vrot.slane %v12975_v55, %v13875_v7  ;;  %v808_v58 = vrot.slane %v291_v56, %v13875_v7  ;;  %v3933_v4 = vrot.slane %v3917_v13, %v13875_v7 }
  0x47   : > { %v3919_v49 = vcombine.low %v3061_v11, %v3062_v1  ;;  %v3940_v3 = vrot.slane %v3918_v57, %v13875_v7  ;;  %v3063_v10 = vmul.f32 %v14208_v2, %v14208_v2  ;;  %v3915_v12 = vcombine.low %v3907_v53, %v3914_v40 }
  0x48   : > { %19458 = vst [vmem:[#allocation42_spill] sm:$0xff] %v14216_v52  ;;  %v754_v15 = vcombine.high %v752_v6, %v752_v6  ;;  %v14224_v17 = vrot.slane %v752_v6, %v13875_v7  ;;  %v816_v22 = vcombine.high %v808_v58, %v808_v58  ;;  %v3948_v55 = vcombine.low %v3926_v29, %v3933_v4 }
  0x49   : > { %v3947_v34 = vrot.slane %v3919_v49, %v13875_v7  ;;  %v14228_v59 = vrot.slane %v808_v58, %v13875_v7  ;;  %v3068_v13 = vmul.f32 %v14216_v52, %v14216_v52  ;;  %13341 = vmatmul.mubr.msk.f32.gmra.mxu0 %vm5655_vm2, %v3915_v12  ;;  %v19464_v57 = vmov 0.0  }
  0x4a   : > { %19459 = vst [vmem:[#allocation43_spill] sm:$0xff] %v14224_v17  ;;  %v14234_v1 = vrot.slane %v754_v15, %v13875_v7  ;;  %v14238_v11 = vcombine.high %v14224_v17, %v14224_v17  ;;  %v14241_v53 = vrot.slane %v816_v22, %v13875_v7  ;;  %v3064_v29 = vmul.f32 %v14224_v17, %v14224_v17 }
  0x4b   : > { %19460 = vst [vmem:[#allocation44_spill] sm:$0xff] %v14228_v59  ;;  %13343 = vmatprep.mubr.msk.f32.mxu0 %vm13810_vm1, %v19464_v57  ;;  %v3949_v4 = vcombine.low %v3940_v3, %v3947_v34  ;;  %v3956_v40 = vrot.slane %v3948_v55, %v13875_v7  ;;  %v3069_v6 = vmul.f32 %v14228_v59, %v14228_v59  ;;  %v12976_v55 = vld.sshfl [vmem:[%s13873_s8 + $0x68] sm:$0x1 pattern:$0x75316420] }
  0x4c   : > { %19461 = vst [vmem:[#allocation45_spill] sm:$0xff] %v14234_v1  ;;  %19462 = vst [vmem:[#allocation46_spill] sm:$0xff] %v14238_v11  ;;  %v801_v58 = vcombine.high %v291_v56, %v291_v56  ;;  %v14252_v49 = vcombine.high %v14234_v1, %v14234_v1  ;;  %v3065_v12 = vmul.f32 %v14234_v1, %v14234_v1 }
  0x4d   : > { %19463 = vst [vmem:[#allocation47_spill] sm:$0xff] %v14241_v53  ;;  %v3066_v15 = vmul.f32 %v14238_v11, %v14238_v11  ;;  %v3070_v22 = vmul.f32 %v14241_v53, %v14241_v53  ;;  %v3963_v3 = vrot.slane %v3949_v4, %v13875_v7  ;;  %v3965_v34 = vcombine.low %v3063_v10, %v3064_v29 }
  0x4e   : > { %19465 = vst [vmem:[#allocation48_spill] sm:$0xff] %v14252_v49  ;;  %v815_v56 = vrot.slane %v801_v58, %v13875_v7  ;;  %v14265_v52 = vcombine.high %v14228_v59, %v14228_v59  ;;  %v3067_v1 = vmul.f32 %v14252_v49, %v14252_v49  ;;  %v14271_v11 = vcombine.high %v14241_v53, %v14241_v53 }
  0x4f   : > { %v3966_v17 = vcombine.low %v3065_v12, %v3066_v15  ;;  %v3968_v14 = vcombine.low %v3069_v6, %v3070_v22  ;;  %v3964_v2 = vcombine.low %v3956_v40, %v3963_v3  ;;  %v3975_v4 = vrot.slane %v3965_v34, %v13875_v7 }
  0x50   : > { %19466 = vst [vmem:[#allocation49_spill] sm:$0xff] %v14265_v52  ;;  %19467 = vst [vmem:[#allocation50_spill] sm:$0xff] %v14271_v11  ;;  %v817_v10 = vcombine.high %v815_v56, %v815_v56  ;;  %v14275_v29 = vrot.slane %v815_v56, %v13875_v7  ;;  %v3967_v58 = vcombine.low %v3067_v1, %v3068_v13 }
  0x51   : > { %v3982_v59 = vrot.slane %v3966_v17, %v13875_v7  ;;  %v3996_v24 = vrot.slane %v3968_v14, %v13875_v7  ;;  %v14281_v12 = vrot.slane %v12976_v55, %v13875_v7  ;;  %13344 = vmatmul.mubr.msk.f32.gmra.mxu0 %vm5655_vm2, %v3964_v2  ;;  %v871_v15 = vrot.slane %v293_v5, %v13875_v7 }
  0x52   : > { %19468 = vst [vmem:[#allocation51_spill] sm:$0xff] %v14275_v29  ;;  %v14285_v6 = vrot.slane %v817_v10, %v13875_v7  ;;  %v14289_v40 = vcombine.high %v14275_v29, %v14275_v29  ;;  %v3071_v17 = vmul.f32 %v14265_v52, %v14265_v52  ;;  %13346 = vmatprep.mubr.msk.f32.mxu0 %vm13810_vm1, %v19464_v57  ;;  %v12977_v52 = vld.sshfl [vmem:[%s13873_s8 + $0x78] sm:$0x1 pattern:$0x75316420] }
  0x53   : > { %19469 = vst [vmem:[#allocation52_spill] sm:$0xff] %v14281_v12  ;;  %v3989_v14 = vrot.slane %v3967_v58, %v13875_v7  ;;  %v3997_v13 = vcombine.low %v3975_v4, %v3982_v59  ;;  %v3072_v2 = vmul.f32 %v14271_v11, %v14271_v11  ;;  %v3073_v1 = vmul.f32 %v14275_v29, %v14275_v29 }
  0x54   : > { %19470 = vst [vmem:[#allocation53_spill] sm:$0xff] %v14285_v6  ;;  %19471 = vst [vmem:[#allocation54_spill] sm:$0xff] %v14289_v40  ;;  %v14303_v22 = vcombine.high %v14285_v6, %v14285_v6  ;;  %v14306_v3 = vrot.slane %v871_v15, %v13875_v7  ;;  %v3074_v34 = vmul.f32 %v14285_v6, %v14285_v6 }
  0x55   : > { %v3075_v55 = vmul.f32 %v14289_v40, %v14289_v40  ;;  %v3998_v59 = vcombine.low %v3989_v14, %v3996_v24  ;;  %v4005_v56 = vrot.slane %v3997_v13, %v13875_v7  ;;  %v3077_v4 = vmul.f32 %v14281_v12, %v14281_v12 }
  0x56   : > { %19472 = vst [vmem:[#allocation55_spill] sm:$0xff] %v14303_v22  ;;  %19473 = vst [vmem:[#allocation56_spill] sm:$0xff] %v14306_v3  ;;  %v4014_v10 = vcombine.low %v3071_v17, %v3072_v2  ;;  %v3076_v58 = vmul.f32 %v14303_v22, %v14303_v22  ;;  %v3078_v29 = vmul.f32 %v14306_v3, %v14306_v3 }
  0x57   : > { %v4015_v11 = vcombine.low %v3073_v1, %v3074_v34  ;;  %v864_v6 = vcombine.high %v293_v5, %v293_v5  ;;  %v4012_v53 = vrot.slane %v3998_v59, %v13875_v7  ;;  %v879_v14 = vcombine.high %v871_v15, %v871_v15  ;;  %v295_v34 = vld [vmem:[%s13873_s8 + $0x80] sm:$0xff] }
  0x58   : > { %v4024_v24 = vrot.slane %v4014_v10, %v13875_v7  ;;  %v14324_v13 = vcombine.high %v14306_v3, %v14306_v3  ;;  %v4016_v17 = vcombine.low %v3075_v55, %v3076_v58  ;;  %v4017_v2 = vcombine.low %v3077_v4, %v3078_v29 }
  0x59   : > { %v4031_v12 = vrot.slane %v4015_v11, %v13875_v7  ;;  %v878_v22 = vrot.slane %v864_v6, %v13875_v7  ;;  %v4013_v40 = vcombine.low %v4005_v56, %v4012_v53  ;;  %v14329_v1 = vrot.slane %v879_v14, %v13875_v7 }
  0x5a   : > { %19474 = vst [vmem:[#allocation57_spill] sm:$0xff] %v14324_v13  ;;  %v14332_v5 = vrot.slane %v12977_v52, %v13875_v7  ;;  %v3080_v15 = vmul.f32 %v14324_v13, %v14324_v13  ;;  %v4038_v59 = vrot.slane %v4016_v17, %v13875_v7  ;;  %v4045_v55 = vrot.slane %v4017_v2, %v13875_v7 }
  0x5b   : > { %19475 = vst [vmem:[#allocation58_spill] sm:$0xff] %v14329_v1  ;;  %v4046_v29 = vcombine.low %v4024_v24, %v4031_v12  ;;  %v880_v4 = vcombine.high %v878_v22, %v878_v22  ;;  %13347 = vmatmul.mubr.msk.f32.gmra.mxu0 %vm5655_vm2, %v4013_v40  ;;  %v14341_v11 = vrot.slane %v878_v22, %v13875_v7 }
  0x5c   : > { %19476 = vst [vmem:[#allocation59_spill] sm:$0xff] %v14332_v5  ;;  %v14345_v53 = vcombine.high %v14329_v1, %v14329_v1  ;;  %v3079_v52 = vmul.f32 %v14329_v1, %v14329_v1  ;;  %v3086_v6 = vmul.f32 %v14332_v5, %v14332_v5  ;;  %13349 = vmatprep.mubr.msk.f32.mxu0 %vm13810_vm1, %v19464_v57 }
  0x5d   : > { %19477 = vst [vmem:[#allocation60_spill] sm:$0xff] %v14341_v11  ;;  %v4047_v12 = vcombine.low %v4038_v59, %v4045_v55  ;;  %v4054_v56 = vrot.slane %v4046_v29, %v13875_v7  ;;  %v14355_v40 = vrot.slane %v880_v4, %v13875_v7  ;;  %v927_v22 = vcombine.high %v295_v34, %v295_v34 }
  0x5e   : > { %19478 = vst [vmem:[#allocation61_spill] sm:$0xff] %v14345_v53  ;;  %v14359_v10 = vcombine.high %v14341_v11, %v14341_v11  ;;  %v3081_v58 = vmul.f32 %v14345_v53, %v14345_v53  ;;  %v3082_v24 = vmul.f32 %v14341_v11, %v14341_v11  ;;  %v4063_v14 = vcombine.low %v3079_v52, %v3080_v15 }
  0x5f   : > { %19479 = vst [vmem:[#allocation62_spill] sm:$0xff] %v14355_v40  ;;  %v4061_v17 = vrot.slane %v4047_v12, %v13875_v7  ;;  %v14368_v2 = vcombine.high %v14355_v40, %v14355_v40  ;;  %v3083_v59 = vmul.f32 %v14355_v40, %v14355_v40  ;;  %v934_v55 = vrot.slane %v295_v34, %v13875_v7 }
  0x60   : > { %19480 = vst [vmem:[#allocation63_spill] sm:$0xff] %v14359_v10  ;;  %v3084_v29 = vmul.f32 %v14359_v10, %v14359_v10  ;;  %v4064_v4 = vcombine.low %v3081_v58, %v3082_v24  ;;  %v4073_v5 = vrot.slane %v4063_v14, %v13875_v7  ;;  %v941_v11 = vrot.slane %v927_v22, %v13875_v7 }
  0x61   : > { %19481 = vst [vmem:[#allocation64_spill] sm:$0xff] %v14368_v2  ;;  %v4062_v15 = vcombine.low %v4054_v56, %v4061_v17  ;;  %v3085_v52 = vmul.f32 %v14368_v2, %v14368_v2  ;;  %v942_v12 = vcombine.high %v934_v55, %v934_v55  ;;  %v14380_v53 = vrot.slane %v934_v55, %v13875_v7 }
  0x62   : > { %v4065_v13 = vcombine.low %v3083_v59, %v3084_v29  ;;  %v4080_v40 = vrot.slane %v4064_v4, %v13875_v7  ;;  %v943_v34 = vcombine.high %v941_v11, %v941_v11  ;;  %v14384_v10 = vrot.slane %v941_v11, %v13875_v7 }
  0x63   : > { %19482 = vst [vmem:[#allocation65_spill] sm:$0xff] %v14380_v53  ;;  %13350 = vmatmul.mubr.msk.f32.gmra.mxu0 %vm5655_vm2, %v4062_v15  ;;  %v4066_v22 = vcombine.low %v3085_v52, %v3086_v6  ;;  %v14388_v56 = vrot.slane %v942_v12, %v13875_v7  ;;  %v14392_v58 = vcombine.high %v14380_v53, %v14380_v53 }
  0x64   : > { %19483 = vst [vmem:[#allocation66_spill] sm:$0xff] %v14384_v10  ;;  %v3087_v24 = vmul.f32 %v14380_v53, %v14380_v53  ;;  %13352 = vmatprep.mubr.msk.f32.mxu0 %vm13810_vm1, %v19464_v57  ;;  %v4087_v11 = vrot.slane %v4065_v13, %v13875_v7  ;;  %v4095_v14 = vcombine.low %v4073_v5, %v4080_v40  ;;  %v12978_v5 = vld.sshfl [vmem:[%s13873_s8 + $0x88] sm:$0x1 pattern:$0x75316420]  ;;  %v297_v40 = vld [vmem:[%s13873_s8 + $0x90] sm:$0xff] }
  0x65   : > { %19484 = vst [vmem:[#allocation67_spill] sm:$0xff] %v14388_v56  ;;  %19485 = vst [vmem:[#allocation68_spill] sm:$0xff] %v14392_v58  ;;  %v14400_v17 = vrot.slane %v943_v34, %v13875_v7  ;;  %v14404_v6 = vcombine.high %v14384_v10, %v14384_v10  ;;  %v4094_v59 = vrot.slane %v4066_v22, %v13875_v7 }
  0x66   : > { %v14409_v55 = vcombine.high %v14388_v56, %v14388_v56  ;;  %v3088_v29 = vmul.f32 %v14388_v56, %v14388_v56  ;;  %v3089_v13 = vmul.f32 %v14392_v58, %v14392_v58  ;;  %v4103_v4 = vrot.slane %v4095_v14, %v13875_v7 }
  0x67   : > { %19486 = vst [vmem:[#allocation69_spill] sm:$0xff] %v14400_v17  ;;  %19487 = vst [vmem:[#allocation70_spill] sm:$0xff] %v14404_v6  ;;  %v14420_v15 = vcombine.high %v14400_v17, %v14400_v17  ;;  %v3091_v52 = vmul.f32 %v14384_v10, %v14384_v10  ;;  %v3092_v12 = vmul.f32 %v14400_v17, %v14400_v17  ;;  %v12979_v17 = vld.sshfl [vmem:[%s13873_s8 + $0x98] sm:$0x1 pattern:$0x75316420] }
  0x68   : > { %19488 = vst [vmem:[#allocation71_spill] sm:$0xff] %v14409_v55  ;;  %v4096_v34 = vcombine.low %v4087_v11, %v4094_v59  ;;  %v3090_v22 = vmul.f32 %v14409_v55, %v14409_v55  ;;  %v3093_v53 = vmul.f32 %v14404_v6, %v14404_v6  ;;  %v4112_v58 = vcombine.low %v3087_v24, %v3088_v29 }
  0x69   : > { %19489 = vst [vmem:[#allocation72_spill] sm:$0xff] %v14420_v15  ;;  %v3094_v14 = vmul.f32 %v14420_v15, %v14420_v15  ;;  %v4114_v56 = vcombine.low %v3091_v52, %v3092_v12  ;;  %v14433_v2 = vrot.slane %v12978_v5, %v13875_v7  ;;  %v990_v1 = vcombine.high %v297_v40, %v297_v40 }
  0x6a   : > { %v4110_v10 = vrot.slane %v4096_v34, %v13875_v7  ;;  %v4113_v3 = vcombine.low %v3089_v13, %v3090_v22  ;;  %v4122_v11 = vrot.slane %v4112_v58, %v13875_v7  ;;  %v997_v59 = vrot.slane %v297_v40, %v13875_v7 }
  0x6b   : > { %19490 = vst [vmem:[#allocation73_spill] sm:$0xff] %v14433_v2  ;;  %v4115_v55 = vcombine.low %v3093_v53, %v3094_v14  ;;  %v4136_v6 = vrot.slane %v4114_v56, %v13875_v7  ;;  %v1004_v24 = vrot.slane %v990_v1, %v13875_v7  ;;  %v3095_v29 = vmul.f32 %v14433_v2, %v14433_v2  ;;  %v299_v14 = vld [vmem:[%s13873_s8 + $0xa0] sm:$0xff] }
  0x6c   : > { %v4111_v52 = vcombine.low %v4103_v4, %v4110_v10  ;;  %v4129_v5 = vrot.slane %v4113_v3, %v13875_v7  ;;  %v1005_v12 = vcombine.high %v997_v59, %v997_v59  ;;  %v14445_v13 = vrot.slane %v997_v59, %v13875_v7 }
  0x6d   : > { %v4143_v58 = vrot.slane %v4115_v55, %v13875_v7  ;;  %v1006_v40 = vcombine.high %v1004_v24, %v1004_v24  ;;  %v14449_v53 = vrot.slane %v1004_v24, %v13875_v7  ;;  %v1052_v56 = vrot.slane %v12979_v17, %v13875_v7 }
  0x6e   : > { %13353 = vmatmul.mubr.msk.f32.gmra.mxu0 %vm5655_vm2, %v4111_v52  ;;  %v4144_v1 = vcombine.low %v4122_v11, %v4129_v5  ;;  %v14454_v10 = vrot.slane %v1005_v12, %v13875_v7  ;;  %v14458_v3 = vcombine.high %v14445_v13, %v14445_v13  ;;  %v3096_v4 = vmul.f32 %v14445_v13, %v14445_v13 }
  0x6f   : > { %13355 = vmatprep.mubr.msk.f32.mxu0 %vm13810_vm1, %v19464_v57  ;;  %v4145_v55 = vcombine.low %v4136_v6, %v4143_v58  ;;  %v14465_v34 = vrot.slane %v1006_v40, %v13875_v7  ;;  %v14469_v17 = vcombine.high %v14449_v53, %v14449_v53  ;;  %v3100_v22 = vmul.f32 %v14449_v53, %v14449_v53 }
  0x70   : > { %v4152_v11 = vrot.slane %v4144_v1, %v13875_v7  ;;  %v14477_v59 = vcombine.high %v14454_v10, %v14454_v10  ;;  %v3097_v6 = vmul.f32 %v14454_v10, %v14454_v10  ;;  %v3098_v24 = vmul.f32 %v14458_v3, %v14458_v3 }
  0x71   : > { %v4159_v52 = vrot.slane %v4145_v55, %v13875_v7  ;;  %v3101_v5 = vmul.f32 %v14465_v34, %v14465_v34  ;;  %v3102_v12 = vmul.f32 %v14469_v17, %v14469_v17  ;;  %v4161_v58 = vcombine.low %v3095_v29, %v3096_v4 }
  0x72   : > { %v3099_v40 = vmul.f32 %v14477_v59, %v14477_v59  ;;  %v4162_v1 = vcombine.low %v3097_v6, %v3098_v24  ;;  %v14492_v2 = vcombine.high %v14465_v34, %v14465_v34  ;;  %v1053_v15 = vcombine.high %v299_v14, %v299_v14 }
  0x73   : > { %v4160_v49 = vcombine.low %v4152_v11, %v4159_v52  ;;  %v4164_v0 = vcombine.low %v3101_v5, %v3102_v12  ;;  %v4171_v55 = vrot.slane %v4161_v58, %v13875_v7  ;;  %v1060_v48 = vrot.slane %v299_v14, %v13875_v7 }
  0x74   : > { %v4163_v47 = vcombine.low %v3099_v40, %v3100_v22  ;;  %v4178_v16 = vrot.slane %v4162_v1, %v13875_v7  ;;  %v1067_v29 = vrot.slane %v1053_v15, %v13875_v7  ;;  %v3103_v4 = vmul.f32 %v14492_v2, %v14492_v2  ;;  %v12980_v40 = vld.sshfl [vmem:[%s13873_s8 + $0xa8] sm:$0x1 pattern:$0x75316420] }
  0x75   : > { %13356 = vmatmul.mubr.msk.f32.gmra.mxu0 %vm5655_vm2, %v4160_v49  ;;  %v4192_v6 = vrot.slane %v4164_v0, %v13875_v7  ;;  %v1068_v24 = vcombine.high %v1060_v48, %v1060_v48  ;;  %v14503_v11 = vrot.slane %v1060_v48, %v13875_v7  ;;  %v3104_v52 = vmul.f32 %v1052_v56, %v1052_v56 }
  0x76   : > { %13358 = vmatprep.mubr.msk.f32.mxu0 %vm13810_vm1, %v19464_v57  ;;  %v4185_v22 = vrot.slane %v4163_v47, %v13875_v7  ;;  %v4193_v14 = vcombine.low %v4171_v55, %v4178_v16  ;;  %v1069_v15 = vcombine.high %v1067_v29, %v1067_v29  ;;  %v14509_v5 = vrot.slane %v1067_v29, %v13875_v7 }
  0x77   : > { %v14512_v49 = vrot.slane %v1068_v24, %v13875_v7  ;;  %v14516_v0 = vcombine.high %v14503_v11, %v14503_v11  ;;  %v3105_v48 = vmul.f32 %v14503_v11, %v14503_v11  ;;  %v4210_v56 = vcombine.low %v3103_v4, %v3104_v52 }
  0x78   : > { %v4194_v12 = vcombine.low %v4185_v22, %v4192_v6  ;;  %v4201_v47 = vrot.slane %v4193_v14, %v13875_v7  ;;  %v14522_v16 = vrot.slane %v1069_v15, %v13875_v7  ;;  %v3109_v58 = vmul.f32 %v14509_v5, %v14509_v5  ;;  %v301_v6 = vld [vmem:[%s13873_s8 + $0xb0] sm:$0xff] }
  0x79   : > { %v14529_v1 = vcombine.high %v14512_v49, %v14512_v49  ;;  %v3106_v55 = vmul.f32 %v14512_v49, %v14512_v49  ;;  %v3107_v29 = vmul.f32 %v14516_v0, %v14516_v0  ;;  %v4220_v4 = vrot.slane %v4210_v56, %v13875_v7 }
  0x7a   : > { %v4208_v24 = vrot.slane %v4194_v12, %v13875_v7  ;;  %v3110_v52 = vmul.f32 %v14522_v16, %v14522_v16  ;;  %v14542_v22 = vcombine.high %v14509_v5, %v14509_v5  ;;  %v14546_v14 = vcombine.high %v14522_v16, %v14522_v16 }
  0x7b   : > { %v3108_v15 = vmul.f32 %v14529_v1, %v14529_v1  ;;  %v4211_v8 = vcombine.low %v3105_v48, %v3106_v55  ;;  %v1115_v56 = vrot.slane %v12980_v40, %v13875_v7  ;;  %v1116_v63 = vcombine.high %v301_v6, %v301_v6 }
  0x7c   : > { %19491 = vst [vmem:[#allocation74_spill] sm:$0xff] %v14542_v22  ;;  %v4209_v28 = vcombine.low %v4201_v47, %v4208_v24  ;;  %v4213_v12 = vcombine.low %v3109_v58, %v3110_v52  ;;  %v1123_v62 = vrot.slane %v301_v6, %v13875_v7  ;;  %v3111_v54 = vmul.f32 %v14542_v22, %v14542_v22  ;;  %v12981_v24 = vld.sshfl [vmem:[%s13873_s8 + $0xb8] sm:$0x1 pattern:$0x75316420] }
  0x7d   : > { %v4212_v46 = vcombine.low %v3107_v29, %v3108_v15  ;;  %v4227_v19 = vrot.slane %v4211_v8, %v13875_v7  ;;  %v1130_v42 = vrot.slane %v1116_v63, %v13875_v7  ;;  %v3112_v61 = vmul.f32 %v14546_v14, %v14546_v14 }
  0x7e   : > { %13359 = vmatmul.mubr.msk.f32.gmra.mxu0 %vm5655_vm2, %v4209_v28  ;;  %v4241_v48 = vrot.slane %v4213_v12, %v13875_v7  ;;  %v1131_v47 = vcombine.high %v1123_v62, %v1123_v62  ;;  %v14561_v58 = vrot.slane %v1123_v62, %v13875_v7  ;;  %v3113_v40 = vmul.f32 %v1115_v56, %v1115_v56 }
  0x7f   : > { %13361 = vmatprep.mubr.msk.f32.mxu0 %vm13810_vm1, %v19464_v57  ;;  %v4234_v8 = vrot.slane %v4212_v46, %v13875_v7  ;;  %v4242_v55 = vcombine.low %v4220_v4, %v4227_v19  ;;  %v14567_v63 = vrot.slane %v1130_v42, %v13875_v7  ;;  %v4259_v29 = vcombine.low %v3111_v54, %v3112_v61  ;;  %v303_v54 = vld [vmem:[%s13873_s8 + $0xc0] sm:$0xff] }
  0x80   : > { %19492 = vst [vmem:[#allocation75_spill] sm:$0xff] %v14561_v58  ;;  %v14570_v28 = vrot.slane %v1131_v47, %v13875_v7  ;;  %v14574_v6 = vcombine.high %v14561_v58, %v14561_v58  ;;  %v3114_v62 = vmul.f32 %v14561_v58, %v14561_v58  ;;  %v1132_v52 = vcombine.high %v1130_v42, %v1130_v42 }
  0x81   : > { %19493 = vst [vmem:[#allocation76_spill] sm:$0xff] %v14567_v63  ;;  %v4243_v15 = vcombine.low %v4234_v8, %v4241_v48  ;;  %v4250_v46 = vrot.slane %v4242_v55, %v13875_v7  ;;  %v3118_v19 = vmul.f32 %v14567_v63, %v14567_v63  ;;  %v4269_v61 = vrot.slane %v4259_v29, %v13875_v7 }
  0x82   : > { %19494 = vst [vmem:[#allocation77_spill] sm:$0xff] %v14570_v28  ;;  %19495 = vst [vmem:[#allocation78_spill] sm:$0xff] %v14574_v6  ;;  %v14586_v4 = vcombine.high %v14570_v28, %v14570_v28  ;;  %v3115_v56 = vmul.f32 %v14570_v28, %v14570_v28  ;;  %v3116_v12 = vmul.f32 %v14574_v6, %v14574_v6  ;;  %v13003_v28 = vld.sshfl [vmem:[%s13873_s8 + $0x218] sm:$0x1 pattern:$0x75316420] }
  0x83   : > { %v4260_v42 = vcombine.low %v3113_v40, %v3114_v62  ;;  %v4257_v48 = vrot.slane %v4243_v15, %v13875_v7  ;;  %v14594_v47 = vrot.slane %v1132_v52, %v13875_v7  ;;  %v14598_v8 = vcombine.high %v14567_v63, %v14567_v63 }
  0x84   : > { %19496 = vst [vmem:[#allocation79_spill] sm:$0xff] %v14586_v4  ;;  %v1178_v55 = vrot.slane %v12981_v24, %v13875_v7  ;;  %v3117_v29 = vmul.f32 %v14586_v4, %v14586_v4  ;;  %v4261_v60 = vcombine.low %v3115_v56, %v3116_v12  ;;  %v1186_v25 = vrot.slane %v303_v54, %v13875_v7  ;;  %v12997_v4 = vld.sshfl [vmem:[%s13873_s8 + $0x1b8] sm:$0x1 pattern:$0x75316420] }
  0x85   : > { %19497 = vst [vmem:[#allocation80_spill] sm:$0xff] %v14594_v47  ;;  %19498 = vst [vmem:[#allocation81_spill] sm:$0xff] %v14598_v8  ;;  %v4276_v33 = vrot.slane %v4260_v42, %v13875_v7  ;;  %v4258_v40 = vcombine.low %v4250_v46, %v4257_v48  ;;  %v14607_v62 = vcombine.high %v14594_v47, %v14594_v47 }
  0x86   : > { %v3119_v52 = vmul.f32 %v14594_v47, %v14594_v47  ;;  %v3120_v24 = vmul.f32 %v14598_v8, %v14598_v8  ;;  %v4262_v15 = vcombine.low %v3117_v29, %v3118_v19  ;;  %v4283_v56 = vrot.slane %v4261_v60, %v13875_v7  ;;  %v12982_v60 = vld.sshfl [vmem:[%s13873_s8 + $0xc8] sm:$0x1 pattern:$0x75316420] }
  0x87   : > { %19499 = vst [vmem:[#allocation82_spill] sm:$0xff] %v14607_v62  ;;  %v4291_v12 = vcombine.low %v4269_v61, %v4276_v33  ;;  %v1194_v42 = vcombine.high %v1186_v25, %v1186_v25  ;;  %13362 = vmatmul.mubr.msk.f32.gmra.mxu0 %vm5655_vm2, %v4258_v40  ;;  %v14616_v46 = vrot.slane %v1186_v25, %v13875_v7  ;;  %v305_v61 = vld [vmem:[%s13873_s8 + $0xd0] sm:$0xff] }
  0x88   : > { %v3121_v48 = vmul.f32 %v14607_v62, %v14607_v62  ;;  %v3122_v41 = vmul.f32 %v1178_v55, %v1178_v55  ;;  %v4308_v20 = vcombine.low %v3119_v52, %v3120_v24  ;;  %13364 = vmatprep.mubr.msk.f32.mxu0 %vm13810_vm1, %v19464_v57  ;;  %v4290_v27 = vrot.slane %v4262_v15, %v13875_v7 }
  0x89   : > { %19500 = vst [vmem:[#allocation83_spill] sm:$0xff] %v14616_v46  ;;  %v4299_v19 = vrot.slane %v4291_v12, %v13875_v7  ;;  %v14625_v33 = vrot.slane %v1194_v42, %v13875_v7  ;;  %v1179_v29 = vcombine.high %v303_v54, %v303_v54  ;;  %v14631_v25 = vcombine.high %v14616_v46, %v14616_v46 }
  0x8a   : > { %v3123_v55 = vmul.f32 %v14616_v46, %v14616_v46  ;;  %v4309_v40 = vcombine.low %v3121_v48, %v3122_v41  ;;  %v4318_v52 = vrot.slane %v4308_v20, %v13875_v7  ;;  %v4292_v24 = vcombine.low %v4283_v56, %v4290_v27 }
  0x8b   : > { %19501 = vst [vmem:[#allocation84_spill] sm:$0xff] %v14625_v33  ;;  %19502 = vst [vmem:[#allocation85_spill] sm:$0xff] %v14631_v25  ;;  %v14638_v15 = vcombine.high %v14625_v33, %v14625_v33  ;;  %v3124_v12 = vmul.f32 %v14625_v33, %v14625_v33  ;;  %v1193_v54 = vrot.slane %v1179_v29, %v13875_v7 }
  0x8c   : > { %v3125_v42 = vmul.f32 %v14631_v25, %v14631_v25  ;;  %v4325_v21 = vrot.slane %v4309_v40, %v13875_v7  ;;  %v1241_v45 = vrot.slane %v12982_v60, %v13875_v7  ;;  %v1249_v41 = vrot.slane %v305_v61, %v13875_v7 }
  0x8d   : > { %19503 = vst [vmem:[#allocation86_spill] sm:$0xff] %v14638_v15  ;;  %v4306_v27 = vrot.slane %v4292_v24, %v13875_v7  ;;  %v3126_v20 = vmul.f32 %v14638_v15, %v14638_v15  ;;  %v4310_v56 = vcombine.low %v3123_v55, %v3124_v12  ;;  %v1195_v48 = vcombine.high %v1193_v54, %v1193_v54 }
  0x8e   : > { %v4340_v38 = vcombine.low %v4318_v52, %v4325_v21  ;;  %v14652_v37 = vrot.slane %v1193_v54, %v13875_v7  ;;  %v1257_v29 = vcombine.high %v1249_v41, %v1249_v41  ;;  %v14655_v30 = vrot.slane %v1249_v41, %v13875_v7 }
  0x8f   : > { %v4307_v40 = vcombine.low %v4299_v19, %v4306_v27  ;;  %v4311_v60 = vcombine.low %v3125_v42, %v3126_v20  ;;  %v4332_v39 = vrot.slane %v4310_v56, %v13875_v7  ;;  %v14659_v24 = vrot.slane %v1195_v48, %v13875_v7  ;;  %v12983_v42 = vld.sshfl [vmem:[%s13873_s8 + $0xd8] sm:$0x1 pattern:$0x75316420] }
  0x90   : > { %19504 = vst [vmem:[#allocation87_spill] sm:$0xff] %v14652_v37  ;;  %19505 = vst [vmem:[#allocation88_spill] sm:$0xff] %v14655_v30  ;;  %v4348_v32 = vrot.slane %v4340_v38, %v13875_v7  ;;  %v14664_v21 = vcombine.high %v14652_v37, %v14652_v37  ;;  %v14667_v55 = vrot.slane %v1257_v29, %v13875_v7 }
  0x91   : > { %19506 = vst [vmem:[#allocation89_spill] sm:$0xff] %v14659_v24  ;;  %v14671_v52 = vcombine.high %v14655_v30, %v14655_v30  ;;  %13365 = vmatmul.mubr.msk.f32.gmra.mxu0 %vm5655_vm2, %v4307_v40  ;;  %v4339_v19 = vrot.slane %v4311_v60, %v13875_v7  ;;  %v14677_v12 = vcombine.high %v14659_v24, %v14659_v24 }
  0x92   : > { %19507 = vst [vmem:[#allocation90_spill] sm:$0xff] %v14664_v21  ;;  %19508 = vst [vmem:[#allocation91_spill] sm:$0xff] %v14667_v55  ;;  %v3127_v38 = vmul.f32 %v14652_v37, %v14652_v37  ;;  %v3128_v54 = vmul.f32 %v14659_v24, %v14659_v24  ;;  %13367 = vmatprep.mubr.msk.f32.mxu0 %vm13810_vm1, %v19464_v57  ;;  %v3129_v41 = vmul.f32 %v14664_v21, %v14664_v21 }
  0x93   : > { %19509 = vst [vmem:[#allocation92_spill] sm:$0xff] %v14671_v52  ;;  %19510 = vst [vmem:[#allocation93_spill] sm:$0xff] %v14677_v12  ;;  %v3131_v27 = vmul.f32 %v1241_v45, %v1241_v45  ;;  %v3132_v20 = vmul.f32 %v14655_v30, %v14655_v30  ;;  %v3133_v56 = vmul.f32 %v14667_v55, %v14667_v55 }
  0x94   : > { %v4341_v48 = vcombine.low %v4332_v39, %v4339_v19  ;;  %v3130_v29 = vmul.f32 %v14677_v12, %v14677_v12  ;;  %v3134_v40 = vmul.f32 %v14671_v52, %v14671_v52  ;;  %v4357_v60 = vcombine.low %v3127_v38, %v3128_v54  ;;  %v12984_v54 = vld.sshfl [vmem:[%s13873_s8 + $0xe8] sm:$0x1 pattern:$0x75316420] }
  0x95   : > { %v4359_v23 = vcombine.low %v3131_v27, %v3132_v20  ;;  %v1242_v24 = vcombine.high %v305_v61, %v305_v61  ;;  %v14699_v45 = vcombine.high %v14667_v55, %v14667_v55  ;;  %v1304_v30 = vrot.slane %v12983_v42, %v13875_v7 }
  0x96   : > { %v4355_v21 = vrot.slane %v4341_v48, %v13875_v7  ;;  %v4358_v39 = vcombine.low %v3129_v41, %v3130_v29  ;;  %v4360_v19 = vcombine.low %v3133_v56, %v3134_v40  ;;  %v4367_v12 = vrot.slane %v4357_v60, %v13875_v7 }
  0x97   : > { %19511 = vst [vmem:[#allocation94_spill] sm:$0xff] %v14699_v45  ;;  %v4381_v37 = vrot.slane %v4359_v23, %v13875_v7  ;;  %v1256_v52 = vrot.slane %v1242_v24, %v13875_v7  ;;  %v1312_v38 = vrot.slane %v307_v31, %v13875_v7  ;;  %v3135_v61 = vmul.f32 %v14699_v45, %v14699_v45  ;;  %v309_v45 = vld [vmem:[%s13873_s8 + $0xf0] sm:$0xff] }
  0x98   : > { %v4356_v27 = vcombine.low %v4348_v32, %v4355_v21  ;;  %v4374_v20 = vrot.slane %v4358_v39, %v13875_v7  ;;  %v4388_v42 = vrot.slane %v4360_v19, %v13875_v7  ;;  %v3140_v48 = vmul.f32 %v1304_v30, %v1304_v30 }
  0x99   : > { %v1258_v41 = vcombine.high %v1256_v52, %v1256_v52  ;;  %v14713_v56 = vrot.slane %v1256_v52, %v13875_v7  ;;  %v1320_v29 = vcombine.high %v1312_v38, %v1312_v38  ;;  %v14716_v23 = vrot.slane %v1312_v38, %v13875_v7 }
  0x9a   : > { %13368 = vmatmul.mubr.msk.f32.gmra.mxu0 %vm5655_vm2, %v4356_v27  ;;  %v4389_v24 = vcombine.low %v4367_v12, %v4374_v20  ;;  %v4390_v40 = vcombine.low %v4381_v37, %v4388_v42  ;;  %v1305_v60 = vcombine.high %v307_v31, %v307_v31  ;;  %v1367_v32 = vrot.slane %v12984_v54, %v13875_v7 }
  0x9b   : > { %19512 = vst [vmem:[#allocation95_spill] sm:$0xff] %v14713_v56  ;;  %19513 = vst [vmem:[#allocation96_spill] sm:$0xff] %v14716_v23  ;;  %13370 = vmatprep.mubr.msk.f32.mxu0 %vm13810_vm1, %v19464_v57  ;;  %v14723_v30 = vrot.slane %v1258_v41, %v13875_v7  ;;  %v14727_v21 = vcombine.high %v14713_v56, %v14713_v56  ;;  %v14730_v52 = vrot.slane %v1320_v29, %v13875_v7 }
  0x9c   : > { %v3136_v12 = vmul.f32 %v14713_v56, %v14713_v56  ;;  %v4397_v31 = vrot.slane %v4389_v24, %v13875_v7  ;;  %v4404_v37 = vrot.slane %v4390_v40, %v13875_v7  ;;  %v3141_v39 = vmul.f32 %v14716_v23, %v14716_v23 }
  0x9d   : > { %19514 = vst [vmem:[#allocation97_spill] sm:$0xff] %v14723_v30  ;;  %19515 = vst [vmem:[#allocation98_spill] sm:$0xff] %v14727_v21  ;;  %v1319_v19 = vrot.slane %v1305_v60, %v13875_v7  ;;  %v14741_v38 = vcombine.high %v14723_v30, %v14723_v30  ;;  %v3137_v54 = vmul.f32 %v14723_v30, %v14723_v30 }
  0x9e   : > { %19516 = vst [vmem:[#allocation99_spill] sm:$0xff] %v14730_v52  ;;  %v3138_v27 = vmul.f32 %v14727_v21, %v14727_v21  ;;  %v3142_v20 = vmul.f32 %v14730_v52, %v14730_v52  ;;  %v4405_v42 = vcombine.low %v4397_v31, %v4404_v37  ;;  %v4406_v41 = vcombine.low %v3135_v61, %v3136_v12 }
  0x9f   : > { %19517 = vst [vmem:[#allocation100_spill] sm:$0xff] %v14741_v38  ;;  %v1321_v29 = vcombine.high %v1319_v19, %v1319_v19  ;;  %v14750_v24 = vrot.slane %v1319_v19, %v13875_v7  ;;  %v3139_v40 = vmul.f32 %v14741_v38, %v14741_v38  ;;  %v14756_v30 = vcombine.high %v14716_v23, %v14716_v23 }
  0xa0   : > { %v4407_v60 = vcombine.low %v3137_v54, %v3138_v27  ;;  %v4409_v56 = vcombine.low %v3141_v39, %v3142_v20  ;;  %13371 = vmatmul.mubr.msk.f32.gmra.mxu0 %vm5655_vm2, %v4405_v42  ;;  %v4416_v21 = vrot.slane %v4406_v41, %v13875_v7  ;;  %v14770_v31 = vcombine.high %v14730_v52, %v14730_v52 }
  0xa1   : > { %19518 = vst [vmem:[#allocation101_spill] sm:$0xff] %v14750_v24  ;;  %19519 = vst [vmem:[#allocation102_spill] sm:$0xff] %v14756_v30  ;;  %v14762_v61 = vrot.slane %v1321_v29, %v13875_v7  ;;  %v14766_v12 = vcombine.high %v14750_v24, %v14750_v24  ;;  %13373 = vmatprep.mubr.msk.f32.mxu0 %vm13810_vm1, %v19464_v57  ;;  %v4408_v37 = vcombine.low %v3139_v40, %v3140_v48 }
  0xa2   : > { %19522 = vst [vmem:[#allocation105_spill] sm:$0xff] %v14770_v31  ;;  %v4423_v39 = vrot.slane %v4407_v60, %v13875_v7  ;;  %v4437_v19 = vrot.slane %v4409_v56, %v13875_v7  ;;  %v1375_v54 = vrot.slane %v309_v45, %v13875_v7  ;;  %v3143_v20 = vmul.f32 %v14756_v30, %v14756_v30 }
  0xa3   : > { %19520 = vst [vmem:[#allocation103_spill] sm:$0xff] %v14762_v61  ;;  %19521 = vst [vmem:[#allocation104_spill] sm:$0xff] %v14766_v12  ;;  %v14779_v27 = vcombine.high %v14762_v61, %v14762_v61  ;;  %v3144_v42 = vmul.f32 %v14770_v31, %v14770_v31  ;;  %v3145_v48 = vmul.f32 %v14750_v24, %v14750_v24 }
  0xa4   : > { %v4430_v41 = vrot.slane %v4408_v37, %v13875_v7  ;;  %v4438_v29 = vcombine.low %v4416_v21, %v4423_v39  ;;  %v14789_v56 = vrot.slane %v1375_v54, %v13875_v7  ;;  %v3146_v40 = vmul.f32 %v14762_v61, %v14762_v61  ;;  %v12985_v39 = vld.sshfl [vmem:[%s13873_s8 + $0xf8] sm:$0x1 pattern:$0x75316420] }
  0xa5   : > { %19523 = vst [vmem:[#allocation106_spill] sm:$0xff] %v14779_v27  ;;  %v3147_v60 = vmul.f32 %v14766_v12, %v14766_v12  ;;  %v3148_v52 = vmul.f32 %v14779_v27, %v14779_v27  ;;  %v3149_v23 = vmul.f32 %v1367_v32, %v1367_v32  ;;  %v4455_v31 = vcombine.low %v3143_v20, %v3144_v42 }
  0xa6   : > { %19524 = vst [vmem:[#allocation107_spill] sm:$0xff] %v14789_v56  ;;  %v4439_v30 = vcombine.low %v4430_v41, %v4437_v19  ;;  %v4446_v24 = vrot.slane %v4438_v29, %v13875_v7  ;;  %v3150_v21 = vmul.f32 %v14789_v56, %v14789_v56  ;;  %v4456_v37 = vcombine.low %v3145_v48, %v3146_v40 }
  0xa7   : > { %v4457_v38 = vcombine.low %v3147_v60, %v3148_v52  ;;  %v4465_v61 = vrot.slane %v4455_v31, %v13875_v7  ;;  %v1368_v55 = vcombine.high %v309_v45, %v309_v45  ;;  %v1383_v15 = vcombine.high %v1375_v54, %v1375_v54  ;;  %v311_v45 = vld [vmem:[%s13873_s8 + $0x100] sm:$0xff] }
  0xa8   : > { %v4453_v12 = vrot.slane %v4439_v30, %v13875_v7  ;;  %v4458_v25 = vcombine.low %v3149_v23, %v3150_v21  ;;  %v4472_v32 = vrot.slane %v4456_v37, %v13875_v7  ;;  %v14806_v19 = vcombine.high %v14789_v56, %v14789_v56 }
  0xa9   : > { %v4479_v20 = vrot.slane %v4457_v38, %v13875_v7  ;;  %v1382_v42 = vrot.slane %v1368_v55, %v13875_v7  ;;  %v14811_v48 = vrot.slane %v1383_v15, %v13875_v7  ;;  %v1430_v52 = vrot.slane %v12985_v39, %v13875_v7 }
  0xaa   : > { %19525 = vst [vmem:[#allocation108_spill] sm:$0xff] %v14806_v19  ;;  %v4454_v31 = vcombine.low %v4446_v24, %v4453_v12  ;;  %v4486_v30 = vrot.slane %v4458_v25, %v13875_v7  ;;  %v4487_v23 = vcombine.low %v4465_v61, %v4472_v32  ;;  %v3152_v54 = vmul.f32 %v14806_v19, %v14806_v19 }
  0xab   : > { %19526 = vst [vmem:[#allocation109_spill] sm:$0xff] %v14811_v48  ;;  %v1384_v41 = vcombine.high %v1382_v42, %v1382_v42  ;;  %v14819_v29 = vrot.slane %v1382_v42, %v13875_v7  ;;  %v14823_v55 = vcombine.high %v14811_v48, %v14811_v48  ;;  %v3151_v15 = vmul.f32 %v14811_v48, %v14811_v48 }
  0xac   : > { %13374 = vmatmul.mubr.msk.f32.gmra.mxu0 %vm5655_vm2, %v4454_v31  ;;  %v4488_v38 = vcombine.low %v4479_v20, %v4486_v30  ;;  %v4495_v25 = vrot.slane %v4487_v23, %v13875_v7  ;;  %v3158_v24 = vmul.f32 %v1430_v52, %v1430_v52  ;;  %v1431_v61 = vcombine.high %v311_v45, %v311_v45  ;;  %v12986_v23 = vld.sshfl [vmem:[%s13873_s8 + $0x108] sm:$0x1 pattern:$0x75316420] }
  0xad   : > { %19527 = vst [vmem:[#allocation110_spill] sm:$0xff] %v14819_v29  ;;  %19528 = vst [vmem:[#allocation111_spill] sm:$0xff] %v14823_v55  ;;  %13376 = vmatprep.mubr.msk.f32.mxu0 %vm13810_vm1, %v19464_v57  ;;  %v14832_v12 = vrot.slane %v1384_v41, %v13875_v7  ;;  %v14836_v40 = vcombine.high %v14819_v29, %v14819_v29  ;;  %v3153_v60 = vmul.f32 %v14823_v55, %v14823_v55 }
  0xae   : > { %v3154_v21 = vmul.f32 %v14819_v29, %v14819_v29  ;;  %v4502_v37 = vrot.slane %v4488_v38, %v13875_v7  ;;  %v4504_v39 = vcombine.low %v3151_v15, %v3152_v54  ;;  %v1438_v32 = vrot.slane %v311_v45, %v13875_v7 }
  0xaf   : > { %19529 = vst [vmem:[#allocation112_spill] sm:$0xff] %v14832_v12  ;;  %19530 = vst [vmem:[#allocation113_spill] sm:$0xff] %v14836_v40  ;;  %v1445_v20 = vrot.slane %v1431_v61, %v13875_v7  ;;  %v14847_v42 = vcombine.high %v14832_v12, %v14832_v12  ;;  %v3155_v52 = vmul.f32 %v14832_v12, %v14832_v12 }
  0xb0   : > { %v3156_v31 = vmul.f32 %v14836_v40, %v14836_v40  ;;  %v4505_v30 = vcombine.low %v3153_v60, %v3154_v21  ;;  %v4503_v41 = vcombine.low %v4495_v25, %v4502_v37  ;;  %v4514_v38 = vrot.slane %v4504_v39, %v13875_v7 }
  0xb1   : > { %19531 = vst [vmem:[#allocation114_spill] sm:$0xff] %v14847_v42  ;;  %v1446_v54 = vcombine.high %v1438_v32, %v1438_v32  ;;  %v1447_v15 = vcombine.high %v1445_v20, %v1445_v20  ;;  %v3157_v45 = vmul.f32 %v14847_v42, %v14847_v42  ;;  %v14859_v55 = vrot.slane %v1438_v32, %v13875_v7 }
  0xb2   : > { %v4506_v61 = vcombine.low %v3155_v52, %v3156_v31  ;;  %v4521_v29 = vrot.slane %v4505_v30, %v13875_v7  ;;  %13377 = vmatmul.mubr.msk.f32.gmra.mxu0 %vm5655_vm2, %v4503_v41  ;;  %v14863_v60 = vrot.slane %v1445_v20, %v13875_v7  ;;  %v1493_v37 = vrot.slane %v12986_v23, %v13875_v7 }
  0xb3   : > { %19532 = vst [vmem:[#allocation115_spill] sm:$0xff] %v14859_v55  ;;  %v14866_v25 = vrot.slane %v1446_v54, %v13875_v7  ;;  %v14869_v21 = vrot.slane %v1447_v15, %v13875_v7  ;;  %13379 = vmatprep.mubr.msk.f32.mxu0 %vm13810_vm1, %v19464_v57  ;;  %v4507_v39 = vcombine.low %v3157_v45, %v3158_v24 }
  0xb4   : > { %19533 = vst [vmem:[#allocation116_spill] sm:$0xff] %v14863_v60  ;;  %v4528_v32 = vrot.slane %v4506_v61, %v13875_v7  ;;  %v4536_v52 = vcombine.low %v4514_v38, %v4521_v29  ;;  %v14877_v31 = vcombine.high %v14859_v55, %v14859_v55  ;;  %v14881_v20 = vcombine.high %v14863_v60, %v14863_v60  ;;  %v313_v29 = vld [vmem:[%s13873_s8 + $0x110] sm:$0xff] }
  0xb5   : > { %19534 = vst [vmem:[#allocation117_spill] sm:$0xff] %v14866_v25  ;;  %19535 = vst [vmem:[#allocation118_spill] sm:$0xff] %v14869_v21  ;;  %v14885_v30 = vcombine.high %v14866_v25, %v14866_v25  ;;  %v14889_v23 = vcombine.high %v14869_v21, %v14869_v21  ;;  %v3159_v24 = vmul.f32 %v14859_v55, %v14859_v55 }
  0xb6   : > { %19536 = vst [vmem:[#allocation119_spill] sm:$0xff] %v14877_v31  ;;  %19537 = vst [vmem:[#allocation120_spill] sm:$0xff] %v14881_v20  ;;  %v4535_v41 = vrot.slane %v4507_v39, %v13875_v7  ;;  %v4544_v38 = vrot.slane %v4536_v52, %v13875_v7  ;;  %v3160_v54 = vmul.f32 %v14866_v25, %v14866_v25 }
  0xb7   : > { %19538 = vst [vmem:[#allocation121_spill] sm:$0xff] %v14885_v30  ;;  %19539 = vst [vmem:[#allocation122_spill] sm:$0xff] %v14889_v23  ;;  %v3161_v15 = vmul.f32 %v14877_v31, %v14877_v31  ;;  %v3162_v45 = vmul.f32 %v14885_v30, %v14885_v30  ;;  %v3163_v61 = vmul.f32 %v14863_v60, %v14863_v60 }
  0xb8   : > { %v3164_v55 = vmul.f32 %v14869_v21, %v14869_v21  ;;  %v3165_v39 = vmul.f32 %v14881_v20, %v14881_v20  ;;  %v4537_v42 = vcombine.low %v4528_v32, %v4535_v41  ;;  %v3166_v52 = vmul.f32 %v14889_v23, %v14889_v23 }
  0xb9   : > { %v4553_v25 = vcombine.low %v3159_v24, %v3160_v54  ;;  %v1494_v40 = vcombine.high %v313_v29, %v313_v29  ;;  %v4554_v12 = vcombine.low %v3161_v15, %v3162_v45  ;;  %v1501_v19 = vrot.slane %v313_v29, %v13875_v7  ;;  %v315_v45 = vld [vmem:[%s13873_s8 + $0x120] sm:$0xff] }
  0xba   : > { %v4555_v31 = vcombine.low %v3163_v61, %v3164_v55  ;;  %v3167_v30 = vmul.f32 %v1493_v37, %v1493_v37  ;;  %v4551_v48 = vrot.slane %v4537_v42, %v13875_v7  ;;  %v4556_v60 = vcombine.low %v3165_v39, %v3166_v52 }
  0xbb   : > { %v4563_v56 = vrot.slane %v4553_v25, %v13875_v7  ;;  %v1508_v21 = vrot.slane %v1494_v40, %v13875_v7  ;;  %v4570_v20 = vrot.slane %v4554_v12, %v13875_v7  ;;  %v1509_v41 = vcombine.high %v1501_v19, %v1501_v19 }
  0xbc   : > { %v4577_v32 = vrot.slane %v4555_v31, %v13875_v7  ;;  %v14917_v24 = vrot.slane %v1501_v19, %v13875_v7  ;;  %v4552_v55 = vcombine.low %v4544_v38, %v4551_v48  ;;  %v4584_v29 = vrot.slane %v4556_v60, %v13875_v7  ;;  %v12987_v31 = vld.sshfl [vmem:[%s13873_s8 + $0x118] sm:$0x1 pattern:$0x75316420] }
  0xbd   : > { %v1510_v37 = vcombine.high %v1508_v21, %v1508_v21  ;;  %v14921_v42 = vrot.slane %v1508_v21, %v13875_v7  ;;  %v4585_v25 = vcombine.low %v4563_v56, %v4570_v20  ;;  %v14924_v40 = vrot.slane %v1509_v41, %v13875_v7 }
  0xbe   : > { %19540 = vst [vmem:[#allocation123_spill] sm:$0xff] %v14917_v24  ;;  %v14928_v12 = vcombine.high %v14917_v24, %v14917_v24  ;;  %v3168_v19 = vmul.f32 %v14917_v24, %v14917_v24  ;;  %13380 = vmatmul.mubr.msk.f32.gmra.mxu0 %vm5655_vm2, %v4552_v55  ;;  %v4586_v48 = vcombine.low %v4577_v32, %v4584_v29 }
  0xbf   : > { %19541 = vst [vmem:[#allocation124_spill] sm:$0xff] %v14921_v42  ;;  %19542 = vst [vmem:[#allocation125_spill] sm:$0xff] %v14924_v40  ;;  %v14934_v60 = vrot.slane %v1510_v37, %v13875_v7  ;;  %v14938_v21 = vcombine.high %v14921_v42, %v14921_v42  ;;  %v3172_v56 = vmul.f32 %v14921_v42, %v14921_v42  ;;  %13382 = vmatprep.mubr.msk.f32.mxu0 %vm13810_vm1, %v19464_v57 }
  0xc0   : > { %19543 = vst [vmem:[#allocation126_spill] sm:$0xff] %v14928_v12  ;;  %v4593_v20 = vrot.slane %v4585_v25, %v13875_v7  ;;  %v14948_v38 = vcombine.high %v14924_v40, %v14924_v40  ;;  %v3169_v54 = vmul.f32 %v14924_v40, %v14924_v40  ;;  %v3170_v15 = vmul.f32 %v14928_v12, %v14928_v12  ;;  %v12988_v25 = vld.sshfl [vmem:[%s13873_s8 + $0x128] sm:$0x1 pattern:$0x75316420] }
  0xc1   : > { %19544 = vst [vmem:[#allocation127_spill] sm:$0xff] %v14934_v60  ;;  %19545 = vst [vmem:[#allocation128_spill] sm:$0xff] %v14938_v21  ;;  %v4600_v61 = vrot.slane %v4586_v48, %v13875_v7  ;;  %v3173_v39 = vmul.f32 %v14934_v60, %v14934_v60  ;;  %v3174_v52 = vmul.f32 %v14938_v21, %v14938_v21 }
  0xc2   : > { %19546 = vst [vmem:[#allocation129_spill] sm:$0xff] %v14948_v38  ;;  %v4602_v32 = vcombine.low %v3167_v30, %v3168_v19  ;;  %v3171_v41 = vmul.f32 %v14948_v38, %v14948_v38  ;;  %v4603_v55 = vcombine.low %v3169_v54, %v3170_v15  ;;  %v14964_v29 = vcombine.high %v14934_v60, %v14934_v60 }
  0xc3   : > { %v1556_v37 = vrot.slane %v12987_v31, %v13875_v7  ;;  %v4601_v40 = vcombine.low %v4593_v20, %v4600_v61  ;;  %v4605_v48 = vcombine.low %v3173_v39, %v3174_v52  ;;  %v1557_v42 = vcombine.high %v315_v45, %v315_v45 }
  0xc4   : > { %19547 = vst [vmem:[#allocation130_spill] sm:$0xff] %v14964_v29  ;;  %v4612_v24 = vrot.slane %v4602_v32, %v13875_v7  ;;  %v4604_v12 = vcombine.low %v3171_v41, %v3172_v56  ;;  %v4619_v30 = vrot.slane %v4603_v55, %v13875_v7  ;;  %v1564_v19 = vrot.slane %v315_v45, %v13875_v7  ;;  %v317_v32 = vld [vmem:[%s13873_s8 + $0x130] sm:$0xff] }
  0xc5   : > { %v3175_v54 = vmul.f32 %v14964_v29, %v14964_v29  ;;  %13383 = vmatmul.mubr.msk.f32.gmra.mxu0 %vm5655_vm2, %v4601_v40  ;;  %v4633_v15 = vrot.slane %v4605_v48, %v13875_v7  ;;  %v1571_v31 = vrot.slane %v1557_v42, %v13875_v7  ;;  %v3176_v20 = vmul.f32 %v1556_v37, %v1556_v37 }
  0xc6   : > { %v14977_v61 = vrot.slane %v12988_v25, %v13875_v7  ;;  %13385 = vmatprep.mubr.msk.f32.mxu0 %vm13810_vm1, %v19464_v57  ;;  %v4626_v56 = vrot.slane %v4604_v12, %v13875_v7  ;;  %v4634_v39 = vcombine.low %v4612_v24, %v4619_v30  ;;  %v1572_v45 = vcombine.high %v1564_v19, %v1564_v19 }
  0xc7   : > { %v14983_v52 = vrot.slane %v1564_v19, %v13875_v7  ;;  %v1573_v40 = vcombine.high %v1571_v31, %v1571_v31  ;;  %v14987_v41 = vrot.slane %v1571_v31, %v13875_v7  ;;  %v4651_v42 = vcombine.low %v3175_v54, %v3176_v20 }
  0xc8   : > { %19548 = vst [vmem:[#allocation131_spill] sm:$0xff] %v14977_v61  ;;  %v1620_v55 = vcombine.high %v317_v32, %v317_v32  ;;  %v4635_v37 = vcombine.low %v4626_v56, %v4633_v15  ;;  %v4642_v25 = vrot.slane %v4634_v39, %v13875_v7  ;;  %v14991_v48 = vrot.slane %v1572_v45, %v13875_v7 }
  0xc9   : > { %19549 = vst [vmem:[#allocation132_spill] sm:$0xff] %v14983_v52  ;;  %19550 = vst [vmem:[#allocation133_spill] sm:$0xff] %v14987_v41  ;;  %v14995_v24 = vcombine.high %v14983_v52, %v14983_v52  ;;  %v14998_v12 = vrot.slane %v1573_v40, %v13875_v7  ;;  %v3177_v30 = vmul.f32 %v14983_v52, %v14983_v52 }
  0xca   : > { %19551 = vst [vmem:[#allocation134_spill] sm:$0xff] %v14991_v48  ;;  %v3181_v19 = vmul.f32 %v14987_v41, %v14987_v41  ;;  %v4661_v54 = vrot.slane %v4651_v42, %v13875_v7  ;;  %v4649_v15 = vrot.slane %v4635_v37, %v13875_v7  ;;  %v15008_v31 = vcombine.high %v14991_v48, %v14991_v48 }
  0xcb   : > { %19552 = vst [vmem:[#allocation135_spill] sm:$0xff] %v14995_v24  ;;  %19553 = vst [vmem:[#allocation136_spill] sm:$0xff] %v14998_v12  ;;  %v3178_v20 = vmul.f32 %v14991_v48, %v14991_v48  ;;  %v3179_v56 = vmul.f32 %v14995_v24, %v14995_v24  ;;  %v3182_v39 = vmul.f32 %v14998_v12, %v14998_v12 }
  0xcc   : > { %19554 = vst [vmem:[#allocation137_spill] sm:$0xff] %v15008_v31  ;;  %v15018_v45 = vcombine.high %v14987_v41, %v14987_v41  ;;  %v15022_v40 = vcombine.high %v14998_v12, %v14998_v12  ;;  %v1627_v42 = vrot.slane %v317_v32, %v13875_v7  ;;  %v4650_v37 = vcombine.low %v4642_v25, %v4649_v15 }
  0xcd   : > { %v3180_v38 = vmul.f32 %v15008_v31, %v15008_v31  ;;  %v4652_v29 = vcombine.low %v3177_v30, %v3178_v20  ;;  %v1634_v60 = vrot.slane %v1620_v55, %v13875_v7  ;;  %v4654_v21 = vcombine.low %v3181_v19, %v3182_v39 }
  0xce   : > { %19555 = vst [vmem:[#allocation138_spill] sm:$0xff] %v15018_v45  ;;  %19556 = vst [vmem:[#allocation139_spill] sm:$0xff] %v15022_v40  ;;  %v1635_v48 = vcombine.high %v1627_v42, %v1627_v42  ;;  %v15029_v24 = vrot.slane %v1627_v42, %v13875_v7  ;;  %v3183_v41 = vmul.f32 %v15018_v45, %v15018_v45  ;;  %13386 = vmatmul.mubr.msk.f32.gmra.mxu0 %vm5655_vm2, %v4650_v37 }
  0xcf   : > { %v4653_v12 = vcombine.low %v3179_v56, %v3180_v38  ;;  %v4668_v32 = vrot.slane %v4652_v29, %v13875_v7  ;;  %v15036_v25 = vrot.slane %v1634_v60, %v13875_v7  ;;  %v3184_v55 = vmul.f32 %v15022_v40, %v15022_v40  ;;  %13388 = vmatprep.mubr.msk.f32.mxu0 %vm13810_vm1, %v19464_v57  ;;  %v319_v40 = vld [vmem:[%s13873_s8 + $0x140] sm:$0xff] }
  0xd0   : > { %19557 = vst [vmem:[#allocation140_spill] sm:$0xff] %v15029_v24  ;;  %v4682_v30 = vrot.slane %v4654_v21, %v13875_v7  ;;  %v15044_v19 = vrot.slane %v1635_v48, %v13875_v7  ;;  %v15048_v38 = vcombine.high %v15029_v24, %v15029_v24  ;;  %v3185_v29 = vmul.f32 %v14977_v61, %v14977_v61  ;;  %v12989_v61 = vld.sshfl [vmem:[%s13873_s8 + $0x138] sm:$0x1 pattern:$0x75316420] }
  0xd1   : > { %19558 = vst [vmem:[#allocation141_spill] sm:$0xff] %v15036_v25  ;;  %v4675_v15 = vrot.slane %v4653_v12, %v13875_v7  ;;  %v4683_v20 = vcombine.low %v4661_v54, %v4668_v32  ;;  %v3186_v56 = vmul.f32 %v15029_v24, %v15029_v24  ;;  %v3190_v21 = vmul.f32 %v15036_v25, %v15036_v25 }
  0xd2   : > { %19559 = vst [vmem:[#allocation142_spill] sm:$0xff] %v15044_v19  ;;  %19560 = vst [vmem:[#allocation143_spill] sm:$0xff] %v15048_v38  ;;  %v15059_v48 = vcombine.high %v15044_v19, %v15044_v19  ;;  %v3187_v39 = vmul.f32 %v15044_v19, %v15044_v19  ;;  %v3188_v42 = vmul.f32 %v15048_v38, %v15048_v38 }
  0xd3   : > { %v4700_v37 = vcombine.low %v3183_v41, %v3184_v55  ;;  %v4684_v12 = vcombine.low %v4675_v15, %v4682_v30  ;;  %v4691_v54 = vrot.slane %v4683_v20, %v13875_v7  ;;  %v4701_v32 = vcombine.low %v3185_v29, %v3186_v56 }
  0xd4   : > { %19561 = vst [vmem:[#allocation144_spill] sm:$0xff] %v15059_v48  ;;  %v1636_v45 = vcombine.high %v1634_v60, %v1634_v60  ;;  %v3189_v31 = vmul.f32 %v15059_v48, %v15059_v48  ;;  %v4702_v52 = vcombine.low %v3187_v39, %v3188_v42  ;;  %v15073_v27 = vcombine.high %v15036_v25, %v15036_v25 }
  0xd5   : > { %v4710_v23 = vrot.slane %v4700_v37, %v13875_v7  ;;  %v4698_v38 = vrot.slane %v4684_v12, %v13875_v7  ;;  %v4717_v41 = vrot.slane %v4701_v32, %v13875_v7  ;;  %v15081_v60 = vrot.slane %v12989_v61, %v13875_v7  ;;  %v12990_v37 = vld.sshfl [vmem:[%s13873_s8 + $0x148] sm:$0x1 pattern:$0x75316420] }
  0xd6   : > { %19562 = vst [vmem:[#allocation145_spill] sm:$0xff] %v15073_v27  ;;  %v15078_v55 = vrot.slane %v1636_v45, %v13875_v7  ;;  %v4703_v30 = vcombine.low %v3189_v31, %v3190_v21  ;;  %v4724_v29 = vrot.slane %v4702_v52, %v13875_v7  ;;  %v1690_v15 = vrot.slane %v319_v40, %v13875_v7 }
  0xd7   : > { %19564 = vst [vmem:[#allocation147_spill] sm:$0xff] %v15081_v60  ;;  %v3192_v20 = vmul.f32 %v15073_v27, %v15073_v27  ;;  %v4699_v56 = vcombine.low %v4691_v54, %v4698_v38  ;;  %v4732_v39 = vcombine.low %v4710_v23, %v4717_v41  ;;  %v3194_v21 = vmul.f32 %v15081_v60, %v15081_v60 }
  0xd8   : > { %19563 = vst [vmem:[#allocation146_spill] sm:$0xff] %v15078_v55  ;;  %v15089_v42 = vcombine.high %v15078_v55, %v15078_v55  ;;  %v3191_v45 = vmul.f32 %v15078_v55, %v15078_v55  ;;  %v4731_v61 = vrot.slane %v4703_v30, %v13875_v7  ;;  %v1698_v31 = vcombine.high %v1690_v15, %v1690_v15 }
  0xd9   : > { %v15095_v52 = vrot.slane %v1690_v15, %v13875_v7  ;;  %13389 = vmatmul.mubr.msk.f32.gmra.mxu0 %vm5655_vm2, %v4699_v56  ;;  %v4740_v23 = vrot.slane %v4732_v39, %v13875_v7  ;;  %v1683_v54 = vcombine.high %v319_v40, %v319_v40  ;;  %v321_v56 = vld [vmem:[%s13873_s8 + $0x150] sm:$0xff] }
  0xda   : > { %19565 = vst [vmem:[#allocation148_spill] sm:$0xff] %v15089_v42  ;;  %v3193_v38 = vmul.f32 %v15089_v42, %v15089_v42  ;;  %v4749_v12 = vcombine.low %v3191_v45, %v3192_v20  ;;  %13391 = vmatprep.mubr.msk.f32.mxu0 %vm13810_vm1, %v19464_v57  ;;  %v4733_v32 = vcombine.low %v4724_v29, %v4731_v61 }
  0xdb   : > { %19566 = vst [vmem:[#allocation149_spill] sm:$0xff] %v15095_v52  ;;  %v15107_v41 = vrot.slane %v1698_v31, %v13875_v7  ;;  %v15111_v30 = vcombine.high %v15095_v52, %v15095_v52  ;;  %v3195_v15 = vmul.f32 %v15095_v52, %v15095_v52  ;;  %v1697_v40 = vrot.slane %v1683_v54, %v13875_v7 }
  0xdc   : > { %v4750_v39 = vcombine.low %v3193_v38, %v3194_v21  ;;  %v4759_v60 = vrot.slane %v4749_v12, %v13875_v7  ;;  %v15119_v20 = vrot.slane %v12990_v37, %v13875_v7  ;;  %v4747_v29 = vrot.slane %v4733_v32, %v13875_v7 }
  0xdd   : > { %19567 = vst [vmem:[#allocation150_spill] sm:$0xff] %v15107_v41  ;;  %19568 = vst [vmem:[#allocation151_spill] sm:$0xff] %v15111_v30  ;;  %v15124_v45 = vcombine.high %v15107_v41, %v15107_v41  ;;  %v3196_v61 = vmul.f32 %v15107_v41, %v15107_v41  ;;  %v3197_v31 = vmul.f32 %v15111_v30, %v15111_v30 }
  0xde   : > { %19569 = vst [vmem:[#allocation152_spill] sm:$0xff] %v15119_v20  ;;  %v4766_v21 = vrot.slane %v4750_v39, %v13875_v7  ;;  %v1699_v38 = vcombine.high %v1697_v40, %v1697_v40  ;;  %v15132_v12 = vrot.slane %v1697_v40, %v13875_v7  ;;  %v1753_v37 = vrot.slane %v321_v56, %v13875_v7 }
  0xdf   : > { %19570 = vst [vmem:[#allocation153_spill] sm:$0xff] %v15124_v45  ;;  %v4748_v54 = vcombine.low %v4740_v23, %v4747_v29  ;;  %v3198_v32 = vmul.f32 %v15124_v45, %v15124_v45  ;;  %v4751_v52 = vcombine.low %v3195_v15, %v3196_v61  ;;  %v3203_v42 = vmul.f32 %v15119_v20, %v15119_v20 }
  0xe0   : > { %19571 = vst [vmem:[#allocation154_spill] sm:$0xff] %v15132_v12  ;;  %v4781_v41 = vcombine.low %v4759_v60, %v4766_v21  ;;  %v15140_v27 = vrot.slane %v1699_v38, %v13875_v7  ;;  %v15144_v39 = vcombine.high %v15132_v12, %v15132_v12  ;;  %v1761_v40 = vcombine.high %v1753_v37, %v1753_v37 }
  0xe1   : > { %13392 = vmatmul.mubr.msk.f32.gmra.mxu0 %vm5655_vm2, %v4748_v54  ;;  %v4752_v23 = vcombine.low %v3197_v31, %v3198_v32  ;;  %v4773_v29 = vrot.slane %v4751_v52, %v13875_v7  ;;  %v15149_v15 = vrot.slane %v1753_v37, %v13875_v7  ;;  %v3199_v60 = vmul.f32 %v15132_v12, %v15132_v12  ;;  %v12991_v32 = vld.sshfl [vmem:[%s13873_s8 + $0x158] sm:$0x1 pattern:$0x75316420]  ;;  %v323_v12 = vld [vmem:[%s13873_s8 + $0x160] sm:$0xff] }
  0xe2   : > { %19572 = vst [vmem:[#allocation155_spill] sm:$0xff] %v15140_v27  ;;  %19573 = vst [vmem:[#allocation156_spill] sm:$0xff] %v15144_v39  ;;  %13394 = vmatprep.mubr.msk.f32.mxu0 %vm13810_vm1, %v19464_v57  ;;  %v4789_v61 = vrot.slane %v4781_v41, %v13875_v7  ;;  %v15158_v21 = vcombine.high %v15140_v27, %v15140_v27  ;;  %v15161_v31 = vrot.slane %v1761_v40, %v13875_v7 }
  0xe3   : > { %19574 = vst [vmem:[#allocation157_spill] sm:$0xff] %v15149_v15  ;;  %v3200_v52 = vmul.f32 %v15140_v27, %v15140_v27  ;;  %v4780_v38 = vrot.slane %v4752_v23, %v13875_v7  ;;  %v15168_v37 = vcombine.high %v15149_v15, %v15149_v15  ;;  %v3201_v54 = vmul.f32 %v15144_v39, %v15144_v39 }
  0xe4   : > { %19575 = vst [vmem:[#allocation158_spill] sm:$0xff] %v15158_v21  ;;  %19576 = vst [vmem:[#allocation159_spill] sm:$0xff] %v15161_v31  ;;  %v3204_v41 = vmul.f32 %v15149_v15, %v15149_v15  ;;  %v3202_v40 = vmul.f32 %v15158_v21, %v15158_v21  ;;  %v3205_v20 = vmul.f32 %v15161_v31, %v15161_v31 }
  0xe5   : > { %19577 = vst [vmem:[#allocation160_spill] sm:$0xff] %v15168_v37  ;;  %v4798_v27 = vcombine.low %v3199_v60, %v3200_v52  ;;  %v1746_v23 = vcombine.high %v321_v56, %v321_v56  ;;  %v4782_v45 = vcombine.low %v4773_v29, %v4780_v38  ;;  %v3206_v30 = vmul.f32 %v15168_v37, %v15168_v37  ;;  %v325_v37 = vld [vmem:[%s13873_s8 + $0x170] sm:$0xff] }
  0xe6   : > { %v4800_v55 = vcombine.low %v3203_v42, %v3204_v41  ;;  %v15184_v39 = vcombine.high %v15161_v31, %v15161_v31  ;;  %v4799_v15 = vcombine.low %v3201_v54, %v3202_v40  ;;  %v15189_v48 = vrot.slane %v12991_v32, %v13875_v7 }
  0xe7   : > { %v4808_v25 = vrot.slane %v4798_v27, %v13875_v7  ;;  %v1760_v21 = vrot.slane %v1746_v23, %v13875_v7  ;;  %v4796_v60 = vrot.slane %v4782_v45, %v13875_v7  ;;  %v4801_v56 = vcombine.low %v3205_v20, %v3206_v30 }
  0xe8   : > { %19578 = vst [vmem:[#allocation161_spill] sm:$0xff] %v15184_v39  ;;  %19579 = vst [vmem:[#allocation162_spill] sm:$0xff] %v15189_v48  ;;  %v4822_v29 = vrot.slane %v4800_v55, %v13875_v7  ;;  %v1816_v52 = vrot.slane %v323_v12, %v13875_v7  ;;  %v4815_v42 = vrot.slane %v4799_v15, %v13875_v7 }
  0xe9   : > { %v1762_v38 = vcombine.high %v1760_v21, %v1760_v21  ;;  %v15196_v41 = vrot.slane %v1760_v21, %v13875_v7  ;;  %v3207_v27 = vmul.f32 %v15184_v39, %v15184_v39  ;;  %v4797_v54 = vcombine.low %v4789_v61, %v4796_v60 }
  0xea   : > { %v4829_v32 = vrot.slane %v4801_v56, %v13875_v7  ;;  %v1824_v40 = vcombine.high %v1816_v52, %v1816_v52  ;;  %v15202_v45 = vrot.slane %v1816_v52, %v13875_v7  ;;  %v4830_v30 = vcombine.low %v4808_v25, %v4815_v42 }
  0xeb   : > { %19580 = vst [vmem:[#allocation163_spill] sm:$0xff] %v15196_v41  ;;  %v15205_v55 = vrot.slane %v1762_v38, %v13875_v7  ;;  %v15209_v20 = vcombine.high %v15196_v41, %v15196_v41  ;;  %v3208_v15 = vmul.f32 %v15196_v41, %v15196_v41  ;;  %13395 = vmatmul.mubr.msk.f32.gmra.mxu0 %vm5655_vm2, %v4797_v54 }
  0xec   : > { %19581 = vst [vmem:[#allocation164_spill] sm:$0xff] %v15202_v45  ;;  %v4831_v61 = vcombine.low %v4822_v29, %v4829_v32  ;;  %v15215_v21 = vrot.slane %v1824_v40, %v13875_v7  ;;  %v3212_v25 = vmul.f32 %v15189_v48, %v15189_v48  ;;  %v3213_v23 = vmul.f32 %v15202_v45, %v15202_v45  ;;  %v12992_v32 = vld.sshfl [vmem:[%s13873_s8 + $0x168] sm:$0x1 pattern:$0x75316420] }
  0xed   : > { %19582 = vst [vmem:[#allocation165_spill] sm:$0xff] %v15205_v55  ;;  %19583 = vst [vmem:[#allocation166_spill] sm:$0xff] %v15209_v20  ;;  %13397 = vmatprep.mubr.msk.f32.mxu0 %vm13810_vm1, %v19464_v57  ;;  %v4838_v60 = vrot.slane %v4830_v30, %v13875_v7  ;;  %v15226_v56 = vcombine.high %v15205_v55, %v15205_v55  ;;  %v3209_v29 = vmul.f32 %v15205_v55, %v15205_v55 }
  0xee   : > { %19584 = vst [vmem:[#allocation167_spill] sm:$0xff] %v15215_v21  ;;  %v3210_v52 = vmul.f32 %v15209_v20, %v15209_v20  ;;  %v4845_v42 = vrot.slane %v4831_v61, %v13875_v7  ;;  %v3214_v38 = vmul.f32 %v15215_v21, %v15215_v21  ;;  %v4847_v54 = vcombine.low %v3207_v27, %v3208_v15 }
  0xef   : > { %19585 = vst [vmem:[#allocation168_spill] sm:$0xff] %v15226_v56  ;;  %v1809_v40 = vcombine.high %v323_v12, %v323_v12  ;;  %v3211_v30 = vmul.f32 %v15226_v56, %v15226_v56  ;;  %v15240_v41 = vcombine.high %v15202_v45, %v15202_v45  ;;  %v15244_v55 = vcombine.high %v15215_v21, %v15215_v21 }
  0xf0   : > { %v4848_v48 = vcombine.low %v3209_v29, %v3210_v52  ;;  %v4846_v20 = vcombine.low %v4838_v60, %v4845_v42  ;;  %v4850_v61 = vcombine.low %v3213_v23, %v3214_v38  ;;  %v4857_v39 = vrot.slane %v4847_v54, %v13875_v7 }
  0xf1   : > { %19586 = vst [vmem:[#allocation169_spill] sm:$0xff] %v15240_v41  ;;  %19587 = vst [vmem:[#allocation170_spill] sm:$0xff] %v15244_v55  ;;  %v1823_v27 = vrot.slane %v1809_v40, %v13875_v7  ;;  %v4849_v12 = vcombine.low %v3211_v30, %v3212_v25  ;;  %v15251_v29 = vrot.slane %v12992_v32, %v13875_v7 }
  0xf2   : > { %v4864_v15 = vrot.slane %v4848_v48, %v13875_v7  ;;  %v1879_v52 = vrot.slane %v325_v37, %v13875_v7  ;;  %13398 = vmatmul.mubr.msk.f32.gmra.mxu0 %vm5655_vm2, %v4846_v20  ;;  %v4878_v21 = vrot.slane %v4850_v61, %v13875_v7  ;;  %v3215_v60 = vmul.f32 %v15240_v41, %v15240_v41 }
  0xf3   : > { %19588 = vst [vmem:[#allocation171_spill] sm:$0xff] %v15251_v29  ;;  %v1825_v45 = vcombine.high %v1823_v27, %v1823_v27  ;;  %v15257_v23 = vrot.slane %v1823_v27, %v13875_v7  ;;  %13400 = vmatprep.mubr.msk.f32.mxu0 %vm13810_vm1, %v19464_v57  ;;  %v4871_v48 = vrot.slane %v4849_v12, %v13875_v7 }
  0xf4   : > { %v4879_v25 = vcombine.low %v4857_v39, %v4864_v15  ;;  %v15265_v42 = vrot.slane %v1879_v52, %v13875_v7  ;;  %v3216_v20 = vmul.f32 %v15244_v55, %v15244_v55  ;;  %v3221_v40 = vmul.f32 %v15251_v29, %v15251_v29 }
  0xf5   : > { %19589 = vst [vmem:[#allocation172_spill] sm:$0xff] %v15257_v23  ;;  %v15270_v38 = vrot.slane %v1825_v45, %v13875_v7  ;;  %v15274_v54 = vcombine.high %v15257_v23, %v15257_v23  ;;  %v3217_v32 = vmul.f32 %v15257_v23, %v15257_v23  ;;  %v4880_v39 = vcombine.low %v4871_v48, %v4878_v21  ;;  %v12993_v23 = vld.sshfl [vmem:[%s13873_s8 + $0x178] sm:$0x1 pattern:$0x75316420] }
  0xf6   : > { %19590 = vst [vmem:[#allocation173_spill] sm:$0xff] %v15265_v42  ;;  %v4887_v30 = vrot.slane %v4879_v25, %v13875_v7  ;;  %v3222_v61 = vmul.f32 %v15265_v42, %v15265_v42  ;;  %v4896_v27 = vcombine.low %v3215_v60, %v3216_v20  ;;  %v1872_v55 = vcombine.high %v325_v37, %v325_v37 }
  0xf7   : > { %19591 = vst [vmem:[#allocation174_spill] sm:$0xff] %v15270_v38  ;;  %19592 = vst [vmem:[#allocation175_spill] sm:$0xff] %v15274_v54  ;;  %v15285_v45 = vcombine.high %v15270_v38, %v15270_v38  ;;  %v3218_v12 = vmul.f32 %v15270_v38, %v15270_v38  ;;  %v3219_v15 = vmul.f32 %v15274_v54, %v15274_v54 }
  0xf8   : > { %v4894_v21 = vrot.slane %v4880_v39, %v13875_v7  ;;  %v4899_v48 = vcombine.low %v3221_v40, %v3222_v61  ;;  %v4906_v25 = vrot.slane %v4896_v27, %v13875_v7  ;;  %v1887_v29 = vcombine.high %v1879_v52, %v1879_v52 }
  0xf9   : > { %19593 = vst [vmem:[#allocation176_spill] sm:$0xff] %v15285_v45  ;;  %v3220_v60 = vmul.f32 %v15285_v45, %v15285_v45  ;;  %v4897_v20 = vcombine.low %v3217_v32, %v3218_v12  ;;  %v1886_v41 = vrot.slane %v1872_v55, %v13875_v7  ;;  %v15299_v38 = vcombine.high %v15265_v42, %v15265_v42  ;;  %v327_v55 = vld [vmem:[%s13873_s8 + $0x180] sm:$0xff]  ;;  %v15313_v12 = vpop.f32.mrf.mxu0  ;;  %v12994_v42 = vld.sshfl [vmem:[%s13873_s8 + $0x188] sm:$0x1 pattern:$0x75316420] }
  0xfa   : > { %v4895_v54 = vcombine.low %v4887_v30, %v4894_v21  ;;  %v4927_v37 = vrot.slane %v4899_v48, %v13875_v7  ;;  %v15303_v39 = vrot.slane %v1887_v29, %v13875_v7  ;;  %v15306_v40 = vrot.slane %v12993_v23, %v13875_v7 }
  0xfb   : > { %19594 = vst [vmem:[#allocation177_spill] sm:$0xff] %v15299_v38  ;;  %v4898_v52 = vcombine.low %v3219_v15, %v3220_v60  ;;  %v4913_v61 = vrot.slane %v4897_v20, %v13875_v7  ;;  %v1888_v27 = vcombine.high %v1886_v41, %v1886_v41  ;;  %v15310_v32 = vrot.slane %v1886_v41, %v13875_v7  ;;  %v13330_v60 = vpop.f32.mrf.mxu0 }
  0xfc   : > { %19595 = vst [vmem:[#allocation178_spill] sm:$0xff] %v15303_v39  ;;  %19596 = vst [vmem:[#allocation179_spill] sm:$0xff] %v15306_v40  ;;  %13401 = vmatmul.mubr.msk.f32.gmra.mxu0 %vm5655_vm2, %v4895_v54  ;;  %v15318_v29 = vcombine.high %v15303_v39, %v15303_v39  ;;  %v3223_v23 = vmul.f32 %v15303_v39, %v15303_v39  ;;  %v3224_v30 = vmul.f32 %v15299_v38, %v15299_v38 }
  0xfd   : > { %19597 = vst [vmem:[#allocation180_spill] sm:$0xff] %v15310_v32  ;;  %v3230_v41 = vmul.f32 %v15306_v40, %v15306_v40  ;;  %13403 = vmatprep.mubr.msk.f32.mxu0 %vm13810_vm1, %v19464_v57  ;;  %v4920_v15 = vrot.slane %v4898_v52, %v13875_v7  ;;  %v4928_v21 = vcombine.low %v4906_v25, %v4913_v61 }
  0xfe   : > { %19598 = vst [vmem:[#allocation181_spill] sm:$0xff] %v15318_v29  ;;  %v15330_v54 = vrot.slane %v1888_v27, %v13875_v7  ;;  %v15334_v48 = vcombine.high %v15310_v32, %v15310_v32  ;;  %v3225_v20 = vmul.f32 %v15318_v29, %v15318_v29  ;;  %v3226_v40 = vmul.f32 %v15310_v32, %v15310_v32  ;;  %v15348_v27 = vpop.f32.mrf.mxu0 }
  0xff   : > { %v4945_v38 = vcombine.low %v3223_v23, %v3224_v30  ;;  %v1935_v39 = vcombine.high %v327_v55, %v327_v55  ;;  %v4929_v45 = vcombine.low %v4920_v15, %v4927_v37  ;;  %v4936_v25 = vrot.slane %v4928_v21, %v13875_v7 }
 0x100   : > { %19599 = vst [vmem:[#allocation182_spill] sm:$0xff] %v15330_v54  ;;  %19600 = vst [vmem:[#allocation183_spill] sm:$0xff] %v15334_v48  ;;  %v15344_v52 = vcombine.high %v15330_v54, %v15330_v54  ;;  %v3227_v61 = vmul.f32 %v15330_v54, %v15330_v54  ;;  %v3228_v60 = vmul.f32 %v15334_v48, %v15334_v48  ;;  %v13333_v54 = vpop.f32.mrf.mxu0 }
 0x101   : > { %v4946_v29 = vcombine.low %v3225_v20, %v3226_v40  ;;  %v4955_v23 = vrot.slane %v4945_v38, %v13875_v7  ;;  %v1942_v30 = vrot.slane %v327_v55, %v13875_v7  ;;  %v4943_v37 = vrot.slane %v4929_v45, %v13875_v7 }
 0x102   : > { %19601 = vst [vmem:[#allocation184_spill] sm:$0xff] %v15344_v52  ;;  %v3229_v15 = vmul.f32 %v15344_v52, %v15344_v52  ;;  %v1949_v21 = vrot.slane %v1935_v39, %v13875_v7  ;;  %v15359_v32 = vrot.slane %v12994_v42, %v13875_v7  ;;  %v4947_v56 = vcombine.low %v3227_v61, %v3228_v60 }
 0x103   : > { %v4962_v31 = vrot.slane %v4946_v29, %v13875_v7  ;;  %v1950_v40 = vcombine.high %v1942_v30, %v1942_v30  ;;  %v15363_v38 = vrot.slane %v1942_v30, %v13875_v7  ;;  %v4944_v55 = vcombine.low %v4936_v25, %v4943_v37 }
 0x104   : > { %19602 = vst [vmem:[#allocation185_spill] sm:$0xff] %v15359_v32  ;;  %v4948_v20 = vcombine.low %v3229_v15, %v3230_v41  ;;  %v1951_v45 = vcombine.high %v1949_v21, %v1949_v21  ;;  %v15366_v48 = vrot.slane %v1949_v21, %v13875_v7  ;;  %v4969_v39 = vrot.slane %v4947_v56, %v13875_v7  ;;  %v329_v56 = vld [vmem:[%s13873_s8 + $0x190] sm:$0xff] }
 0x105   : > { %19603 = vst [vmem:[#allocation186_spill] sm:$0xff] %v15363_v38  ;;  %v4977_v52 = vcombine.low %v4955_v23, %v4962_v31  ;;  %v15370_v42 = vrot.slane %v1950_v40, %v13875_v7  ;;  %v15374_v29 = vcombine.high %v15363_v38, %v15363_v38  ;;  %13404 = vmatmul.mubr.msk.f32.gmra.mxu0 %vm5655_vm2, %v4944_v55 }
 0x106   : > { %19604 = vst [vmem:[#allocation187_spill] sm:$0xff] %v15366_v48  ;;  %v4976_v54 = vrot.slane %v4948_v20, %v13875_v7  ;;  %v15379_v41 = vrot.slane %v1951_v45, %v13875_v7  ;;  %v15383_v25 = vcombine.high %v15366_v48, %v15366_v48  ;;  %v3231_v31 = vmul.f32 %v15363_v38, %v15363_v38 }
 0x107   : > { %19605 = vst [vmem:[#allocation188_spill] sm:$0xff] %v15370_v42  ;;  %19606 = vst [vmem:[#allocation189_spill] sm:$0xff] %v15374_v29  ;;  %13406 = vmatprep.mubr.msk.f32.mxu0 %vm13810_vm1, %v19464_v57  ;;  %v4985_v61 = vrot.slane %v4977_v52, %v13875_v7  ;;  %v15393_v60 = vcombine.high %v15370_v42, %v15370_v42  ;;  %v3232_v23 = vmul.f32 %v15370_v42, %v15370_v42  ;;  %v15415_v42 = vpop.f32.mrf.mxu0 }
 0x108   : > { %19607 = vst [vmem:[#allocation190_spill] sm:$0xff] %v15379_v41  ;;  %19608 = vst [vmem:[#allocation191_spill] sm:$0xff] %v15383_v25  ;;  %v3233_v30 = vmul.f32 %v15374_v29, %v15374_v29  ;;  %v4978_v37 = vcombine.low %v4969_v39, %v4976_v54  ;;  %v15401_v15 = vcombine.high %v15379_v41, %v15379_v41 }
 0x109   : > { %19609 = vst [vmem:[#allocation192_spill] sm:$0xff] %v15393_v60  ;;  %v3235_v21 = vmul.f32 %v15366_v48, %v15366_v48  ;;  %v3236_v52 = vmul.f32 %v15379_v41, %v15379_v41  ;;  %v3234_v40 = vmul.f32 %v15393_v60, %v15393_v60  ;;  %v3237_v55 = vmul.f32 %v15383_v25, %v15383_v25 }
 0x10a   : > { %19610 = vst [vmem:[#allocation193_spill] sm:$0xff] %v15401_v15  ;;  %v4994_v20 = vcombine.low %v3231_v31, %v3232_v23  ;;  %v1998_v45 = vcombine.high %v329_v56, %v329_v56  ;;  %v4992_v39 = vrot.slane %v4978_v37, %v13875_v7  ;;  %v3238_v54 = vmul.f32 %v15401_v15, %v15401_v15  ;;  %v12995_v31 = vld.sshfl [vmem:[%s13873_s8 + $0x198] sm:$0x1 pattern:$0x75316420]  ;;  %v331_v23 = vld [vmem:[%s13873_s8 + $0x1a0] sm:$0xff] }
 0x10b   : > { %v4996_v29 = vcombine.low %v3235_v21, %v3236_v52  ;;  %v2005_v48 = vrot.slane %v329_v56, %v13875_v7  ;;  %v4995_v38 = vcombine.low %v3233_v30, %v3234_v40  ;;  %v3239_v25 = vmul.f32 %v15359_v32, %v15359_v32  ;;  %v13336_v21 = vpop.f32.mrf.mxu0 }
 0x10c   : > { %v5004_v41 = vrot.slane %v4994_v20, %v13875_v7  ;;  %v2012_v60 = vrot.slane %v1998_v45, %v13875_v7  ;;  %v4993_v24 = vcombine.low %v4985_v61, %v4992_v39  ;;  %v4997_v37 = vcombine.low %v3237_v55, %v3238_v54 }
 0x10d   : > { %v5018_v19 = vrot.slane %v4996_v29, %v13875_v7  ;;  %v2013_v15 = vcombine.high %v2005_v48, %v2005_v48  ;;  %v5011_v56 = vrot.slane %v4995_v38, %v13875_v7  ;;  %v15426_v30 = vrot.slane %v2005_v48, %v13875_v7 }
 0x10e   : > { %v2014_v52 = vcombine.high %v2012_v60, %v2012_v60  ;;  %v15429_v40 = vrot.slane %v2012_v60, %v13875_v7  ;;  %13407 = vmatmul.mubr.msk.f32.gmra.mxu0 %vm5655_vm2, %v4993_v24  ;;  %v5025_v20 = vrot.slane %v4997_v37, %v13875_v7  ;;  %v15437_v29 = vrot.slane %v12995_v31, %v13875_v7 }
 0x10f   : > { %19611 = vst [vmem:[#allocation194_spill] sm:$0xff] %v15426_v30  ;;  %v15434_v61 = vrot.slane %v2013_v15, %v13875_v7  ;;  %v2061_v55 = vcombine.high %v331_v23, %v331_v23  ;;  %13409 = vmatprep.mubr.msk.f32.mxu0 %vm13810_vm1, %v19464_v57  ;;  %v5026_v38 = vcombine.low %v5004_v41, %v5011_v56  ;;  %v15452_v15 = vpop.f32.mrf.mxu0 }
 0x110   : > { %19612 = vst [vmem:[#allocation195_spill] sm:$0xff] %v15429_v40  ;;  %19614 = vst [vmem:[#allocation197_spill] sm:$0xff] %v15437_v29  ;;  %v15442_v48 = vrot.slane %v2014_v52, %v13875_v7  ;;  %v15446_v60 = vcombine.high %v15426_v30, %v15426_v30  ;;  %v15450_v24 = vcombine.high %v15429_v40, %v15429_v40 }
 0x111   : > { %19613 = vst [vmem:[#allocation196_spill] sm:$0xff] %v15434_v61  ;;  %v5027_v45 = vcombine.low %v5018_v19, %v5025_v20  ;;  %v15456_v39 = vcombine.high %v15434_v61, %v15434_v61  ;;  %v3240_v41 = vmul.f32 %v15426_v30, %v15426_v30  ;;  %v3241_v54 = vmul.f32 %v15434_v61, %v15434_v61  ;;  %v13339_v56 = vpop.f32.mrf.mxu0 }
 0x112   : > { %19615 = vst [vmem:[#allocation198_spill] sm:$0xff] %v15442_v48  ;;  %19616 = vst [vmem:[#allocation199_spill] sm:$0xff] %v15446_v60  ;;  %v5034_v31 = vrot.slane %v5026_v38, %v13875_v7  ;;  %v3242_v37 = vmul.f32 %v15446_v60, %v15446_v60  ;;  %v3244_v21 = vmul.f32 %v15429_v40, %v15429_v40 }
 0x113   : > { %19617 = vst [vmem:[#allocation200_spill] sm:$0xff] %v15450_v24  ;;  %19618 = vst [vmem:[#allocation201_spill] sm:$0xff] %v15456_v39  ;;  %v3245_v19 = vmul.f32 %v15442_v48, %v15442_v48  ;;  %v5041_v52 = vrot.slane %v5027_v45, %v13875_v7  ;;  %v3243_v20 = vmul.f32 %v15456_v39, %v15456_v39 }
 0x114   : > { %v3246_v32 = vmul.f32 %v15450_v24, %v15450_v24  ;;  %v5043_v61 = vcombine.low %v3239_v25, %v3240_v41  ;;  %v5044_v38 = vcombine.low %v3241_v54, %v3242_v37  ;;  %v15476_v60 = vcombine.high %v15442_v48, %v15442_v48 }
 0x115   : > { %v2068_v40 = vrot.slane %v331_v23, %v13875_v7  ;;  %v2075_v30 = vrot.slane %v2061_v55, %v13875_v7  ;;  %v5042_v33 = vcombine.low %v5034_v31, %v5041_v52  ;;  %v5045_v56 = vcombine.low %v3243_v20, %v3244_v21 }
 0x116   : > { %19619 = vst [vmem:[#allocation202_spill] sm:$0xff] %v15476_v60  ;;  %v5046_v46 = vcombine.low %v3245_v19, %v3246_v32  ;;  %v5053_v45 = vrot.slane %v5043_v61, %v13875_v7  ;;  %v5060_v39 = vrot.slane %v5044_v38, %v13875_v7  ;;  %v3247_v32 = vmul.f32 %v15476_v60, %v15476_v60  ;;  %v12996_v19 = vld.sshfl [vmem:[%s13873_s8 + $0x1a8] sm:$0x1 pattern:$0x75316420]  ;;  %v333_v60 = vld [vmem:[%s13873_s8 + $0x1b0] sm:$0xff] }
 0x117   : > { %v2076_v62 = vcombine.high %v2068_v40, %v2068_v40  ;;  %v2077_v8 = vcombine.high %v2075_v30, %v2075_v30  ;;  %v2084_v25 = vrot.slane %v2068_v40, %v13875_v7  ;;  %13410 = vmatmul.mubr.msk.f32.gmra.mxu0 %vm5655_vm2, %v5042_v33  ;;  %v5067_v41 = vrot.slane %v5045_v56, %v13875_v7  ;;  %v15493_v33 = vpop.f32.mrf.mxu0 }
 0x118   : > { %v5074_v23 = vrot.slane %v5046_v46, %v13875_v7  ;;  %v2091_v55 = vrot.slane %v2075_v30, %v13875_v7  ;;  %13412 = vmatprep.mubr.msk.f32.mxu0 %vm13810_vm1, %v19464_v57  ;;  %v5075_v61 = vcombine.low %v5053_v45, %v5060_v39  ;;  %v3248_v46 = vmul.f32 %v15437_v29, %v15437_v29 }
 0x119   : > { %v2098_v54 = vrot.slane %v2076_v62, %v13875_v7  ;;  %v2105_v40 = vrot.slane %v2077_v8, %v13875_v7  ;;  %v2106_v31 = vcombine.high %v2084_v25, %v2084_v25  ;;  %v3249_v30 = vmul.f32 %v2084_v25, %v2084_v25  ;;  %v13342_v56 = vpop.f32.mrf.mxu0 }
 0x11a   : > { %v5076_v37 = vcombine.low %v5067_v41, %v5074_v23  ;;  %v3253_v21 = vmul.f32 %v2091_v55, %v2091_v55  ;;  %v5083_v52 = vrot.slane %v5075_v61, %v13875_v7  ;;  %v5092_v45 = vcombine.low %v3247_v32, %v3248_v46 }
 0x11b   : > { %v2108_v20 = vcombine.high %v2098_v54, %v2098_v54  ;;  %v3250_v38 = vmul.f32 %v2098_v54, %v2098_v54  ;;  %v3251_v39 = vmul.f32 %v2106_v31, %v2106_v31  ;;  %v3254_v8 = vmul.f32 %v2105_v40, %v2105_v40 }
 0x11c   : > { %v5090_v62 = vrot.slane %v5076_v37, %v13875_v7  ;;  %v2107_v24 = vcombine.high %v2091_v55, %v2091_v55  ;;  %v2109_v48 = vcombine.high %v2105_v40, %v2105_v40  ;;  %v2123_v25 = vrot.slane %v12996_v19, %v13875_v7 }
 0x11d   : > { %v3252_v41 = vmul.f32 %v2108_v20, %v2108_v20  ;;  %v5093_v23 = vcombine.low %v3249_v30, %v3250_v38  ;;  %v5095_v47 = vcombine.low %v3253_v21, %v3254_v8  ;;  %v5102_v61 = vrot.slane %v5092_v45, %v13875_v7  ;;  %v15509_v30 = vpop.f32.mrf.mxu0  ;;  %v335_v8 = vld [vmem:[%s13873_s8 + $0x1c0] sm:$0xff] }
 0x11e   : > { %v5091_v29 = vcombine.low %v5083_v52, %v5090_v62  ;;  %v2124_v63 = vcombine.high %v333_v60, %v333_v60  ;;  %v2131_v37 = vrot.slane %v333_v60, %v13875_v7  ;;  %v3255_v56 = vmul.f32 %v2107_v24, %v2107_v24 }
 0x11f   : > { %v5094_v54 = vcombine.low %v3251_v39, %v3252_v41  ;;  %v5109_v31 = vrot.slane %v5093_v23, %v13875_v7  ;;  %v5123_v55 = vrot.slane %v5095_v47, %v13875_v7  ;;  %v3256_v40 = vmul.f32 %v2109_v48, %v2109_v48  ;;  %v13345_v52 = vpop.f32.mrf.mxu0 }
 0x120   : > { %13413 = vmatmul.mubr.msk.f32.gmra.mxu0 %vm5655_vm2, %v5091_v29  ;;  %v2138_v32 = vrot.slane %v2124_v63, %v13875_v7  ;;  %v3257_v46 = vmul.f32 %v2123_v25, %v2123_v25  ;;  %v2139_v60 = vcombine.high %v2131_v37, %v2131_v37  ;;  %v15515_v24 = vrot.slane %v2131_v37, %v13875_v7 }
 0x121   : > { %13415 = vmatprep.mubr.msk.f32.mxu0 %vm13810_vm1, %v19464_v57  ;;  %v5116_v21 = vrot.slane %v5094_v54, %v13875_v7  ;;  %v5124_v19 = vcombine.low %v5102_v61, %v5109_v31  ;;  %v5141_v47 = vcombine.low %v3255_v56, %v3256_v40  ;;  %v2186_v48 = vrot.slane %v12997_v4, %v13875_v7 }
 0x122   : > { %19620 = vst [vmem:[#allocation203_spill] sm:$0xff] %v15515_v24  ;;  %v15518_v29 = vrot.slane %v2138_v32, %v13875_v7  ;;  %v2140_v63 = vcombine.high %v2138_v32, %v2138_v32  ;;  %v15523_v39 = vrot.slane %v2139_v60, %v13875_v7  ;;  %v15527_v62 = vcombine.high %v15515_v24, %v15515_v24 }
 0x123   : > { %v5125_v20 = vcombine.low %v5116_v21, %v5123_v55  ;;  %v5132_v38 = vrot.slane %v5124_v19, %v13875_v7  ;;  %v3258_v45 = vmul.f32 %v15515_v24, %v15515_v24  ;;  %v5151_v4 = vrot.slane %v5141_v47, %v13875_v7  ;;  %v339_v24 = vld [vmem:[%s13873_s8 + $0x1e0] sm:$0xff] }
 0x124   : > { %19621 = vst [vmem:[#allocation204_spill] sm:$0xff] %v15518_v29  ;;  %19622 = vst [vmem:[#allocation205_spill] sm:$0xff] %v15523_v39  ;;  %v3262_v41 = vmul.f32 %v15518_v29, %v15518_v29  ;;  %v15536_v23 = vrot.slane %v2140_v63, %v13875_v7  ;;  %v15541_v61 = vcombine.high %v15523_v39, %v15523_v39 }
 0x125   : > { %19623 = vst [vmem:[#allocation206_spill] sm:$0xff] %v15527_v62  ;;  %v5139_v25 = vrot.slane %v5125_v20, %v13875_v7  ;;  %v3259_v54 = vmul.f32 %v15523_v39, %v15523_v39  ;;  %v3260_v31 = vmul.f32 %v15527_v62, %v15527_v62  ;;  %v5142_v37 = vcombine.low %v3257_v46, %v3258_v45 }
 0x126   : > { %19624 = vst [vmem:[#allocation207_spill] sm:$0xff] %v15536_v23  ;;  %19625 = vst [vmem:[#allocation208_spill] sm:$0xff] %v15541_v61  ;;  %v15549_v56 = vcombine.high %v15518_v29, %v15518_v29  ;;  %v15553_v55 = vcombine.high %v15536_v23, %v15536_v23  ;;  %v2194_v32 = vrot.slane %v335_v8, %v13875_v7 }
 0x127   : > { %v5140_v40 = vcombine.low %v5132_v38, %v5139_v25  ;;  %v3261_v21 = vmul.f32 %v15541_v61, %v15541_v61  ;;  %v5143_v19 = vcombine.low %v3259_v54, %v3260_v31  ;;  %v3263_v60 = vmul.f32 %v15536_v23, %v15536_v23  ;;  %v15570_v54 = vpop.f32.mrf.mxu0 }
 0x128   : > { %19626 = vst [vmem:[#allocation209_spill] sm:$0xff] %v15549_v56  ;;  %19627 = vst [vmem:[#allocation210_spill] sm:$0xff] %v15553_v55  ;;  %v5158_v46 = vrot.slane %v5142_v37, %v13875_v7  ;;  %v2202_v47 = vcombine.high %v2194_v32, %v2194_v32  ;;  %v15562_v63 = vrot.slane %v2194_v32, %v13875_v7 }
 0x129   : > { %v3264_v52 = vmul.f32 %v15549_v56, %v15549_v56  ;;  %13416 = vmatmul.mubr.msk.f32.gmra.mxu0 %vm5655_vm2, %v5140_v40  ;;  %v5144_v20 = vcombine.low %v3261_v21, %v3262_v41  ;;  %v5165_v38 = vrot.slane %v5143_v19, %v13875_v7  ;;  %v3265_v45 = vmul.f32 %v15553_v55, %v15553_v55  ;;  %v12998_v19 = vld.sshfl [vmem:[%s13873_s8 + $0x1c8] sm:$0x1 pattern:$0x75316420]  ;;  %v337_v55 = vld [vmem:[%s13873_s8 + $0x1d0] sm:$0xff]  ;;  %v13348_v23 = vpop.f32.mrf.mxu0 }
 0x12a   : > { %19628 = vst [vmem:[#allocation211_spill] sm:$0xff] %v15562_v63  ;;  %v3266_v25 = vmul.f32 %v2186_v48, %v2186_v48  ;;  %13418 = vmatprep.mubr.msk.f32.mxu0 %vm13810_vm1, %v19464_v57  ;;  %v5173_v31 = vcombine.low %v5151_v4, %v5158_v46  ;;  %v15575_v37 = vrot.slane %v2202_v47, %v13875_v7 }
 0x12b   : > { %v15579_v32 = vcombine.high %v15562_v63, %v15562_v63  ;;  %v3267_v41 = vmul.f32 %v15562_v63, %v15562_v63  ;;  %v5172_v40 = vrot.slane %v5144_v20, %v13875_v7  ;;  %v5190_v21 = vcombine.low %v3263_v60, %v3264_v52 }
 0x12c   : > { %19629 = vst [vmem:[#allocation212_spill] sm:$0xff] %v15575_v37  ;;  %v5191_v48 = vcombine.low %v3265_v45, %v3266_v25  ;;  %v2187_v56 = vcombine.high %v335_v8, %v335_v8  ;;  %v5181_v4 = vrot.slane %v5173_v31, %v13875_v7  ;;  %v15589_v46 = vcombine.high %v15575_v37, %v15575_v37 }
 0x12d   : > { %19630 = vst [vmem:[#allocation213_spill] sm:$0xff] %v15579_v32  ;;  %v3268_v47 = vmul.f32 %v15575_v37, %v15575_v37  ;;  %v3269_v29 = vmul.f32 %v15579_v32, %v15579_v32  ;;  %v5174_v61 = vcombine.low %v5165_v38, %v5172_v40  ;;  %v5200_v60 = vrot.slane %v5190_v21, %v13875_v7 }
 0x12e   : > { %19631 = vst [vmem:[#allocation214_spill] sm:$0xff] %v15589_v46  ;;  %v5207_v52 = vrot.slane %v5191_v48, %v13875_v7  ;;  %v2201_v8 = vrot.slane %v2187_v56, %v13875_v7  ;;  %v3270_v23 = vmul.f32 %v15589_v46, %v15589_v46  ;;  %v2249_v45 = vrot.slane %v12998_v19, %v13875_v7 }
 0x12f   : > { %v5192_v20 = vcombine.low %v3267_v41, %v3268_v47  ;;  %v2257_v25 = vrot.slane %v337_v55, %v13875_v7  ;;  %v5188_v31 = vrot.slane %v5174_v61, %v13875_v7  ;;  %v15610_v41 = vpop.f32.mrf.mxu0  ;;  %v2320_v63 = vrot.slane %v339_v24, %v13875_v7 }
 0x130   : > { %v5222_v62 = vcombine.low %v5200_v60, %v5207_v52  ;;  %v2203_v39 = vcombine.high %v2201_v8, %v2201_v8  ;;  %v15604_v38 = vrot.slane %v2201_v8, %v13875_v7  ;;  %v5193_v40 = vcombine.low %v3269_v29, %v3270_v23 }
 0x131   : > { %v5214_v21 = vrot.slane %v5192_v20, %v13875_v7  ;;  %v2265_v48 = vcombine.high %v2257_v25, %v2257_v25  ;;  %v15608_v56 = vrot.slane %v2257_v25, %v13875_v7  ;;  %v5189_v19 = vcombine.low %v5181_v4, %v5188_v31  ;;  %v13351_v4 = vpop.f32.mrf.mxu0  ;;  %v12999_v31 = vld.sshfl [vmem:[%s13873_s8 + $0x1d8] sm:$0x1 pattern:$0x75316420] }
 0x132   : > { %19632 = vst [vmem:[#allocation215_spill] sm:$0xff] %v15604_v38  ;;  %v5230_v47 = vrot.slane %v5222_v62, %v13875_v7  ;;  %v15614_v61 = vrot.slane %v2203_v39, %v13875_v7  ;;  %v15618_v60 = vcombine.high %v15604_v38, %v15604_v38  ;;  %v5221_v29 = vrot.slane %v5193_v40, %v13875_v7 }
 0x133   : > { %19633 = vst [vmem:[#allocation216_spill] sm:$0xff] %v15608_v56  ;;  %v15622_v52 = vrot.slane %v2265_v48, %v13875_v7  ;;  %v15626_v8 = vcombine.high %v15608_v56, %v15608_v56  ;;  %v3271_v62 = vmul.f32 %v15604_v38, %v15604_v38  ;;  %13419 = vmatmul.mubr.msk.f32.gmra.mxu0 %vm5655_vm2, %v5189_v19 }
 0x134   : > { %19634 = vst [vmem:[#allocation217_spill] sm:$0xff] %v15614_v61  ;;  %19635 = vst [vmem:[#allocation218_spill] sm:$0xff] %v15618_v60  ;;  %v15633_v39 = vcombine.high %v15614_v61, %v15614_v61  ;;  %v3272_v23 = vmul.f32 %v15614_v61, %v15614_v61  ;;  %v3273_v20 = vmul.f32 %v15618_v60, %v15618_v60  ;;  %13421 = vmatprep.mubr.msk.f32.mxu0 %vm13810_vm1, %v19464_v57 }
 0x135   : > { %19636 = vst [vmem:[#allocation219_spill] sm:$0xff] %v15622_v52  ;;  %19637 = vst [vmem:[#allocation220_spill] sm:$0xff] %v15626_v8  ;;  %v3275_v25 = vmul.f32 %v2249_v45, %v2249_v45  ;;  %v5223_v40 = vcombine.low %v5214_v21, %v5221_v29  ;;  %v3276_v48 = vmul.f32 %v15608_v56, %v15608_v56 }
 0x136   : > { %19638 = vst [vmem:[#allocation221_spill] sm:$0xff] %v15633_v39  ;;  %v3277_v19 = vmul.f32 %v15622_v52, %v15622_v52  ;;  %v3278_v4 = vmul.f32 %v15626_v8, %v15626_v8  ;;  %v3274_v61 = vmul.f32 %v15633_v39, %v15633_v39  ;;  %v5239_v60 = vcombine.low %v3271_v62, %v3272_v23 }
 0x137   : > { %v2250_v45 = vcombine.high %v337_v55, %v337_v55  ;;  %v15653_v38 = vcombine.high %v15622_v52, %v15622_v52  ;;  %v5237_v21 = vrot.slane %v5223_v40, %v13875_v7  ;;  %v5241_v29 = vcombine.low %v3275_v25, %v3276_v48 }
 0x138   : > { %v5242_v56 = vcombine.low %v3277_v19, %v3278_v4  ;;  %v2312_v46 = vrot.slane %v12999_v31, %v13875_v7  ;;  %v5240_v32 = vcombine.low %v3273_v20, %v3274_v61  ;;  %v5249_v37 = vrot.slane %v5239_v60, %v13875_v7  ;;  %v15672_v19 = vpop.f32.mrf.mxu0 }
 0x139   : > { %19639 = vst [vmem:[#allocation222_spill] sm:$0xff] %v15653_v38  ;;  %v2264_v8 = vrot.slane %v2250_v45, %v13875_v7  ;;  %v5238_v39 = vcombine.low %v5230_v47, %v5237_v21  ;;  %v5263_v55 = vrot.slane %v5241_v29, %v13875_v7  ;;  %v3279_v23 = vmul.f32 %v15653_v38, %v15653_v38 }
 0x13a   : > { %v5270_v62 = vrot.slane %v5242_v56, %v13875_v7  ;;  %v5256_v25 = vrot.slane %v5240_v32, %v13875_v7  ;;  %v2328_v61 = vcombine.high %v2320_v63, %v2320_v63  ;;  %v15670_v20 = vrot.slane %v2320_v63, %v13875_v7  ;;  %v13354_v4 = vpop.f32.mrf.mxu0 }
 0x13b   : > { %v2266_v40 = vcombine.high %v2264_v8, %v2264_v8  ;;  %v15666_v31 = vrot.slane %v2264_v8, %v13875_v7  ;;  %13422 = vmatmul.mubr.msk.f32.gmra.mxu0 %vm5655_vm2, %v5238_v39  ;;  %v3284_v47 = vmul.f32 %v2312_v46, %v2312_v46  ;;  %v2313_v48 = vcombine.high %v339_v24, %v339_v24 }
 0x13c   : > { %v5272_v60 = vcombine.low %v5263_v55, %v5270_v62  ;;  %19641 = vst [vmem:[#allocation224_spill] sm:$0xff] %v15670_v20  ;;  %13424 = vmatprep.mubr.msk.f32.mxu0 %vm13810_vm1, %v19464_v57  ;;  %v5271_v32 = vcombine.low %v5249_v37, %v5256_v25  ;;  %v15684_v39 = vrot.slane %v2328_v61, %v13875_v7 }
 0x13d   : > { %19640 = vst [vmem:[#allocation223_spill] sm:$0xff] %v15666_v31  ;;  %v15677_v56 = vrot.slane %v2266_v40, %v13875_v7  ;;  %v15681_v8 = vcombine.high %v15666_v31, %v15666_v31  ;;  %v3280_v24 = vmul.f32 %v15666_v31, %v15666_v31  ;;  %v3285_v46 = vmul.f32 %v15670_v20, %v15670_v20  ;;  %v13000_v40 = vld.sshfl [vmem:[%s13873_s8 + $0x1e8] sm:$0x1 pattern:$0x75316420] }
 0x13e   : > { %19644 = vst [vmem:[#allocation227_spill] sm:$0xff] %v15684_v39  ;;  %v5286_v63 = vrot.slane %v5272_v60, %v13875_v7  ;;  %v2327_v37 = vrot.slane %v2313_v48, %v13875_v7  ;;  %v5279_v45 = vrot.slane %v5271_v32, %v13875_v7  ;;  %v3286_v62 = vmul.f32 %v15684_v39, %v15684_v39 }
 0x13f   : > { %19642 = vst [vmem:[#allocation225_spill] sm:$0xff] %v15677_v56  ;;  %19643 = vst [vmem:[#allocation226_spill] sm:$0xff] %v15681_v8  ;;  %v15695_v21 = vcombine.high %v15677_v56, %v15677_v56  ;;  %v3281_v29 = vmul.f32 %v15677_v56, %v15677_v56  ;;  %v3282_v55 = vmul.f32 %v15681_v8, %v15681_v8 }
 0x140   : > { %v5288_v25 = vcombine.low %v3279_v23, %v3280_v24  ;;  %v2329_v61 = vcombine.high %v2327_v37, %v2327_v37  ;;  %v15705_v60 = vrot.slane %v2327_v37, %v13875_v7  ;;  %v5287_v48 = vcombine.low %v5279_v45, %v5286_v63  ;;  %v341_v37 = vld [vmem:[%s13873_s8 + $0x1f0] sm:$0xff] }
 0x141   : > { %19645 = vst [vmem:[#allocation228_spill] sm:$0xff] %v15695_v21  ;;  %v3283_v32 = vmul.f32 %v15695_v21, %v15695_v21  ;;  %v5289_v4 = vcombine.low %v3281_v29, %v3282_v55  ;;  %v15711_v56 = vcombine.high %v15670_v20, %v15670_v20  ;;  %v5291_v8 = vcombine.low %v3285_v46, %v3286_v62  ;;  %v15729_v29 = vpop.f32.mrf.mxu0  ;;  %v13001_v21 = vld.sshfl [vmem:[%s13873_s8 + $0x1f8] sm:$0x1 pattern:$0x75316420] }
 0x142   : > { %19646 = vst [vmem:[#allocation229_spill] sm:$0xff] %v15705_v60  ;;  %v5298_v31 = vrot.slane %v5288_v25, %v13875_v7  ;;  %v15715_v38 = vrot.slane %v2329_v61, %v13875_v7  ;;  %v15719_v23 = vcombine.high %v15705_v60, %v15705_v60  ;;  %13425 = vmatmul.mubr.msk.f32.gmra.mxu0 %vm5655_vm2, %v5287_v48 }
 0x143   : > { %19647 = vst [vmem:[#allocation230_spill] sm:$0xff] %v15711_v56  ;;  %v5290_v63 = vcombine.low %v3283_v32, %v3284_v47  ;;  %v5305_v24 = vrot.slane %v5289_v4, %v13875_v7  ;;  %v15726_v45 = vcombine.high %v15684_v39, %v15684_v39  ;;  %v2375_v46 = vrot.slane %v13000_v40, %v13875_v7 }
 0x144   : > { %19648 = vst [vmem:[#allocation231_spill] sm:$0xff] %v15715_v38  ;;  %19649 = vst [vmem:[#allocation232_spill] sm:$0xff] %v15719_v23  ;;  %13427 = vmatprep.mubr.msk.f32.mxu0 %vm13810_vm1, %v19464_v57  ;;  %v5319_v55 = vrot.slane %v5291_v8, %v13875_v7  ;;  %v15736_v62 = vcombine.high %v15715_v38, %v15715_v38  ;;  %v2383_v47 = vrot.slane %v341_v37, %v13875_v7  ;;  %v13357_v8 = vpop.f32.mrf.mxu0 }
 0x145   : > { %19650 = vst [vmem:[#allocation233_spill] sm:$0xff] %v15726_v45  ;;  %v3287_v25 = vmul.f32 %v15711_v56, %v15711_v56  ;;  %v5312_v61 = vrot.slane %v5290_v63, %v13875_v7  ;;  %v5320_v48 = vcombine.low %v5298_v31, %v5305_v24  ;;  %v3288_v40 = vmul.f32 %v15726_v45, %v15726_v45  ;;  %v13049_v63 = vld [vmem:[%s18926_s3 + $0x4] sm:$0xf] }
 0x146   : > { %19651 = vst [vmem:[#allocation234_spill] sm:$0xff] %v15736_v62  ;;  %v3289_v32 = vmul.f32 %v15705_v60, %v15705_v60  ;;  %v15747_v4 = vrot.slane %v2383_v47, %v13875_v7  ;;  %v3290_v39 = vmul.f32 %v15715_v38, %v15715_v38  ;;  %v3291_v56 = vmul.f32 %v15719_v23, %v15719_v23 }
 0x147   : > { %v3292_v31 = vmul.f32 %v15736_v62, %v15736_v62  ;;  %v5321_v24 = vcombine.low %v5312_v61, %v5319_v55  ;;  %v5328_v60 = vrot.slane %v5320_v48, %v13875_v7  ;;  %v3293_v8 = vmul.f32 %v2375_v46, %v2375_v46  ;;  %13451 = vmatprep.subr.msk.mxu1 %vm5738_vm0, %v13049_v63 }
 0x148   : > { %19652 = vst [vmem:[#allocation235_spill] sm:$0xff] %v15747_v4  ;;  %v5337_v45 = vcombine.low %v3287_v25, %v3288_v40  ;;  %v3294_v38 = vmul.f32 %v15747_v4, %v15747_v4  ;;  %v5338_v20 = vcombine.low %v3289_v32, %v3290_v39  ;;  %v2376_v52 = vcombine.high %v341_v37, %v341_v37  ;;  %v343_v39 = vld [vmem:[%s13873_s8 + $0x200] sm:$0xff] }
 0x149   : > { %v5339_v23 = vcombine.low %v3291_v56, %v3292_v31  ;;  %13452 = vmatpush3.msk.msra.mxu1 %vm5738_vm0, %v13049_v63  ;;  %v5335_v62 = vrot.slane %v5321_v24, %v13875_v7  ;;  %v2391_v61 = vcombine.high %v2383_v47, %v2383_v47  ;;  %v15768_v46 = vcombine.high %v15747_v4, %v15747_v4 }
 0x14a   : > { %v5347_v55 = vrot.slane %v5337_v45, %v13875_v7  ;;  %v5340_v25 = vcombine.low %v3293_v8, %v3294_v38  ;;  %v5354_v48 = vrot.slane %v5338_v20, %v13875_v7  ;;  %v2390_v56 = vrot.slane %v2376_v52, %v13875_v7 }
 0x14b   : > { %19653 = vst [vmem:[#allocation236_spill] sm:$0xff] %v15768_v46  ;;  %v5361_v40 = vrot.slane %v5339_v23, %v13875_v7  ;;  %v5336_v37 = vcombine.low %v5328_v60, %v5335_v62  ;;  %v15775_v32 = vrot.slane %v2391_v61, %v13875_v7  ;;  %v2438_v31 = vrot.slane %v13001_v21, %v13875_v7  ;;  %v15784_v23 = vpop.f32.mrf.mxu0 }
 0x14c   : > { %v3296_v45 = vmul.f32 %v15768_v46, %v15768_v46  ;;  %v5368_v47 = vrot.slane %v5340_v25, %v13875_v7  ;;  %v5369_v63 = vcombine.low %v5347_v55, %v5354_v48  ;;  %v2392_v38 = vcombine.high %v2390_v56, %v2390_v56 }
 0x14d   : > { %19654 = vst [vmem:[#allocation237_spill] sm:$0xff] %v15775_v32  ;;  %v15782_v20 = vrot.slane %v2390_v56, %v13875_v7  ;;  %13428 = vmatmul.mubr.msk.f32.gmra.mxu0 %vm5655_vm2, %v5336_v37  ;;  %v15789_v52 = vcombine.high %v15775_v32, %v15775_v32  ;;  %v3295_v21 = vmul.f32 %v15775_v32, %v15775_v32  ;;  %v13360_v25 = vpop.f32.mrf.mxu0 }
 0x14e   : > { %v3302_v60 = vmul.f32 %v2438_v31, %v2438_v31  ;;  %v2439_v62 = vcombine.high %v343_v39, %v343_v39  ;;  %13430 = vmatprep.mubr.msk.f32.mxu0 %vm13810_vm1, %v19464_v57  ;;  %v5370_v24 = vcombine.low %v5361_v40, %v5368_v47  ;;  %v5377_v8 = vrot.slane %v5369_v63, %v13875_v7 }
 0x14f   : > { %19655 = vst [vmem:[#allocation238_spill] sm:$0xff] %v15782_v20  ;;  %19656 = vst [vmem:[#allocation239_spill] sm:$0xff] %v15789_v52  ;;  %v15797_v55 = vrot.slane %v2392_v38, %v13875_v7  ;;  %v15801_v61 = vcombine.high %v15782_v20, %v15782_v20  ;;  %v3297_v48 = vmul.f32 %v15789_v52, %v15789_v52 }
 0x150   : > { %v3298_v56 = vmul.f32 %v15782_v20, %v15782_v20  ;;  %v5386_v37 = vcombine.low %v3295_v21, %v3296_v45  ;;  %v2446_v31 = vrot.slane %v343_v39, %v13875_v7  ;;  %v5384_v40 = vrot.slane %v5370_v24, %v13875_v7 }
 0x151   : > { %19657 = vst [vmem:[#allocation240_spill] sm:$0xff] %v15797_v55  ;;  %19658 = vst [vmem:[#allocation241_spill] sm:$0xff] %v15801_v61  ;;  %v15811_v47 = vcombine.high %v15797_v55, %v15797_v55  ;;  %v3299_v63 = vmul.f32 %v15797_v55, %v15797_v55  ;;  %v3300_v38 = vmul.f32 %v15801_v61, %v15801_v61 }
 0x152   : > { %v5387_v25 = vcombine.low %v3297_v48, %v3298_v56  ;;  %v5396_v52 = vrot.slane %v5386_v37, %v13875_v7  ;;  %v2453_v20 = vrot.slane %v2439_v62, %v13875_v7  ;;  %v2454_v45 = vcombine.high %v2446_v31, %v2446_v31 }
 0x153   : > { %19659 = vst [vmem:[#allocation242_spill] sm:$0xff] %v15811_v47  ;;  %v5385_v21 = vcombine.low %v5377_v8, %v5384_v40  ;;  %v3301_v39 = vmul.f32 %v15811_v47, %v15811_v47  ;;  %v5388_v24 = vcombine.low %v3299_v63, %v3300_v38  ;;  %v15822_v46 = vrot.slane %v2446_v31, %v13875_v7  ;;  %v13002_v63 = vld.sshfl [vmem:[%s13873_s8 + $0x208] sm:$0x1 pattern:$0x75316420]  ;;  %v15853_v38 = vpop.f32.mrf.mxu0 }
 0x154   : > { %v5403_v55 = vrot.slane %v5387_v25, %v13875_v7  ;;  %v2455_v32 = vcombine.high %v2453_v20, %v2453_v20  ;;  %v15826_v61 = vrot.slane %v2453_v20, %v13875_v7  ;;  %v15829_v48 = vrot.slane %v2454_v45, %v13875_v7 }
 0x155   : > { %19660 = vst [vmem:[#allocation243_spill] sm:$0xff] %v15822_v46  ;;  %13431 = vmatmul.mubr.msk.f32.gmra.mxu0 %vm5655_vm2, %v5385_v21  ;;  %v5389_v62 = vcombine.low %v3301_v39, %v3302_v60  ;;  %v5410_v8 = vrot.slane %v5388_v24, %v13875_v7  ;;  %v15835_v56 = vcombine.high %v15822_v46, %v15822_v46 }
 0x156   : > { %19661 = vst [vmem:[#allocation244_spill] sm:$0xff] %v15826_v61  ;;  %19662 = vst [vmem:[#allocation245_spill] sm:$0xff] %v15829_v48  ;;  %v3303_v37 = vmul.f32 %v15822_v46, %v15822_v46  ;;  %13433 = vmatprep.mubr.msk.f32.mxu0 %vm13810_vm1, %v19464_v57  ;;  %v5418_v20 = vcombine.low %v5396_v52, %v5403_v55  ;;  %v15842_v31 = vrot.slane %v2455_v32, %v13875_v7  ;;  %v345_v55 = vld [vmem:[%s13873_s8 + $0x210] sm:$0xff] }
 0x157   : > { %19663 = vst [vmem:[#allocation246_spill] sm:$0xff] %v15835_v56  ;;  %v15846_v40 = vcombine.high %v15826_v61, %v15826_v61  ;;  %v15850_v60 = vcombine.high %v15829_v48, %v15829_v48  ;;  %v5417_v25 = vrot.slane %v5389_v62, %v13875_v7  ;;  %v3304_v45 = vmul.f32 %v15829_v48, %v15829_v48  ;;  %v13363_v48 = vpop.f32.mrf.mxu0 }
 0x158   : > { %19664 = vst [vmem:[#allocation247_spill] sm:$0xff] %v15842_v31  ;;  %v3305_v32 = vmul.f32 %v15835_v56, %v15835_v56  ;;  %v3307_v52 = vmul.f32 %v15826_v61, %v15826_v61  ;;  %v5426_v21 = vrot.slane %v5418_v20, %v13875_v7  ;;  %v15866_v39 = vcombine.high %v15842_v31, %v15842_v31 }
 0x159   : > { %19665 = vst [vmem:[#allocation248_spill] sm:$0xff] %v15846_v40  ;;  %19666 = vst [vmem:[#allocation249_spill] sm:$0xff] %v15850_v60  ;;  %v3306_v24 = vmul.f32 %v15850_v60, %v15850_v60  ;;  %v3308_v62 = vmul.f32 %v15842_v31, %v15842_v31  ;;  %v5419_v46 = vcombine.low %v5410_v8, %v5417_v25 }
 0x15a   : > { %19667 = vst [vmem:[#allocation250_spill] sm:$0xff] %v15866_v39  ;;  %v3309_v56 = vmul.f32 %v15846_v40, %v15846_v40  ;;  %v5435_v61 = vcombine.low %v3303_v37, %v3304_v45  ;;  %v2501_v47 = vrot.slane %v13002_v63, %v13875_v7  ;;  %v3310_v20 = vmul.f32 %v15866_v39, %v15866_v39  ;;  %v347_v45 = vld [vmem:[%s13873_s8 + $0x220] sm:$0xff] }
 0x15b   : > { %v5436_v4 = vcombine.low %v3305_v32, %v3306_v24  ;;  %v5437_v6 = vcombine.low %v3307_v52, %v3308_v62  ;;  %v2502_v58 = vcombine.high %v345_v55, %v345_v55  ;;  %v5433_v60 = vrot.slane %v5419_v46, %v13875_v7 }
 0x15c   : > { %v5445_v31 = vrot.slane %v5435_v61, %v13875_v7  ;;  %v2509_v48 = vrot.slane %v345_v55, %v13875_v7  ;;  %v3311_v8 = vmul.f32 %v2501_v47, %v2501_v47  ;;  %v5438_v25 = vcombine.low %v3309_v56, %v3310_v20  ;;  %v15903_v56 = vpop.f32.mrf.mxu0 }
 0x15d   : > { %v5452_v40 = vrot.slane %v5436_v4, %v13875_v7  ;;  %v5459_v37 = vrot.slane %v5437_v6, %v13875_v7  ;;  %v2516_v63 = vrot.slane %v2502_v58, %v13875_v7  ;;  %v5434_v39 = vcombine.low %v5426_v21, %v5433_v60 }
 0x15e   : > { %v2517_v32 = vcombine.high %v2509_v48, %v2509_v48  ;;  %v15886_v52 = vrot.slane %v2509_v48, %v13875_v7  ;;  %v2564_v46 = vrot.slane %v13003_v28, %v13875_v7  ;;  %v5466_v61 = vrot.slane %v5438_v25, %v13875_v7  ;;  %v13366_v25 = vpop.f32.mrf.mxu0 }
 0x15f   : > { %v5467_v24 = vcombine.low %v5445_v31, %v5452_v40  ;;  %v2518_v55 = vcombine.high %v2516_v63, %v2516_v63  ;;  %v15891_v47 = vrot.slane %v2516_v63, %v13875_v7  ;;  %13434 = vmatmul.mubr.msk.f32.gmra.mxu0 %vm5655_vm2, %v5434_v39  ;;  %v2565_v28 = vcombine.high %v347_v45, %v347_v45 }
 0x160   : > { %19668 = vst [vmem:[#allocation251_spill] sm:$0xff] %v15886_v52  ;;  %v15895_v6 = vrot.slane %v2517_v32, %v13875_v7  ;;  %v15899_v58 = vcombine.high %v15886_v52, %v15886_v52  ;;  %v3312_v4 = vmul.f32 %v15886_v52, %v15886_v52  ;;  %13436 = vmatprep.mubr.msk.f32.mxu0 %vm13810_vm1, %v19464_v57 }
 0x161   : > { %19669 = vst [vmem:[#allocation252_spill] sm:$0xff] %v15891_v47  ;;  %v5468_v31 = vcombine.low %v5459_v37, %v5466_v61  ;;  %v5475_v40 = vrot.slane %v5467_v24, %v13875_v7  ;;  %v15909_v60 = vrot.slane %v2518_v55, %v13875_v7  ;;  %v15913_v21 = vcombine.high %v15891_v47, %v15891_v47 }
 0x162   : > { %19670 = vst [vmem:[#allocation253_spill] sm:$0xff] %v15895_v6  ;;  %19671 = vst [vmem:[#allocation254_spill] sm:$0xff] %v15899_v58  ;;  %v15917_v39 = vcombine.high %v15895_v6, %v15895_v6  ;;  %v3313_v62 = vmul.f32 %v15895_v6, %v15895_v6  ;;  %v3314_v20 = vmul.f32 %v15899_v58, %v15899_v58 }
 0x163   : > { %19672 = vst [vmem:[#allocation255_spill] sm:$0xff] %v15909_v60  ;;  %19673 = vst [vmem:[#allocation256_spill] sm:$0xff] %v15913_v21  ;;  %v3316_v48 = vmul.f32 %v15891_v47, %v15891_v47  ;;  %v5482_v37 = vrot.slane %v5468_v31, %v13875_v7  ;;  %v3317_v63 = vmul.f32 %v15909_v60, %v15909_v60 }
 0x164   : > { %19674 = vst [vmem:[#allocation257_spill] sm:$0xff] %v15917_v39  ;;  %v3318_v32 = vmul.f32 %v15913_v21, %v15913_v21  ;;  %v5484_v61 = vcombine.low %v3311_v8, %v3312_v4  ;;  %v3315_v24 = vmul.f32 %v15917_v39, %v15917_v39  ;;  %v5485_v55 = vcombine.low %v3313_v62, %v3314_v20 }
 0x165   : > { %v15934_v58 = vcombine.high %v15909_v60, %v15909_v60  ;;  %v2572_v47 = vrot.slane %v347_v45, %v13875_v7  ;;  %v5483_v25 = vcombine.low %v5475_v40, %v5482_v37  ;;  %v2579_v52 = vrot.slane %v2565_v28, %v13875_v7 }
 0x166   : > { %v5487_v6 = vcombine.low %v3317_v63, %v3318_v32  ;;  %v5494_v31 = vrot.slane %v5484_v61, %v13875_v7  ;;  %v5486_v22 = vcombine.low %v3315_v24, %v3316_v48  ;;  %v5501_v21 = vrot.slane %v5485_v55, %v13875_v7 }
 0x167   : > { %19675 = vst [vmem:[#allocation258_spill] sm:$0xff] %v15934_v58  ;;  %v2580_v8 = vcombine.high %v2572_v47, %v2572_v47  ;;  %v15941_v4 = vrot.slane %v2572_v47, %v13875_v7  ;;  %13437 = vmatmul.mubr.msk.f32.gmra.mxu0 %vm5655_vm2, %v5483_v25  ;;  %v2581_v20 = vcombine.high %v2579_v52, %v2579_v52  ;;  %v13004_v25 = vld.sshfl [vmem:[%s13873_s8 + $0x228] sm:$0x1 pattern:$0x75316420] }
 0x168   : > { %v5515_v62 = vrot.slane %v5487_v6, %v13875_v7  ;;  %v15946_v45 = vrot.slane %v2579_v52, %v13875_v7  ;;  %v3319_v40 = vmul.f32 %v15934_v58, %v15934_v58  ;;  %13439 = vmatprep.mubr.msk.f32.mxu0 %vm13810_vm1, %v19464_v57  ;;  %v5508_v28 = vrot.slane %v5486_v22, %v13875_v7  ;;  %v15960_v52 = vpop.f32.mrf.mxu0 }
 0x169   : > { %19676 = vst [vmem:[#allocation259_spill] sm:$0xff] %v15941_v4  ;;  %v5516_v48 = vcombine.low %v5494_v31, %v5501_v21  ;;  %v15954_v47 = vrot.slane %v2580_v8, %v13875_v7  ;;  %v15958_v6 = vcombine.high %v15941_v4, %v15941_v4  ;;  %v15963_v37 = vrot.slane %v2581_v20, %v13875_v7 }
 0x16a   : > { %19677 = vst [vmem:[#allocation260_spill] sm:$0xff] %v15946_v45  ;;  %v3320_v63 = vmul.f32 %v2564_v46, %v2564_v46  ;;  %v3321_v32 = vmul.f32 %v15941_v4, %v15941_v4  ;;  %v3325_v22 = vmul.f32 %v15946_v45, %v15946_v45  ;;  %v5517_v21 = vcombine.low %v5508_v28, %v5515_v62  ;;  %v13369_v31 = vpop.f32.mrf.mxu0  ;;  %v349_v4 = vld [vmem:[%s13873_s8 + $0x230] sm:$0xff] }
 0x16b   : > { %19678 = vst [vmem:[#allocation261_spill] sm:$0xff] %v15954_v47  ;;  %19679 = vst [vmem:[#allocation262_spill] sm:$0xff] %v15958_v6  ;;  %v5524_v61 = vrot.slane %v5516_v48, %v13875_v7  ;;  %v15972_v24 = vcombine.high %v15954_v47, %v15954_v47  ;;  %v3322_v55 = vmul.f32 %v15954_v47, %v15954_v47 }
 0x16c   : > { %19680 = vst [vmem:[#allocation263_spill] sm:$0xff] %v15963_v37  ;;  %v3323_v46 = vmul.f32 %v15958_v6, %v15958_v6  ;;  %v3326_v8 = vmul.f32 %v15963_v37, %v15963_v37  ;;  %v5533_v20 = vcombine.low %v3319_v40, %v3320_v63  ;;  %v15984_v62 = vcombine.high %v15946_v45, %v15946_v45 }
 0x16d   : > { %19681 = vst [vmem:[#allocation264_spill] sm:$0xff] %v15972_v24  ;;  %v5531_v28 = vrot.slane %v5517_v21, %v13875_v7  ;;  %v3324_v48 = vmul.f32 %v15972_v24, %v15972_v24  ;;  %v5534_v47 = vcombine.low %v3321_v32, %v3322_v55  ;;  %v15991_v31 = vcombine.high %v15963_v37, %v15963_v37  ;;  %v16000_v32 = vld [vmem:[%s18925_s2] ss:$0 sm:$0xff]  ;;  %v16002_v55 = vpop.f32.mrf.mxu0 }
 0x16e   : > { %19682 = vst [vmem:[#allocation265_spill] sm:$0xff] %v15984_v62  ;;  %v5536_v6 = vcombine.low %v3325_v22, %v3326_v8  ;;  %v5543_v58 = vrot.slane %v5533_v20, %v13875_v7  ;;  %v2627_v40 = vrot.slane %v13004_v25, %v13875_v7  ;;  %v2628_v63 = vcombine.high %v349_v4, %v349_v4 }
 0x16f   : > { %19683 = vst [vmem:[#allocation266_spill] sm:$0xff] %v15991_v31  ;;  %v5532_v60 = vcombine.low %v5524_v61, %v5531_v28  ;;  %v5535_v39 = vcombine.low %v3323_v46, %v3324_v48  ;;  %v5550_v45 = vrot.slane %v5534_v47, %v13875_v7  ;;  %v2635_v21 = vrot.slane %v349_v4, %v13875_v7  ;;  %v13372_v28 = vpop.f32.mrf.mxu0 }
 0x170   : > { %v5564_v22 = vrot.slane %v5536_v6, %v13875_v7  ;;  %v16006_v8 = vrot.slane %v2628_v63, %v13875_v7  ;;  %v3327_v61 = vmul.f32 %v15984_v62, %v15984_v62  ;;  %v3328_v47 = vmul.f32 %v15991_v31, %v15991_v31 }
 0x171   : > { %13440 = vmatmul.mubr.msk.f32.gmra.mxu0 %vm5655_vm2, %v5532_v60  ;;  %v5557_v4 = vrot.slane %v5535_v39, %v13875_v7  ;;  %v5565_v25 = vcombine.low %v5543_v58, %v5550_v45  ;;  %v2643_v46 = vcombine.high %v2635_v21, %v2635_v21  ;;  %v2651_v20 = vrot.slane %v2635_v21, %v13875_v7 }
 0x172   : > { %19684 = vst [vmem:[#allocation267_spill] sm:$0xff] %v16006_v8  ;;  %13442 = vmatprep.mubr.msk.f32.mxu0 %vm13810_vm1, %v19464_v57  ;;  %v16019_v6 = vrot.slane %v16006_v8, %v13875_v7  ;;  %v3329_v48 = vmul.f32 %v2627_v40, %v2627_v40  ;;  %v5582_v63 = vcombine.low %v3327_v61, %v3328_v47 }
 0x173   : > { %v5809_v31 = vadd.f32 %v16000_v32, %v15313_v12  ;;  %v5566_v60 = vcombine.low %v5557_v4, %v5564_v22  ;;  %v5573_v39 = vrot.slane %v5565_v25, %v13875_v7  ;;  %v2665_v58 = vrot.slane %v2643_v46, %v13875_v7 }
 0x174   : > { %19685 = vst [vmem:[#allocation268_spill] sm:$0xff] %v16019_v6  ;;  %v2673_v45 = vcombine.high %v2651_v20, %v2651_v20  ;;  %v3330_v21 = vmul.f32 %v2651_v20, %v2651_v20  ;;  %v3334_v28 = vmul.f32 %v16019_v6, %v16019_v6  ;;  %v5592_v62 = vrot.slane %v5582_v63, %v13875_v7 }
 0x175   : > { %13703 = vrsqrt.f32 %v5809_v31  ;;  %v5580_v8 = vrot.slane %v5566_v60, %v13875_v7  ;;  %v2675_v40 = vcombine.high %v2665_v58, %v2665_v58  ;;  %v3331_v61 = vmul.f32 %v2665_v58, %v2665_v58 }
 0x176   : > { %v3332_v47 = vmul.f32 %v2673_v45, %v2673_v45  ;;  %v5583_v37 = vcombine.low %v3329_v48, %v3330_v21  ;;  %v5814_v12 = vadd.f32 %v16000_v32, %v15348_v27  ;;  %v5819_v22 = vadd.f32 %v16000_v32, %v15415_v42  ;;  %v5883_v42 = vpop.f32.mrf.mxu0 }
 0x177   : > { %v5824_v4 = vadd.f32 %v16000_v32, %v15452_v15  ;;  %v5581_v25 = vcombine.low %v5573_v39, %v5580_v8  ;;  %v3333_v46 = vmul.f32 %v2675_v40, %v2675_v40  ;;  %v5829_v8 = vadd.f32 %v16000_v32, %v15493_v33 }
 0x178   : > { %v5584_v20 = vcombine.low %v3331_v61, %v3332_v47  ;;  %v5599_v31 = vrot.slane %v5583_v37, %v13875_v7  ;;  %13705 = vrsqrt.f32 %v5814_v12  ;;  %v5834_v37 = vadd.f32 %v16000_v32, %v15509_v30  ;;  %v13375_v60 = vpop.f32.mrf.mxu0 }
 0x179   : > { %13443 = vmatmul.mubr.msk.f32.gmra.mxu0 %vm5655_vm2, %v5581_v25  ;;  %v5585_v63 = vcombine.low %v3333_v46, %v3334_v28  ;;  %13707 = vrsqrt.f32 %v5819_v22  ;;  %v5839_v45 = vadd.f32 %v16000_v32, %v15570_v54  ;;  %v5849_v28 = vadd.f32 %v16000_v32, %v15672_v19 }
 0x17a   : > { %v5606_v48 = vrot.slane %v5584_v20, %v13875_v7  ;;  %13445 = vmatprep.mubr.msk.f32.mxu0 %vm13810_vm1, %v19464_v57  ;;  %v5614_v27 = vcombine.low %v5592_v62, %v5599_v31  ;;  %13709 = vrsqrt.f32 %v5824_v4  ;;  %v5844_v62 = vadd.f32 %v16000_v32, %v15610_v41  ;;  %v5888_v30 = vpop.f32.mrf.mxu0 }
 0x17b   : > { %v5613_v15 = vrot.slane %v5585_v63, %v13875_v7  ;;  %13711 = vrsqrt.f32 %v5829_v8  ;;  %v5854_v33 = vadd.f32 %v16000_v32, %v15729_v29  ;;  %v5859_v54 = vadd.f32 %v16000_v32, %v15784_v23 }
 0x17c   : > { %v5622_v58 = vrot.slane %v5614_v27, %v13875_v7  ;;  %13713 = vrsqrt.f32 %v5834_v37  ;;  %v5864_v41 = vadd.f32 %v16000_v32, %v15853_v38  ;;  %v13378_v12 = vpop.f32.mrf.mxu0  ;;  %v5869_v19 = vadd.f32 %v16000_v32, %v15903_v56 }
 0x17d   : > { %v5615_v39 = vcombine.low %v5606_v48, %v5613_v15  ;;  %13715 = vrsqrt.f32 %v5839_v45  ;;  %v5874_v22 = vadd.f32 %v16000_v32, %v15960_v52  ;;  %v5879_v38 = vadd.f32 %v16000_v32, %v16002_v55 }
 0x17e   : > { %13717 = vrsqrt.f32 %v5844_v62  ;;  %v5884_v56 = vadd.f32 %v16000_v32, %v5883_v42  ;;  %v16072_v46 = vadd.f32 %v16000_v32, %v5888_v30 }
 0x17f   : > { %v5629_v21 = vrot.slane %v5615_v39, %v13875_v7  ;;  %13719 = vrsqrt.f32 %v5849_v28  ;;  %v16090_v28 = vpop.f32.mrf.mxu0 }
 0x180   : > { %13721 = vrsqrt.f32 %v5854_v33 }
 0x181   : > { %v5630_v61 = vcombine.low %v5622_v58, %v5629_v21  ;;  %13723 = vrsqrt.f32 %v5859_v54 }
 0x182   : > { %v13704_v40 = vpop.eup %13703  ;;  %13725 = vrsqrt.f32 %v5864_v41 }
 0x183   : > { %v6091_v47 = vcombine.high %v13704_v40, %v13704_v40  ;;  %13446 = vmatmul.mubr.msk.f32.gmra.mxu0 %vm5655_vm2, %v5630_v61  ;;  %v6098_v29 = vrot.slane %v13704_v40, %v13875_v7  ;;  %13727 = vrsqrt.f32 %v5869_v19 }
 0x184   : > { %13448 = vmatprep.mubr.msk.f32.mxu0 %vm13810_vm1, %v19464_v57  ;;  %13729 = vrsqrt.f32 %v5874_v22  ;;  %v13381_v22 = vpop.f32.mrf.mxu0 }
 0x185   : > { %v13706_v23 = vpop.eup %13705  ;;  %v6105_v25 = vrot.slane %v6091_v47, %v13875_v7  ;;  %v6106_v63 = vcombine.high %v6098_v29, %v6098_v29  ;;  %v16077_v48 = vrot.slane %v6098_v29, %v13875_v7  ;;  %13731 = vrsqrt.f32 %v5879_v38 }
 0x186   : > { %v13708_v4 = vpop.eup %13707  ;;  %v6140_v31 = vcombine.high %v13706_v23, %v13706_v23  ;;  %v6147_v52 = vrot.slane %v13706_v23, %v13875_v7  ;;  %13733 = vrsqrt.f32 %v5884_v56 }
 0x187   : > { %v13710_v20 = vpop.eup %13709  ;;  %v6196_v57 = vrot.slane %v13708_v4, %v13875_v7  ;;  %v6189_v55 = vcombine.high %v13708_v4, %v13708_v4  ;;  %v6107_v8 = vcombine.high %v6105_v25, %v6105_v25  ;;  %v16084_v37 = vrot.slane %v6105_v25, %v13875_v7 }
 0x188   : > { %v6154_v27 = vrot.slane %v6140_v31, %v13875_v7  ;;  %v6155_v15 = vcombine.high %v6147_v52, %v6147_v52  ;;  %v16081_v42 = vrot.slane %v6147_v52, %v13875_v7  ;;  %v6238_v39 = vcombine.high %v13710_v20, %v13710_v20  ;;  %v13712_v33 = vpop.eup %13711 }
 0x189   : > { %v6204_v60 = vcombine.high %v6196_v57, %v6196_v57  ;;  %v16093_v30 = vrot.slane %v6189_v55, %v13875_v7  ;;  %v16096_v40 = vrot.slane %v6196_v57, %v13875_v7  ;;  %v6245_v54 = vrot.slane %v13710_v20, %v13875_v7  ;;  %v13714_v47 = vpop.eup %13713 }
 0x18a   : > { %19686 = vst [vmem:[#allocation269_spill] sm:$0xff] %v16081_v42  ;;  %v6156_v58 = vcombine.high %v6154_v27, %v6154_v27  ;;  %v6170_v45 = vrot.slane %v6154_v27, %v13875_v7  ;;  %v6177_v62 = vrot.slane %v6155_v15, %v13875_v7  ;;  %v6185_v21 = vcombine.high %v16081_v42, %v16081_v42  ;;  %v13716_v23 = vpop.eup %13715 }
 0x18b   : > { %19687 = vst [vmem:[#allocation270_spill] sm:$0xff] %v16093_v30  ;;  %19688 = vst [vmem:[#allocation271_spill] sm:$0xff] %v16096_v40  ;;  %v16099_v61 = vrot.slane %v6204_v60, %v13875_v7  ;;  %v16103_v41 = vrot.slane %v6106_v63, %v13875_v7  ;;  %v16116_v31 = vpop.eup %13717  ;;  %v16119_v57 = vrot.slane %v6238_v39, %v13875_v7  ;;  %v16147_v39 = vpop.f32.mrf.mxu0  ;;  %13735 = vrsqrt.f32 %v16072_v46 }
 0x18c   : > { %v6184_v12 = vrot.slane %v6156_v58, %v13875_v7  ;;  %v6186_v19 = vcombine.high %v6170_v45, %v6170_v45  ;;  %v6187_v29 = vcombine.high %v6177_v62, %v6177_v62  ;;  %v16109_v4 = vmul.f32 %v6177_v62, %v13899_v26  ;;  %v16124_v55 = vpop.eup %13719 }
 0x18d   : > { %19689 = vst [vmem:[#allocation272_spill] sm:$0xff] %v16099_v61  ;;  %v16112_v25 = vmul.f32 %v6185_v21, %v13920_v36  ;;  %v8288_v20 = vmul.f32 %v16099_v61, %v13888_v18  ;;  %19690 = vst [vmem:[#allocation273_spill] sm:$0xff] %v16119_v57  ;;  %v16122_v63 = vrot.slane %v6107_v8, %v13875_v7  ;;  %v16133_v15 = vpop.eup %13721 }
 0x18e   : > { %v6188_v52 = vcombine.high %v6184_v12, %v6184_v12  ;;  %v16127_v26 = vmul.f32 %v6187_v29, %v13944_v44  ;;  %v8287_v18 = vmul.f32 %v16096_v40, %v13986_v9  ;;  %v6253_v27 = vcombine.high %v6245_v54, %v6245_v54  ;;  %v16149_v58 = vpop.eup %13723  ;;  %v16185_v44 = vld [vmem:[%s18926_s3] sm:$0xf] }
 0x18f   : > { %v16136_v60 = vmul.f32 %v6184_v12, %v13917_v35  ;;  %v16139_v56 = vmul.f32 %v6186_v19, %v13940_v43  ;;  %v16143_v8 = vrot.slane %v16093_v30, %v13875_v7  ;;  %v16152_v9 = vmul.f32 %v6170_v45, %v13962_v51  ;;  %v16159_v21 = vpop.eup %13725  ;;  %v13384_v51 = vpop.f32.mrf.mxu0  ;;  %13465 = vmatprep.subr.msk.mxu1 %vm5738_vm0, %v16185_v44 }
 0x190   : > { %v16157_v43 = vmul.f32 %v6188_v52, %v13958_v50  ;;  %v9785_v62 = vcombine.low %v8287_v18, %v8288_v20  ;;  %v16164_v19 = vrot.slane %v6245_v54, %v13875_v7  ;;  %v6287_v29 = vcombine.high %v13712_v33, %v13712_v33  ;;  %v16167_v45 = vpop.eup %13727 }
 0x191   : > { %19691 = vst [vmem:[#allocation274_spill] sm:$0xff] %v16139_v56  ;;  %19692 = vst [vmem:[#allocation275_spill] sm:$0xff] %v16143_v8  ;;  %v6294_v22 = vrot.slane %v13712_v33, %v13875_v7  ;;  %v6336_v20 = vcombine.high %v13714_v47, %v13714_v47  ;;  %v6343_v52 = vrot.slane %v13714_v47, %v13875_v7  ;;  %v16173_v36 = vpop.eup %13729 }
 0x192   : > { %19693 = vst [vmem:[#allocation276_spill] sm:$0xff] %v16157_v43  ;;  %19694 = vst [vmem:[#allocation277_spill] sm:$0xff] %v16164_v19  ;;  %v9259_v50 = vcombine.low %v16157_v43, %v8287_v18  ;;  %v16180_v33 = vrot.slane %v6287_v29, %v13875_v7  ;;  %v6385_v51 = vcombine.high %v13716_v23, %v13716_v23  ;;  %v16187_v18 = vpop.eup %13731 }
 0x193   : > { %v16192_v35 = vrot.slane %v9785_v62, %v13875_v7  ;;  %v16196_v12 = vrot.slane %v16119_v57, %v13875_v7  ;;  %v16199_v29 = vrot.slane %v6253_v27, %v13875_v7  ;;  %v6302_v38 = vcombine.high %v6294_v22, %v6294_v22 }
 0x194   : > { %19695 = vst [vmem:[#allocation278_spill] sm:$0xff] %v16180_v33  ;;  %v16206_v6 = vrot.slane %v6294_v22, %v13875_v7  ;;  %v6392_v62 = vrot.slane %v13716_v23, %v13875_v7  ;;  %v16210_v47 = vrot.slane %v9259_v50, %v13875_v7  ;;  %v16215_v27 = vrot.slane %v6336_v20, %v13875_v7 }
 0x195   : > { %19696 = vst [vmem:[#allocation279_spill] sm:$0xff] %v16192_v35  ;;  %19697 = vst [vmem:[#allocation280_spill] sm:$0xff] %v16196_v12  ;;  %v6351_v35 = vcombine.high %v6343_v52, %v6343_v52  ;;  %v16220_v54 = vrot.slane %v6343_v52, %v13875_v7  ;;  %v6399_v22 = vrot.slane %v6385_v51, %v13875_v7  ;;  %v16235_v52 = vpop.f32.mrf.mxu0 }
 0x196   : > { %19698 = vst [vmem:[#allocation281_spill] sm:$0xff] %v16199_v29  ;;  %19699 = vst [vmem:[#allocation282_spill] sm:$0xff] %v16206_v6  ;;  %v6434_v23 = vcombine.high %v16116_v31, %v16116_v31  ;;  %v16227_v50 = vrot.slane %v16180_v33, %v13875_v7  ;;  %v6441_v20 = vrot.slane %v16116_v31, %v13875_v7  ;;  %v16245_v33 = vpop.eup %13733 }
 0x197   : > { %19700 = vst [vmem:[#allocation283_spill] sm:$0xff] %v16210_v47  ;;  %19701 = vst [vmem:[#allocation284_spill] sm:$0xff] %v16215_v27  ;;  %v6483_v24 = vcombine.high %v16124_v55, %v16124_v55  ;;  %v6490_v42 = vrot.slane %v16124_v55, %v13875_v7  ;;  %v16238_v51 = vrot.slane %v6302_v38, %v13875_v7  ;;  %v13387_v19 = vpop.f32.mrf.mxu0 }
 0x198   : > { %19702 = vst [vmem:[#allocation285_spill] sm:$0xff] %v16220_v54  ;;  %19703 = vst [vmem:[#allocation286_spill] sm:$0xff] %v16227_v50  ;;  %v6400_v12 = vcombine.high %v6392_v62, %v6392_v62  ;;  %v16243_v50 = vrot.slane %v6392_v62, %v13875_v7  ;;  %v6401_v57 = vcombine.high %v6399_v22, %v6399_v22 }
 0x199   : > { %19704 = vst [vmem:[#allocation287_spill] sm:$0xff] %v16238_v51  ;;  %v16250_v55 = vrot.slane %v6434_v23, %v13875_v7  ;;  %v6449_v29 = vcombine.high %v6441_v20, %v6441_v20  ;;  %v16254_v38 = vrot.slane %v16215_v27, %v13875_v7  ;;  %v16257_v43 = vrot.slane %v6351_v35, %v13875_v7 }
 0x19a   : > { %19705 = vst [vmem:[#allocation288_spill] sm:$0xff] %v16243_v50  ;;  %v16262_v51 = vrot.slane %v6441_v20, %v13875_v7  ;;  %v16265_v31 = vrot.slane %v6399_v22, %v13875_v7  ;;  %v16268_v23 = vrot.slane %v6483_v24, %v13875_v7  ;;  %v6498_v19 = vcombine.high %v6490_v42, %v6490_v42 }
 0x19b   : > { %19706 = vst [vmem:[#allocation289_spill] sm:$0xff] %v16250_v55  ;;  %19707 = vst [vmem:[#allocation290_spill] sm:$0xff] %v16254_v38  ;;  %v6532_v27 = vcombine.high %v16133_v15, %v16133_v15  ;;  %v16273_v38 = vrot.slane %v6400_v12, %v13875_v7  ;;  %v16278_v62 = vrot.slane %v6490_v42, %v13875_v7 }
 0x19c   : > { %19708 = vst [vmem:[#allocation291_spill] sm:$0xff] %v16257_v43  ;;  %19709 = vst [vmem:[#allocation292_spill] sm:$0xff] %v16262_v51  ;;  %v6539_v22 = vrot.slane %v16133_v15, %v13875_v7  ;;  %v16283_v20 = vrot.slane %v6401_v57, %v13875_v7  ;;  %v16292_v12 = vrot.slane %v6449_v29, %v13875_v7 }
 0x19d   : > { %19710 = vst [vmem:[#allocation293_spill] sm:$0xff] %v16265_v31  ;;  %19711 = vst [vmem:[#allocation294_spill] sm:$0xff] %v16268_v23  ;;  %v16289_v31 = vrot.slane %v16250_v55, %v13875_v7  ;;  %v6630_v35 = vcombine.high %v16159_v21, %v16159_v21  ;;  %v16300_v57 = vrot.slane %v16159_v21, %v13875_v7 }
 0x19e   : > { %19712 = vst [vmem:[#allocation295_spill] sm:$0xff] %v16273_v38  ;;  %19713 = vst [vmem:[#allocation296_spill] sm:$0xff] %v16278_v62  ;;  %v6679_v15 = vcombine.high %v16167_v45, %v16167_v45  ;;  %v16308_v29 = vrot.slane %v16268_v23, %v13875_v7  ;;  %v16314_v42 = vrot.slane %v6532_v27, %v13875_v7  ;;  %v5908_v62 = vpop.f32.mrf.mxu0 }
 0x19f   : > { %19714 = vst [vmem:[#allocation297_spill] sm:$0xff] %v16283_v20  ;;  %19715 = vst [vmem:[#allocation298_spill] sm:$0xff] %v16289_v31  ;;  %v16311_v31 = vrot.slane %v6498_v19, %v13875_v7  ;;  %v6547_v51 = vcombine.high %v6539_v22, %v6539_v22  ;;  %v16323_v24 = vrot.slane %v16167_v45, %v13875_v7 }
 0x1a0   : > { %19716 = vst [vmem:[#allocation299_spill] sm:$0xff] %v16292_v12  ;;  %19717 = vst [vmem:[#allocation300_spill] sm:$0xff] %v16308_v29  ;;  %v16319_v12 = vrot.slane %v6630_v35, %v13875_v7  ;;  %v6645_v29 = vcombine.high %v16300_v57, %v16300_v57  ;;  %v16328_v19 = vrot.slane %v6679_v15, %v13875_v7 }
 0x1a1   : > { %19718 = vst [vmem:[#allocation301_spill] sm:$0xff] %v16311_v31  ;;  %19719 = vst [vmem:[#allocation302_spill] sm:$0xff] %v16314_v42  ;;  %v6727_v27 = vcombine.high %v16173_v36, %v16173_v36  ;;  %v6734_v21 = vrot.slane %v16173_v36, %v13875_v7  ;;  %v16335_v35 = vrot.slane %v6539_v22, %v13875_v7 }
 0x1a2   : > { %v6581_v45 = vcombine.high %v16149_v58, %v16149_v58  ;;  %v6694_v31 = vcombine.high %v16323_v24, %v16323_v24  ;;  %v6775_v15 = vcombine.high %v16187_v18, %v16187_v18  ;;  %v6588_v55 = vrot.slane %v16149_v58, %v13875_v7 }
 0x1a3   : > { %19720 = vst [vmem:[#allocation303_spill] sm:$0xff] %v16335_v35  ;;  %v16348_v36 = vrot.slane %v6727_v27, %v13875_v7  ;;  %v6782_v22 = vrot.slane %v16187_v18, %v13875_v7  ;;  %v13390_v35 = vpop.f32.mrf.mxu0  ;;  %v16354_v20 = vrot.slane %v16314_v42, %v13875_v7  ;;  %v16357_v50 = vrot.slane %v6547_v51, %v13875_v7 }
 0x1a4   : > { %v6646_v23 = vcombine.high %v16319_v12, %v16319_v12  ;;  %v6742_v38 = vcombine.high %v6734_v21, %v6734_v21  ;;  %v16363_v58 = vrot.slane %v16319_v12, %v13875_v7  ;;  %v16366_v27 = vrot.slane %v6645_v29, %v13875_v7 }
 0x1a5   : > { %19721 = vst [vmem:[#allocation304_spill] sm:$0xff] %v16354_v20  ;;  %19722 = vst [vmem:[#allocation305_spill] sm:$0xff] %v16357_v50  ;;  %v16371_v35 = vrot.slane %v6734_v21, %v13875_v7  ;;  %v16377_v50 = vrot.slane %v16328_v19, %v13875_v7  ;;  %v16380_v20 = vrot.slane %v6694_v31, %v13875_v7  ;;  %v16402_v29 = vpop.f32.mrf.mxu0 }
 0x1a6   : > { %v16383_v12 = vrot.slane %v6775_v15, %v13875_v7  ;;  %v16389_v21 = vrot.slane %v16348_v36, %v13875_v7  ;;  %v6790_v18 = vcombine.high %v6782_v22, %v6782_v22  ;;  %v16392_v51 = vrot.slane %v6782_v22, %v13875_v7 }
 0x1a7   : > { %v16395_v42 = vrot.slane %v6742_v38, %v13875_v7  ;;  %v5894_v31 = vadd.f32 %v16000_v32, %v16090_v28  ;;  %v5899_v15 = vadd.f32 %v16000_v32, %v16147_v39  ;;  %v6824_v22 = vcombine.high %v16245_v33, %v16245_v33  ;;  %v13393_v6 = vpop.f32.mrf.mxu0 }
 0x1a8   : > { %v5904_v38 = vadd.f32 %v16000_v32, %v16235_v52  ;;  %v6595_v43 = vrot.slane %v6581_v45, %v13875_v7  ;;  %v6596_v28 = vcombine.high %v6588_v55, %v6588_v55  ;;  %v16414_v39 = vrot.slane %v6588_v55, %v13875_v7 }
 0x1a9   : > { %13737 = vrsqrt.f32 %v5894_v31  ;;  %v16418_v54 = vrot.slane %v16383_v12, %v13875_v7  ;;  %v16421_v40 = vrot.slane %v6790_v18, %v13875_v7  ;;  %v6831_v45 = vrot.slane %v16245_v33, %v13875_v7 }
 0x1aa   : > { %19723 = vst [vmem:[#allocation306_spill] sm:$0xff] %v16414_v39  ;;  %13739 = vrsqrt.f32 %v5899_v15  ;;  %v6597_v31 = vcombine.high %v6595_v43, %v6595_v43  ;;  %v6611_v46 = vrot.slane %v6595_v43, %v13875_v7  ;;  %v6618_v55 = vrot.slane %v6596_v28, %v13875_v7 }
 0x1ab   : > { %v16430_v6 = vrot.slane %v6824_v22, %v13875_v7  ;;  %13741 = vrsqrt.f32 %v5904_v38  ;;  %v6626_v18 = vcombine.high %v16414_v39, %v16414_v39  ;;  %v6653_v47 = vrot.slane %v16300_v57, %v13875_v7 }
 0x1ac   : > { %v6625_v52 = vrot.slane %v6597_v31, %v13875_v7  ;;  %v6627_v61 = vcombine.high %v6611_v46, %v6611_v46  ;;  %v6628_v33 = vcombine.high %v6618_v55, %v6618_v55  ;;  %v8352_v15 = vmul.f32 %v6618_v55, %v14445_v13 }
 0x1ad   : > { %v8353_v43 = vmul.f32 %v6626_v18, %v14454_v10  ;;  %v8355_v28 = vmul.f32 %v6611_v46, %v14477_v59  ;;  %v5909_v22 = vadd.f32 %v16000_v32, %v5908_v62  ;;  %v6674_v38 = vrot.slane %v6646_v23, %v13875_v7  ;;  %v16449_v23 = vpop.f32.mrf.mxu0 }
 0x1ae   : > { %v6629_v8 = vcombine.high %v6625_v52, %v6625_v52  ;;  %v8354_v39 = vmul.f32 %v6628_v33, %v14458_v3  ;;  %v8356_v30 = vmul.f32 %v6625_v52, %v14449_v53  ;;  %v8357_v57 = vmul.f32 %v6627_v61, %v14465_v34  ;;  %v19736_v3 = vld [vmem:[#allocation76_spill] sm:$0xff] }
 0x1af   : > { %v6839_v31 = vcombine.high %v6831_v45, %v6831_v45  ;;  %v8627_v56 = vcombine.low %v8352_v15, %v8353_v43  ;;  %13743 = vrsqrt.f32 %v5909_v22  ;;  %v6677_v13 = vcombine.high %v16366_v27, %v16366_v27 }
 0x1b0   : > { %v8358_v10 = vmul.f32 %v6629_v8, %v14469_v17  ;;  %v8359_v59 = vmul.f32 %v6653_v47, %v14492_v2  ;;  %v8628_v62 = vcombine.low %v8354_v39, %v8355_v28  ;;  %v6678_v46 = vcombine.high %v6674_v38, %v6674_v38  ;;  %v13396_v8 = vpop.f32.mrf.mxu0  ;;  %v13736_v39 = vpop.eup %13735 }
 0x1b1   : > { %v16454_v53 = vrot.slane %v6831_v45, %v13875_v7  ;;  %v6675_v34 = vcombine.high %v6653_v47, %v6653_v47  ;;  %v8629_v61 = vcombine.low %v8356_v30, %v8357_v57  ;;  %v16458_v52 = vrot.slane %v16430_v6, %v13875_v7 }
 0x1b2   : > { %v8630_v27 = vcombine.low %v8358_v10, %v8359_v59  ;;  %v8644_v17 = vrot.slane %v8628_v62, %v13875_v7  ;;  %v6676_v2 = vcombine.high %v16363_v58, %v16363_v58  ;;  %v16464_v55 = vrot.slane %v6839_v31, %v13875_v7  ;;  %v16483_v59 = vpop.f32.mrf.mxu0 }
 0x1b3   : > { %v8637_v45 = vrot.slane %v8627_v56, %v13875_v7  ;;  %v8361_v47 = vmul.f32 %v6677_v13, %v14512_v49  ;;  %v8363_v30 = vmul.f32 %v6674_v38, %v14529_v1  ;;  %v6873_v18 = vcombine.high %v13736_v39, %v13736_v39  ;;  %v19724_v13 = vld [vmem:[#allocation74_spill] sm:$0xff] }
 0x1b4   : > { %v6880_v33 = vrot.slane %v13736_v39, %v13875_v7  ;;  %v8658_v15 = vrot.slane %v8630_v27, %v13875_v7  ;;  %v8365_v43 = vmul.f32 %v6678_v46, %v14522_v16  ;;  %v8651_v22 = vrot.slane %v8629_v61, %v13875_v7 }
 0x1b5   : > { %v8360_v57 = vmul.f32 %v6675_v34, %v14503_v11  ;;  %v8362_v31 = vmul.f32 %v16363_v58, %v14516_v0  ;;  %v8367_v49 = vmul.f32 %v16380_v20, %v14546_v14  ;;  %v8659_v1 = vcombine.low %v8637_v45, %v8644_v17 }
 0x1b6   : > { %v13738_v28 = vpop.eup %13737  ;;  %v8364_v38 = vmul.f32 %v6676_v2, %v14509_v5  ;;  %v19725_v10 = vrot.slane %v16323_v24, %v13875_v7  ;;  %v16486_v11 = vrot.slane %v6873_v18, %v13875_v7  ;;  %v8660_v58 = vcombine.low %v8651_v22, %v8658_v15  ;;  %v13399_v24 = vpop.f32.mrf.mxu0  ;;  %v19737_v5 = vld [vmem:[#allocation80_spill] sm:$0xff] }
 0x1b7   : > { %v6921_v56 = vcombine.high %v13738_v28, %v13738_v28  ;;  %v13740_v62 = vpop.eup %13739  ;;  %v6928_v0 = vrot.slane %v13738_v28, %v13875_v7  ;;  %v8676_v46 = vcombine.low %v8360_v57, %v8361_v47  ;;  %v6888_v34 = vcombine.high %v6880_v33, %v6880_v33 }
 0x1b8   : > { %v8366_v16 = vmul.f32 %v19725_v10, %v19724_v13  ;;  %v16489_v14 = vpop.eup %13741  ;;  %v8677_v61 = vcombine.low %v8362_v31, %v8363_v30  ;;  %v8678_v27 = vcombine.low %v8364_v38, %v8365_v43  ;;  %v16494_v17 = vrot.slane %v6880_v33, %v13875_v7  ;;  %v19732_v33 = vld [vmem:[#allocation77_spill] sm:$0xff] }
 0x1b9   : > { %19726 = vst [vmem:[#allocation74_spill] sm:$0xff] %v16489_v14  ;;  %v16497_v2 = vrot.slane %v6921_v56, %v13875_v7  ;;  %v6969_v8 = vcombine.high %v13740_v62, %v13740_v62  ;;  %v6936_v45 = vcombine.high %v6928_v0, %v6928_v0  ;;  %v16500_v47 = vrot.slane %v6928_v0, %v13875_v7 }
 0x1ba   : > { %v8679_v39 = vcombine.low %v8366_v16, %v8367_v49  ;;  %v6976_v18 = vrot.slane %v13740_v62, %v13875_v7  ;;  %v8674_v15 = vrot.slane %v8660_v58, %v13875_v7  ;;  %v8667_v43 = vrot.slane %v8659_v1, %v13875_v7 }
 0x1bb   : > { %v8686_v28 = vrot.slane %v8676_v46, %v13875_v7  ;;  %v16511_v57 = vrot.slane %v6888_v34, %v13875_v7  ;;  %v16514_v31 = vrot.slane %v6969_v8, %v13875_v7  ;;  %v16527_v62 = vrot.slane %v16497_v2, %v13875_v7 }
 0x1bc   : > { %v13744_v22 = vpop.eup %13743  ;;  %v6984_v49 = vcombine.high %v6976_v18, %v6976_v18  ;;  %v16517_v56 = vrot.slane %v6976_v18, %v13875_v7  ;;  %v8675_v1 = vcombine.low %v8667_v43, %v8674_v15  ;;  %v16530_v0 = vrot.slane %v6936_v45, %v13875_v7  ;;  %v16546_v45 = vpop.f32.mrf.mxu0 }
 0x1bd   : > { %v7067_v10 = vcombine.high %v13744_v22, %v13744_v22  ;;  %v16538_v34 = vrot.slane %v16514_v31, %v13875_v7  ;;  %v7074_v18 = vrot.slane %v13744_v22, %v13875_v7  ;;  %v8693_v43 = vrot.slane %v8677_v61, %v13875_v7 }
 0x1be   : > { %v16541_v24 = vrot.slane %v6984_v49, %v13875_v7  ;;  %13453 = vmatprep.mubr.msk.f32.mxu1 %vm5655_vm2, %v8675_v1  ;;  %v8700_v13 = vrot.slane %v8678_v27, %v13875_v7  ;;  %v8707_v46 = vrot.slane %v8679_v39, %v13875_v7  ;;  %v5914_v49 = vadd.f32 %v16000_v32, %v16402_v29  ;;  %v13402_v58 = vpop.f32.mrf.mxu0 }
 0x1bf   : > { %v16550_v15 = vrot.slane %v7067_v10, %v13875_v7  ;;  %v19728_v1 = vcombine.high %v16328_v19, %v16328_v19  ;;  %v6724_v22 = vcombine.high %v16377_v50, %v16377_v50  ;;  %v7082_v10 = vcombine.high %v7074_v18, %v7074_v18  ;;  %v19738_v58 = vld [vmem:[#allocation81_spill] sm:$0xff] }
 0x1c0   : > { %v16566_v27 = vrot.slane %v7074_v18, %v13875_v7  ;;  %v8708_v29 = vcombine.low %v8686_v28, %v8693_v43  ;;  %v8709_v16 = vcombine.low %v8700_v13, %v8707_v46  ;;  %13745 = vrsqrt.f32 %v5914_v49  ;;  %v19733_v28 = vld [vmem:[#allocation75_spill] sm:$0xff]  ;;  %v19734_v46 = vld [vmem:[#allocation78_spill] sm:$0xff] }
 0x1c1   : > { %19727 = vst [vmem:[#allocation307_spill] sm:$0xff] %v16550_v15  ;;  %v6723_v8 = vrot.slane %v19728_v1, %v13875_v7  ;;  %v16570_v39 = vrot.slane %v16550_v15, %v13875_v7  ;;  %v6725_v19 = vcombine.high %v16380_v20, %v16380_v20  ;;  %v16575_v1 = vrot.slane %v7082_v10, %v13875_v7  ;;  %v19735_v49 = vld [vmem:[#allocation79_spill] sm:$0xff] }
 0x1c2   : > { %19729 = vst [vmem:[#allocation308_spill] sm:$0xff] %v16566_v27  ;;  %v8369_v18 = vmul.f32 %v16377_v50, %v19732_v33  ;;  %v8716_v38 = vrot.slane %v8708_v29, %v13875_v7  ;;  %v8723_v30 = vrot.slane %v8709_v16, %v13875_v7  ;;  %v8371_v20 = vmul.f32 %v6724_v22, %v19735_v49  ;;  %v19740_v50 = vld [vmem:[#allocation82_spill] sm:$0xff]  ;;  %v19745_v49 = vld [vmem:[#allocation85_spill] sm:$0xff] }
 0x1c3   : > { %19730 = vst [vmem:[#allocation309_spill] sm:$0xff] %v16570_v39  ;;  %19731 = vst [vmem:[#allocation310_spill] sm:$0xff] %v16575_v1  ;;  %v6726_v61 = vcombine.high %v6723_v8, %v6723_v8  ;;  %v8368_v13 = vmul.f32 %v6725_v19, %v19733_v28  ;;  %v8370_v43 = vmul.f32 %v6723_v8, %v19734_v46  ;;  %v19923_v39 = vld [vmem:[#allocation288_spill] sm:$0xff] }
 0x1c4   : > { %v8373_v14 = vmul.f32 %v16371_v35, %v19737_v5  ;;  %v8374_v27 = vmul.f32 %v16395_v42, %v19738_v58  ;;  %v16591_v1 = vcombine.low %v8716_v38, %v8723_v30  ;;  %v19741_v33 = vcombine.high %v16371_v35, %v16371_v35 }
 0x1c5   : > { %v8372_v10 = vmul.f32 %v6726_v61, %v19736_v3  ;;  %v8725_v29 = vcombine.low %v8368_v13, %v8369_v18  ;;  %v5919_v8 = vadd.f32 %v16000_v32, %v16449_v23  ;;  %v8726_v22 = vcombine.low %v8370_v43, %v8371_v20  ;;  %v16605_v30 = vpop.f32.mrf.mxu0  ;;  %v19743_v18 = vld [vmem:[#allocation83_spill] sm:$0xff]  ;;  %v19744_v13 = vld [vmem:[#allocation84_spill] sm:$0xff] }
 0x1c6   : > { %19739 = vst [vmem:[#allocation77_spill] sm:$0xff] %v16591_v1  ;;  %v8375_v16 = vmul.f32 %v19741_v33, %v19740_v50  ;;  %v5924_v3 = vadd.f32 %v16000_v32, %v16483_v59  ;;  %v19742_v42 = vcombine.high %v16348_v36, %v16348_v36  ;;  %13454 = vmatmul.mubr.msk.f32.vlgmr.msra.gmra.mxu1 %vm5655_vm2, %v16591_v1  ;;  %v19747_v33 = vld [vmem:[#allocation87_spill] sm:$0xff] }
 0x1c7   : > { %v8727_v19 = vcombine.low %v8372_v10, %v8373_v14  ;;  %v8735_v38 = vrot.slane %v8725_v29, %v13875_v7  ;;  %13747 = vrsqrt.f32 %v5919_v8  ;;  %v6773_v23 = vcombine.high %v16389_v21, %v16389_v21  ;;  %v13405_v36 = vpop.f32.mrf.mxu0  ;;  %13466 = vmatpush3.msk.msra.mxu1 %vm5738_vm0, %v16185_v44  ;;  %v19746_v10 = vld [vmem:[#allocation86_spill] sm:$0xff]  ;;  %v19748_v44 = vld [vmem:[#allocation89_spill] sm:$0xff] }
 0x1c8   : > { %v6771_v5 = vrot.slane %v19742_v42, %v13875_v7  ;;  %v8728_v35 = vcombine.low %v8374_v27, %v8375_v16  ;;  %v8742_v14 = vrot.slane %v8726_v22, %v13875_v7  ;;  %13749 = vrsqrt.f32 %v5924_v3  ;;  %v19749_v22 = vld [vmem:[#allocation90_spill] sm:$0xff] }
 0x1c9   : > { %v8749_v59 = vrot.slane %v8727_v19, %v13875_v7  ;;  %v6822_v27 = vcombine.high %v16421_v40, %v16421_v40  ;;  %v8376_v28 = vmul.f32 %v16389_v21, %v19743_v18  ;;  %v8378_v20 = vmul.f32 %v6773_v23, %v19745_v49  ;;  %v19751_v21 = vld [vmem:[#allocation93_spill] sm:$0xff] }
 0x1ca   : > { %v6774_v61 = vcombine.high %v6771_v5, %v6771_v5  ;;  %v8756_v58 = vrot.slane %v8728_v35, %v13875_v7  ;;  %v8377_v46 = vmul.f32 %v6771_v5, %v19744_v13  ;;  %v8757_v43 = vcombine.low %v8735_v38, %v8742_v14 }
 0x1cb   : > { %v8380_v16 = vmul.f32 %v16392_v51, %v19747_v33  ;;  %v8381_v8 = vmul.f32 %v16421_v40, %v19748_v44  ;;  %v19750_v19 = vcombine.high %v16392_v51, %v16392_v51  ;;  %v8383_v42 = vmul.f32 %v6822_v27, %v19751_v21  ;;  %v16644_v51 = vld [vmem:[%s18926_s3 + $0x8] sm:$0xf]  ;;  %v19757_v21 = vld [vmem:[#allocation92_spill] sm:$0xff] }
 0x1cc   : > { %v8379_v50 = vmul.f32 %v6774_v61, %v19746_v10  ;;  %v8758_v29 = vcombine.low %v8749_v59, %v8756_v58  ;;  %v8765_v5 = vrot.slane %v8757_v43, %v13875_v7  ;;  %v8774_v35 = vcombine.low %v8376_v28, %v8377_v46  ;;  %13479 = vmatprep.subr.msk.mxu1 %vm5738_vm0, %v16644_v51  ;;  %v19777_v10 = vld [vmem:[#allocation145_spill] sm:$0xff] }
 0x1cd   : > { %v8382_v3 = vmul.f32 %v19750_v19, %v19749_v22  ;;  %v5929_v23 = vadd.f32 %v16000_v32, %v16546_v45  ;;  %v8776_v59 = vcombine.low %v8380_v16, %v8381_v8  ;;  %v19752_v40 = vcombine.high %v16383_v12, %v16383_v12  ;;  %v13746_v58 = vpop.eup %13745  ;;  %v19756_v19 = vld [vmem:[#allocation91_spill] sm:$0xff] }
 0x1ce   : > { %v8775_v38 = vcombine.low %v8378_v20, %v8379_v50  ;;  %v8772_v14 = vrot.slane %v8758_v29, %v13875_v7  ;;  %v8784_v27 = vrot.slane %v8774_v35, %v13875_v7  ;;  %v6821_v32 = vcombine.high %v16418_v54, %v16418_v54  ;;  %v16650_v45 = vpop.f32.mrf.mxu0  ;;  %v19755_v29 = vld [vmem:[#allocation88_spill] sm:$0xff] }
 0x1cf   : > { %v8777_v61 = vcombine.low %v8382_v3, %v8383_v42  ;;  %v6819_v36 = vrot.slane %v19752_v40, %v13875_v7  ;;  %13751 = vrsqrt.f32 %v5929_v23  ;;  %v7116_v12 = vcombine.high %v13746_v58, %v13746_v58  ;;  %v19776_v23 = vld [vmem:[#allocation146_spill] sm:$0xff] }
 0x1d0   : > { %v8791_v18 = vrot.slane %v8775_v38, %v13875_v7  ;;  %v7123_v28 = vrot.slane %v13746_v58, %v13875_v7  ;;  %v16655_v13 = vcombine.low %v8765_v5, %v8772_v14  ;;  %v8798_v46 = vrot.slane %v8776_v59, %v13875_v7  ;;  %v13408_v54 = vpop.f32.mrf.mxu0 }
 0x1d1   : > { %v8805_v43 = vrot.slane %v8777_v61, %v13875_v7  ;;  %v6823_v20 = vcombine.high %v6819_v36, %v6819_v36  ;;  %v7130_v50 = vrot.slane %v7116_v12, %v13875_v7  ;;  %v16668_v44 = vmul.f32 %v6819_v36, %v19755_v29  ;;  %v19759_v61 = vld [vmem:[#allocation94_spill] sm:$0xff]  ;;  %v19760_v36 = vld [vmem:[#allocation95_spill] sm:$0xff] }
 0x1d2   : > { %19753 = vst [vmem:[#allocation75_spill] sm:$0xff] %v16655_v13  ;;  %v8806_v49 = vcombine.low %v8784_v27, %v8791_v18  ;;  %v7131_v33 = vcombine.high %v7123_v28, %v7123_v28  ;;  %v16663_v16 = vrot.slane %v7123_v28, %v13875_v7  ;;  %13456 = vmatprep.mubr.msk.f32.mxu1 %vm5655_vm2, %v16655_v13  ;;  %v19761_v27 = vld [vmem:[#allocation97_spill] sm:$0xff]  ;;  %v19779_v13 = vld [vmem:[#allocation148_spill] sm:$0xff] }
 0x1d3   : > { %v8807_v8 = vcombine.low %v8798_v46, %v8805_v43  ;;  %v16672_v3 = vmul.f32 %v6821_v32, %v19756_v19  ;;  %v16675_v42 = vmul.f32 %v6823_v20, %v19757_v21  ;;  %v7132_v5 = vcombine.high %v7130_v50, %v7130_v50  ;;  %v19765_v19 = vld [vmem:[#allocation140_spill] sm:$0xff] }
 0x1d4   : > { %19754 = vst [vmem:[#allocation78_spill] sm:$0xff] %v16663_v16  ;;  %v8814_v22 = vrot.slane %v8806_v49, %v13875_v7  ;;  %v7146_v35 = vrot.slane %v7130_v50, %v13875_v7  ;;  %v16679_v38 = vrot.slane %v7131_v33, %v13875_v7  ;;  %v13748_v14 = vpop.eup %13747  ;;  %v16686_v40 = vmul.f32 %v16454_v53, %v19759_v61  ;;  %v19763_v49 = vld [vmem:[#allocation142_spill] sm:$0xff]  ;;  %v19922_v16 = vld [vmem:[#allocation41_spill] sm:$0xff] }
 0x1d5   : > { %v8821_v59 = vrot.slane %v8807_v8, %v13875_v7  ;;  %v16690_v58 = vmul.f32 %v16464_v55, %v19760_v36  ;;  %v19762_v18 = vcombine.high %v16454_v53, %v16454_v53  ;;  %v13750_v12 = vpop.eup %13749  ;;  %v7160_v28 = vrot.slane %v7132_v5, %v13875_v7  ;;  %v19767_v5 = vld [vmem:[#allocation143_spill] sm:$0xff]  ;;  %v19769_v36 = vld [vmem:[#allocation144_spill] sm:$0xff] }
 0x1d6   : > { %19758 = vst [vmem:[#allocation79_spill] sm:$0xff] %v16679_v38  ;;  %v7162_v46 = vcombine.high %v7146_v35, %v7146_v35  ;;  %v7163_v43 = vcombine.high %v16679_v38, %v16679_v38  ;;  %v16702_v20 = vmul.f32 %v7146_v35, %v19763_v49  ;;  %v7165_v54 = vcombine.high %v13748_v14, %v13748_v14 }
 0x1d7   : > { %v16696_v32 = vmul.f32 %v19762_v18, %v19761_v27  ;;  %v7172_v50 = vrot.slane %v13748_v14, %v13875_v7  ;;  %v7214_v33 = vcombine.high %v13750_v12, %v13750_v12  ;;  %v7221_v29 = vrot.slane %v13750_v12, %v13875_v7  ;;  %v16706_v8 = vpop.f32.mrf.mxu0 }
 0x1d8   : > { %19764 = vst [vmem:[#allocation76_spill] sm:$0xff] %v16702_v20  ;;  %v7164_v53 = vcombine.high %v7160_v28, %v7160_v28  ;;  %v16709_v21 = vmul.f32 %v7163_v43, %v19765_v19  ;;  %v16712_v61 = vmul.f32 %v7160_v28, %v19767_v5  ;;  %v16715_v27 = vmul.f32 %v7162_v46, %v19769_v36  ;;  %v19773_v19 = vld [vmem:[#allocation141_spill] sm:$0xff] }
 0x1d9   : > { %v16718_v35 = vrot.slane %v7165_v54, %v13875_v7  ;;  %v7180_v18 = vcombine.high %v7172_v50, %v7172_v50  ;;  %v7188_v14 = vrot.slane %v7172_v50, %v13875_v7  ;;  %v16722_v12 = vrot.slane %v7214_v33, %v13875_v7  ;;  %v13411_v49 = vpop.f32.mrf.mxu0 }
 0x1da   : > { %19766 = vst [vmem:[#allocation80_spill] sm:$0xff] %v16709_v21  ;;  %19768 = vst [vmem:[#allocation81_spill] sm:$0xff] %v16712_v61  ;;  %v16731_v5 = vmul.f32 %v7164_v53, %v19773_v19  ;;  %v7229_v46 = vcombine.high %v7221_v29, %v7221_v29  ;;  %v16762_v28 = vcombine.low %v8814_v22, %v8821_v59  ;;  %v19785_v53 = vld [vmem:[#allocation147_spill] sm:$0xff] }
 0x1db   : > { %19770 = vst [vmem:[#allocation82_spill] sm:$0xff] %v16715_v27  ;;  %19771 = vst [vmem:[#allocation83_spill] sm:$0xff] %v16718_v35  ;;  %v16737_v50 = vrot.slane %v16718_v35, %v13875_v7  ;;  %v7202_v33 = vrot.slane %v7180_v18, %v13875_v7  ;;  %v7210_v36 = vcombine.high %v7188_v14, %v7188_v14  ;;  %v19920_v21 = vld [vmem:[#allocation39_spill] sm:$0xff] }
 0x1dc   : > { %19772 = vst [vmem:[#allocation84_spill] sm:$0xff] %v16722_v12  ;;  %19774 = vst [vmem:[#allocation85_spill] sm:$0xff] %v16731_v5  ;;  %v13752_v49 = vpop.eup %13751  ;;  %v8438_v43 = vmul.f32 %v7188_v14, %v19776_v23  ;;  %v16752_v18 = vrot.slane %v7221_v29, %v13875_v7  ;;  %v16757_v23 = vrot.slane %v16722_v12, %v13875_v7  ;;  %13457 = vmatmul.mubr.msk.f32.gmra.mxu1 %vm5655_vm2, %v16762_v28 }
 0x1dd   : > { %19775 = vst [vmem:[#allocation86_spill] sm:$0xff] %v16737_v50  ;;  %v7212_v19 = vcombine.high %v7202_v33, %v7202_v33  ;;  %v16746_v54 = vmul.f32 %v7202_v33, %v19777_v10  ;;  %v16749_v1 = vmul.f32 %v7210_v36, %v19779_v13  ;;  %v16760_v14 = vrot.slane %v7229_v46, %v13875_v7  ;;  %v19788_v46 = vld [vmem:[#allocation98_spill] sm:$0xff]  ;;  %v19791_v13 = vld [vmem:[#allocation100_spill] sm:$0xff] }
 0x1de   : > { %19781 = vst [vmem:[#allocation90_spill] sm:$0xff] %v16752_v18  ;;  %v10374_v50 = vcombine.low %v16731_v5, %v8438_v43  ;;  %19782 = vst [vmem:[#allocation93_spill] sm:$0xff] %v16757_v23  ;;  %v7263_v22 = vcombine.high %v13752_v49, %v13752_v49  ;;  %v7270_v59 = vrot.slane %v13752_v49, %v13875_v7 }
 0x1df   : > { %19778 = vst [vmem:[#allocation87_spill] sm:$0xff] %v16746_v54  ;;  %19780 = vst [vmem:[#allocation89_spill] sm:$0xff] %v16749_v1  ;;  %v16765_v10 = vmul.f32 %v7212_v19, %v19785_v53  ;;  %v11498_v29 = vcombine.low %v8438_v43, %v16746_v54  ;;  %v19789_v53 = vcombine.high %v16464_v55, %v16464_v55  ;;  %v19799_v43 = vld [vmem:[#allocation96_spill] sm:$0xff]  ;;  %v19901_v54 = vld [vmem:[#allocation30_spill] sm:$0xff] }
 0x1e0   : > { %19783 = vst [vmem:[#allocation88_spill] sm:$0xff] %v16760_v14  ;;  %19784 = vst [vmem:[#allocation91_spill] sm:$0xff] %v16762_v28  ;;  %v16772_v36 = vpop.f32.mrf.mxu0  ;;  %v16775_v5 = vrot.slane %v10374_v50, %v13875_v7  ;;  %v8391_v50 = vmul.f32 %v16458_v52, %v19791_v13  ;;  %v8823_v28 = vcombine.low %v16668_v44, %v16672_v3  ;;  %v16805_v44 = vld [vmem:[%s18925_s2] ss:$0 sm:$0xff]  ;;  %v19891_v14 = vld [vmem:[#allocation287_spill] sm:$0xff] }
 0x1e1   : > { %19786 = vst [vmem:[#allocation92_spill] sm:$0xff] %v16765_v10  ;;  %v8390_v19 = vmul.f32 %v19789_v53, %v19788_v46  ;;  %v16787_v33 = vrot.slane %v11498_v29, %v13875_v7  ;;  %v7277_v49 = vrot.slane %v7263_v22, %v13875_v7  ;;  %v7278_v12 = vcombine.high %v7270_v59, %v7270_v59 }
 0x1e2   : > { %19787 = vst [vmem:[#allocation94_spill] sm:$0xff] %v16775_v5  ;;  %v13414_v23 = vpop.f32.mrf.mxu0  ;;  %v16795_v18 = vrot.slane %v7270_v59, %v13875_v7  ;;  %v8824_v55 = vcombine.low %v16675_v42, %v16686_v40  ;;  %v8825_v29 = vcombine.low %v16690_v58, %v16696_v32  ;;  %v8833_v53 = vrot.slane %v8823_v28, %v13875_v7 }
 0x1e3   : > { %19790 = vst [vmem:[#allocation95_spill] sm:$0xff] %v16787_v33  ;;  %v8826_v46 = vcombine.low %v8390_v19, %v8391_v50  ;;  %v5934_v3 = vadd.f32 %v16805_v44, %v16605_v30  ;;  %v7279_v23 = vcombine.high %v7277_v49, %v7277_v49  ;;  %v16810_v13 = vrot.slane %v7277_v49, %v13875_v7 }
 0x1e4   : > { %19792 = vst [vmem:[#allocation97_spill] sm:$0xff] %v16795_v18  ;;  %v16813_v42 = vrot.slane %v7278_v12, %v13875_v7  ;;  %v8840_v58 = vrot.slane %v8824_v55, %v13875_v7  ;;  %v8847_v32 = vrot.slane %v8825_v29, %v13875_v7  ;;  %v19796_v30 = vcombine.high %v16430_v6, %v16430_v6 }
 0x1e5   : > { %19793 = vst [vmem:[#allocation142_spill] sm:$0xff] %v16810_v13  ;;  %v8854_v28 = vrot.slane %v8826_v46, %v13875_v7  ;;  %13753 = vrsqrt.f32 %v5934_v3  ;;  %v16821_v22 = vrot.slane %v7279_v23, %v13875_v7  ;;  %v6870_v12 = vcombine.high %v16458_v52, %v16458_v52  ;;  %v19798_v46 = vld [vmem:[#allocation102_spill] sm:$0xff]  ;;  %v19801_v52 = vld [vmem:[#allocation101_spill] sm:$0xff] }
 0x1e6   : > { %19794 = vst [vmem:[#allocation140_spill] sm:$0xff] %v16813_v42  ;;  %v6868_v59 = vrot.slane %v19796_v30, %v13875_v7  ;;  %v19797_v19 = vcombine.high %v16486_v11, %v16486_v11  ;;  %v8855_v49 = vcombine.low %v8833_v53, %v8840_v58  ;;  %v6919_v29 = vcombine.high %v16511_v57, %v16511_v57  ;;  %v19800_v30 = vld [vmem:[#allocation105_spill] sm:$0xff]  ;;  %v19889_v42 = vld [vmem:[#allocation22_spill] sm:$0xff] }
 0x1e7   : > { %19795 = vst [vmem:[#allocation143_spill] sm:$0xff] %v16821_v22  ;;  %v8856_v55 = vcombine.low %v8847_v32, %v8854_v28  ;;  %v8394_v3 = vmul.f32 %v16494_v17, %v19798_v46  ;;  %v8392_v6 = vmul.f32 %v6870_v12, %v19799_v43  ;;  %v8395_v40 = vmul.f32 %v16511_v57, %v19800_v30  ;;  %v19803_v32 = vld [vmem:[#allocation103_spill] sm:$0xff]  ;;  %v19804_v46 = vld [vmem:[#allocation104_spill] sm:$0xff]  ;;  %v19807_v30 = vld [vmem:[#allocation106_spill] sm:$0xff] }
 0x1e8   : > { %v6917_v50 = vrot.slane %v19797_v19, %v13875_v7  ;;  %v6872_v23 = vcombine.high %v6868_v59, %v6868_v59  ;;  %v19802_v33 = vcombine.high %v16494_v17, %v16494_v17  ;;  %v8863_v53 = vrot.slane %v8855_v49, %v13875_v7  ;;  %v19806_v12 = vld [vmem:[#allocation99_spill] sm:$0xff] }
 0x1e9   : > { %v16844_v19 = vpop.f32.mrf.mxu0  ;;  %v8870_v58 = vrot.slane %v8856_v55, %v13875_v7  ;;  %v8397_v28 = vmul.f32 %v6919_v29, %v19803_v32  ;;  %v19805_v43 = vrot.slane %v16486_v11, %v13875_v7  ;;  %v8873_v13 = vcombine.low %v8394_v3, %v8395_v40 }
 0x1ea   : > { %v8396_v10 = vmul.f32 %v19802_v33, %v19801_v52  ;;  %v8393_v57 = vmul.f32 %v6872_v23, %v19806_v12  ;;  %v8399_v22 = vmul.f32 %v6917_v50, %v19807_v30  ;;  %v5939_v17 = vadd.f32 %v16805_v44, %v16650_v45  ;;  %v19815_v12 = vld [vmem:[#allocation110_spill] sm:$0xff]  ;;  %v19816_v30 = vld [vmem:[#allocation112_spill] sm:$0xff] }
 0x1eb   : > { %v8398_v59 = vmul.f32 %v19805_v43, %v19804_v46  ;;  %v13417_v33 = vpop.f32.mrf.mxu0  ;;  %v16857_v52 = vcombine.low %v8863_v53, %v8870_v58  ;;  %v6920_v55 = vcombine.high %v6917_v50, %v6917_v50  ;;  %v19809_v29 = vcombine.high %v16497_v2, %v16497_v2  ;;  %v19810_v50 = vld [vmem:[#allocation107_spill] sm:$0xff]  ;;  %v19812_v53 = vld [vmem:[#allocation108_spill] sm:$0xff] }
 0x1ec   : > { %v8874_v49 = vcombine.low %v8396_v10, %v8397_v28  ;;  %v8872_v11 = vcombine.low %v8392_v6, %v8393_v57  ;;  %v8889_v23 = vrot.slane %v8873_v13, %v13875_v7  ;;  %13755 = vrsqrt.f32 %v5939_v17  ;;  %v19811_v6 = vld [vmem:[#allocation109_spill] sm:$0xff]  ;;  %v19813_v28 = vld [vmem:[#allocation111_spill] sm:$0xff] }
 0x1ed   : > { %19808 = vst [vmem:[#allocation144_spill] sm:$0xff] %v16857_v52  ;;  %v6965_v32 = vrot.slane %v19809_v29, %v13875_v7  ;;  %v8875_v46 = vcombine.low %v8398_v59, %v8399_v22  ;;  %13459 = vmatprep.mubr.msk.f32.mxu1 %vm5655_vm2, %v16857_v52  ;;  %v6967_v40 = vcombine.high %v16527_v62, %v16527_v62  ;;  %v19817_v33 = vld [vmem:[#allocation113_spill] sm:$0xff] }
 0x1ee   : > { %v8896_v45 = vrot.slane %v8874_v49, %v13875_v7  ;;  %v6968_v10 = vcombine.high %v16530_v0, %v16530_v0  ;;  %v8400_v3 = vmul.f32 %v6920_v55, %v19810_v50  ;;  %v8882_v2 = vrot.slane %v8872_v11, %v13875_v7  ;;  %v19818_v11 = vld [vmem:[#allocation114_spill] sm:$0xff] }
 0x1ef   : > { %v8903_v22 = vrot.slane %v8875_v46, %v13875_v7  ;;  %v8401_v13 = vmul.f32 %v16500_v47, %v19811_v6  ;;  %v8402_v58 = vmul.f32 %v16530_v0, %v19812_v53  ;;  %v19814_v43 = vcombine.high %v16500_v47, %v16500_v47 }
 0x1f0   : > { %v8404_v57 = vmul.f32 %v6968_v10, %v19815_v12  ;;  %v8405_v17 = vmul.f32 %v16527_v62, %v19816_v30  ;;  %v8406_v49 = vmul.f32 %v6965_v32, %v19817_v33  ;;  %v8904_v55 = vcombine.low %v8882_v2, %v8889_v23  ;;  %v19823_v33 = vld [vmem:[#allocation115_spill] sm:$0xff] }
 0x1f1   : > { %v8403_v59 = vmul.f32 %v19814_v43, %v19813_v28  ;;  %v8905_v29 = vcombine.low %v8896_v45, %v8903_v22  ;;  %v8407_v46 = vmul.f32 %v6967_v40, %v19818_v11  ;;  %v8921_v50 = vcombine.low %v8400_v3, %v8401_v13 }
 0x1f2   : > { %v8923_v52 = vcombine.low %v8404_v57, %v8405_v17  ;;  %v5944_v0 = vadd.f32 %v16805_v44, %v16706_v8  ;;  %v19819_v47 = vcombine.high %v16514_v31, %v16514_v31  ;;  %v13754_v53 = vpop.eup %13753  ;;  %v8912_v62 = vrot.slane %v8904_v55, %v13875_v7  ;;  %v19859_v55 = vld [vmem:[#allocation275_spill] sm:$0xff] }
 0x1f3   : > { %v8922_v6 = vcombine.low %v8402_v58, %v8403_v59  ;;  %v8919_v32 = vrot.slane %v8905_v29, %v13875_v7  ;;  %v8924_v23 = vcombine.low %v8406_v49, %v8407_v46  ;;  %v8931_v45 = vrot.slane %v8921_v50, %v13875_v7  ;;  %v16896_v40 = vpop.f32.mrf.mxu0 }
 0x1f4   : > { %v7013_v10 = vrot.slane %v19819_v47, %v13875_v7  ;;  %v7312_v3 = vcombine.high %v13754_v53, %v13754_v53  ;;  %v7319_v2 = vrot.slane %v13754_v53, %v13875_v7  ;;  %v8945_v22 = vrot.slane %v8923_v52, %v13875_v7  ;;  %v19827_v53 = vld [vmem:[#allocation119_spill] sm:$0xff] }
 0x1f5   : > { %v8938_v8 = vrot.slane %v8922_v6, %v13875_v7  ;;  %v16901_v13 = vcombine.low %v8912_v62, %v8919_v32  ;;  %v8952_v31 = vrot.slane %v8924_v23, %v13875_v7  ;;  %13757 = vrsqrt.f32 %v5944_v0  ;;  %v13420_v28 = vpop.f32.mrf.mxu0  ;;  %v19826_v0 = vld [vmem:[#allocation117_spill] sm:$0xff] }
 0x1f6   : > { %v7015_v58 = vcombine.high %v16538_v34, %v16538_v34  ;;  %v16907_v43 = vrot.slane %v7312_v3, %v13875_v7  ;;  %v7327_v59 = vcombine.high %v7319_v2, %v7319_v2  ;;  %v16910_v12 = vrot.slane %v7319_v2, %v13875_v7  ;;  %v19830_v2 = vld [vmem:[#allocation116_spill] sm:$0xff] }
 0x1f7   : > { %19820 = vst [vmem:[#allocation141_spill] sm:$0xff] %v16901_v13  ;;  %v8953_v57 = vcombine.low %v8931_v45, %v8938_v8  ;;  %13460 = vmatmul.mubr.msk.f32.gmra.mxu1 %vm5655_vm2, %v16901_v13  ;;  %v8954_v52 = vcombine.low %v8945_v22, %v8952_v31  ;;  %v7016_v30 = vcombine.high %v16541_v24, %v16541_v24  ;;  %v19829_v45 = vld [vmem:[#allocation121_spill] sm:$0xff]  ;;  %v19831_v22 = vld [vmem:[#allocation118_spill] sm:$0xff]  ;;  %v19832_v28 = vld [vmem:[#allocation120_spill] sm:$0xff] }
 0x1f8   : > { %19821 = vst [vmem:[#allocation146_spill] sm:$0xff] %v16907_v43  ;;  %19822 = vst [vmem:[#allocation145_spill] sm:$0xff] %v16910_v12  ;;  %v7017_v17 = vcombine.high %v7013_v10, %v7013_v10  ;;  %v8408_v49 = vmul.f32 %v16517_v56, %v19823_v33  ;;  %v16922_v29 = vrot.slane %v16907_v43, %v13875_v7 }
 0x1f9   : > { %v16925_v11 = vrot.slane %v7327_v59, %v13875_v7  ;;  %v8961_v50 = vrot.slane %v8953_v57, %v13875_v7  ;;  %v8968_v6 = vrot.slane %v8954_v52, %v13875_v7  ;;  %v8409_v47 = vmul.f32 %v16541_v24, %v19826_v0  ;;  %v13756_v23 = vpop.eup %13755  ;;  %v19834_v0 = vld [vmem:[#allocation122_spill] sm:$0xff] }
 0x1fa   : > { %19824 = vst [vmem:[#allocation148_spill] sm:$0xff] %v16922_v29  ;;  %v19828_v62 = vcombine.high %v16517_v56, %v16517_v56  ;;  %v8411_v3 = vmul.f32 %v7016_v30, %v19829_v45  ;;  %v8412_v8 = vmul.f32 %v16538_v34, %v19830_v2  ;;  %v8413_v31 = vmul.f32 %v7013_v10, %v19831_v22 }
 0x1fb   : > { %19825 = vst [vmem:[#allocation147_spill] sm:$0xff] %v16925_v11  ;;  %v8414_v59 = vmul.f32 %v7015_v58, %v19832_v28  ;;  %v16942_v57 = vpop.f32.mrf.mxu0  ;;  %v7361_v52 = vcombine.high %v13756_v23, %v13756_v23  ;;  %v7368_v24 = vrot.slane %v13756_v23, %v13875_v7  ;;  %v16945_v33 = vcombine.low %v8961_v50, %v8968_v6 }
 0x1fc   : > { %v8410_v32 = vmul.f32 %v19828_v62, %v19827_v53  ;;  %v8415_v56 = vmul.f32 %v7017_v17, %v19834_v0  ;;  %v8970_v53 = vcombine.low %v8408_v49, %v8409_v47  ;;  %v8972_v46 = vcombine.low %v8412_v8, %v8413_v31  ;;  %v19839_v31 = vld [vmem:[#allocation3_spill] sm:$0xff] }
 0x1fd   : > { %19833 = vst [vmem:[#allocation98_spill] sm:$0xff] %v16945_v33  ;;  %v5949_v30 = vadd.f32 %v16805_v44, %v16772_v36  ;;  %v13423_v34 = vpop.f32.mrf.mxu0  ;;  %v16951_v10 = vrot.slane %v7361_v52, %v13875_v7  ;;  %v7376_v58 = vcombine.high %v7368_v24, %v7368_v24  ;;  %v16954_v45 = vrot.slane %v7368_v24, %v13875_v7  ;;  %v19841_v24 = vld [vmem:[#allocation6_spill] sm:$0xff] }
 0x1fe   : > { %v8971_v62 = vcombine.low %v8410_v32, %v8411_v3  ;;  %13462 = vmatprep.mubr.msk.f32.mxu1 %vm5655_vm2, %v16945_v33  ;;  %v8973_v50 = vcombine.low %v8414_v59, %v8415_v56  ;;  %v8980_v17 = vrot.slane %v8970_v53, %v13875_v7  ;;  %v8994_v6 = vrot.slane %v8972_v46, %v13875_v7  ;;  %v19840_v59 = vld [vmem:[#allocation5_spill] sm:$0xff] }
 0x1ff   : > { %19835 = vst [vmem:[#allocation100_spill] sm:$0xff] %v16951_v10  ;;  %19836 = vst [vmem:[#allocation102_spill] sm:$0xff] %v16954_v45  ;;  %13759 = vrsqrt.f32 %v5949_v30  ;;  %v16965_v47 = vrot.slane %v16951_v10, %v13875_v7  ;;  %v16968_v32 = vrot.slane %v7376_v58, %v13875_v7  ;;  %v6137_v46 = vcombine.high %v16084_v37, %v16084_v37  ;;  %v19843_v58 = vld [vmem:[#allocation9_spill] sm:$0xff]  ;;  %v19885_v10 = vld [vmem:[#allocation24_spill] sm:$0xff] }
 0x200   : > { %v8987_v49 = vrot.slane %v8971_v62, %v13875_v7  ;;  %v9001_v3 = vrot.slane %v8973_v50, %v13875_v7  ;;  %v6138_v8 = vcombine.high %v16103_v41, %v16103_v41  ;;  %v6139_v22 = vcombine.high %v16122_v63, %v16122_v63 }
 0x201   : > { %19837 = vst [vmem:[#allocation96_spill] sm:$0xff] %v16965_v47  ;;  %19838 = vst [vmem:[#allocation105_spill] sm:$0xff] %v16968_v32  ;;  %v8271_v28 = vmul.f32 %v16077_v48, %v19839_v31  ;;  %v16983_v52 = vmul.f32 %v16103_v41, %v19840_v59  ;;  %v19842_v0 = vcombine.high %v16077_v48, %v16077_v48  ;;  %v19845_v59 = vld [vmem:[#allocation7_spill] sm:$0xff] }
 0x202   : > { %v9002_v2 = vcombine.low %v8980_v17, %v8987_v49  ;;  %v16991_v53 = vpop.f32.mrf.mxu0  ;;  %v13758_v62 = vpop.eup %13757  ;;  %v9003_v30 = vcombine.low %v8994_v6, %v9001_v3  ;;  %v16995_v50 = vmul.f32 %v6138_v8, %v19843_v58  ;;  %v19844_v17 = vld [vmem:[#allocation4_spill] sm:$0xff]  ;;  %v17004_v48 = vmul.f32 %v16122_v63, %v19845_v59 }
 0x203   : > { %v16989_v56 = vmul.f32 %v19842_v0, %v19841_v24  ;;  %v16999_v49 = vmul.f32 %v16084_v37, %v19844_v17  ;;  %v7410_v41 = vcombine.high %v13758_v62, %v13758_v62  ;;  %v7417_v31 = vrot.slane %v13758_v62, %v13875_v7  ;;  %v19846_v24 = vld [vmem:[#allocation8_spill] sm:$0xff] }
 0x204   : > { %v9010_v34 = vrot.slane %v9002_v2, %v13875_v7  ;;  %v17007_v0 = vmul.f32 %v6137_v46, %v19846_v24  ;;  %v13426_v6 = vpop.f32.mrf.mxu0  ;;  %v9017_v3 = vrot.slane %v9003_v30, %v13875_v7  ;;  %v19847_v2 = vld [vmem:[#allocation10_spill] sm:$0xff]  ;;  %v9207_v58 = vcombine.low %v8271_v28, %v16983_v52 }
 0x205   : > { %v17011_v8 = vmul.f32 %v6139_v22, %v19847_v2  ;;  %v9208_v37 = vcombine.low %v16989_v56, %v16995_v50  ;;  %v17017_v62 = vrot.slane %v7410_v41, %v13875_v7  ;;  %v7425_v17 = vcombine.high %v7417_v31, %v7417_v31 }
 0x206   : > { %v17020_v63 = vrot.slane %v7417_v31, %v13875_v7  ;;  %v9209_v46 = vcombine.low %v16999_v49, %v17004_v48  ;;  %v17024_v59 = vcombine.low %v9010_v34, %v9017_v3  ;;  %v9217_v28 = vrot.slane %v9207_v58, %v13875_v7  ;;  %v19855_v34 = vld [vmem:[#allocation274_spill] sm:$0xff] }
 0x207   : > { %19848 = vst [vmem:[#allocation101_spill] sm:$0xff] %v17017_v62  ;;  %v9210_v22 = vcombine.low %v17007_v0, %v17011_v8  ;;  %v9224_v30 = vrot.slane %v9208_v37, %v13875_v7  ;;  %v17034_v24 = vrot.slane %v17017_v62, %v13875_v7  ;;  %v17037_v31 = vrot.slane %v7425_v17, %v13875_v7 }
 0x208   : > { %19849 = vst [vmem:[#allocation103_spill] sm:$0xff] %v17020_v63  ;;  %19850 = vst [vmem:[#allocation104_spill] sm:$0xff] %v17024_v59  ;;  %13463 = vmatmul.mubr.msk.f32.gmra.mxu1 %vm5655_vm2, %v17024_v59  ;;  %v9231_v6 = vrot.slane %v9209_v46, %v13875_v7  ;;  %v19853_v58 = vcombine.low %v16109_v4, %v16112_v25  ;;  %v19854_v17 = vcombine.low %v16127_v26, %v16152_v9 }
 0x209   : > { %19851 = vst [vmem:[#allocation99_spill] sm:$0xff] %v17034_v24  ;;  %19852 = vst [vmem:[#allocation106_spill] sm:$0xff] %v17037_v31  ;;  %v9238_v3 = vrot.slane %v9210_v22, %v13875_v7  ;;  %v9239_v2 = vcombine.low %v9217_v28, %v9224_v30  ;;  %v19856_v23 = vcombine.low %v16136_v60, %v19855_v34  ;;  %v19857_v22 = vld [vmem:[#allocation270_spill] sm:$0xff] }
 0x20a   : > { %v9266_v37 = vrot.slane %v19853_v58, %v13875_v7  ;;  %v9273_v41 = vrot.slane %v19854_v17, %v13875_v7  ;;  %v5954_v46 = vadd.f32 %v16805_v44, %v16844_v19  ;;  %v19858_v28 = vcombine.high %v19857_v22, %v19857_v22  ;;  %v19860_v17 = vld [vmem:[#allocation272_spill] sm:$0xff] }
 0x20b   : > { %v9280_v36 = vrot.slane %v19856_v23, %v13875_v7  ;;  %v9240_v4 = vcombine.low %v9231_v6, %v9238_v3  ;;  %v9247_v58 = vrot.slane %v9239_v2, %v13875_v7  ;;  %v6235_v59 = vcombine.high %v19859_v55, %v19859_v55  ;;  %v19861_v23 = vld [vmem:[#allocation283_spill] sm:$0xff] }
 0x20c   : > { %v6233_v30 = vrot.slane %v19858_v28, %v13875_v7  ;;  %v6236_v33 = vcombine.high %v19860_v17, %v19860_v17  ;;  %v13760_v13 = vpop.eup %13759  ;;  %v9288_v63 = vcombine.low %v9266_v37, %v9273_v41  ;;  %13761 = vrsqrt.f32 %v5954_v46  ;;  %v19862_v3 = vld [vmem:[#allocation11_spill] sm:$0xff]  ;;  %v19865_v37 = vld [vmem:[#allocation13_spill] sm:$0xff] }
 0x20d   : > { %v9289_v31 = vcombine.low %v9280_v36, %v19861_v23  ;;  %v17069_v24 = vpop.f32.mrf.mxu0  ;;  %v7459_v62 = vcombine.high %v13760_v13, %v13760_v13  ;;  %v7466_v22 = vrot.slane %v13760_v13, %v13875_v7  ;;  %v9254_v6 = vrot.slane %v9240_v4, %v13875_v7  ;;  %v19863_v2 = vld [vmem:[#allocation271_spill] sm:$0xff] }
 0x20e   : > { %v6237_v19 = vcombine.high %v6233_v30, %v6233_v30  ;;  %v19864_v28 = vcombine.high %v19863_v2, %v19863_v2  ;;  %v9296_v17 = vrot.slane %v9288_v63, %v13875_v7  ;;  %v17080_v36 = vmul.f32 %v6236_v33, %v19865_v37  ;;  %v19866_v46 = vld [vmem:[#allocation15_spill] sm:$0xff]  ;;  %v19872_v33 = vld [vmem:[#allocation12_spill] sm:$0xff] }
 0x20f   : > { %v9303_v41 = vrot.slane %v9289_v31, %v13875_v7  ;;  %v17084_v23 = vmul.f32 %v19859_v55, %v19866_v46  ;;  %v13429_v32 = vpop.f32.mrf.mxu0  ;;  %v17087_v13 = vrot.slane %v7459_v62, %v13875_v7  ;;  %v7474_v4 = vcombine.high %v7466_v22, %v7466_v22  ;;  %v19871_v31 = vld [vmem:[#allocation16_spill] sm:$0xff]  ;;  %v19873_v55 = vld [vmem:[#allocation14_spill] sm:$0xff] }
 0x210   : > { %v8289_v45 = vmul.f32 %v19864_v28, %v19862_v3  ;;  %v17090_v47 = vrot.slane %v7466_v22, %v13875_v7  ;;  %v17092_v3 = vcombine.low %v9247_v58, %v9254_v6  ;;  %v17097_v2 = vmul.f32 %v6233_v30, %v19871_v31  ;;  %v19877_v22 = vld [vmem:[#allocation277_spill] sm:$0xff] }
 0x211   : > { %19867 = vst [vmem:[#allocation107_spill] sm:$0xff] %v17087_v13  ;;  %v17094_v63 = vcombine.low %v9296_v17, %v9303_v41  ;;  %v17100_v28 = vmul.f32 %v6235_v59, %v19872_v33  ;;  %v17103_v37 = vmul.f32 %v6237_v19, %v19873_v55  ;;  %v17109_v62 = vrot.slane %v17087_v13, %v13875_v7  ;;  %v17121_v59 = vld [vmem:[%s18926_s3 + $0xc] sm:$0xf]  ;;  %v19876_v19 = vld [vmem:[#allocation17_spill] sm:$0xff]  ;;  %v19878_v17 = vld [vmem:[#allocation18_spill] sm:$0xff] }
 0x212   : > { %19868 = vst [vmem:[#allocation109_spill] sm:$0xff] %v17090_v47  ;;  %19869 = vst [vmem:[#allocation108_spill] sm:$0xff] %v17092_v3  ;;  %v17112_v58 = vrot.slane %v7474_v4, %v13875_v7  ;;  %13467 = vmatprep.mubr.msk.f32.mxu1 %vm5655_vm2, %v17092_v3  ;;  %v17127_v6 = vmul.f32 %v19877_v22, %v19876_v19  ;;  %v19879_v41 = vld [vmem:[#allocation281_spill] sm:$0xff]  ;;  %v9305_v4 = vcombine.low %v8289_v45, %v17080_v36  ;;  %v19882_v3 = vld [vmem:[#allocation280_spill] sm:$0xff] }
 0x213   : > { %19870 = vst [vmem:[#allocation111_spill] sm:$0xff] %v17094_v63  ;;  %19874 = vst [vmem:[#allocation110_spill] sm:$0xff] %v17109_v62  ;;  %13468 = vmatmul.mubr.msk.f32.vlgmr.msra.gmra.mxu1 %vm5655_vm2, %v17094_v63  ;;  %v17131_v46 = vmul.f32 %v19879_v41, %v19878_v17  ;;  %v9306_v31 = vcombine.low %v17084_v23, %v17097_v2  ;;  %v9307_v33 = vcombine.low %v17100_v28, %v17103_v37  ;;  %v19880_v55 = vld [vmem:[#allocation273_spill] sm:$0xff] }
 0x214   : > { %19875 = vst [vmem:[#allocation112_spill] sm:$0xff] %v17112_v58  ;;  %v19881_v30 = vcombine.high %v19880_v55, %v19880_v55  ;;  %v6284_v19 = vcombine.high %v19882_v3, %v19882_v3  ;;  %v6285_v17 = vcombine.high %v19879_v41, %v19879_v41  ;;  %13480 = vmatpush3.msk.msra.mxu1 %vm5738_vm0, %v16644_v51  ;;  %v19883_v55 = vld [vmem:[#allocation23_spill] sm:$0xff]  ;;  %v19884_v51 = vld [vmem:[#allocation20_spill] sm:$0xff] }
 0x215   : > { %v17148_v45 = vpop.f32.mrf.mxu0  ;;  %v9308_v63 = vcombine.low %v17127_v6, %v17131_v46  ;;  %v9315_v47 = vrot.slane %v9305_v4, %v13875_v7  ;;  %v9322_v58 = vrot.slane %v9306_v31, %v13875_v7  ;;  %13493 = vmatprep.subr.msk.mxu1 %vm5738_vm0, %v17121_v59  ;;  %v9329_v41 = vrot.slane %v9307_v33, %v13875_v7  ;;  %v19886_v31 = vld [vmem:[#allocation25_spill] sm:$0xff]  ;;  %v19890_v33 = vld [vmem:[#allocation27_spill] sm:$0xff] }
 0x216   : > { %v6282_v32 = vrot.slane %v19881_v30, %v13875_v7  ;;  %v17156_v30 = vmul.f32 %v19882_v3, %v19883_v55  ;;  %v8298_v13 = vmul.f32 %v6285_v17, %v19884_v51  ;;  %v17167_v43 = vmul.f32 %v6284_v19, %v19886_v31  ;;  %v19887_v3 = vld [vmem:[#allocation26_spill] sm:$0xff] }
 0x217   : > { %v13432_v12 = vpop.f32.mrf.mxu0  ;;  %v9336_v4 = vrot.slane %v9308_v63, %v13875_v7  ;;  %v9337_v11 = vcombine.low %v9315_v47, %v9322_v58  ;;  %v19888_v55 = vld [vmem:[#allocation282_spill] sm:$0xff]  ;;  %v17178_v17 = vmul.f32 %v19891_v14, %v19890_v33  ;;  %v17283_v15 = vmul.f32 %v19923_v39, %v19922_v16 }
 0x218   : > { %v6286_v62 = vcombine.high %v6282_v32, %v6282_v32  ;;  %v17163_v29 = vmul.f32 %v6282_v32, %v19885_v10  ;;  %v17171_v18 = vmul.f32 %v19888_v55, %v19887_v3  ;;  %v19892_v10 = vld [vmem:[#allocation28_spill] sm:$0xff]  ;;  %v19893_v12 = vcombine.high %v19888_v55, %v19888_v55  ;;  %v19933_v16 = vld [vmem:[#allocation46_spill] sm:$0xff] }
 0x219   : > { %v9354_v47 = vcombine.low %v8298_v13, %v17156_v30  ;;  %v9338_v32 = vcombine.low %v9329_v41, %v9336_v4  ;;  %v9345_v58 = vrot.slane %v9337_v11, %v13875_v7  ;;  %v19894_v13 = vld [vmem:[#allocation278_spill] sm:$0xff]  ;;  %19924 = vst [vmem:[#allocation120_spill] sm:$0xff] %v17283_v15 }
 0x21a   : > { %v17174_v5 = vmul.f32 %v6286_v62, %v19889_v42  ;;  %v17184_v63 = vmul.f32 %v19893_v12, %v19892_v10  ;;  %v9355_v19 = vcombine.low %v17163_v29, %v17167_v43  ;;  %v5959_v42 = vadd.f32 %v16805_v44, %v16896_v40  ;;  %v13762_v62 = vpop.eup %13761  ;;  %v19897_v12 = vld [vmem:[#allocation286_spill] sm:$0xff] }
 0x21b   : > { %v9364_v3 = vrot.slane %v9354_v47, %v13875_v7  ;;  %v19895_v41 = vcombine.high %v19894_v13, %v19894_v13  ;;  %v17202_v4 = vrot.slane %v13762_v62, %v13875_v7  ;;  %v9352_v55 = vrot.slane %v9338_v32, %v13875_v7  ;;  %v19910_v62 = vld [vmem:[#allocation36_spill] sm:$0xff] }
 0x21c   : > { %v9356_v51 = vcombine.low %v17174_v5, %v17171_v18  ;;  %v9357_v31 = vcombine.low %v17178_v17, %v17184_v63  ;;  %v9371_v40 = vrot.slane %v9355_v19, %v13875_v7  ;;  %13763 = vrsqrt.f32 %v5959_v42  ;;  %v19899_v19 = vld [vmem:[#allocation291_spill] sm:$0xff] }
 0x21d   : > { %v6331_v11 = vrot.slane %v19895_v41, %v13875_v7  ;;  %19896 = vst [vmem:[#allocation113_spill] sm:$0xff] %v17202_v4  ;;  %v6333_v47 = vcombine.high %v19897_v12, %v19897_v12  ;;  %v7515_v13 = vcombine.high %v17202_v4, %v17202_v4  ;;  %v17214_v41 = vcombine.low %v9345_v58, %v9352_v55 }
 0x21e   : > { %v9378_v33 = vrot.slane %v9356_v51, %v13875_v7  ;;  %v9385_v10 = vrot.slane %v9357_v31, %v13875_v7  ;;  %v9386_v32 = vcombine.low %v9364_v3, %v9371_v40  ;;  %v6383_v42 = vcombine.high %v19899_v19, %v19899_v19  ;;  %v19900_v51 = vld [vmem:[#allocation29_spill] sm:$0xff]  ;;  %v19904_v3 = vld [vmem:[#allocation31_spill] sm:$0xff]  ;;  %v19905_v40 = vld [vmem:[#allocation32_spill] sm:$0xff] }
 0x21f   : > { %v6335_v35 = vcombine.high %v6331_v11, %v6331_v11  ;;  %19898 = vst [vmem:[#allocation114_spill] sm:$0xff] %v17214_v41  ;;  %v8307_v31 = vmul.f32 %v19897_v12, %v19900_v51  ;;  %v17221_v27 = vmul.f32 %v6331_v11, %v19901_v54  ;;  %v17223_v61 = vpop.f32.mrf.mxu0  ;;  %v17226_v20 = vrot.slane %v7515_v13, %v13875_v7  ;;  %v19906_v54 = vld [vmem:[#allocation33_spill] sm:$0xff]  ;;  %v19908_v51 = vld [vmem:[#allocation35_spill] sm:$0xff] }
 0x220   : > { %v9387_v1 = vcombine.low %v9378_v33, %v9385_v10  ;;  %19902 = vst [vmem:[#allocation115_spill] sm:$0xff] %v17223_v61  ;;  %13470 = vmatprep.mubr.msk.f32.mxu1 %vm5655_vm2, %v17214_v41  ;;  %v9394_v58 = vrot.slane %v9386_v32, %v13875_v7  ;;  %v17232_v55 = vmul.f32 %v6333_v47, %v19904_v3  ;;  %v19907_v11 = vld [vmem:[#allocation285_spill] sm:$0xff] }
 0x221   : > { %19903 = vst [vmem:[#allocation117_spill] sm:$0xff] %v17226_v20  ;;  %v17235_v33 = vmul.f32 %v6335_v35, %v19905_v40  ;;  %v17240_v12 = vmul.f32 %v19907_v11, %v19906_v54  ;;  %v17244_v13 = vmul.f32 %v19899_v19, %v19908_v51  ;;  %v19911_v32 = vcombine.high %v19907_v11, %v19907_v11  ;;  %v13435_v47 = vpop.f32.mrf.mxu0  ;;  %v19912_v3 = vld [vmem:[#allocation37_spill] sm:$0xff]  ;;  %v19914_v54 = vld [vmem:[#allocation284_spill] sm:$0xff]  ;;  %v19917_v11 = vld [vmem:[#allocation290_spill] sm:$0xff] }
 0x222   : > { %v9401_v10 = vrot.slane %v9387_v1, %v13875_v7  ;;  %v17253_v35 = vmul.f32 %v6383_v42, %v19912_v3  ;;  %v9403_v1 = vcombine.low %v8307_v31, %v17221_v27  ;;  %v19915_v19 = vcombine.high %v19914_v54, %v19914_v54  ;;  %v19918_v42 = vld [vmem:[#allocation295_spill] sm:$0xff] }
 0x223   : > { %19909 = vst [vmem:[#allocation119_spill] sm:$0xff] %v17244_v13  ;;  %v17250_v41 = vmul.f32 %v19911_v32, %v19910_v62  ;;  %v9404_v40 = vcombine.low %v17232_v55, %v17235_v33  ;;  %v9405_v62 = vcombine.low %v17240_v12, %v17244_v13  ;;  %v6382_v32 = vcombine.high %v19917_v11, %v19917_v11  ;;  %v19927_v13 = vld [vmem:[#allocation43_spill] sm:$0xff] }
 0x224   : > { %19913 = vst [vmem:[#allocation121_spill] sm:$0xff] %v17253_v35  ;;  %v6380_v51 = vrot.slane %v19915_v19, %v13875_v7  ;;  %v17262_v20 = vcombine.low %v9394_v58, %v9401_v10  ;;  %v6432_v47 = vcombine.high %v19918_v42, %v19918_v42  ;;  %v9413_v3 = vrot.slane %v9403_v1, %v13875_v7  ;;  %v19919_v10 = vld [vmem:[#allocation38_spill] sm:$0xff] }
 0x225   : > { %v9406_v31 = vcombine.low %v17250_v41, %v17253_v35  ;;  %v9420_v4 = vrot.slane %v9404_v40, %v13875_v7  ;;  %v9427_v58 = vrot.slane %v9405_v62, %v13875_v7  ;;  %v17279_v38 = vmul.f32 %v6382_v32, %v19920_v21  ;;  %v19925_v35 = vld [vmem:[#allocation40_spill] sm:$0xff] }
 0x226   : > { %19916 = vst [vmem:[#allocation116_spill] sm:$0xff] %v17262_v20  ;;  %v6384_v54 = vcombine.high %v6380_v51, %v6380_v51  ;;  %13471 = vmatmul.mubr.msk.f32.gmra.mxu1 %vm5655_vm2, %v17262_v20  ;;  %v8316_v19 = vmul.f32 %v6380_v51, %v19919_v10  ;;  %v17291_v20 = vmul.f32 %v19918_v42, %v19927_v13  ;;  %v19930_v51 = vld [vmem:[#allocation45_spill] sm:$0xff] }
 0x227   : > { %19921 = vst [vmem:[#allocation118_spill] sm:$0xff] %v17279_v38  ;;  %v9434_v61 = vrot.slane %v9406_v31, %v13875_v7  ;;  %v9435_v1 = vcombine.low %v9413_v3, %v9420_v4  ;;  %v17293_v62 = vpop.f32.mrf.mxu0  ;;  %v19931_v21 = vcombine.high %v19923_v39, %v19923_v39  ;;  %v17302_v10 = vmul.f32 %v6432_v47, %v19933_v16  ;;  %v19935_v31 = vld [vmem:[#allocation48_spill] sm:$0xff]  ;;  %v19936_v4 = vld [vmem:[#allocation293_spill] sm:$0xff] }
 0x228   : > { %v17287_v40 = vmul.f32 %v6384_v54, %v19925_v35  ;;  %19928 = vst [vmem:[#allocation3_spill] sm:$0xff] %v17291_v20  ;;  %19929 = vst [vmem:[#allocation5_spill] sm:$0xff] %v17293_v62  ;;  %v17306_v3 = vmul.f32 %v19936_v4, %v19935_v31  ;;  %v9452_v35 = vcombine.low %v8316_v19, %v17279_v38 }
 0x229   : > { %v17299_v32 = vmul.f32 %v19931_v21, %v19930_v51  ;;  %19934 = vst [vmem:[#allocation9_spill] sm:$0xff] %v17302_v10  ;;  %v9436_v54 = vcombine.low %v9427_v58, %v9434_v61  ;;  %v9443_v13 = vrot.slane %v9435_v1, %v13875_v7  ;;  %v5964_v39 = vadd.f32 %v16805_v44, %v16942_v57  ;;  %v13438_v51 = vpop.f32.mrf.mxu0  ;;  %v13764_v21 = vpop.eup %13763 }
 0x22a   : > { %19926 = vst [vmem:[#allocation122_spill] sm:$0xff] %v17287_v40  ;;  %19937 = vst [vmem:[#allocation4_spill] sm:$0xff] %v17306_v3  ;;  %v9453_v42 = vcombine.low %v17287_v40, %v17283_v15  ;;  %v9455_v16 = vcombine.low %v17302_v10, %v17306_v3  ;;  %v9462_v31 = vrot.slane %v9452_v35, %v13875_v7  ;;  %v19955_v40 = vld [vmem:[#allocation51_spill] sm:$0xff] }
 0x22b   : > { %19932 = vst [vmem:[#allocation6_spill] sm:$0xff] %v17299_v32  ;;  %v9454_v47 = vcombine.low %v17291_v20, %v17299_v32  ;;  %v6431_v61 = vcombine.high %v19936_v4, %v19936_v4  ;;  %v7530_v58 = vcombine.high %v13764_v21, %v13764_v21  ;;  %v7537_v19 = vrot.slane %v13764_v21, %v13875_v7  ;;  %v19938_v32 = vld [vmem:[#allocation297_spill] sm:$0xff] }
 0x22c   : > { %v9450_v1 = vrot.slane %v9436_v54, %v13875_v7  ;;  %v9469_v57 = vrot.slane %v9453_v42, %v13875_v7  ;;  %v9483_v62 = vrot.slane %v9455_v16, %v13875_v7  ;;  %13765 = vrsqrt.f32 %v5964_v39  ;;  %v19941_v54 = vld [vmem:[#allocation289_spill] sm:$0xff]  ;;  %v19944_v39 = vld [vmem:[#allocation44_spill] sm:$0xff] }
 0x22d   : > { %v9476_v51 = vrot.slane %v9454_v47, %v13875_v7  ;;  %v6433_v3 = vcombine.high %v19938_v32, %v19938_v32  ;;  %v17329_v35 = vrot.slane %v7530_v58, %v13875_v7  ;;  %v7545_v10 = vcombine.high %v7537_v19, %v7537_v19  ;;  %v19943_v47 = vld [vmem:[#allocation299_spill] sm:$0xff] }
 0x22e   : > { %v17331_v4 = vcombine.low %v9443_v13, %v9450_v1  ;;  %v9484_v15 = vcombine.low %v9462_v31, %v9469_v57  ;;  %v19942_v42 = vcombine.high %v19941_v54, %v19941_v54  ;;  %v6481_v16 = vcombine.high %v19943_v47, %v19943_v47  ;;  %v19947_v19 = vld [vmem:[#allocation47_spill] sm:$0xff]  ;;  %v19950_v57 = vld [vmem:[#allocation292_spill] sm:$0xff]  ;;  %v19952_v54 = vld [vmem:[#allocation50_spill] sm:$0xff] }
 0x22f   : > { %19939 = vst [vmem:[#allocation7_spill] sm:$0xff] %v17329_v35  ;;  %v9485_v21 = vcombine.low %v9476_v51, %v9483_v62  ;;  %v8325_v38 = vmul.f32 %v6431_v61, %v19944_v39  ;;  %v17344_v58 = vrot.slane %v17329_v35, %v13875_v7  ;;  %v17347_v13 = vrot.slane %v7545_v10, %v13875_v7  ;;  %v19949_v61 = vld [vmem:[#allocation49_spill] sm:$0xff] }
 0x230   : > { %19940 = vst [vmem:[#allocation8_spill] sm:$0xff] %v17331_v4  ;;  %v6478_v20 = vrot.slane %v19942_v42, %v13875_v7  ;;  %13473 = vmatprep.mubr.msk.f32.mxu1 %vm5655_vm2, %v17331_v4  ;;  %v9492_v62 = vrot.slane %v9484_v15, %v13875_v7  ;;  %v17354_v1 = vmul.f32 %v6433_v3, %v19947_v19  ;;  %v19958_v3 = vld [vmem:[#allocation53_spill] sm:$0xff]  ;;  %v19961_v4 = vld [vmem:[#allocation298_spill] sm:$0xff] }
 0x231   : > { %19945 = vst [vmem:[#allocation10_spill] sm:$0xff] %v17344_v58  ;;  %19946 = vst [vmem:[#allocation274_spill] sm:$0xff] %v17347_v13  ;;  %v9499_v31 = vrot.slane %v9485_v21, %v13875_v7  ;;  %v17358_v51 = vmul.f32 %v19950_v57, %v19949_v61  ;;  %v17362_v42 = vmul.f32 %v19943_v47, %v19952_v54  ;;  %v17364_v10 = vpop.f32.mrf.mxu0  ;;  %v19960_v61 = vld [vmem:[#allocation54_spill] sm:$0xff]  ;;  %v19964_v54 = vld [vmem:[#allocation55_spill] sm:$0xff] }
 0x232   : > { %19948 = vst [vmem:[#allocation270_spill] sm:$0xff] %v17354_v1  ;;  %19954 = vst [vmem:[#allocation283_spill] sm:$0xff] %v17364_v10  ;;  %v19956_v15 = vcombine.high %v19950_v57, %v19950_v57  ;;  %v17375_v19 = vmul.f32 %v6481_v16, %v19958_v3  ;;  %v17379_v58 = vmul.f32 %v19961_v4, %v19960_v61 }
 0x233   : > { %19951 = vst [vmem:[#allocation275_spill] sm:$0xff] %v17358_v51  ;;  %19953 = vst [vmem:[#allocation272_spill] sm:$0xff] %v17362_v42  ;;  %v17381_v47 = vcombine.low %v9492_v62, %v9499_v31  ;;  %v17384_v35 = vmul.f32 %v6478_v20, %v19964_v54  ;;  %v9501_v39 = vcombine.low %v8325_v38, %v17354_v1  ;;  %v13441_v57 = vpop.f32.mrf.mxu0  ;;  %v19968_v62 = vld [vmem:[#allocation300_spill] sm:$0xff] }
 0x234   : > { %v17372_v21 = vmul.f32 %v19956_v15, %v19955_v40  ;;  %19959 = vst [vmem:[#allocation271_spill] sm:$0xff] %v17375_v19  ;;  %19962 = vst [vmem:[#allocation13_spill] sm:$0xff] %v17379_v58  ;;  %v9502_v13 = vcombine.low %v17358_v51, %v17362_v42  ;;  %v6482_v16 = vcombine.high %v6478_v20, %v6478_v20  ;;  %v19966_v15 = vld [vmem:[#allocation294_spill] sm:$0xff]  ;;  %v19969_v20 = vld [vmem:[#allocation301_spill] sm:$0xff] }
 0x235   : > { %19963 = vst [vmem:[#allocation15_spill] sm:$0xff] %v17381_v47  ;;  %19965 = vst [vmem:[#allocation16_spill] sm:$0xff] %v17384_v35  ;;  %v19967_v3 = vcombine.high %v19966_v15, %v19966_v15  ;;  %v6529_v31 = vcombine.high %v19968_v62, %v19968_v62  ;;  %13474 = vmatmul.mubr.msk.f32.gmra.mxu1 %vm5655_vm2, %v17381_v47  ;;  %v9504_v38 = vcombine.low %v17379_v58, %v17384_v35  ;;  %v19971_v42 = vld [vmem:[#allocation58_spill] sm:$0xff]  ;;  %v19973_v51 = vld [vmem:[#allocation57_spill] sm:$0xff] }
 0x236   : > { %19957 = vst [vmem:[#allocation11_spill] sm:$0xff] %v17372_v21  ;;  %v9503_v40 = vcombine.low %v17372_v21, %v17375_v19  ;;  %v9511_v54 = vrot.slane %v9501_v39, %v13875_v7  ;;  %v9518_v57 = vrot.slane %v9502_v13, %v13875_v7  ;;  %v6530_v10 = vcombine.high %v19969_v20, %v19969_v20  ;;  %v19972_v21 = vld [vmem:[#allocation296_spill] sm:$0xff]  ;;  %v19974_v58 = vld [vmem:[#allocation61_spill] sm:$0xff] }
 0x237   : > { %v17395_v61 = vrot.slane %v19967_v3, %v13875_v7  ;;  %v19970_v3 = vld [vmem:[#allocation56_spill] sm:$0xff]  ;;  %v17411_v1 = vmul.f32 %v19972_v21, %v19971_v42  ;;  %v17415_v47 = vmul.f32 %v19969_v20, %v19973_v51  ;;  %v9532_v35 = vrot.slane %v9504_v38, %v13875_v7 }
 0x238   : > { %v9525_v15 = vrot.slane %v9503_v40, %v13875_v7  ;;  %v8334_v19 = vmul.f32 %v6482_v16, %v19970_v3  ;;  %v9533_v39 = vcombine.low %v9511_v54, %v9518_v57  ;;  %v19975_v13 = vcombine.high %v19972_v21, %v19972_v21  ;;  %v19977_v40 = vld [vmem:[#allocation60_spill] sm:$0xff]  ;;  %v19978_v16 = vld [vmem:[#allocation62_spill] sm:$0xff]  ;;  %v19980_v3 = vld [vmem:[#allocation63_spill] sm:$0xff] }
 0x239   : > { %v17425_v32 = vmul.f32 %v6530_v10, %v19977_v40  ;;  %v17429_v42 = vmul.f32 %v19968_v62, %v19978_v16  ;;  %v17433_v51 = vmul.f32 %v17395_v61, %v19980_v3  ;;  %v19982_v20 = vld [vmem:[#allocation64_spill] sm:$0xff]  ;;  %v5969_v21 = vadd.f32 %v16805_v44, %v16991_v53  ;;  %v17444_v62 = vpop.f32.mrf.mxu0 }
 0x23a   : > { %v17422_v4 = vmul.f32 %v19975_v13, %v19974_v58  ;;  %v17436_v38 = vmul.f32 %v6529_v31, %v19982_v20  ;;  %v9550_v54 = vcombine.low %v8334_v19, %v17411_v1  ;;  %v9534_v57 = vcombine.low %v9525_v15, %v9532_v35  ;;  %19984 = vst [vmem:[#allocation18_spill] sm:$0xff] %v17444_v62  ;;  %v13766_v13 = vpop.eup %13765  ;;  %v19985_v35 = vld [vmem:[#allocation2_spill] sm:$0xff]  ;;  %v19986_v15 = vld [vmem:[#allocation269_spill] sm:$0xff] }
 0x23b   : > { %19979 = vst [vmem:[#allocation14_spill] sm:$0xff] %v17429_v42  ;;  %19981 = vst [vmem:[#allocation17_spill] sm:$0xff] %v17433_v51  ;;  %v9541_v58 = vrot.slane %v9533_v39, %v13875_v7  ;;  %v9552_v40 = vcombine.low %v17425_v32, %v17429_v42  ;;  %v8279_v39 = vmul.f32 %v19986_v15, %v19985_v35  ;;  %v13444_v62 = vpop.f32.mrf.mxu0  ;;  %13767 = vrsqrt.f32 %v5969_v21 }
 0x23c   : > { %19976 = vst [vmem:[#allocation12_spill] sm:$0xff] %v17422_v4  ;;  %19983 = vst [vmem:[#allocation277_spill] sm:$0xff] %v17436_v38  ;;  %v9551_v10 = vcombine.low %v17415_v47, %v17422_v4  ;;  %v9553_v31 = vcombine.low %v17433_v51, %v17436_v38  ;;  %v9560_v19 = vrot.slane %v9550_v54, %v13875_v7 }
 0x23d   : > { %v7571_v16 = vcombine.high %v13766_v13, %v13766_v13  ;;  %v7578_v3 = vrot.slane %v13766_v13, %v13875_v7  ;;  %v9548_v20 = vrot.slane %v9534_v57, %v13875_v7  ;;  %v9574_v4 = vrot.slane %v9552_v40, %v13875_v7 }
 0x23e   : > { %v9567_v53 = vrot.slane %v9551_v10, %v13875_v7  ;;  %v9581_v42 = vrot.slane %v9553_v31, %v13875_v7  ;;  %v9733_v38 = vcombine.low %v16983_v52, %v16989_v56  ;;  %v9734_v10 = vcombine.low %v16995_v50, %v16999_v49 }
 0x23f   : > { %v7585_v54 = vrot.slane %v7571_v16, %v13875_v7  ;;  %v7586_v51 = vcombine.high %v7578_v3, %v7578_v3  ;;  %v17462_v35 = vrot.slane %v7578_v3, %v13875_v7  ;;  %v17464_v13 = vcombine.low %v9541_v58, %v9548_v20  ;;  %v19988_v58 = vld [vmem:[#allocation211_spill] sm:$0xff]  ;;  %v19991_v20 = vld [vmem:[#allocation212_spill] sm:$0xff] }
 0x240   : > { %v9582_v57 = vcombine.low %v9560_v19, %v9567_v53  ;;  %v9583_v15 = vcombine.low %v9574_v4, %v9581_v42  ;;  %v9735_v62 = vcombine.low %v17004_v48, %v17007_v0  ;;  %v9736_v50 = vcombine.low %v17011_v8, %v8279_v39 }
 0x241   : > { %19987 = vst [vmem:[#allocation281_spill] sm:$0xff] %v17464_v13  ;;  %v7587_v21 = vcombine.high %v7585_v54, %v7585_v54  ;;  %v7601_v40 = vrot.slane %v7585_v54, %v13875_v7  ;;  %v17472_v52 = vrot.slane %v7586_v51, %v13875_v7  ;;  %13476 = vmatprep.mubr.msk.f32.mxu1 %vm5655_vm2, %v17464_v13  ;;  %v19992_v54 = vld [vmem:[#allocation213_spill] sm:$0xff]  ;;  %v20098_v13 = vld [vmem:[#allocation140_spill] sm:$0xff] }
 0x242   : > { %v9590_v4 = vrot.slane %v9582_v57, %v13875_v7  ;;  %v9597_v42 = vrot.slane %v9583_v15, %v13875_v7  ;;  %v9743_v49 = vrot.slane %v9733_v38, %v13875_v7  ;;  %v9750_v31 = vrot.slane %v9734_v10, %v13875_v7 }
 0x243   : > { %v7615_v48 = vrot.slane %v7587_v21, %v13875_v7  ;;  %v7617_v0 = vcombine.high %v7601_v40, %v7601_v40  ;;  %v17484_v51 = vmul.f32 %v7601_v40, %v19988_v58  ;;  %v9757_v16 = vrot.slane %v9735_v62, %v13875_v7  ;;  %v17501_v10 = vpop.f32.mrf.mxu0  ;;  %v19997_v58 = vld [vmem:[#allocation19_spill] sm:$0xff] }
 0x244   : > { %v17487_v19 = vcombine.low %v9590_v4, %v9597_v42  ;;  %v9764_v3 = vrot.slane %v9736_v50, %v13875_v7  ;;  %v19990_v8 = vcombine.low %v16112_v25, %v16127_v26  ;;  %v9765_v15 = vcombine.low %v9743_v49, %v9750_v31  ;;  %v19994_v26 = vld [vmem:[#allocation276_spill] sm:$0xff]  ;;  %v19996_v50 = vld [vmem:[#allocation214_spill] sm:$0xff] }
 0x245   : > { %v7618_v38 = vcombine.high %v7615_v48, %v7615_v48  ;;  %v17496_v53 = vmul.f32 %v7615_v48, %v19991_v20  ;;  %v17499_v57 = vmul.f32 %v7617_v0, %v19992_v54  ;;  %v19993_v21 = vcombine.low %v16152_v9, %v16136_v60  ;;  %v13447_v31 = vpop.f32.mrf.mxu0 }
 0x246   : > { %19989 = vst [vmem:[#allocation273_spill] sm:$0xff] %v17487_v19  ;;  %v9792_v39 = vrot.slane %v19990_v8, %v13875_v7  ;;  %13477 = vmatmul.mubr.msk.f32.gmra.mxu1 %vm5655_vm2, %v17487_v19  ;;  %v9766_v62 = vcombine.low %v9757_v16, %v9764_v3  ;;  %v19995_v40 = vcombine.low %v19855_v34, %v19994_v26  ;;  %v19999_v3 = vld [vmem:[#allocation279_spill] sm:$0xff] }
 0x247   : > { %v9799_v25 = vrot.slane %v19993_v21, %v13875_v7  ;;  %v5974_v42 = vadd.f32 %v16805_v44, %v17069_v24  ;;  %v17516_v49 = vmul.f32 %v7618_v38, %v19996_v50  ;;  %v9773_v0 = vrot.slane %v9765_v15, %v13875_v7  ;;  %v20069_v31 = vld [vmem:[#allocation87_spill] sm:$0xff] }
 0x248   : > { %v9806_v4 = vrot.slane %v19995_v40, %v13875_v7  ;;  %v19998_v60 = vcombine.high %v19877_v22, %v19877_v22  ;;  %v9780_v34 = vrot.slane %v9766_v62, %v13875_v7  ;;  %v9831_v38 = vcombine.low %v17080_v36, %v17084_v23  ;;  %v13768_v21 = vpop.eup %13767  ;;  %v20001_v40 = vld [vmem:[#allocation21_spill] sm:$0xff] }
 0x249   : > { %v9814_v16 = vcombine.low %v9792_v39, %v9799_v25  ;;  %13769 = vrsqrt.f32 %v5974_v42  ;;  %v9832_v20 = vcombine.low %v17097_v2, %v17100_v28  ;;  %v9833_v22 = vcombine.low %v17103_v37, %v17127_v6 }
 0x24a   : > { %v8297_v9 = vmul.f32 %v19998_v60, %v19997_v58  ;;  %v9815_v8 = vcombine.low %v9806_v4, %v19999_v3  ;;  %v9781_v54 = vcombine.low %v9773_v0, %v9780_v34  ;;  %v9841_v25 = vrot.slane %v9831_v38, %v13875_v7 }
 0x24b   : > { %v9822_v15 = vrot.slane %v9814_v16, %v13875_v7  ;;  %v9848_v26 = vrot.slane %v9832_v20, %v13875_v7  ;;  %v9855_v36 = vrot.slane %v9833_v22, %v13875_v7  ;;  %v6334_v23 = vcombine.high %v19891_v14, %v19891_v14  ;;  %v17556_v14 = vld [vmem:[%s18926_s3 + $0x10] sm:$0xf]  ;;  %v20003_v20 = vld [vmem:[#allocation217_spill] sm:$0xff] }
 0x24c   : > { %v9829_v39 = vrot.slane %v9815_v8, %v13875_v7  ;;  %v9834_v62 = vcombine.low %v17131_v46, %v8297_v9  ;;  %v7619_v2 = vcombine.high %v13768_v21, %v13768_v21  ;;  %v7626_v28 = vrot.slane %v13768_v21, %v13875_v7  ;;  %13481 = vmatprep.mubr.msk.f32.mxu1 %vm5655_vm2, %v9781_v54  ;;  %v20004_v54 = vld [vmem:[#allocation218_spill] sm:$0xff] }
 0x24d   : > { %v9863_v46 = vcombine.low %v9841_v25, %v9848_v26  ;;  %v8306_v4 = vmul.f32 %v6334_v23, %v20001_v40  ;;  %v9880_v42 = vcombine.low %v17156_v30, %v17163_v29  ;;  %v9881_v50 = vcombine.low %v17167_v43, %v17174_v5  ;;  %v20006_v26 = vld [vmem:[#allocation34_spill] sm:$0xff]  ;;  %v20007_v23 = vld [vmem:[#allocation221_spill] sm:$0xff] }
 0x24e   : > { %v17545_v37 = vcombine.low %v9822_v15, %v9829_v39  ;;  %v9862_v6 = vrot.slane %v9834_v62, %v13875_v7  ;;  %v17559_v0 = vrot.slane %v7619_v2, %v13875_v7  ;;  %v7634_v58 = vcombine.high %v7626_v28, %v7626_v28 }
 0x24f   : > { %v7642_v60 = vrot.slane %v7626_v28, %v13875_v7  ;;  %v9871_v29 = vrot.slane %v9863_v46, %v13875_v7  ;;  %v9882_v5 = vcombine.low %v17171_v18, %v17178_v17  ;;  %v9883_v43 = vcombine.low %v17184_v63, %v8306_v4  ;;  %v20002_v18 = vld [vmem:[#allocation215_spill] sm:$0xff] }
 0x250   : > { %20000 = vst [vmem:[#allocation280_spill] sm:$0xff] %v17545_v37  ;;  %13482 = vmatmul.mubr.msk.f32.vlgmr.msra.gmra.mxu1 %vm5655_vm2, %v17545_v37  ;;  %v9864_v9 = vcombine.low %v9855_v36, %v9862_v6  ;;  %v9890_v30 = vrot.slane %v9880_v42, %v13875_v7  ;;  %v17575_v34 = vrot.slane %v17559_v0, %v13875_v7  ;;  %v20079_v37 = vld [vmem:[#allocation150_spill] sm:$0xff] }
 0x251   : > { %13494 = vmatpush3.msk.msra.mxu1 %vm5738_vm0, %v17121_v59  ;;  %v7656_v16 = vrot.slane %v7634_v58, %v13875_v7  ;;  %v7664_v3 = vcombine.high %v7642_v60, %v7642_v60  ;;  %v8508_v17 = vmul.f32 %v7642_v60, %v20002_v18  ;;  %v9897_v8 = vrot.slane %v9881_v50, %v13875_v7  ;;  %v20070_v50 = vld [vmem:[#allocation89_spill] sm:$0xff] }
 0x252   : > { %13507 = vmatprep.subr.msk.mxu1 %vm5738_vm0, %v17556_v14  ;;  %v9878_v63 = vrot.slane %v9864_v9, %v13875_v7  ;;  %v9904_v59 = vrot.slane %v9882_v5, %v13875_v7  ;;  %v9911_v39 = vrot.slane %v9883_v43, %v13875_v7  ;;  %v5979_v25 = vadd.f32 %v16805_v44, %v17148_v45  ;;  %v20009_v9 = vld [vmem:[#allocation121_spill] sm:$0xff] }
 0x253   : > { %v7666_v38 = vcombine.high %v7656_v16, %v7656_v16  ;;  %v8509_v22 = vmul.f32 %v7656_v16, %v20003_v20  ;;  %v17586_v15 = vmul.f32 %v7664_v3, %v20004_v54  ;;  %v9912_v21 = vcombine.low %v9890_v30, %v9897_v8 }
 0x254   : > { %v17589_v62 = vcombine.low %v9871_v29, %v9878_v63  ;;  %v8315_v36 = vmul.f32 %v19917_v11, %v20006_v26  ;;  %v9913_v6 = vcombine.low %v9904_v59, %v9911_v39  ;;  %v9929_v46 = vcombine.low %v17221_v27, %v17232_v55  ;;  %v20008_v11 = vld [vmem:[#allocation119_spill] sm:$0xff]  ;;  %v20012_v63 = vld [vmem:[#allocation297_spill] sm:$0xff]  ;;  %v20067_v59 = vld [vmem:[#allocation82_spill] sm:$0xff] }
 0x255   : > { %v17596_v2 = vmul.f32 %v7666_v38, %v20007_v23  ;;  %v10964_v28 = vcombine.low %v8508_v17, %v8509_v22  ;;  %v9920_v4 = vrot.slane %v9912_v21, %v13875_v7  ;;  %13771 = vrsqrt.f32 %v5979_v25  ;;  %v20011_v17 = vld [vmem:[#allocation42_spill] sm:$0xff]  ;;  %v20016_v23 = vld [vmem:[#allocation120_spill] sm:$0xff] }
 0x256   : > { %20005 = vst [vmem:[#allocation23_spill] sm:$0xff] %v17589_v62  ;;  %v13770_v40 = vpop.eup %13769  ;;  %13484 = vmatprep.mubr.msk.f32.mxu1 %vm5655_vm2, %v17589_v62  ;;  %v9930_v45 = vcombine.low %v17235_v33, %v17240_v12  ;;  %v9931_v42 = vcombine.low %v20008_v11, %v17250_v41  ;;  %v9927_v60 = vrot.slane %v9913_v6, %v13875_v7  ;;  %v20013_v21 = vld [vmem:[#allocation122_spill] sm:$0xff]  ;;  %v20017_v6 = vld [vmem:[#allocation9_spill] sm:$0xff]  ;;  %v20020_v11 = vld [vmem:[#allocation115_spill] sm:$0xff] }
 0x257   : > { %v17610_v58 = vrot.slane %v10964_v28, %v13875_v7  ;;  %v7668_v27 = vcombine.high %v13770_v40, %v13770_v40  ;;  %v7675_v55 = vrot.slane %v13770_v40, %v13875_v7  ;;  %v9932_v29 = vcombine.low %v20009_v9, %v8315_v36  ;;  %v20014_v25 = vld [vmem:[#allocation118_spill] sm:$0xff]  ;;  %v20015_v36 = vld [vmem:[#allocation3_spill] sm:$0xff] }
 0x258   : > { %v9939_v5 = vrot.slane %v9929_v46, %v13875_v7  ;;  %v9946_v33 = vrot.slane %v9930_v45, %v13875_v7  ;;  %v9953_v30 = vrot.slane %v9931_v42, %v13875_v7  ;;  %v17624_v16 = vcombine.low %v9920_v4, %v9927_v60  ;;  %v20018_v46 = vld [vmem:[#allocation6_spill] sm:$0xff]  ;;  %v20019_v4 = vld [vmem:[#allocation4_spill] sm:$0xff] }
 0x259   : > { %v17618_v12 = vrot.slane %v7668_v27, %v13875_v7  ;;  %v7683_v41 = vcombine.high %v7675_v55, %v7675_v55  ;;  %v17621_v43 = vrot.slane %v7675_v55, %v13875_v7  ;;  %v9960_v3 = vrot.slane %v9932_v29, %v13875_v7  ;;  %v20021_v27 = vld [vmem:[#allocation298_spill] sm:$0xff] }
 0x25a   : > { %20010 = vst [vmem:[#allocation20_spill] sm:$0xff] %v17624_v16  ;;  %v9961_v18 = vcombine.low %v9939_v5, %v9946_v33  ;;  %v8324_v8 = vmul.f32 %v20012_v63, %v20011_v17  ;;  %13485 = vmatmul.mubr.msk.f32.gmra.mxu1 %vm5655_vm2, %v17624_v16  ;;  %v9978_v26 = vcombine.low %v20014_v25, %v20013_v21  ;;  %v20022_v5 = vld [vmem:[#allocation275_spill] sm:$0xff]  ;;  %v20023_v33 = vld [vmem:[#allocation270_spill] sm:$0xff]  ;;  %v20027_v21 = vld [vmem:[#allocation272_spill] sm:$0xff] }
 0x25b   : > { %v17633_v38 = vrot.slane %v17618_v12, %v13875_v7  ;;  %v17636_v20 = vrot.slane %v7683_v41, %v13875_v7  ;;  %v9962_v54 = vcombine.low %v9953_v30, %v9960_v3  ;;  %v9979_v28 = vcombine.low %v20016_v23, %v20015_v36  ;;  %v20028_v25 = vld [vmem:[#allocation13_spill] sm:$0xff] }
 0x25c   : > { %v9969_v39 = vrot.slane %v9961_v18, %v13875_v7  ;;  %v9980_v40 = vcombine.low %v20018_v46, %v20017_v6  ;;  %v9981_v45 = vcombine.low %v20019_v4, %v8324_v8  ;;  %v5984_v42 = vadd.f32 %v16805_v44, %v20020_v11  ;;  %v20024_v18 = vld [vmem:[#allocation52_spill] sm:$0xff]  ;;  %v20026_v8 = vld [vmem:[#allocation11_spill] sm:$0xff] }
 0x25d   : > { %v6480_v55 = vcombine.high %v20021_v27, %v20021_v27  ;;  %v9976_v60 = vrot.slane %v9962_v54, %v13875_v7  ;;  %v9988_v9 = vrot.slane %v9978_v26, %v13875_v7  ;;  %v9995_v29 = vrot.slane %v9979_v28, %v13875_v7  ;;  %v20029_v26 = vld [vmem:[#allocation271_spill] sm:$0xff]  ;;  %v20030_v28 = vld [vmem:[#allocation16_spill] sm:$0xff] }
 0x25e   : > { %v10027_v41 = vcombine.low %v20023_v33, %v20022_v5  ;;  %v10002_v30 = vrot.slane %v9980_v40, %v13875_v7  ;;  %v10009_v3 = vrot.slane %v9981_v45, %v13875_v7  ;;  %13773 = vrsqrt.f32 %v5984_v42 }
 0x25f   : > { %v8333_v17 = vmul.f32 %v6480_v55, %v20024_v18  ;;  %v17662_v44 = vcombine.low %v9969_v39, %v9976_v60  ;;  %v10010_v63 = vcombine.low %v9988_v9, %v9995_v29  ;;  %v10028_v54 = vcombine.low %v20027_v21, %v20026_v8  ;;  %v20031_v60 = vld [vmem:[#allocation59_spill] sm:$0xff] }
 0x260   : > { %v10029_v36 = vcombine.low %v20029_v26, %v20028_v25  ;;  %v10011_v23 = vcombine.low %v10002_v30, %v10009_v3  ;;  %v10037_v46 = vrot.slane %v10027_v41, %v13875_v7  ;;  %v6531_v40 = vcombine.high %v17395_v61, %v17395_v61  ;;  %v20032_v61 = vld [vmem:[#allocation12_spill] sm:$0xff]  ;;  %v20033_v30 = vld [vmem:[#allocation17_spill] sm:$0xff]  ;;  %v20034_v3 = vld [vmem:[#allocation14_spill] sm:$0xff] }
 0x261   : > { %20025 = vst [vmem:[#allocation24_spill] sm:$0xff] %v17662_v44  ;;  %v10030_v6 = vcombine.low %v20030_v28, %v8333_v17  ;;  %13487 = vmatprep.mubr.msk.f32.mxu1 %vm5655_vm2, %v17662_v44  ;;  %v10018_v39 = vrot.slane %v10010_v63, %v13875_v7  ;;  %v10044_v4 = vrot.slane %v10028_v54, %v13875_v7 }
 0x262   : > { %v10051_v45 = vrot.slane %v10029_v36, %v13875_v7  ;;  %v10076_v11 = vcombine.low %v17411_v1, %v17415_v47  ;;  %v13772_v42 = vpop.eup %13771  ;;  %v10025_v27 = vrot.slane %v10011_v23, %v13875_v7  ;;  %v8342_v9 = vmul.f32 %v6531_v40, %v20031_v60  ;;  %v20036_v47 = vld [vmem:[#allocation277_spill] sm:$0xff]  ;;  %v20039_v60 = vld [vmem:[#allocation307_spill] sm:$0xff] }
 0x263   : > { %v10058_v55 = vrot.slane %v10030_v6, %v13875_v7  ;;  %v10077_v29 = vcombine.low %v20032_v61, %v17425_v32  ;;  %v7717_v5 = vcombine.high %v13772_v42, %v13772_v42  ;;  %v7724_v33 = vrot.slane %v13772_v42, %v13875_v7  ;;  %v17718_v42 = vld [vmem:[%s18925_s2] ss:$0 sm:$0xff] }
 0x264   : > { %v10059_v41 = vcombine.low %v10037_v46, %v10044_v4  ;;  %v10078_v18 = vcombine.low %v20034_v3, %v20033_v30  ;;  %v17687_v17 = vcombine.low %v10018_v39, %v10025_v27  ;;  %v10079_v63 = vcombine.low %v20036_v47, %v8342_v9  ;;  %v20038_v27 = vld [vmem:[#allocation5_spill] sm:$0xff]  ;;  %v20043_v30 = vld [vmem:[#allocation132_spill] sm:$0xff] }
 0x265   : > { %v10060_v1 = vcombine.low %v10051_v45, %v10058_v55  ;;  %v10086_v8 = vrot.slane %v10076_v11, %v13875_v7  ;;  %v17692_v21 = vrot.slane %v7717_v5, %v13875_v7  ;;  %v7732_v54 = vcombine.high %v7724_v33, %v7724_v33  ;;  %v20044_v3 = vld [vmem:[#allocation308_spill] sm:$0xff] }
 0x266   : > { %20035 = vst [vmem:[#allocation25_spill] sm:$0xff] %v17687_v17  ;;  %v17695_v32 = vrot.slane %v7724_v33, %v13875_v7  ;;  %v10067_v25 = vrot.slane %v10059_v41, %v13875_v7  ;;  %13488 = vmatmul.mubr.msk.f32.gmra.mxu1 %vm5655_vm2, %v17687_v17  ;;  %v10093_v36 = vrot.slane %v10077_v29, %v13875_v7  ;;  %v20041_v29 = vld [vmem:[#allocation309_spill] sm:$0xff]  ;;  %v20042_v33 = vld [vmem:[#allocation310_spill] sm:$0xff]  ;;  %v20076_v17 = vld [vmem:[#allocation88_spill] sm:$0xff] }
 0x267   : > { %v10074_v26 = vrot.slane %v10060_v1, %v13875_v7  ;;  %v10100_v23 = vrot.slane %v10078_v18, %v13875_v7  ;;  %v10107_v28 = vrot.slane %v10079_v63, %v13875_v7  ;;  %v17709_v40 = vrot.slane %v7732_v54, %v13875_v7 }
 0x268   : > { %v10108_v45 = vcombine.low %v10086_v8, %v10093_v36  ;;  %v5989_v55 = vadd.f32 %v17718_v42, %v20038_v27  ;;  %v20040_v9 = vcombine.high %v20039_v60, %v20039_v60  ;;  %v7113_v5 = vcombine.high %v20041_v29, %v20041_v29  ;;  %v20046_v8 = vld [vmem:[#allocation135_spill] sm:$0xff]  ;;  %v20048_v36 = vld [vmem:[#allocation134_spill] sm:$0xff]  ;;  %v20052_v60 = vld [vmem:[#allocation133_spill] sm:$0xff] }
 0x269   : > { %v17713_v4 = vcombine.low %v10067_v25, %v10074_v26  ;;  %v10109_v11 = vcombine.low %v10100_v23, %v10107_v28  ;;  %v7114_v41 = vcombine.high %v20042_v33, %v20042_v33  ;;  %v20045_v18 = vcombine.high %v20044_v3, %v20044_v3  ;;  %v20050_v28 = vld [vmem:[#allocation137_spill] sm:$0xff] }
 0x26a   : > { %v7111_v61 = vrot.slane %v20040_v9, %v13875_v7  ;;  %v10116_v47 = vrot.slane %v10108_v45, %v13875_v7  ;;  %13775 = vrsqrt.f32 %v5989_v55  ;;  %v17740_v54 = vmul.f32 %v20041_v29, %v20046_v8  ;;  %v20055_v55 = vld [vmem:[#allocation138_spill] sm:$0xff] }
 0x26b   : > { %20037 = vst [vmem:[#allocation26_spill] sm:$0xff] %v17713_v4  ;;  %v8424_v1 = vmul.f32 %v20045_v18, %v20043_v30  ;;  %13490 = vmatprep.mubr.msk.f32.mxu1 %vm5655_vm2, %v17713_v4  ;;  %v10123_v63 = vrot.slane %v10109_v11, %v13875_v7  ;;  %v13774_v25 = vpop.eup %13773  ;;  %v17743_v23 = vmul.f32 %v7114_v41, %v20048_v36  ;;  %v20056_v30 = vld [vmem:[#allocation78_spill] sm:$0xff]  ;;  %v20058_v18 = vld [vmem:[#allocation136_spill] sm:$0xff]  ;;  %v20060_v41 = vld [vmem:[#allocation139_spill] sm:$0xff] }
 0x26c   : > { %20047 = vst [vmem:[#allocation282_spill] sm:$0xff] %v17740_v54  ;;  %v7115_v26 = vcombine.high %v7111_v61, %v7111_v61  ;;  %v17746_v27 = vmul.f32 %v7111_v61, %v20050_v28  ;;  %v17749_v9 = vmul.f32 %v7113_v5, %v20052_v60  ;;  %v7765_v33 = vcombine.high %v13774_v25, %v13774_v25  ;;  %v20061_v36 = vld [vmem:[#allocation79_spill] sm:$0xff]  ;;  %v20064_v28 = vld [vmem:[#allocation76_spill] sm:$0xff] }
 0x26d   : > { %20049 = vst [vmem:[#allocation22_spill] sm:$0xff] %v17743_v23  ;;  %v7772_v45 = vrot.slane %v13774_v25, %v13875_v7  ;;  %v17752_v11 = vcombine.low %v10116_v47, %v10123_v63  ;;  %v17756_v29 = vmul.f32 %v20056_v30, %v20055_v55  ;;  %v17763_v46 = vmul.f32 %v20061_v36, %v20060_v41 }
 0x26e   : > { %20051 = vst [vmem:[#allocation27_spill] sm:$0xff] %v17746_v27  ;;  %20053 = vst [vmem:[#allocation287_spill] sm:$0xff] %v17749_v9  ;;  %v17759_v8 = vmul.f32 %v7115_v26, %v20058_v18  ;;  %v10323_v61 = vcombine.low %v8424_v1, %v17743_v23  ;;  %v10324_v5 = vcombine.low %v17740_v54, %v17746_v27  ;;  %v20063_v26 = vld [vmem:[#allocation80_spill] sm:$0xff] }
 0x26f   : > { %20054 = vst [vmem:[#allocation28_spill] sm:$0xff] %v17752_v11  ;;  %20057 = vst [vmem:[#allocation278_spill] sm:$0xff] %v17756_v29  ;;  %v17769_v25 = vrot.slane %v7765_v33, %v13875_v7  ;;  %v7780_v47 = vcombine.high %v7772_v45, %v7772_v45  ;;  %v17772_v63 = vrot.slane %v7772_v45, %v13875_v7  ;;  %13491 = vmatmul.mubr.msk.f32.gmra.mxu1 %vm5655_vm2, %v17752_v11 }
 0x270   : > { %20059 = vst [vmem:[#allocation286_spill] sm:$0xff] %v17759_v8  ;;  %20062 = vst [vmem:[#allocation291_spill] sm:$0xff] %v17763_v46  ;;  %v20065_v60 = vcombine.low %v20063_v26, %v20064_v28  ;;  %v10325_v1 = vcombine.low %v17749_v9, %v17759_v8  ;;  %v10326_v18 = vcombine.low %v17756_v29, %v17763_v46  ;;  %v20179_v29 = vld [vmem:[#allocation191_spill] sm:$0xff]  ;;  %v20200_v9 = vld [vmem:[#allocation200_spill] sm:$0xff] }
 0x271   : > { %v10333_v33 = vrot.slane %v10323_v61, %v13875_v7  ;;  %v10340_v41 = vrot.slane %v10324_v5, %v13875_v7  ;;  %v17790_v36 = vrot.slane %v17769_v25, %v13875_v7  ;;  %v17793_v26 = vrot.slane %v7780_v47, %v13875_v7  ;;  %v20066_v5 = vld [vmem:[#allocation81_spill] sm:$0xff]  ;;  %v20072_v47 = vld [vmem:[#allocation283_spill] sm:$0xff] }
 0x272   : > { %v10382_v55 = vrot.slane %v20065_v60, %v13875_v7  ;;  %v10347_v39 = vrot.slane %v10325_v1, %v13875_v7  ;;  %v10354_v6 = vrot.slane %v10326_v18, %v13875_v7  ;;  %v20068_v22 = vcombine.low %v20066_v5, %v20067_v59  ;;  %v20073_v60 = vld [vmem:[#allocation83_spill] sm:$0xff]  ;;  %v20075_v18 = vld [vmem:[#allocation86_spill] sm:$0xff] }
 0x273   : > { %v10355_v61 = vcombine.low %v10333_v33, %v10340_v41  ;;  %v20071_v24 = vcombine.low %v20069_v31, %v20070_v50  ;;  %v5994_v56 = vadd.f32 %v17718_v42, %v20072_v47  ;;  %v20074_v1 = vcombine.high %v20073_v60, %v20073_v60  ;;  %v20077_v31 = vld [vmem:[#allocation94_spill] sm:$0xff]  ;;  %v20078_v47 = vld [vmem:[#allocation149_spill] sm:$0xff] }
 0x274   : > { %v10389_v45 = vrot.slane %v20068_v22, %v13875_v7  ;;  %v7211_v33 = vcombine.high %v20075_v18, %v20075_v18  ;;  %v10356_v41 = vcombine.low %v10347_v39, %v10354_v6  ;;  %v7261_v44 = vcombine.high %v20076_v17, %v20076_v17  ;;  %v20081_v6 = vld [vmem:[#allocation151_spill] sm:$0xff]  ;;  %v20133_v59 = vld [vmem:[#allocation174_spill] sm:$0xff] }
 0x275   : > { %v10403_v48 = vrot.slane %v20071_v24, %v13875_v7  ;;  %v7209_v11 = vrot.slane %v20074_v1, %v13875_v7  ;;  %v10363_v4 = vrot.slane %v10355_v61, %v13875_v7  ;;  %13777 = vrsqrt.f32 %v5994_v56  ;;  %v20085_v56 = vld [vmem:[#allocation154_spill] sm:$0xff] }
 0x276   : > { %v10404_v22 = vcombine.low %v10382_v55, %v10389_v45  ;;  %v8442_v62 = vmul.f32 %v20075_v18, %v20078_v47  ;;  %v10370_v60 = vrot.slane %v10356_v41, %v13875_v7  ;;  %v17827_v39 = vmul.f32 %v7211_v33, %v20081_v6  ;;  %v20083_v45 = vld [vmem:[#allocation153_spill] sm:$0xff]  ;;  %v20088_v18 = vld [vmem:[#allocation155_spill] sm:$0xff] }
 0x277   : > { %v10405_v24 = vcombine.low %v20077_v31, %v10403_v48  ;;  %v7213_v16 = vcombine.high %v7209_v11, %v7209_v11  ;;  %v17824_v19 = vmul.f32 %v7209_v11, %v20079_v37  ;;  %v20086_v48 = vld [vmem:[#allocation90_spill] sm:$0xff]  ;;  %v17839_v41 = vmul.f32 %v20076_v17, %v20088_v18  ;;  %v20090_v37 = vld [vmem:[#allocation156_spill] sm:$0xff] }
 0x278   : > { %v10412_v1 = vrot.slane %v10404_v22, %v13875_v7  ;;  %20082 = vst [vmem:[#allocation30_spill] sm:$0xff] %v17827_v39  ;;  %v17835_v31 = vmul.f32 %v20086_v48, %v20085_v56  ;;  %v13776_v22 = vpop.eup %13775  ;;  %v10371_v47 = vcombine.low %v10363_v4, %v10370_v60  ;;  %v20091_v11 = vcombine.high %v20086_v48, %v20086_v48  ;;  %v20095_v48 = vld [vmem:[#allocation84_spill] sm:$0xff] }
 0x279   : > { %20080 = vst [vmem:[#allocation29_spill] sm:$0xff] %v17824_v19  ;;  %v10419_v55 = vrot.slane %v10405_v24, %v13875_v7  ;;  %v17831_v61 = vmul.f32 %v7213_v16, %v20083_v45  ;;  %20089 = vst [vmem:[#allocation33_spill] sm:$0xff] %v17839_v41  ;;  %v20093_v24 = vld [vmem:[#allocation158_spill] sm:$0xff]  ;;  %v10421_v16 = vcombine.low %v8442_v62, %v17824_v19  ;;  %v20105_v19 = vld [vmem:[#allocation97_spill] sm:$0xff] }
 0x27a   : > { %20087 = vst [vmem:[#allocation32_spill] sm:$0xff] %v17835_v31  ;;  %v17845_v33 = vmul.f32 %v20091_v11, %v20090_v37  ;;  %v17848_v6 = vmul.f32 %v7261_v44, %v20093_v24  ;;  %v7813_v45 = vcombine.high %v13776_v22, %v13776_v22  ;;  %v7820_v56 = vrot.slane %v13776_v22, %v13875_v7 }
 0x27b   : > { %20084 = vst [vmem:[#allocation31_spill] sm:$0xff] %v17831_v61  ;;  %v10420_v3 = vcombine.low %v10412_v1, %v10419_v55  ;;  %v10422_v17 = vcombine.low %v17827_v39, %v17831_v61  ;;  %13495 = vmatprep.mubr.msk.f32.mxu1 %vm5655_vm2, %v10371_v47  ;;  %v10423_v4 = vcombine.low %v17835_v31, %v17839_v41  ;;  %v17867_v1 = vld [vmem:[%s18926_s3 + $0x14] sm:$0xf]  ;;  %v20100_v41 = vld [vmem:[#allocation159_spill] sm:$0xff] }
 0x27c   : > { %20092 = vst [vmem:[#allocation285_spill] sm:$0xff] %v17845_v33  ;;  %20094 = vst [vmem:[#allocation35_spill] sm:$0xff] %v17848_v6  ;;  %v10424_v60 = vcombine.low %v17845_v33, %v17848_v6  ;;  %v10431_v44 = vrot.slane %v10421_v16, %v13875_v7  ;;  %v20096_v62 = vcombine.high %v20095_v48, %v20095_v48  ;;  %v20097_v16 = vld [vmem:[#allocation93_spill] sm:$0xff]  ;;  %v20102_v61 = vld [vmem:[#allocation160_spill] sm:$0xff] }
 0x27d   : > { %v17870_v55 = vrot.slane %v7813_v45, %v13875_v7  ;;  %v7828_v22 = vcombine.high %v7820_v56, %v7820_v56  ;;  %v17873_v47 = vrot.slane %v7820_v56, %v13875_v7  ;;  %13496 = vmatmul.mubr.msk.f32.vlgmr.msra.gmra.mxu1 %vm5655_vm2, %v10420_v3  ;;  %v10438_v37 = vrot.slane %v10422_v17, %v13875_v7  ;;  %v20099_v6 = vld [vmem:[#allocation157_spill] sm:$0xff]  ;;  %v20107_v17 = vld [vmem:[#allocation163_spill] sm:$0xff] }
 0x27e   : > { %v7258_v18 = vrot.slane %v20096_v62, %v13875_v7  ;;  %v10445_v11 = vrot.slane %v10423_v4, %v13875_v7  ;;  %v10452_v24 = vrot.slane %v10424_v60, %v13875_v7  ;;  %v7260_v48 = vcombine.high %v20097_v16, %v20097_v16  ;;  %13508 = vmatpush3.msk.msra.mxu1 %vm5738_vm0, %v17556_v14 }
 0x27f   : > { %v17887_v56 = vrot.slane %v17870_v55, %v13875_v7  ;;  %v17890_v3 = vrot.slane %v7828_v22, %v13875_v7  ;;  %13521 = vmatprep.subr.msk.mxu1 %vm5738_vm0, %v17867_v1  ;;  %v10453_v4 = vcombine.low %v10431_v44, %v10438_v37  ;;  %v7310_v14 = vcombine.high %v20098_v13, %v20098_v13  ;;  %v20104_v22 = vld [vmem:[#allocation161_spill] sm:$0xff] }
 0x280   : > { %v7262_v62 = vcombine.high %v7258_v18, %v7258_v18  ;;  %v10454_v60 = vcombine.low %v10445_v11, %v10452_v24  ;;  %v8451_v45 = vmul.f32 %v7258_v18, %v20099_v6  ;;  %v17900_v33 = vmul.f32 %v7260_v48, %v20100_v41  ;;  %v20109_v11 = vld [vmem:[#allocation165_spill] sm:$0xff]  ;;  %v20114_v24 = vld [vmem:[#allocation168_spill] sm:$0xff]  ;;  %v20115_v48 = vld [vmem:[#allocation142_spill] sm:$0xff] }
 0x281   : > { %v17907_v39 = vmul.f32 %v20105_v19, %v20104_v22  ;;  %v17911_v16 = vmul.f32 %v20098_v13, %v20107_v17  ;;  %v10461_v44 = vrot.slane %v10453_v4, %v13875_v7  ;;  %v20110_v41 = vcombine.high %v20105_v19, %v20105_v19  ;;  %v20117_v4 = vld [vmem:[#allocation18_spill] sm:$0xff] }
 0x282   : > { %20101 = vst [vmem:[#allocation36_spill] sm:$0xff] %v17900_v33  ;;  %v17903_v31 = vmul.f32 %v7262_v62, %v20102_v61  ;;  %v10468_v37 = vrot.slane %v10454_v60, %v13875_v7  ;;  %v20112_v61 = vld [vmem:[#allocation166_spill] sm:$0xff]  ;;  %v17926_v62 = vmul.f32 %v20115_v48, %v20114_v24  ;;  %v10470_v13 = vcombine.low %v8451_v45, %v17900_v33  ;;  %v13778_v22 = vpop.eup %13777  ;;  %v20123_v33 = vld [vmem:[#allocation167_spill] sm:$0xff] }
 0x283   : > { %20106 = vst [vmem:[#allocation284_spill] sm:$0xff] %v17907_v39  ;;  %20108 = vst [vmem:[#allocation290_spill] sm:$0xff] %v17911_v16  ;;  %v17919_v6 = vmul.f32 %v20110_v41, %v20109_v11  ;;  %v17922_v18 = vmul.f32 %v7310_v14, %v20112_v61  ;;  %v5999_v60 = vadd.f32 %v17718_v42, %v20117_v4  ;;  %v20118_v11 = vld [vmem:[#allocation143_spill] sm:$0xff] }
 0x284   : > { %20103 = vst [vmem:[#allocation37_spill] sm:$0xff] %v17903_v31  ;;  %20116 = vst [vmem:[#allocation39_spill] sm:$0xff] %v17926_v62  ;;  %v10471_v17 = vcombine.low %v17903_v31, %v17907_v39  ;;  %v10469_v50 = vcombine.low %v10461_v44, %v10468_v37  ;;  %v7309_v14 = vcombine.high %v20115_v48, %v20115_v48  ;;  %v20119_v48 = vld [vmem:[#allocation146_spill] sm:$0xff] }
 0x285   : > { %20111 = vst [vmem:[#allocation295_spill] sm:$0xff] %v17919_v6  ;;  %20113 = vst [vmem:[#allocation38_spill] sm:$0xff] %v17922_v18  ;;  %v10472_v19 = vcombine.low %v17911_v16, %v17919_v6  ;;  %v7311_v41 = vcombine.high %v20118_v11, %v20118_v11  ;;  %v7862_v61 = vcombine.high %v13778_v22, %v13778_v22  ;;  %13779 = vrsqrt.f32 %v5999_v60 }
 0x286   : > { %v7869_v45 = vrot.slane %v13778_v22, %v13875_v7  ;;  %v10473_v24 = vcombine.low %v17922_v18, %v17926_v62  ;;  %v10480_v39 = vrot.slane %v10470_v13, %v13875_v7  ;;  %13498 = vmatprep.mubr.msk.f32.mxu1 %vm5655_vm2, %v10469_v50  ;;  %v10487_v44 = vrot.slane %v10471_v17, %v13875_v7  ;;  %v20121_v18 = vld [vmem:[#allocation147_spill] sm:$0xff] }
 0x287   : > { %v10494_v37 = vrot.slane %v10472_v19, %v13875_v7  ;;  %v20120_v4 = vcombine.high %v20119_v48, %v20119_v48  ;;  %v17951_v16 = vrot.slane %v7862_v61, %v13875_v7  ;;  %v7359_v17 = vcombine.high %v20121_v18, %v20121_v18  ;;  %v20122_v19 = vld [vmem:[#allocation164_spill] sm:$0xff] }
 0x288   : > { %v7877_v22 = vcombine.high %v7869_v45, %v7869_v45  ;;  %v17954_v62 = vrot.slane %v7869_v45, %v13875_v7  ;;  %v10501_v13 = vrot.slane %v10473_v24, %v13875_v7  ;;  %v10502_v50 = vcombine.low %v10480_v39, %v10487_v44  ;;  %v20130_v48 = vld [vmem:[#allocation172_spill] sm:$0xff] }
 0x289   : > { %v7356_v6 = vrot.slane %v20120_v4, %v13875_v7  ;;  %v8460_v60 = vmul.f32 %v7309_v14, %v20122_v19  ;;  %v17961_v31 = vmul.f32 %v7311_v41, %v20123_v33  ;;  %v17967_v61 = vrot.slane %v17951_v16, %v13875_v7  ;;  %v20125_v14 = vld [vmem:[#allocation169_spill] sm:$0xff]  ;;  %v20128_v41 = vld [vmem:[#allocation170_spill] sm:$0xff]  ;;  %v20138_v39 = vld [vmem:[#allocation176_spill] sm:$0xff] }
 0x28a   : > { %v17970_v45 = vrot.slane %v7877_v22, %v13875_v7  ;;  %v10503_v24 = vcombine.low %v10494_v37, %v10501_v13  ;;  %v10510_v44 = vrot.slane %v10502_v50, %v13875_v7  ;;  %v20126_v4 = vld [vmem:[#allocation145_spill] sm:$0xff]  ;;  %v17981_v19 = vmul.f32 %v20121_v18, %v20128_v41  ;;  %v20135_v37 = vld [vmem:[#allocation175_spill] sm:$0xff]  ;;  %v20136_v13 = vld [vmem:[#allocation148_spill] sm:$0xff] }
 0x28b   : > { %20124 = vst [vmem:[#allocation41_spill] sm:$0xff] %v17961_v31  ;;  %v17977_v33 = vmul.f32 %v20126_v4, %v20125_v14  ;;  %v20131_v11 = vcombine.high %v20126_v4, %v20126_v4  ;;  %v17990_v5 = vmul.f32 %v7359_v17, %v20133_v59  ;;  %v17994_v50 = vmul.f32 %v20136_v13, %v20135_v37  ;;  %v20140_v17 = vld [vmem:[#allocation100_spill] sm:$0xff] }
 0x28c   : > { %20129 = vst [vmem:[#allocation40_spill] sm:$0xff] %v17981_v19  ;;  %v17997_v14 = vmul.f32 %v7356_v6, %v20138_v39  ;;  %v10517_v28 = vrot.slane %v10503_v24, %v13875_v7  ;;  %v10519_v18 = vcombine.low %v8460_v60, %v17961_v31  ;;  %v7360_v4 = vcombine.high %v7356_v6, %v7356_v6  ;;  %v20143_v37 = vld [vmem:[#allocation96_spill] sm:$0xff] }
 0x28d   : > { %20127 = vst [vmem:[#allocation288_spill] sm:$0xff] %v17977_v33  ;;  %v17987_v22 = vmul.f32 %v20131_v11, %v20130_v48  ;;  %20134 = vst [vmem:[#allocation45_spill] sm:$0xff] %v17990_v5  ;;  %v10520_v41 = vcombine.low %v17977_v33, %v17981_v19  ;;  %v20141_v48 = vcombine.high %v20140_v17, %v20140_v17  ;;  %v20144_v19 = vld [vmem:[#allocation105_spill] sm:$0xff]  ;;  %v20146_v17 = vld [vmem:[#allocation178_spill] sm:$0xff] }
 0x28e   : > { %20137 = vst [vmem:[#allocation46_spill] sm:$0xff] %v17994_v50  ;;  %20139 = vst [vmem:[#allocation48_spill] sm:$0xff] %v17997_v14  ;;  %v10522_v59 = vcombine.low %v17994_v50, %v17997_v14  ;;  %v7407_v24 = vcombine.high %v20143_v37, %v20143_v37  ;;  %v10518_v60 = vcombine.low %v10510_v44, %v10517_v28  ;;  %v20145_v50 = vld [vmem:[#allocation173_spill] sm:$0xff] }
 0x28f   : > { %20132 = vst [vmem:[#allocation43_spill] sm:$0xff] %v17987_v22  ;;  %v10521_v11 = vcombine.low %v17987_v22, %v17990_v5  ;;  %v18011_v39 = vrot.slane %v20141_v48, %v13875_v7  ;;  %v10529_v31 = vrot.slane %v10519_v18, %v13875_v7  ;;  %v10536_v6 = vrot.slane %v10520_v41, %v13875_v7  ;;  %v20147_v48 = vld [vmem:[#allocation102_spill] sm:$0xff]  ;;  %v20149_v44 = vld [vmem:[#allocation177_spill] sm:$0xff] }
 0x290   : > { %v7408_v5 = vcombine.high %v20144_v19, %v20144_v19  ;;  %v10550_v14 = vrot.slane %v10522_v59, %v13875_v7  ;;  %v8469_v33 = vmul.f32 %v7360_v4, %v20145_v50  ;;  %v18024_v13 = vmul.f32 %v20147_v48, %v20146_v17  ;;  %13499 = vmatmul.mubr.msk.f32.gmra.mxu1 %vm5655_vm2, %v10518_v60  ;;  %v20151_v41 = vld [vmem:[#allocation181_spill] sm:$0xff]  ;;  %v20154_v59 = vld [vmem:[#allocation180_spill] sm:$0xff]  ;;  %v20156_v4 = vld [vmem:[#allocation182_spill] sm:$0xff] }
 0x291   : > { %20142 = vst [vmem:[#allocation293_spill] sm:$0xff] %v18011_v39  ;;  %v10543_v22 = vrot.slane %v10521_v11, %v13875_v7  ;;  %v10551_v28 = vcombine.low %v10529_v31, %v10536_v6  ;;  %v18029_v18 = vmul.f32 %v20144_v19, %v20149_v44  ;;  %v20152_v46 = vcombine.high %v20147_v48, %v20147_v48  ;;  %v20158_v60 = vld [vmem:[#allocation183_spill] sm:$0xff]  ;;  %v20160_v19 = vld [vmem:[#allocation184_spill] sm:$0xff] }
 0x292   : > { %20148 = vst [vmem:[#allocation289_spill] sm:$0xff] %v18024_v13  ;;  %v18038_v8 = vmul.f32 %v7408_v5, %v20154_v59  ;;  %v18042_v17 = vmul.f32 %v20143_v37, %v20156_v4  ;;  %v18046_v31 = vmul.f32 %v18011_v39, %v20158_v60  ;;  %v18049_v6 = vmul.f32 %v7407_v24, %v20160_v19 }
 0x293   : > { %20150 = vst [vmem:[#allocation299_spill] sm:$0xff] %v18029_v18  ;;  %v18035_v11 = vmul.f32 %v20152_v46, %v20151_v41  ;;  %v10552_v50 = vcombine.low %v10543_v22, %v10550_v14  ;;  %v10559_v44 = vrot.slane %v10551_v28, %v13875_v7  ;;  %v10568_v46 = vcombine.low %v8469_v33, %v18024_v13  ;;  %v13780_v14 = vpop.eup %13779  ;;  %v20162_v41 = vld [vmem:[#allocation101_spill] sm:$0xff]  ;;  %v20173_v13 = vld [vmem:[#allocation192_spill] sm:$0xff] }
 0x294   : > { %20155 = vst [vmem:[#allocation47_spill] sm:$0xff] %v18038_v8  ;;  %20157 = vst [vmem:[#allocation49_spill] sm:$0xff] %v18042_v17  ;;  %v6004_v22 = vadd.f32 %v17718_v42, %v17501_v10  ;;  %v10570_v48 = vcombine.low %v18038_v8, %v18042_v17  ;;  %v10571_v24 = vcombine.low %v18046_v31, %v18049_v6 }
 0x295   : > { %20153 = vst [vmem:[#allocation44_spill] sm:$0xff] %v18035_v11  ;;  %20159 = vst [vmem:[#allocation292_spill] sm:$0xff] %v18046_v31  ;;  %v10569_v5 = vcombine.low %v18029_v18, %v18035_v11  ;;  %v10566_v37 = vrot.slane %v10552_v50, %v13875_v7  ;;  %v20163_v28 = vcombine.high %v20162_v41, %v20162_v41  ;;  %v20168_v31 = vld [vmem:[#allocation188_spill] sm:$0xff]  ;;  %v20170_v11 = vld [vmem:[#allocation189_spill] sm:$0xff] }
 0x296   : > { %20161 = vst [vmem:[#allocation50_spill] sm:$0xff] %v18049_v6  ;;  %v7911_v59 = vcombine.high %v13780_v14, %v13780_v14  ;;  %v7918_v4 = vrot.slane %v13780_v14, %v13875_v7  ;;  %v10578_v60 = vrot.slane %v10568_v46, %v13875_v7  ;;  %v10592_v50 = vrot.slane %v10570_v48, %v13875_v7  ;;  %v20164_v46 = vld [vmem:[#allocation99_spill] sm:$0xff] }
 0x297   : > { %v7454_v33 = vrot.slane %v20163_v28, %v13875_v7  ;;  %v10585_v10 = vrot.slane %v10569_v5, %v13875_v7  ;;  %v10567_v42 = vcombine.low %v10559_v44, %v10566_v37  ;;  %v10599_v19 = vrot.slane %v10571_v24, %v13875_v7  ;;  %v20165_v44 = vld [vmem:[#allocation106_spill] sm:$0xff] }
 0x298   : > { %13781 = vrsqrt.f32 %v6004_v22  ;;  %v18072_v6 = vrot.slane %v7911_v59, %v13875_v7  ;;  %v7926_v17 = vcombine.high %v7918_v4, %v7918_v4  ;;  %v18075_v41 = vrot.slane %v7918_v4, %v13875_v7  ;;  %v20175_v4 = vld [vmem:[#allocation187_spill] sm:$0xff] }
 0x299   : > { %v10600_v28 = vcombine.low %v10578_v60, %v10585_v10  ;;  %13501 = vmatprep.mubr.msk.f32.mxu1 %vm5655_vm2, %v10567_v42  ;;  %v10601_v14 = vcombine.low %v10592_v50, %v10599_v19  ;;  %v7456_v5 = vcombine.high %v20164_v46, %v20164_v46  ;;  %v7457_v37 = vcombine.high %v20165_v44, %v20165_v44  ;;  %v20166_v42 = vld [vmem:[#allocation186_spill] sm:$0xff]  ;;  %v20167_v50 = vld [vmem:[#allocation103_spill] sm:$0xff] }
 0x29a   : > { %v7458_v48 = vcombine.high %v7454_v33, %v7454_v33  ;;  %v18086_v24 = vrot.slane %v18072_v6, %v13875_v7  ;;  %v18089_v59 = vrot.slane %v7926_v17, %v13875_v7  ;;  %v8478_v19 = vmul.f32 %v20167_v50, %v20166_v42 }
 0x29b   : > { %v10608_v60 = vrot.slane %v10600_v28, %v13875_v7  ;;  %v10615_v10 = vrot.slane %v10601_v14, %v13875_v7  ;;  %v18099_v22 = vmul.f32 %v20165_v44, %v20168_v31  ;;  %v20171_v8 = vcombine.high %v20167_v50, %v20167_v50  ;;  %v20177_v14 = vld [vmem:[#allocation190_spill] sm:$0xff]  ;;  %v20181_v44 = vld [vmem:[#allocation193_spill] sm:$0xff] }
 0x29c   : > { %v18108_v18 = vmul.f32 %v7457_v37, %v20173_v13  ;;  %v18112_v28 = vmul.f32 %v20164_v46, %v20175_v4  ;;  %v18115_v39 = vmul.f32 %v7454_v33, %v20177_v14  ;;  %v18118_v31 = vmul.f32 %v7456_v5, %v20179_v29  ;;  %v20183_v46 = vld [vmem:[#allocation107_spill] sm:$0xff]  ;;  %v20185_v4 = vld [vmem:[#allocation110_spill] sm:$0xff] }
 0x29d   : > { %20169 = vst [vmem:[#allocation51_spill] sm:$0xff] %v18099_v22  ;;  %v18105_v17 = vmul.f32 %v20171_v8, %v20170_v11  ;;  %v10616_v42 = vcombine.low %v10608_v60, %v10615_v10  ;;  %v18121_v27 = vmul.f32 %v7458_v48, %v20181_v44  ;;  %v10617_v8 = vcombine.low %v8478_v19, %v18099_v22  ;;  %v20186_v60 = vld [vmem:[#allocation112_spill] sm:$0xff]  ;;  %v20187_v50 = vld [vmem:[#allocation194_spill] sm:$0xff] }
 0x29e   : > { %20174 = vst [vmem:[#allocation54_spill] sm:$0xff] %v18108_v18  ;;  %20176 = vst [vmem:[#allocation55_spill] sm:$0xff] %v18112_v28  ;;  %v10619_v11 = vcombine.low %v18112_v28, %v18115_v39  ;;  %v20184_v33 = vcombine.high %v20183_v46, %v20183_v46  ;;  %v7505_v29 = vcombine.high %v20185_v4, %v20185_v4  ;;  %v20194_v28 = vld [vmem:[#allocation201_spill] sm:$0xff] }
 0x29f   : > { %20172 = vst [vmem:[#allocation53_spill] sm:$0xff] %v18105_v17  ;;  %20178 = vst [vmem:[#allocation294_spill] sm:$0xff] %v18115_v39  ;;  %v10618_v13 = vcombine.low %v18105_v17, %v18108_v18  ;;  %13502 = vmatmul.mubr.msk.f32.gmra.mxu1 %vm5655_vm2, %v10616_v42  ;;  %v10620_v5 = vcombine.low %v18118_v31, %v18121_v27  ;;  %v10627_v48 = vrot.slane %v10617_v8, %v13875_v7  ;;  %v20189_v39 = vld [vmem:[#allocation109_spill] sm:$0xff]  ;;  %v20192_v8 = vld [vmem:[#allocation199_spill] sm:$0xff] }
 0x2a0   : > { %20180 = vst [vmem:[#allocation300_spill] sm:$0xff] %v18118_v31  ;;  %20182 = vst [vmem:[#allocation301_spill] sm:$0xff] %v18121_v27  ;;  %v7503_v37 = vrot.slane %v20184_v33, %v13875_v7  ;;  %v7506_v10 = vcombine.high %v20186_v60, %v20186_v60  ;;  %v8487_v19 = vmul.f32 %v20186_v60, %v20187_v50  ;;  %v20188_v33 = vld [vmem:[#allocation196_spill] sm:$0xff]  ;;  %v20196_v60 = vld [vmem:[#allocation195_spill] sm:$0xff] }
 0x2a1   : > { %v10634_v14 = vrot.slane %v10618_v13, %v13875_v7  ;;  %v10641_v44 = vrot.slane %v10619_v11, %v13875_v7  ;;  %v20190_v42 = vcombine.high %v20189_v39, %v20189_v39  ;;  %v10648_v27 = vrot.slane %v10620_v5, %v13875_v7  ;;  %v20198_v50 = vld [vmem:[#allocation198_spill] sm:$0xff] }
 0x2a2   : > { %v7507_v46 = vcombine.high %v7503_v37, %v7503_v37  ;;  %v18152_v31 = vmul.f32 %v7506_v10, %v20192_v8  ;;  %v18156_v22 = vmul.f32 %v20185_v4, %v20194_v28  ;;  %v18159_v13 = vmul.f32 %v7503_v37, %v20196_v60  ;;  %v20206_v4 = vld [vmem:[#allocation7_spill] sm:$0xff] }
 0x2a3   : > { %v18148_v18 = vmul.f32 %v20190_v42, %v20188_v33  ;;  %v10649_v11 = vcombine.low %v10627_v48, %v10634_v14  ;;  %v18162_v17 = vmul.f32 %v7505_v29, %v20198_v50  ;;  %v20202_v33 = vld [vmem:[#allocation202_spill] sm:$0xff]  ;;  %v20203_v42 = vld [vmem:[#allocation113_spill] sm:$0xff]  ;;  %v10650_v8 = vcombine.low %v10641_v44, %v10648_v27 }
 0x2a4   : > { %20193 = vst [vmem:[#allocation58_spill] sm:$0xff] %v18152_v31  ;;  %20195 = vst [vmem:[#allocation296_spill] sm:$0xff] %v18156_v22  ;;  %v18165_v39 = vmul.f32 %v7507_v46, %v20200_v9  ;;  %v20204_v5 = vrot.slane %v20203_v42, %v13875_v7  ;;  %v10667_v37 = vcombine.low %v18152_v31, %v18156_v22  ;;  %v20208_v27 = vld [vmem:[#allocation10_spill] sm:$0xff]  ;;  %v20214_v31 = vld [vmem:[#allocation208_spill] sm:$0xff] }
 0x2a5   : > { %20191 = vst [vmem:[#allocation56_spill] sm:$0xff] %v18148_v18  ;;  %20197 = vst [vmem:[#allocation57_spill] sm:$0xff] %v18159_v13  ;;  %v10666_v28 = vcombine.low %v8487_v19, %v18148_v18  ;;  %v20207_v29 = vcombine.high %v20206_v4, %v20206_v4  ;;  %v13782_v14 = vpop.eup %13781  ;;  %v10657_v9 = vrot.slane %v10649_v11, %v13875_v7  ;;  %v20213_v18 = vld [vmem:[#allocation206_spill] sm:$0xff] }
 0x2a6   : > { %20199 = vst [vmem:[#allocation61_spill] sm:$0xff] %v18162_v17  ;;  %20201 = vst [vmem:[#allocation60_spill] sm:$0xff] %v18165_v39  ;;  %v18171_v10 = vmul.f32 %v20204_v5, %v20202_v33  ;;  %v10668_v46 = vcombine.low %v18159_v13, %v18162_v17  ;;  %v7568_v19 = vcombine.high %v20208_v27, %v20208_v27  ;;  %v20210_v17 = vld [vmem:[#allocation274_spill] sm:$0xff] }
 0x2a7   : > { %v7567_v48 = vrot.slane %v20207_v29, %v13875_v7  ;;  %v18188_v44 = vrot.slane %v13782_v14, %v13875_v7  ;;  %v10664_v50 = vrot.slane %v10650_v8, %v13875_v7  ;;  %v10676_v33 = vrot.slane %v10666_v28, %v13875_v7  ;;  %v20209_v29 = vld [vmem:[#allocation203_spill] sm:$0xff] }
 0x2a8   : > { %20205 = vst [vmem:[#allocation62_spill] sm:$0xff] %v18171_v10  ;;  %v10669_v60 = vcombine.low %v18165_v39, %v18171_v10  ;;  %v10683_v42 = vrot.slane %v10667_v37, %v13875_v7  ;;  %v10690_v11 = vrot.slane %v10668_v46, %v13875_v7  ;;  %v20211_v10 = vcombine.high %v20210_v17, %v20210_v17  ;;  %v20212_v37 = vld [vmem:[#allocation205_spill] sm:$0xff]  ;;  %v20216_v8 = vld [vmem:[#allocation207_spill] sm:$0xff] }
 0x2a9   : > { %v7570_v4 = vcombine.high %v7567_v48, %v7567_v48  ;;  %v7967_v14 = vcombine.high %v18188_v44, %v18188_v44  ;;  %v10665_v22 = vcombine.low %v10657_v9, %v10664_v50  ;;  %v8497_v46 = vmul.f32 %v20208_v27, %v20212_v37 }
 0x2aa   : > { %v10697_v5 = vrot.slane %v10669_v60, %v13875_v7  ;;  %v8496_v39 = vmul.f32 %v20211_v10, %v20209_v29  ;;  %v10698_v28 = vcombine.low %v10676_v33, %v10683_v42  ;;  %v8498_v60 = vmul.f32 %v7567_v48, %v20213_v18  ;;  %v20215_v10 = vld [vmem:[#allocation204_spill] sm:$0xff]  ;;  %v20217_v33 = vld [vmem:[#allocation209_spill] sm:$0xff]  ;;  %v20218_v18 = vld [vmem:[#allocation210_spill] sm:$0xff] }
 0x2ab   : > { %v8499_v23 = vmul.f32 %v7568_v19, %v20214_v31  ;;  %v18208_v54 = vrot.slane %v7967_v14, %v13875_v7  ;;  %13504 = vmatprep.mubr.msk.f32.mxu1 %vm5655_vm2, %v10665_v22  ;;  %v8500_v29 = vmul.f32 %v7570_v4, %v20215_v10  ;;  %v8501_v9 = vmul.f32 %v17462_v35, %v20216_v8  ;;  %v20224_v10 = vld [vmem:[#allocation216_spill] sm:$0xff] }
 0x2ac   : > { %v10699_v13 = vcombine.low %v10690_v11, %v10697_v5  ;;  %v10706_v17 = vrot.slane %v10698_v28, %v13875_v7  ;;  %v8502_v27 = vmul.f32 %v17472_v52, %v20217_v33  ;;  %v20219_v31 = vcombine.high %v17462_v35, %v17462_v35 }
 0x2ad   : > { %v10913_v19 = vcombine.low %v8496_v39, %v8497_v46  ;;  %v10914_v42 = vcombine.low %v8498_v60, %v8499_v23  ;;  %v10915_v22 = vcombine.low %v8500_v29, %v8501_v9  ;;  %v20220_v11 = vcombine.low %v17484_v51, %v17496_v53 }
 0x2ae   : > { %v10713_v50 = vrot.slane %v10699_v13, %v13875_v7  ;;  %v8503_v48 = vmul.f32 %v20219_v31, %v20218_v18  ;;  %v20221_v13 = vcombine.low %v17499_v57, %v17516_v49  ;;  %v20222_v35 = vcombine.low %v17586_v15, %v17596_v2 }
 0x2af   : > { %v10972_v5 = vrot.slane %v20220_v11, %v13875_v7  ;;  %v10923_v8 = vrot.slane %v10913_v19, %v13875_v7  ;;  %v10930_v39 = vrot.slane %v10914_v42, %v13875_v7  ;;  %v10937_v28 = vrot.slane %v10915_v22, %v13875_v7  ;;  %v20229_v42 = vld [vmem:[#allocation225_spill] sm:$0xff] }
 0x2b0   : > { %v10979_v4 = vrot.slane %v20221_v13, %v13875_v7  ;;  %v10714_v14 = vcombine.low %v10706_v17, %v10713_v50  ;;  %v10916_v52 = vcombine.low %v8502_v27, %v8503_v48  ;;  %v10993_v23 = vrot.slane %v20222_v35, %v13875_v7  ;;  %v20225_v50 = vld [vmem:[#allocation219_spill] sm:$0xff]  ;;  %v20226_v27 = vld [vmem:[#allocation222_spill] sm:$0xff] }
 0x2b1   : > { %v20223_v53 = vcombine.high %v17559_v0, %v17559_v0  ;;  %v7665_v15 = vcombine.high %v17575_v34, %v17575_v34  ;;  %v7715_v2 = vcombine.high %v17636_v20, %v17636_v20  ;;  %v10945_v46 = vcombine.low %v10923_v8, %v10930_v39  ;;  %v20227_v34 = vld [vmem:[#allocation220_spill] sm:$0xff]  ;;  %v20228_v48 = vld [vmem:[#allocation223_spill] sm:$0xff] }
 0x2b2   : > { %v10994_v51 = vcombine.low %v10972_v5, %v10979_v4  ;;  %13505 = vmatmul.mubr.msk.f32.gmra.mxu1 %vm5655_vm2, %v10714_v14  ;;  %v10944_v49 = vrot.slane %v10916_v52, %v13875_v7  ;;  %v10995_v37 = vcombine.low %v17610_v58, %v10993_v23  ;;  %v8515_v58 = vmul.f32 %v17621_v43, %v20226_v27  ;;  %v20231_v4 = vld [vmem:[#allocation226_spill] sm:$0xff]  ;;  %v20232_v52 = vld [vmem:[#allocation228_spill] sm:$0xff]  ;;  %v20238_v27 = vld [vmem:[#allocation233_spill] sm:$0xff] }
 0x2b3   : > { %v7663_v57 = vrot.slane %v20223_v53, %v13875_v7  ;;  %v8513_v33 = vmul.f32 %v7665_v15, %v20225_v50  ;;  %v10953_v18 = vrot.slane %v10945_v46, %v13875_v7  ;;  %v8516_v19 = vmul.f32 %v17636_v20, %v20228_v48  ;;  %v20237_v50 = vld [vmem:[#allocation227_spill] sm:$0xff] }
 0x2b4   : > { %v11002_v60 = vrot.slane %v10994_v51, %v13875_v7  ;;  %v10946_v0 = vcombine.low %v10937_v28, %v10944_v49  ;;  %v11009_v9 = vrot.slane %v10995_v37, %v13875_v7  ;;  %v20230_v22 = vcombine.high %v17621_v43, %v17621_v43 }
 0x2b5   : > { %v7667_v17 = vcombine.high %v7663_v57, %v7663_v57  ;;  %v8512_v29 = vmul.f32 %v7663_v57, %v20224_v10  ;;  %v8518_v14 = vmul.f32 %v7715_v2, %v20231_v4  ;;  %v8519_v8 = vmul.f32 %v17633_v38, %v20232_v52  ;;  %v20236_v10 = vld [vmem:[#allocation230_spill] sm:$0xff] }
 0x2b6   : > { %v8517_v11 = vmul.f32 %v20230_v22, %v20229_v42  ;;  %v10960_v5 = vrot.slane %v10946_v0, %v13875_v7  ;;  %v11010_v13 = vcombine.low %v11002_v60, %v11009_v9  ;;  %v20233_v20 = vcombine.high %v17618_v12, %v17618_v12  ;;  %v18289_v0 = vld [vmem:[%s18926_s3 + $0x18] sm:$0xf]  ;;  %v20242_v22 = vld [vmem:[#allocation232_spill] sm:$0xff] }
 0x2b7   : > { %v8514_v31 = vmul.f32 %v7667_v17, %v20227_v34  ;;  %v11011_v35 = vcombine.low %v8512_v29, %v8513_v33  ;;  %v11014_v53 = vcombine.low %v8518_v14, %v8519_v8  ;;  %v7714_v43 = vcombine.high %v17633_v38, %v17633_v38  ;;  %v20235_v38 = vld [vmem:[#allocation224_spill] sm:$0xff] }
 0x2b8   : > { %v11013_v39 = vcombine.low %v8516_v19, %v8517_v11  ;;  %v7712_v28 = vrot.slane %v20233_v20, %v13875_v7  ;;  %v10961_v51 = vcombine.low %v10953_v18, %v10960_v5  ;;  %v20234_v57 = vcombine.high %v17692_v21, %v17692_v21  ;;  %v20239_v18 = vld [vmem:[#allocation229_spill] sm:$0xff]  ;;  %v20241_v19 = vld [vmem:[#allocation231_spill] sm:$0xff] }
 0x2b9   : > { %v11012_v23 = vcombine.low %v8514_v31, %v8515_v58  ;;  %v11021_v37 = vrot.slane %v11011_v35, %v13875_v7  ;;  %v11042_v12 = vrot.slane %v11014_v53, %v13875_v7  ;;  %v7763_v60 = vcombine.high %v17709_v40, %v17709_v40 }
 0x2ba   : > { %v7761_v49 = vrot.slane %v20234_v57, %v13875_v7  ;;  %v11035_v2 = vrot.slane %v11013_v39, %v13875_v7  ;;  %v7716_v46 = vcombine.high %v7712_v28, %v7712_v28  ;;  %13509 = vmatprep.mubr.msk.f32.mxu1 %vm5655_vm2, %v10961_v51  ;;  %v8520_v17 = vmul.f32 %v7714_v43, %v20235_v38 }
 0x2bb   : > { %v11028_v15 = vrot.slane %v11012_v23, %v13875_v7  ;;  %v8522_v29 = vmul.f32 %v17695_v32, %v20236_v10  ;;  %13510 = vmatmul.mubr.msk.f32.vlgmr.msra.gmra.mxu1 %vm5655_vm2, %v11010_v13  ;;  %v8523_v58 = vmul.f32 %v17709_v40, %v20238_v27  ;;  %v20240_v34 = vcombine.high %v17695_v32, %v17695_v32  ;;  %v20244_v13 = vld [vmem:[#allocation234_spill] sm:$0xff]  ;;  %v20253_v27 = vld [vmem:[#allocation241_spill] sm:$0xff] }
 0x2bc   : > { %v8521_v33 = vmul.f32 %v7716_v46, %v20237_v50  ;;  %v11044_v48 = vcombine.low %v11035_v2, %v11042_v12  ;;  %v8525_v42 = vmul.f32 %v7763_v60, %v20241_v19  ;;  %v20243_v11 = vrot.slane %v17692_v21, %v13875_v7  ;;  %13522 = vmatpush3.msk.msra.mxu1 %vm5738_vm0, %v17867_v1  ;;  %v20248_v46 = vld [vmem:[#allocation236_spill] sm:$0xff]  ;;  %v20249_v60 = vld [vmem:[#allocation239_spill] sm:$0xff] }
 0x2bd   : > { %v11043_v9 = vcombine.low %v11021_v37, %v11028_v15  ;;  %v8524_v31 = vmul.f32 %v20240_v34, %v20239_v18  ;;  %v8527_v4 = vmul.f32 %v7761_v49, %v20244_v13  ;;  %v11061_v52 = vcombine.low %v8522_v29, %v8523_v58  ;;  %13535 = vmatprep.subr.msk.mxu1 %vm5738_vm0, %v18289_v0  ;;  %v20251_v29 = vld [vmem:[#allocation238_spill] sm:$0xff]  ;;  %v20252_v50 = vld [vmem:[#allocation240_spill] sm:$0xff] }
 0x2be   : > { %v8526_v5 = vmul.f32 %v20243_v11, %v20242_v22  ;;  %v11060_v14 = vcombine.low %v8520_v17, %v8521_v33  ;;  %v7764_v8 = vcombine.high %v7761_v49, %v7761_v49  ;;  %v11058_v32 = vrot.slane %v11044_v48, %v13875_v7  ;;  %v20246_v49 = vld [vmem:[#allocation235_spill] sm:$0xff]  ;;  %v20254_v34 = vld [vmem:[#allocation242_spill] sm:$0xff] }
 0x2bf   : > { %v11051_v40 = vrot.slane %v11043_v9, %v13875_v7  ;;  %v11062_v35 = vcombine.low %v8524_v31, %v8525_v42  ;;  %v20245_v21 = vcombine.high %v17769_v25, %v17769_v25  ;;  %v11077_v1 = vrot.slane %v11061_v52, %v13875_v7  ;;  %v20247_v25 = vld [vmem:[#allocation237_spill] sm:$0xff] }
 0x2c0   : > { %v11063_v23 = vcombine.low %v8526_v5, %v8527_v4  ;;  %v11070_v20 = vrot.slane %v11060_v14, %v13875_v7  ;;  %v7811_v28 = vcombine.high %v17790_v36, %v17790_v36  ;;  %v7812_v51 = vcombine.high %v17793_v26, %v17793_v26 }
 0x2c1   : > { %v7809_v39 = vrot.slane %v20245_v21, %v13875_v7  ;;  %v11059_v53 = vcombine.low %v11051_v40, %v11058_v32  ;;  %v11084_v43 = vrot.slane %v11062_v35, %v13875_v7  ;;  %v8528_v37 = vmul.f32 %v7764_v8, %v20246_v49  ;;  %v20256_v8 = vld [vmem:[#allocation243_spill] sm:$0xff] }
 0x2c2   : > { %v11091_v57 = vrot.slane %v11063_v23, %v13875_v7  ;;  %v11092_v15 = vcombine.low %v11070_v20, %v11077_v1  ;;  %v8529_v2 = vmul.f32 %v17772_v63, %v20247_v25  ;;  %v8530_v12 = vmul.f32 %v17793_v26, %v20248_v46  ;;  %v20257_v23 = vld [vmem:[#allocation245_spill] sm:$0xff] }
 0x2c3   : > { %v20250_v38 = vcombine.high %v17772_v63, %v17772_v63  ;;  %13512 = vmatprep.mubr.msk.f32.mxu1 %vm5655_vm2, %v11059_v53  ;;  %v8532_v9 = vmul.f32 %v7812_v51, %v20251_v29  ;;  %v8533_v33 = vmul.f32 %v17790_v36, %v20252_v50  ;;  %v8534_v58 = vmul.f32 %v7809_v39, %v20253_v27  ;;  %v20258_v39 = vld [vmem:[#allocation246_spill] sm:$0xff]  ;;  %v20261_v53 = vld [vmem:[#allocation244_spill] sm:$0xff] }
 0x2c4   : > { %v11093_v10 = vcombine.low %v11084_v43, %v11091_v57  ;;  %v11100_v18 = vrot.slane %v11092_v15, %v13875_v7  ;;  %v8535_v31 = vmul.f32 %v7811_v28, %v20254_v34  ;;  %v11109_v26 = vcombine.low %v8528_v37, %v8529_v2  ;;  %v20260_v28 = vld [vmem:[#allocation249_spill] sm:$0xff]  ;;  %v20262_v57 = vld [vmem:[#allocation247_spill] sm:$0xff]  ;;  %v20263_v37 = vld [vmem:[#allocation248_spill] sm:$0xff] }
 0x2c5   : > { %v8531_v17 = vmul.f32 %v20250_v38, %v20249_v60  ;;  %v11111_v63 = vcombine.low %v8532_v9, %v8533_v33  ;;  %v20255_v42 = vcombine.high %v17870_v55, %v17870_v55  ;;  %v7859_v11 = vcombine.high %v17887_v56, %v17887_v56 }
 0x2c6   : > { %v11107_v19 = vrot.slane %v11093_v10, %v13875_v7  ;;  %v11112_v36 = vcombine.low %v8534_v58, %v8535_v31  ;;  %v11119_v5 = vrot.slane %v11109_v26, %v13875_v7  ;;  %v7860_v4 = vcombine.high %v17890_v3, %v17890_v3  ;;  %v20267_v26 = vld [vmem:[#allocation253_spill] sm:$0xff] }
 0x2c7   : > { %v11110_v48 = vcombine.low %v8530_v12, %v8531_v17  ;;  %v7857_v22 = vrot.slane %v20255_v42, %v13875_v7  ;;  %v11133_v14 = vrot.slane %v11111_v63, %v13875_v7  ;;  %v8536_v32 = vmul.f32 %v17873_v47, %v20256_v8  ;;  %v20269_v63 = vld [vmem:[#allocation254_spill] sm:$0xff] }
 0x2c8   : > { %v11108_v40 = vcombine.low %v11100_v18, %v11107_v19  ;;  %v11140_v55 = vrot.slane %v11112_v36, %v13875_v7  ;;  %v8537_v21 = vmul.f32 %v17890_v3, %v20257_v23  ;;  %v20259_v20 = vcombine.high %v17873_v47, %v17873_v47  ;;  %v20264_v3 = vld [vmem:[#allocation250_spill] sm:$0xff]  ;;  %v20266_v18 = vld [vmem:[#allocation251_spill] sm:$0xff] }
 0x2c9   : > { %v11126_v13 = vrot.slane %v11110_v48, %v13875_v7  ;;  %v7861_v52 = vcombine.high %v7857_v22, %v7857_v22  ;;  %v8539_v51 = vmul.f32 %v7860_v4, %v20260_v28  ;;  %v8540_v43 = vmul.f32 %v17887_v56, %v20261_v53  ;;  %v20272_v4 = vld [vmem:[#allocation255_spill] sm:$0xff]  ;;  %v20274_v8 = vld [vmem:[#allocation258_spill] sm:$0xff] }
 0x2ca   : > { %v8538_v1 = vmul.f32 %v20259_v20, %v20258_v39  ;;  %13513 = vmatmul.mubr.msk.f32.gmra.mxu1 %vm5655_vm2, %v11108_v40  ;;  %v8541_v49 = vmul.f32 %v7857_v22, %v20262_v57  ;;  %v8542_v15 = vmul.f32 %v7859_v11, %v20263_v37  ;;  %v11142_v25 = vcombine.low %v11133_v14, %v11140_v55  ;;  %v20270_v11 = vld [vmem:[#allocation257_spill] sm:$0xff]  ;;  %v20273_v14 = vld [vmem:[#allocation256_spill] sm:$0xff]  ;;  %v20276_v37 = vld [vmem:[#allocation259_spill] sm:$0xff] }
 0x2cb   : > { %v11141_v35 = vcombine.low %v11119_v5, %v11126_v13  ;;  %v8543_v46 = vmul.f32 %v7861_v52, %v20264_v3  ;;  %v11158_v12 = vcombine.low %v8536_v32, %v8537_v21  ;;  %v20265_v38 = vcombine.high %v17951_v16, %v17951_v16  ;;  %v20271_v5 = vld [vmem:[#allocation252_spill] sm:$0xff] }
 0x2cc   : > { %v11159_v60 = vcombine.low %v8538_v1, %v8539_v51  ;;  %v11160_v47 = vcombine.low %v8540_v43, %v8541_v49  ;;  %v7908_v56 = vcombine.high %v17967_v61, %v17967_v61  ;;  %v11156_v10 = vrot.slane %v11142_v25, %v13875_v7 }
 0x2cd   : > { %v11149_v2 = vrot.slane %v11141_v35, %v13875_v7  ;;  %v7906_v17 = vrot.slane %v20265_v38, %v13875_v7  ;;  %v11161_v29 = vcombine.low %v8542_v15, %v8543_v46  ;;  %v11168_v9 = vrot.slane %v11158_v12, %v13875_v7  ;;  %v20279_v12 = vld [vmem:[#allocation261_spill] sm:$0xff] }
 0x2ce   : > { %v7909_v50 = vcombine.high %v17970_v45, %v17970_v45  ;;  %v11175_v33 = vrot.slane %v11159_v60, %v13875_v7  ;;  %v11182_v27 = vrot.slane %v11160_v47, %v13875_v7  ;;  %v8544_v16 = vmul.f32 %v17970_v45, %v20266_v18  ;;  %v20280_v47 = vld [vmem:[#allocation264_spill] sm:$0xff] }
 0x2cf   : > { %v7910_v58 = vcombine.high %v7906_v17, %v7906_v17  ;;  %v11157_v34 = vcombine.low %v11149_v2, %v11156_v10  ;;  %v11189_v31 = vrot.slane %v11161_v29, %v13875_v7  ;;  %v20268_v48 = vcombine.high %v17954_v62, %v17954_v62  ;;  %v20278_v2 = vld [vmem:[#allocation262_spill] sm:$0xff]  ;;  %v20282_v10 = vld [vmem:[#allocation263_spill] sm:$0xff] }
 0x2d0   : > { %v8546_v42 = vmul.f32 %v7909_v50, %v20269_v63  ;;  %v11190_v22 = vcombine.low %v11168_v9, %v11175_v33  ;;  %v8547_v36 = vmul.f32 %v17967_v61, %v20270_v11  ;;  %v8548_v13 = vmul.f32 %v7906_v17, %v20271_v5  ;;  %v20281_v17 = vld [vmem:[#allocation260_spill] sm:$0xff]  ;;  %v20283_v9 = vld [vmem:[#allocation265_spill] sm:$0xff]  ;;  %v20285_v33 = vld [vmem:[#allocation266_spill] sm:$0xff] }
 0x2d1   : > { %v8545_v19 = vmul.f32 %v20268_v48, %v20267_v26  ;;  %v8549_v40 = vmul.f32 %v7908_v56, %v20272_v4  ;;  %13515 = vmatprep.mubr.msk.f32.mxu1 %vm5655_vm2, %v11157_v34  ;;  %v11191_v45 = vcombine.low %v11182_v27, %v11189_v31  ;;  %v8550_v52 = vmul.f32 %v7910_v58, %v20273_v14  ;;  %v18432_v26 = vpop.f32.mrf.mxu1  ;;  %v20291_v5 = vld [vmem:[#allocation27_spill] sm:$0xff]  ;;  %v20292_v4 = vld [vmem:[#allocation278_spill] sm:$0xff] }
 0x2d2   : > { %v8551_v32 = vmul.f32 %v18075_v41, %v20274_v8  ;;  %v11198_v55 = vrot.slane %v11190_v22, %v13875_v7  ;;  %v11208_v35 = vcombine.low %v8546_v42, %v8547_v36  ;;  %v20275_v61 = vcombine.high %v18072_v6, %v18072_v6  ;;  %v20289_v42 = vld [vmem:[#allocation22_spill] sm:$0xff]  ;;  %v20290_v36 = vld [vmem:[#allocation287_spill] sm:$0xff] }
 0x2d3   : > { %v11207_v62 = vcombine.low %v8544_v16, %v8545_v19  ;;  %v11209_v23 = vcombine.low %v8548_v13, %v8549_v40  ;;  %v11205_v39 = vrot.slane %v11191_v45, %v13875_v7  ;;  %v7957_v28 = vcombine.high %v18086_v24, %v18086_v24  ;;  %v20286_v16 = vld [vmem:[#allocation131_spill] sm:$0xff]  ;;  %v20293_v40 = vld [vmem:[#allocation286_spill] sm:$0xff] }
 0x2d4   : > { %v7955_v21 = vrot.slane %v20275_v61, %v13875_v7  ;;  %v11210_v20 = vcombine.low %v8550_v52, %v8551_v32  ;;  %v11224_v51 = vrot.slane %v11208_v35, %v13875_v7  ;;  %v7958_v43 = vcombine.high %v18089_v59, %v18089_v59  ;;  %v20294_v8 = vld [vmem:[#allocation291_spill] sm:$0xff]  ;;  %v18449_v61 = vpop.f32.mrf.mxu1 }
 0x2d5   : > { %v11217_v1 = vrot.slane %v11207_v62, %v13875_v7  ;;  %v11231_v53 = vrot.slane %v11209_v23, %v13875_v7  ;;  %v11206_v49 = vcombine.low %v11198_v55, %v11205_v39  ;;  %v20277_v15 = vcombine.high %v18075_v41, %v18075_v41 }
 0x2d6   : > { %v7959_v57 = vcombine.high %v7955_v21, %v7955_v21  ;;  %v11238_v6 = vrot.slane %v11210_v20, %v13875_v7  ;;  %v8554_v3 = vmul.f32 %v18086_v24, %v20278_v2  ;;  %v8553_v60 = vmul.f32 %v7958_v43, %v20279_v12  ;;  %v20295_v20 = vld [vmem:[#allocation76_spill] sm:$0xff]  ;;  %v20299_v43 = vld [vmem:[#allocation85_spill] sm:$0xff] }
 0x2d7   : > { %v8552_v25 = vmul.f32 %v20277_v15, %v20276_v37  ;;  %v11239_v46 = vcombine.low %v11217_v1, %v11224_v51  ;;  %v8555_v38 = vmul.f32 %v7955_v21, %v20280_v47  ;;  %v8556_v56 = vmul.f32 %v7957_v28, %v20281_v17  ;;  %13516 = vmatmul.mubr.msk.f32.gmra.mxu1 %vm5655_vm2, %v11206_v49  ;;  %v20296_v1 = vld [vmem:[#allocation81_spill] sm:$0xff]  ;;  %v18468_v47 = vpop.f32.mrf.mxu1 }
 0x2d8   : > { %v11240_v59 = vcombine.low %v11231_v53, %v11238_v6  ;;  %v8557_v29 = vmul.f32 %v7959_v57, %v20282_v10  ;;  %v20284_v41 = vrot.slane %v18188_v44, %v13875_v7  ;;  %v8559_v24 = vmul.f32 %v18208_v54, %v20285_v33  ;;  %v20288_v44 = vld [vmem:[#allocation282_spill] sm:$0xff]  ;;  %v20301_v15 = vld [vmem:[#allocation89_spill] sm:$0xff]  ;;  %v20309_v33 = vld [vmem:[#allocation32_spill] sm:$0xff] }
 0x2d9   : > { %v11247_v27 = vrot.slane %v11239_v46, %v13875_v7  ;;  %v11256_v58 = vcombine.low %v8552_v25, %v8553_v60  ;;  %v11257_v18 = vcombine.low %v8554_v3, %v8555_v38  ;;  %v20287_v34 = vcombine.high %v20056_v30, %v20056_v30  ;;  %v20298_v53 = vld [vmem:[#allocation82_spill] sm:$0xff]  ;;  %v20302_v25 = vld [vmem:[#allocation92_spill] sm:$0xff]  ;;  %v20305_v12 = vld [vmem:[#allocation93_spill] sm:$0xff] }
 0x2da   : > { %v8558_v50 = vmul.f32 %v20284_v41, %v20283_v9  ;;  %v11254_v48 = vrot.slane %v11240_v59, %v13875_v7  ;;  %v11258_v19 = vcombine.low %v8556_v56, %v8557_v29  ;;  %v11447_v22 = vcombine.low %v20289_v42, %v20288_v44  ;;  %v20304_v46 = vld [vmem:[#allocation152_spill] sm:$0xff]  ;;  %v20306_v59 = vld [vmem:[#allocation30_spill] sm:$0xff]  ;;  %v20307_v10 = vld [vmem:[#allocation29_spill] sm:$0xff] }
 0x2db   : > { %v8432_v31 = vmul.f32 %v20287_v34, %v20286_v16  ;;  %v11266_v54 = vrot.slane %v11256_v58, %v13875_v7  ;;  %v11273_v11 = vrot.slane %v11257_v18, %v13875_v7  ;;  %v11448_v13 = vcombine.low %v20291_v5, %v20290_v36  ;;  %v20308_v41 = vld [vmem:[#allocation95_spill] sm:$0xff]  ;;  %v20311_v58 = vld [vmem:[#allocation285_spill] sm:$0xff] }
 0x2dc   : > { %v11259_v63 = vcombine.low %v8558_v50, %v8559_v24  ;;  %v11449_v30 = vcombine.low %v20293_v40, %v20292_v4  ;;  %v11255_v45 = vcombine.low %v11247_v27, %v11254_v48  ;;  %v11280_v14 = vrot.slane %v11258_v19, %v13875_v7  ;;  %v20310_v24 = vld [vmem:[#allocation31_spill] sm:$0xff]  ;;  %v20312_v18 = vld [vmem:[#allocation33_spill] sm:$0xff] }
 0x2dd   : > { %v11450_v32 = vcombine.low %v20294_v8, %v8432_v31  ;;  %v11288_v62 = vcombine.low %v11266_v54, %v11273_v11  ;;  %v11457_v55 = vrot.slane %v11447_v22, %v13875_v7  ;;  %v11464_v35 = vrot.slane %v11448_v13, %v13875_v7  ;;  %v20313_v19 = vld [vmem:[#allocation35_spill] sm:$0xff]  ;;  %v18486_v11 = vpop.f32.mrf.mxu1  ;;  %v20314_v13 = vld [vmem:[#allocation162_spill] sm:$0xff] }
 0x2de   : > { %v11287_v52 = vrot.slane %v11259_v63, %v13875_v7  ;;  %v11471_v23 = vrot.slane %v11449_v30, %v13875_v7  ;;  %13518 = vmatprep.mubr.msk.f32.mxu1 %vm5655_vm2, %v11255_v45  ;;  %v20297_v28 = vcombine.low %v20295_v20, %v20296_v1  ;;  %v20300_v57 = vcombine.low %v20298_v53, %v20299_v43  ;;  %v20315_v4 = vld [vmem:[#allocation143_spill] sm:$0xff]  ;;  %v20316_v30 = vld [vmem:[#allocation37_spill] sm:$0xff]  ;;  %v20317_v45 = vld [vmem:[#allocation36_spill] sm:$0xff] }
 0x2df   : > { %v11478_v39 = vrot.slane %v11450_v32, %v13875_v7  ;;  %v11296_v6 = vrot.slane %v11288_v62, %v13875_v7  ;;  %v11479_v37 = vcombine.low %v11457_v55, %v11464_v35  ;;  %v20303_v2 = vcombine.low %v20301_v15, %v20302_v25  ;;  %v20318_v32 = vld [vmem:[#allocation290_spill] sm:$0xff]  ;;  %v20319_v62 = vld [vmem:[#allocation284_spill] sm:$0xff]  ;;  %v20322_v1 = vld [vmem:[#allocation39_spill] sm:$0xff] }
 0x2e0   : > { %v11289_v21 = vcombine.low %v11280_v14, %v11287_v52  ;;  %v11506_v51 = vrot.slane %v20297_v28, %v13875_v7  ;;  %v11513_v49 = vrot.slane %v20300_v57, %v13875_v7  ;;  %v8450_v60 = vmul.f32 %v20305_v12, %v20304_v46  ;;  %v20320_v35 = vld [vmem:[#allocation38_spill] sm:$0xff]  ;;  %v20323_v53 = vld [vmem:[#allocation148_spill] sm:$0xff]  ;;  %v20325_v15 = vld [vmem:[#allocation41_spill] sm:$0xff] }
 0x2e1   : > { %v11527_v3 = vrot.slane %v20303_v2, %v13875_v7  ;;  %v11480_v17 = vcombine.low %v11471_v23, %v11478_v39  ;;  %v11545_v29 = vcombine.low %v20307_v10, %v20306_v59  ;;  %v11487_v9 = vrot.slane %v11479_v37, %v13875_v7  ;;  %v20321_v23 = vld [vmem:[#allocation295_spill] sm:$0xff]  ;;  %v18498_v39 = vpop.f32.mrf.mxu1  ;;  %v20324_v37 = vld [vmem:[#allocation288_spill] sm:$0xff]  ;;  %v18513_v2 = vld [vmem:[%s18926_s3 + $0x1c] sm:$0xf] }
 0x2e2   : > { %v11303_v38 = vrot.slane %v11289_v21, %v13875_v7  ;;  %v11528_v56 = vcombine.low %v11506_v51, %v11513_v49  ;;  %v11546_v27 = vcombine.low %v20310_v24, %v20309_v33  ;;  %v11547_v16 = vcombine.low %v20312_v18, %v20311_v58  ;;  %v20326_v12 = vld [vmem:[#allocation171_spill] sm:$0xff]  ;;  %v20329_v10 = vld [vmem:[#allocation46_spill] sm:$0xff]  ;;  %v20332_v18 = vld [vmem:[#allocation48_spill] sm:$0xff] }
 0x2e3   : > { %v11529_v50 = vcombine.low %v20308_v41, %v11527_v3  ;;  %v11494_v31 = vrot.slane %v11480_v17, %v13875_v7  ;;  %v11548_v63 = vcombine.low %v20313_v19, %v8450_v60  ;;  %v11555_v42 = vrot.slane %v11545_v29, %v13875_v7  ;;  %v20328_v17 = vld [vmem:[#allocation40_spill] sm:$0xff]  ;;  %v20330_v29 = vld [vmem:[#allocation45_spill] sm:$0xff]  ;;  %v18528_v24 = vpop.f32.mrf.mxu1 }
 0x2e4   : > { %v11304_v34 = vcombine.low %v11296_v6, %v11303_v38  ;;  %v11536_v48 = vrot.slane %v11528_v56, %v13875_v7  ;;  %v11562_v22 = vrot.slane %v11546_v27, %v13875_v7  ;;  %v11569_v54 = vrot.slane %v11547_v16, %v13875_v7  ;;  %v20327_v38 = vld [vmem:[#allocation43_spill] sm:$0xff] }
 0x2e5   : > { %v11543_v44 = vrot.slane %v11529_v50, %v13875_v7  ;;  %v11495_v36 = vcombine.low %v11487_v9, %v11494_v31  ;;  %v11576_v5 = vrot.slane %v11548_v63, %v13875_v7  ;;  %v8459_v40 = vmul.f32 %v20315_v4, %v20314_v13  ;;  %v20331_v50 = vld [vmem:[#allocation293_spill] sm:$0xff]  ;;  %v20334_v63 = vld [vmem:[#allocation299_spill] sm:$0xff]  ;;  %v20337_v4 = vld [vmem:[#allocation44_spill] sm:$0xff] }
 0x2e6   : > { %13519 = vmatmul.mubr.msk.f32.gmra.mxu1 %vm5655_vm2, %v11304_v34  ;;  %v11594_v14 = vcombine.low %v20317_v45, %v20316_v30  ;;  %v11577_v8 = vcombine.low %v11555_v42, %v11562_v22  ;;  %v11595_v55 = vcombine.low %v20319_v62, %v20318_v32  ;;  %v11596_v21 = vcombine.low %v20321_v23, %v20320_v35  ;;  %v18539_v22 = vpop.f32.mrf.mxu1  ;;  %v20336_v13 = vld [vmem:[#allocation47_spill] sm:$0xff]  ;;  %v20338_v30 = vld [vmem:[#allocation292_spill] sm:$0xff]  ;;  %v20339_v45 = vld [vmem:[#allocation49_spill] sm:$0xff] }
 0x2e7   : > { %v11544_v52 = vcombine.low %v11536_v48, %v11543_v44  ;;  %13523 = vmatprep.mubr.msk.f32.mxu1 %vm5655_vm2, %v11495_v36  ;;  %v11578_v20 = vcombine.low %v11569_v54, %v11576_v5  ;;  %v11597_v28 = vcombine.low %v20322_v1, %v8459_v40  ;;  %v7358_v43 = vcombine.high %v20323_v53, %v20323_v53  ;;  %v20333_v48 = vld [vmem:[#allocation179_spill] sm:$0xff]  ;;  %v20335_v44 = vld [vmem:[#allocation289_spill] sm:$0xff] }
 0x2e8   : > { %v11604_v51 = vrot.slane %v11594_v14, %v13875_v7  ;;  %v11585_v57 = vrot.slane %v11577_v8, %v13875_v7  ;;  %v11611_v49 = vrot.slane %v11595_v55, %v13875_v7  ;;  %v11618_v6 = vrot.slane %v11596_v21, %v13875_v7  ;;  %v20341_v62 = vld [vmem:[#allocation185_spill] sm:$0xff] }
 0x2e9   : > { %v11643_v25 = vcombine.low %v20325_v15, %v20324_v37  ;;  %v11592_v3 = vrot.slane %v11578_v20, %v13875_v7  ;;  %v11625_v46 = vrot.slane %v11597_v28, %v13875_v7  ;;  %v8468_v60 = vmul.f32 %v7358_v43, %v20326_v12  ;;  %v20342_v55 = vld [vmem:[#allocation109_spill] sm:$0xff]  ;;  %v20344_v43 = vld [vmem:[#allocation51_spill] sm:$0xff]  ;;  %v18560_v15 = vpop.f32.mrf.mxu1  ;;  %v20348_v12 = vld [vmem:[#allocation294_spill] sm:$0xff] }
 0x2ea   : > { %13524 = vmatmul.mubr.msk.f32.vlgmr.msra.gmra.mxu1 %vm5655_vm2, %v11544_v52  ;;  %v11644_v56 = vcombine.low %v20328_v17, %v20327_v38  ;;  %v11626_v59 = vcombine.low %v11604_v51, %v11611_v49  ;;  %v11645_v9 = vcombine.low %v20330_v29, %v20329_v10  ;;  %v7409_v33 = vcombine.high %v20331_v50, %v20331_v50  ;;  %v20340_v52 = vld [vmem:[#allocation50_spill] sm:$0xff]  ;;  %v20343_v53 = vld [vmem:[#allocation53_spill] sm:$0xff]  ;;  %v20345_v49 = vld [vmem:[#allocation55_spill] sm:$0xff] }
 0x2eb   : > { %13536 = vmatpush3.msk.msra.mxu1 %vm5738_vm0, %v18289_v0  ;;  %v11653_v41 = vrot.slane %v11643_v25, %v13875_v7  ;;  %v11593_v27 = vcombine.low %v11585_v57, %v11592_v3  ;;  %v11627_v58 = vcombine.low %v11618_v6, %v11625_v46  ;;  %v11646_v16 = vcombine.low %v20332_v18, %v8468_v60  ;;  %v20346_v6 = vld [vmem:[#allocation54_spill] sm:$0xff]  ;;  %v20347_v46 = vld [vmem:[#allocation300_spill] sm:$0xff]  ;;  %v20349_v38 = vld [vmem:[#allocation301_spill] sm:$0xff] }
 0x2ec   : > { %v11660_v34 = vrot.slane %v11644_v56, %v13875_v7  ;;  %13549 = vmatprep.subr.msk.mxu1 %vm5738_vm0, %v18513_v2  ;;  %v11634_v0 = vrot.slane %v11626_v59, %v13875_v7  ;;  %v11667_v31 = vrot.slane %v11645_v9, %v13875_v7  ;;  %v8477_v19 = vmul.f32 %v7409_v33, %v20333_v48  ;;  %v20350_v29 = vld [vmem:[#allocation197_spill] sm:$0xff] }
 0x2ed   : > { %v11692_v42 = vcombine.low %v20335_v44, %v20334_v63  ;;  %13526 = vmatprep.mubr.msk.f32.mxu1 %vm5655_vm2, %v11593_v27  ;;  %v11641_v54 = vrot.slane %v11627_v58, %v13875_v7  ;;  %v11674_v36 = vrot.slane %v11646_v16, %v13875_v7  ;;  %v11693_v40 = vcombine.low %v20337_v4, %v20336_v13  ;;  %v20351_v9 = vld [vmem:[#allocation117_spill] sm:$0xff]  ;;  %v18579_v44 = vpop.f32.mrf.mxu1  ;;  %v20358_v13 = vld [vmem:[#allocation62_spill] sm:$0xff] }
 0x2ee   : > { %v11675_v5 = vcombine.low %v11653_v41, %v11660_v34  ;;  %v11694_v14 = vcombine.low %v20339_v45, %v20338_v30  ;;  %v11695_v8 = vcombine.low %v20340_v52, %v8477_v19  ;;  %v8486_v35 = vmul.f32 %v20342_v55, %v20341_v62  ;;  %v20352_v34 = vld [vmem:[#allocation58_spill] sm:$0xff]  ;;  %v20354_v48 = vld [vmem:[#allocation57_spill] sm:$0xff]  ;;  %v20355_v19 = vld [vmem:[#allocation296_spill] sm:$0xff] }
 0x2ef   : > { %v11702_v32 = vrot.slane %v11692_v42, %v13875_v7  ;;  %v11642_v23 = vcombine.low %v11634_v0, %v11641_v54  ;;  %v11676_v21 = vcombine.low %v11667_v31, %v11674_v36  ;;  %v11709_v1 = vrot.slane %v11693_v40, %v13875_v7  ;;  %v20353_v0 = vld [vmem:[#allocation56_spill] sm:$0xff]  ;;  %v20357_v36 = vld [vmem:[#allocation61_spill] sm:$0xff]  ;;  %v20359_v40 = vld [vmem:[#allocation302_spill] sm:$0xff] }
 0x2f0   : > { %v11683_v20 = vrot.slane %v11675_v5, %v13875_v7  ;;  %v11716_v28 = vrot.slane %v11694_v14, %v13875_v7  ;;  %v11723_v51 = vrot.slane %v11695_v8, %v13875_v7  ;;  %v11741_v57 = vcombine.low %v20344_v43, %v20343_v53  ;;  %v20356_v54 = vld [vmem:[#allocation60_spill] sm:$0xff]  ;;  %v20364_v53 = vld [vmem:[#allocation305_spill] sm:$0xff] }
 0x2f1   : > { %v11742_v37 = vcombine.low %v20346_v6, %v20345_v49  ;;  %13527 = vmatmul.mubr.msk.f32.gmra.mxu1 %vm5655_vm2, %v11642_v23  ;;  %v11690_v25 = vrot.slane %v11676_v21, %v13875_v7  ;;  %v11724_v3 = vcombine.low %v11702_v32, %v11709_v1  ;;  %v11743_v60 = vcombine.low %v20348_v12, %v20347_v46  ;;  %v20361_v23 = vld [vmem:[#allocation304_spill] sm:$0xff]  ;;  %v18604_v49 = vpop.f32.mrf.mxu1  ;;  %v20365_v6 = vld [vmem:[#allocation303_spill] sm:$0xff] }
 0x2f2   : > { %v11744_v17 = vcombine.low %v20349_v38, %v8486_v35  ;;  %v11725_v56 = vcombine.low %v11716_v28, %v11723_v51  ;;  %v11751_v59 = vrot.slane %v11741_v57, %v13875_v7  ;;  %v8495_v41 = vmul.f32 %v20351_v9, %v20350_v29  ;;  %v20369_v9 = vld [vmem:[#allocation72_spill] sm:$0xff] }
 0x2f3   : > { %v11758_v10 = vrot.slane %v11742_v37, %v13875_v7  ;;  %v11691_v50 = vcombine.low %v11683_v20, %v11690_v25  ;;  %v11732_v33 = vrot.slane %v11724_v3, %v13875_v7  ;;  %v11765_v27 = vrot.slane %v11743_v60, %v13875_v7  ;;  %v20362_v20 = vld [vmem:[#allocation74_spill] sm:$0xff]  ;;  %v20366_v60 = vld [vmem:[#allocation71_spill] sm:$0xff] }
 0x2f4   : > { %v11772_v58 = vrot.slane %v11744_v17, %v13875_v7  ;;  %v11739_v18 = vrot.slane %v11725_v56, %v13875_v7  ;;  %v11790_v31 = vcombine.low %v20353_v0, %v20352_v34  ;;  %v11791_v63 = vcombine.low %v20355_v19, %v20354_v48  ;;  %v20367_v56 = vld [vmem:[#allocation69_spill] sm:$0xff]  ;;  %v20372_v0 = vld [vmem:[#allocation66_spill] sm:$0xff] }
 0x2f5   : > { %v11773_v16 = vcombine.low %v11751_v59, %v11758_v10  ;;  %13529 = vmatprep.mubr.msk.f32.mxu1 %vm5655_vm2, %v11691_v50  ;;  %v11792_v5 = vcombine.low %v20357_v36, %v20356_v54  ;;  %v11793_v4 = vcombine.low %v20358_v13, %v8495_v41  ;;  %v20360_v30 = vcombine.high %v20359_v40, %v20359_v40  ;;  %v20368_v10 = vld [vmem:[#allocation70_spill] sm:$0xff] }
 0x2f6   : > { %v11774_v42 = vcombine.low %v11765_v27, %v11772_v58  ;;  %v11740_v14 = vcombine.low %v11732_v33, %v11739_v18  ;;  %v11800_v8 = vrot.slane %v11790_v31, %v13875_v7  ;;  %v11807_v32 = vrot.slane %v11791_v63, %v13875_v7  ;;  %v20370_v33 = vld [vmem:[#allocation67_spill] sm:$0xff]  ;;  %v18629_v58 = vpop.f32.mrf.mxu1  ;;  %v20373_v63 = vld [vmem:[#allocation65_spill] sm:$0xff] }
 0x2f7   : > { %v6576_v45 = vrot.slane %v20360_v30, %v13875_v7  ;;  %v11781_v52 = vrot.slane %v11773_v16, %v13875_v7  ;;  %v11814_v55 = vrot.slane %v11792_v5, %v13875_v7  ;;  %v11821_v35 = vrot.slane %v11793_v4, %v13875_v7  ;;  %v20371_v16 = vld [vmem:[#allocation68_spill] sm:$0xff]  ;;  %v20374_v5 = vld [vmem:[#allocation111_spill] sm:$0xff] }
 0x2f8   : > { %v11788_v62 = vrot.slane %v11774_v42, %v13875_v7  ;;  %v6578_v21 = vcombine.high %v20361_v23, %v20361_v23  ;;  %v20363_v1 = vcombine.high %v20362_v20, %v20362_v20  ;;  %13530 = vmatmul.mubr.msk.f32.gmra.mxu1 %vm5655_vm2, %v11740_v14  ;;  %v11822_v51 = vcombine.low %v11800_v8, %v11807_v32  ;;  %v9694_v13 = vpop.f32.mrf.mxu1  ;;  %v13128_v14 = vld [vmem:[%s18926_s3 + $0x20] sm:$0xf] }
 0x2f9   : > { %v6579_v43 = vcombine.high %v20364_v53, %v20364_v53  ;;  %v6580_v57 = vcombine.high %v6576_v45, %v6576_v45  ;;  %v6577_v37 = vcombine.high %v20365_v6, %v20365_v6  ;;  %v11823_v3 = vcombine.low %v11814_v55, %v11821_v35  ;;  %v20375_v8 = vld [vmem:[#allocation114_spill] sm:$0xff]  ;;  %v20376_v55 = vld [vmem:[#allocation116_spill] sm:$0xff] }
 0x2fa   : > { %v7032_v28 = vrot.slane %v20363_v1, %v13875_v7  ;;  %v11789_v25 = vcombine.low %v11781_v52, %v11788_v62  ;;  %v7025_v46 = vrot.slane %v20362_v20, %v13875_v7  ;;  %v11830_v12 = vrot.slane %v11822_v51, %v13875_v7  ;;  %v13475_v35 = vpop.f32.mrf.mxu1 }
 0x2fb   : > { %v18612_v38 = vmul.f32 %v6579_v43, %v20366_v60  ;;  %v11837_v17 = vrot.slane %v11823_v3, %v13875_v7  ;;  %v18617_v59 = vmul.f32 %v6576_v45, %v20367_v56  ;;  %v18620_v29 = vmul.f32 %v6578_v21, %v20368_v10  ;;  %v20381_v10 = vld [vmem:[#allocation281_spill] sm:$0xff] }
 0x2fc   : > { %13532 = vmatprep.mubr.msk.f32.mxu1 %vm5655_vm2, %v11789_v25  ;;  %v18623_v41 = vmul.f32 %v6580_v57, %v20369_v9  ;;  %v7034_v50 = vcombine.high %v7032_v28, %v7032_v28  ;;  %v18627_v27 = vmul.f32 %v20364_v53, %v20370_v33  ;;  %v18632_v34 = vmul.f32 %v6577_v37, %v20371_v16  ;;  %v9704_v51 = vpop.f32.mrf.mxu1  ;;  %v20377_v53 = vld [vmem:[#allocation8_spill] sm:$0xff]  ;;  %v20383_v33 = vld [vmem:[#allocation127_spill] sm:$0xff] }
 0x2fd   : > { %v11838_v18 = vcombine.low %v11830_v12, %v11837_v17  ;;  %v18636_v31 = vmul.f32 %v20361_v23, %v20372_v0  ;;  %v7033_v19 = vcombine.high %v7025_v46, %v7025_v46  ;;  %v8343_v42 = vmul.f32 %v20365_v6, %v20373_v63  ;;  %v20380_v17 = vld [vmem:[#allocation126_spill] sm:$0xff]  ;;  %v20385_v16 = vld [vmem:[#allocation308_spill] sm:$0xff] }
 0x2fe   : > { %v11984_v48 = vcombine.low %v18620_v29, %v18623_v41  ;;  %v11982_v54 = vcombine.low %v18632_v34, %v18612_v38  ;;  %v7062_v30 = vrot.slane %v7034_v50, %v13875_v7  ;;  %v7048_v52 = vrot.slane %v7032_v28, %v13875_v7 }
 0x2ff   : > { %13533 = vmatmul.mubr.msk.f32.gmra.mxu1 %vm5655_vm2, %v11838_v18  ;;  %v11983_v36 = vcombine.low %v18636_v31, %v18617_v59  ;;  %v11981_v4 = vcombine.low %v8343_v42, %v18627_v27  ;;  %v7055_v45 = vrot.slane %v7033_v19, %v13875_v7  ;;  %v7041_v23 = vrot.slane %v7025_v46, %v13875_v7  ;;  %v20379_v46 = vld [vmem:[#allocation128_spill] sm:$0xff]  ;;  %v20384_v18 = vld [vmem:[#allocation130_spill] sm:$0xff]  ;;  %v20387_v19 = vld [vmem:[#allocation123_spill] sm:$0xff] }
 0x300   : > { %13537 = vmatprep.mubr.msk.f32.mxu1 %vm5655_vm2, %v20374_v5  ;;  %v12012_v40 = vrot.slane %v11984_v48, %v13875_v7  ;;  %v11998_v32 = vrot.slane %v11982_v54, %v13875_v7  ;;  %v7066_v1 = vcombine.high %v7062_v30, %v7062_v30  ;;  %v7064_v57 = vcombine.high %v7048_v52, %v7048_v52  ;;  %v20386_v48 = vld [vmem:[#allocation273_spill] sm:$0xff] }
 0x301   : > { %v12005_v62 = vrot.slane %v11983_v36, %v13875_v7  ;;  %v11991_v21 = vrot.slane %v11981_v4, %v13875_v7  ;;  %v7065_v28 = vcombine.high %v7055_v45, %v7055_v45  ;;  %v18673_v6 = vadd.f32 %v9694_v13, %v18486_v11  ;;  %v20382_v11 = vld [vmem:[#allocation124_spill] sm:$0xff]  ;;  %v20388_v42 = vld [vmem:[#allocation125_spill] sm:$0xff] }
 0x302   : > { %v18676_v37 = vadd.f32 %v13475_v35, %v18498_v39  ;;  %v7063_v25 = vcombine.high %v7041_v23, %v7041_v23  ;;  %v8422_v12 = vmul.f32 %v7066_v1, %v20379_v46  ;;  %v18681_v60 = vadd.f32 %v9704_v51, %v18528_v24  ;;  %v20389_v36 = vld [vmem:[#allocation129_spill] sm:$0xff]  ;;  %v20391_v23 = vld [vmem:[#allocation75_spill] sm:$0xff] }
 0x303   : > { %13538 = vmatmul.mubr.msk.f32.vlgmr.msra.gmra.mxu1 %vm5655_vm2, %v20375_v8  ;;  %v12014_v20 = vcombine.low %v12005_v62, %v12012_v40  ;;  %v12013_v43 = vcombine.low %v11991_v21, %v11998_v32  ;;  %v8418_v56 = vmul.f32 %v7065_v28, %v20380_v17  ;;  %v8420_v50 = vmul.f32 %v7062_v30, %v20382_v11  ;;  %v20390_v32 = vld [vmem:[#allocation77_spill] sm:$0xff]  ;;  %v20392_v1 = vld [vmem:[#allocation91_spill] sm:$0xff]  ;;  %v20395_v17 = vld [vmem:[#allocation98_spill] sm:$0xff] }
 0x304   : > { %13550 = vmatpush3.msk.msra.mxu1 %vm5738_vm0, %v18513_v2  ;;  %13540 = vmatprep.mubr.msk.f32.mxu1 %vm5655_vm2, %v20376_v55  ;;  %v20378_v2 = vld [vmem:[#allocation15_spill] sm:$0xff]  ;;  %v8421_v39 = vmul.f32 %v7064_v57, %v20383_v33  ;;  %v8423_v0 = vmul.f32 %v20385_v16, %v20384_v18  ;;  %v8416_v24 = vmul.f32 %v7055_v45, %v20387_v19  ;;  %v12495_v45 = vld [vmem:[%s18927_s4] sm:$0xf]  ;;  %v20398_v33 = vld [vmem:[#allocation104_spill] sm:$0xff] }
 0x305   : > { %13563 = vmatprep.subr.msk.mxu1 %vm5738_vm0, %v13128_v14  ;;  %v12028_v3 = vrot.slane %v12014_v20, %v13875_v7  ;;  %v12021_v9 = vrot.slane %v12013_v43, %v13875_v7  ;;  %v8417_v54 = vmul.f32 %v7063_v25, %v20388_v42  ;;  %v8419_v13 = vmul.f32 %v7048_v52, %v20389_v36  ;;  %v20397_v11 = vld [vmem:[#allocation306_spill] sm:$0xff]  ;;  %v20400_v42 = vld [vmem:[#allocation23_spill] sm:$0xff]  ;;  %v20401_v36 = vld [vmem:[#allocation20_spill] sm:$0xff] }
 0x306   : > { %v12161_v4 = vcombine.low %v8422_v12, %v8423_v0  ;;  %v12160_v30 = vcombine.low %v8420_v50, %v8421_v39  ;;  %v13478_v20 = vpop.f32.mrf.mxu1  ;;  %v20394_v12 = vld [vmem:[#allocation141_spill] sm:$0xff]  ;;  %v9685_v39 = vadd.f32 %v18604_v49, %v18449_v61  ;;  %v12329_v19 = vcombine.low %v18612_v38, %v18636_v31 }
 0x307   : > { %13541 = vmatmul.mubr.msk.f32.gmra.mxu1 %vm5655_vm2, %v20377_v53  ;;  %v12029_v63 = vcombine.low %v12021_v9, %v12028_v3  ;;  %v12159_v40 = vcombine.low %v8418_v56, %v8419_v13  ;;  %v12158_v62 = vcombine.low %v8416_v24, %v8417_v54  ;;  %v9720_v28 = vadd.f32 %v13478_v20, %v18539_v22  ;;  %v20393_v3 = vld [vmem:[#allocation144_spill] sm:$0xff]  ;;  %v20396_v9 = vld [vmem:[#allocation73_spill] sm:$0xff] }
 0x308   : > { %13543 = vmatprep.mubr.msk.f32.mxu1 %vm5655_vm2, %v20378_v2  ;;  %v12189_v35 = vrot.slane %v12161_v4, %v13875_v7  ;;  %v12182_v21 = vrot.slane %v12160_v30, %v13875_v7  ;;  %v9714_v57 = vpop.f32.mrf.mxu1  ;;  %v9690_v22 = vadd.f32 %v18579_v44, %v18432_v26  ;;  %v12330_v24 = vcombine.low %v18617_v59, %v18620_v29  ;;  %v20402_v29 = vld [vmem:[#allocation24_spill] sm:$0xff]  ;;  %v20403_v31 = vld [vmem:[#allocation25_spill] sm:$0xff] }
 0x309   : > { %v12175_v52 = vrot.slane %v12159_v40, %v13875_v7  ;;  %v12168_v51 = vrot.slane %v12158_v62, %v13875_v7  ;;  %v9715_v25 = vadd.f32 %v9714_v57, %v18560_v15  ;;  %v8351_v15 = vmul.f32 %v20397_v11, %v20396_v9  ;;  %v12605_v57 = vld [vmem:[%s18928_s5 + $0x8] sm:$0xff]  ;;  %v12793_v11 = vld [vmem:[%s18929_s6 + $0x78] sm:$0xff] }
 0x30a   : > { %v12191_v43 = vcombine.low %v12182_v21, %v12189_v35  ;;  %v12328_v61 = vcombine.low %v18627_v27, %v18632_v34  ;;  %v12352_v54 = vrot.slane %v12330_v24, %v13875_v7  ;;  %v9700_v34 = vadd.f32 %v18629_v58, %v18468_v47  ;;  %v20406_v47 = vld [vmem:[#allocation108_spill] sm:$0xff]  ;;  %13611 = vmatprep.subr.mxu0 %v12793_v11  ;;  %v12783_v24 = vld [vmem:[%s18929_s6 + $0x28] sm:$0xff] }
 0x30b   : > { %13544 = vmatmul.mubr.msk.f32.gmra.mxu1 %vm5655_vm2, %v20381_v10  ;;  %v12190_v46 = vcombine.low %v12168_v51, %v12175_v52  ;;  %v12331_v0 = vcombine.low %v18623_v41, %v8351_v15  ;;  %v12345_v41 = vrot.slane %v12329_v19, %v13875_v7  ;;  %v12792_v15 = vld [vmem:[%s18929_s6 + $0x70] sm:$0xff]  ;;  %13612 = vmatpush3.msra.mxu0 %v12793_v11 }
 0x30c   : > { %13546 = vmatprep.mubr.msk.f32.mxu1 %vm5655_vm2, %v20386_v48  ;;  %v12338_v38 = vrot.slane %v12328_v61, %v13875_v7  ;;  %13613 = vmatprep.subr.mxu0 %v12792_v15 }
 0x30d   : > { %v12198_v56 = vrot.slane %v12190_v46, %v13875_v7  ;;  %v12359_v49 = vrot.slane %v12331_v0, %v13875_v7  ;;  %13614 = vmatpush3.msra.mxu0 %v12792_v15  ;;  %v12786_v0 = vld [vmem:[%s18929_s6 + $0x40] sm:$0xff] }
 0x30e   : > { %v12360_v27 = vcombine.low %v12338_v38, %v12345_v41  ;;  %v12780_v41 = vld [vmem:[%s18929_s6 + $0x10] sm:$0xff] }
 0x30f   : > { %13547 = vmatmul.mubr.msk.f32.gmra.mxu1 %vm5655_vm2, %v12029_v63  ;;  %v20399_v63 = vld [vmem:[#allocation280_spill] sm:$0xff]  ;;  %v12361_v59 = vcombine.low %v12352_v54, %v12359_v49  ;;  %v12781_v49 = vld [vmem:[%s18929_s6 + $0x18] sm:$0xff] }
 0x310   : > { %13551 = vmatprep.mubr.msk.f32.mxu1 %vm5655_vm2, %v20390_v32  ;;  %v13483_v50 = vpop.f32.mrf.mxu1  ;;  %v20404_v32 = vld [vmem:[#allocation26_spill] sm:$0xff]  ;;  %v12368_v62 = vrot.slane %v12360_v27, %v13875_v7 }
 0x311   : > { %v10250_v18 = vadd.f32 %v13483_v50, %v9690_v22  ;;  %v12375_v4 = vrot.slane %v12361_v59, %v13875_v7  ;;  %v12791_v50 = vld [vmem:[%s18929_s6 + $0x68] sm:$0xff] }
 0x312   : > { %v10210_v26 = vpop.f32.mrf.mxu1  ;;  %13615 = vmatprep.subr.mxu0 %v12791_v50 }
 0x313   : > { %13552 = vmatmul.mubr.msk.f32.vlgmr.msra.gmra.mxu1 %vm5655_vm2, %v20391_v23  ;;  %v10249_v44 = vadd.f32 %v10210_v26, %v9685_v39  ;;  %v12376_v23 = vcombine.low %v12368_v62, %v12375_v4  ;;  %13616 = vmatpush3.msra.mxu0 %v12791_v50  ;;  %v12789_v39 = vld [vmem:[%s18929_s6 + $0x58] sm:$0xff] }
 0x314   : > { %13564 = vmatpush3.msk.msra.mxu1 %vm5738_vm0, %v13128_v14  ;;  %13554 = vmatprep.mubr.msk.f32.mxu1 %vm5655_vm2, %v20392_v1  ;;  %v12205_v14 = vrot.slane %v12191_v43, %v13875_v7  ;;  %v12785_v26 = vld [vmem:[%s18929_s6 + $0x38] sm:$0xff] }
 0x315   : > { %13577 = vmatprep.subr.msk.mxu1 %vm5738_vm0, %v12495_v45 }
 0x316   : > { %v12206_v16 = vcombine.low %v12198_v56, %v12205_v14 }
 0x317   : > { %13555 = vmatmul.mubr.msk.f32.gmra.mxu1 %vm5655_vm2, %v20393_v3 }
 0x318   : > { %13557 = vmatprep.mubr.msk.f32.mxu1 %vm5655_vm2, %v20394_v12 }
 0x31a   : > { %v13486_v13 = vpop.f32.mrf.mxu1 }
 0x31b   : > { %13558 = vmatmul.mubr.msk.f32.gmra.mxu1 %vm5655_vm2, %v20395_v17  ;;  %v10252_v40 = vadd.f32 %v13486_v13, %v9700_v34 }
 0x31c   : > { %13560 = vmatprep.mubr.msk.f32.mxu1 %vm5655_vm2, %v20398_v33  ;;  %v10220_v30 = vpop.f32.mrf.mxu1  ;;  %v12790_v33 = vld [vmem:[%s18929_s6 + $0x60] sm:$0xff] }
 0x31d   : > { %v10251_v35 = vadd.f32 %v10220_v30, %v18673_v6  ;;  %13617 = vmatprep.subr.mxu0 %v12790_v33 }
 0x31e   : > { %13618 = vmatpush3.msra.mxu0 %v12790_v33 }
 0x31f   : > { %13561 = vmatmul.mubr.msk.f32.gmra.mxu1 %vm5655_vm2, %v12206_v16  ;;  %13619 = vmatprep.subr.mxu0 %v12789_v39  ;;  %v12787_v16 = vld [vmem:[%s18929_s6 + $0x48] sm:$0xff] }
 0x320   : > { %13565 = vmatprep.mubr.msk.f32.mxu1 %vm5655_vm2, %v20399_v63  ;;  %13620 = vmatpush3.msra.mxu0 %v12789_v39  ;;  %v12782_v63 = vld [vmem:[%s18929_s6 + $0x20] sm:$0xff] }
 0x323   : > { %13566 = vmatmul.mubr.msk.f32.vlgmr.msra.gmra.mxu1 %vm5655_vm2, %v20400_v42 }
 0x324   : > { %13568 = vmatprep.mubr.msk.f32.mxu1 %vm5655_vm2, %v20401_v36  ;;  %13578 = vmatpush3.msk.msra.mxu1 %vm5738_vm0, %v12495_v45  ;;  %v20405_v45 = vld [vmem:[#allocation28_spill] sm:$0xff] }
 0x326   : > { %v13489_v58 = vpop.f32.mrf.mxu1 }
 0x327   : > { %13569 = vmatmul.mubr.msk.f32.gmra.mxu1 %vm5655_vm2, %v20402_v29  ;;  %v10254_v52 = vadd.f32 %v13489_v58, %v18676_v37 }
 0x328   : > { %13571 = vmatprep.mubr.msk.f32.mxu1 %vm5655_vm2, %v20403_v31  ;;  %v10230_v21 = vpop.f32.mrf.mxu1 }
 0x329   : > { %v10253_v6 = vadd.f32 %v10230_v21, %v18681_v60 }
 0x32b   : > { %13572 = vmatmul.mubr.msk.f32.gmra.mxu1 %vm5655_vm2, %v20404_v32 }
 0x32c   : > { %13574 = vmatprep.mubr.msk.f32.mxu1 %vm5655_vm2, %v20405_v45 }
 0x32f   : > { %13575 = vmatmul.mubr.msk.f32.gmra.mxu1 %vm5655_vm2, %v12376_v23  ;;  %v13492_v20 = vpop.f32.mrf.mxu1 }
 0x330   : > { %13579 = vmatprep.mubr.msk.f32.mxu1 %vm5655_vm2, %v20406_v47 }
 0x333   : > { %13580 = vmatmul.mubr.msk.f32.vlgmr.msra.gmra.mxu1 %vm5655_vm2, %v20374_v5  ;;  %v10256_v5 = vadd.f32 %v13492_v20, %v9720_v28 }
 0x334   : > { %13582 = vmatprep.mubr.msk.f32.mxu1 %vm5655_vm2, %v20375_v8  ;;  %v10240_v8 = vpop.f32.mrf.mxu1 }
 0x335   : > { %v10255_v1 = vadd.f32 %v10240_v8, %v9715_v25  ;;  %v12604_v25 = vld [vmem:[%s18928_s5] sm:$0xff] }
 0x337   : > { %13583 = vmatmul.mubr.msk.f32.gmra.mxu1 %vm5655_vm2, %v20376_v55 }
 0x338   : > { %13585 = vmatprep.mubr.msk.f32.mxu1 %vm5655_vm2, %v20377_v53  ;;  %v12607_v53 = vld [vmem:[%s18928_s5 + $0x18] sm:$0xff] }
 0x339   : > { %13591 = vmatprep.subr.mxu1 %v12607_v53 }
 0x33a   : > { %13592 = vmatpush3.msra.mxu1 %v12607_v53 }
 0x33b   : > { %13586 = vmatmul.mubr.msk.f32.gmra.mxu1 %vm5655_vm2, %v20378_v2 }
 0x33c   : > { %13588 = vmatprep.mubr.msk.f32.mxu1 %vm5655_vm2, %v20381_v10 }
 0x33d   : > { %v13497_v37 = vpop.f32.mrf.mxu1 }
 0x33e   : > { %v18781_v60 = vadd.f32 %v13497_v37, %v10250_v18  ;;  %v12788_v18 = vld [vmem:[%s18929_s6 + $0x50] sm:$0xff] }
 0x33f   : > { %13589 = vmatmul.mubr.msk.f32.gmra.mxu1 %vm5655_vm2, %v20386_v48  ;;  %v10800_v55 = vpop.f32.mrf.mxu1  ;;  %v12606_v48 = vld [vmem:[%s18928_s5 + $0x10] sm:$0xff]  ;;  %13621 = vmatprep.subr.mxu0 %v12788_v18 }
 0x340   : > { %v18783_v51 = vadd.f32 %v10800_v55, %v10249_v44  ;;  %13593 = vmatprep.subr.mxu1 %v12606_v48  ;;  %13622 = vmatpush3.msra.mxu0 %v12788_v18  ;;  %v12784_v44 = vld [vmem:[%s18929_s6 + $0x30] sm:$0xff] }
 0x341   : > { %13594 = vmatpush3.msra.mxu1 %v12606_v48  ;;  %13623 = vmatprep.subr.mxu0 %v12787_v16 }
 0x342   : > { %13595 = vmatprep.subr.mxu1 %v12605_v57  ;;  %13624 = vmatpush3.msra.mxu0 %v12787_v16 }
 0x343   : > { %13596 = vmatpush3.msra.mxu1 %v12605_v57  ;;  %13625 = vmatprep.subr.mxu0 %v12786_v0 }
 0x344   : > { %13597 = vmatprep.subr.mxu1 %v12604_v25  ;;  %13626 = vmatpush3.msra.mxu0 %v12786_v0 }
 0x345   : > { %13598 = vmatpush3.msra.mxu1 %v12604_v25  ;;  %13627 = vmatprep.subr.mxu0 %v12785_v26 }
 0x346   : > { %13628 = vmatpush3.msra.mxu0 %v12785_v26 }
 0x347   : > { %13629 = vmatprep.subr.mxu0 %v12784_v44 }
 0x348   : > { %13630 = vmatpush3.msra.mxu0 %v12784_v44 }
 0x349   : > { %13631 = vmatprep.subr.mxu0 %v12783_v24 }
 0x34a   : > { %13632 = vmatpush3.msra.mxu0 %v12783_v24 }
 0x34b   : > { %13633 = vmatprep.subr.mxu0 %v12782_v63 }
 0x34c   : > { %13634 = vmatpush3.msra.mxu0 %v12782_v63 }
 0x34d   : > { %13635 = vmatprep.subr.mxu0 %v12781_v49 }
 0x34e   : > { %13636 = vmatpush3.msra.mxu0 %v12781_v49 }
 0x34f   : > { %13637 = vmatprep.subr.mxu0 %v12780_v41 }
 0x350   : > { %v13500_v2 = vpop.f32.mrf.mxu1  ;;  %13638 = vmatpush3.msra.mxu0 %v12780_v41 }
 0x351   : > { %v18788_v10 = vadd.f32 %v13500_v2, %v10252_v40 }
 0x352   : > { %v10810_v28 = vpop.f32.mrf.mxu1 }
 0x353   : > { %v18793_v43 = vadd.f32 %v10810_v28, %v10251_v35 }
 0x35f   : > { %v13503_v3 = vpop.f32.mrf.mxu1 }
 0x360   : > { %v18801_v46 = vadd.f32 %v13503_v3, %v10254_v52 }
 0x361   : > { %v10820_v12 = vpop.f32.mrf.mxu1 }
 0x362   : > { %v18803_v14 = vadd.f32 %v10820_v12, %v10253_v6 }
 0x372   : > { %v13506_v22 = vpop.f32.mrf.mxu1 }
 0x373   : > { %v18805_v17 = vadd.f32 %v13506_v22, %v10256_v5 }
 0x374   : > { %v10830_v56 = vpop.f32.mrf.mxu1 }
 0x375   : > { %v18807_v9 = vadd.f32 %v10830_v56, %v10255_v1 }
 0x37b   : > { %v13511_v19 = vpop.f32.mrf.mxu1 }
 0x37c   : > { %v11430_v53 = vadd.f32 %v13511_v19, %v18781_v60 }
 0x37d   : > { %v11390_v61 = vpop.f32.mrf.mxu1 }
 0x37e   : > { %v11429_v55 = vadd.f32 %v11390_v61, %v18783_v51 }
 0x38a   : > { %v13514_v42 = vpop.f32.mrf.mxu1 }
 0x38b   : > { %v11432_v12 = vadd.f32 %v13514_v42, %v18788_v10 }
 0x38c   : > { %v11400_v54 = vpop.f32.mrf.mxu1 }
 0x38d   : > { %v11431_v25 = vadd.f32 %v11400_v54, %v18793_v43 }
 0x397   : > { %v13517_v36 = vpop.f32.mrf.mxu1 }
 0x398   : > { %v11434_v16 = vadd.f32 %v13517_v36, %v18801_v46 }
 0x399   : > { %v11410_v38 = vpop.f32.mrf.mxu1 }
 0x39a   : > { %v11433_v51 = vadd.f32 %v11410_v38, %v18803_v14 }
 0x3a6   : > { %v13520_v59 = vpop.f32.mrf.mxu1 }
 0x3a7   : > { %v11436_v42 = vadd.f32 %v13520_v59, %v18805_v17 }
 0x3a8   : > { %v11420_v29 = vpop.f32.mrf.mxu1 }
 0x3a9   : > { %v11435_v61 = vadd.f32 %v11420_v29, %v18807_v9 }
 0x3aa   : > { %v13525_v27 = vpop.f32.mrf.mxu1 }
 0x3ab   : > { %v11964_v48 = vadd.f32 %v13525_v27, %v11430_v53 }
 0x3ac   : > { %v11924_v34 = vpop.f32.mrf.mxu1 }
 0x3ad   : > { %v11963_v28 = vadd.f32 %v11924_v34, %v11429_v55 }
 0x3b1   : > { %v13528_v31 = vpop.f32.mrf.mxu1 }
 0x3b2   : > { %v11966_v50 = vadd.f32 %v13528_v31, %v11432_v12 }
 0x3b3   : > { %v11934_v13 = vpop.f32.mrf.mxu1 }
 0x3b4   : > { %v11965_v11 = vadd.f32 %v11934_v13, %v11431_v25 }
 0x3b8   : > { %v13531_v4 = vpop.f32.mrf.mxu1 }
 0x3b9   : > { %v11968_v10 = vadd.f32 %v13531_v4, %v11434_v16 }
 0x3ba   : > { %v11944_v40 = vpop.f32.mrf.mxu1 }
 0x3bb   : > { %v11967_v44 = vadd.f32 %v11944_v40, %v11433_v51 }
 0x3bf   : > { %v13534_v30 = vpop.f32.mrf.mxu1 }
 0x3c0   : > { %v11970_v27 = vadd.f32 %v13534_v30, %v11436_v42  ;;  %v12779_v30 = vld [vmem:[%s18929_s6 + $0x8] sm:$0xff] }
 0x3c1   : > { %v11954_v32 = vpop.f32.mrf.mxu1  ;;  %13639 = vmatprep.subr.mxu0 %v12779_v30 }
 0x3c2   : > { %v11969_v36 = vadd.f32 %v11954_v32, %v11435_v61  ;;  %13640 = vmatpush3.msra.mxu0 %v12779_v30 }
 0x3c3   : > { %v13539_v62 = vpop.f32.mrf.mxu1 }
 0x3c4   : > { %v12141_v22 = vadd.f32 %v13539_v62, %v11964_v48 }
 0x3c5   : > { %v12101_v35 = vpop.f32.mrf.mxu1 }
 0x3c6   : > { %v12140_v3 = vadd.f32 %v12101_v35, %v11963_v28 }
 0x3c7   : > { %v13542_v45 = vpop.f32.mrf.mxu1 }
 0x3c8   : > { %v12143_v0 = vadd.f32 %v13542_v45, %v11966_v50  ;;  %v12778_v45 = vld [vmem:[%s18929_s6] sm:$0xff] }
 0x3c9   : > { %v12111_v23 = vpop.f32.mrf.mxu1  ;;  %13641 = vmatprep.subr.mxu0 %v12778_v45 }
 0x3ca   : > { %v12142_v60 = vadd.f32 %v12111_v23, %v11965_v11  ;;  %13642 = vmatpush3.msra.mxu0 %v12778_v45  ;;  %v13005_v23 = vld.sshfl [vmem:[%s13873_s8 + $0x238] sm:$0x1 pattern:$0x75316420]  ;;  %s13157_s8 = sshll.u32 %s20410_s25, 6 }
 0x3cb   : > { %v13545_v47 = vpop.f32.mrf.mxu1  ;;  %s278_s17 = scalar_lea.vmem %s18930_s7, %s13157_s8 }
 0x3cc   : > { %v12145_v41 = vadd.f32 %v13545_v47, %v11968_v10  ;;  %v20407_v47 = vld [vmem:[#allocation267_spill] sm:$0xff] }
 0x3cd   : > { %v12121_v58 = vpop.f32.mrf.mxu1 }
 0x3ce   : > { %v12144_v49 = vadd.f32 %v12121_v58, %v11967_v44  ;;  %v2644_v58 = vcombine.high %v20407_v47, %v20407_v47 }
 0x3cf   : > { %v13548_v52 = vpop.f32.mrf.mxu1 }
 0x3d0   : > { %v12147_v40 = vadd.f32 %v13548_v52, %v11970_v27  ;;  %v20408_v52 = vld [vmem:[#allocation268_spill] sm:$0xff] }
 0x3d1   : > { %v12131_v21 = vpop.f32.mrf.mxu1 }
 0x3d2   : > { %v12146_v13 = vadd.f32 %v12131_v21, %v11969_v36  ;;  %v2674_v21 = vcombine.high %v20408_v52, %v20408_v52 }
 0x3d3   : > { %v13553_v6 = vpop.f32.mrf.mxu1 }
 0x3d4   : > { %v12318_v33 = vadd.f32 %v13553_v6, %v12141_v22  ;;  %v2690_v6 = vrot.slane %v13005_v23, %v13875_v7 }
 0x3d5   : > { %v12278_v20 = vpop.f32.mrf.mxu1 }
 0x3d6   : > { %v12317_v15 = vadd.f32 %v12278_v20, %v12140_v3  ;;  %v2672_v20 = vrot.slane %v2644_v58, %v13875_v7 }
 0x3d7   : > { %v13556_v5 = vpop.f32.mrf.mxu1 }
 0x3d8   : > { %v12320_v24 = vadd.f32 %v13556_v5, %v12143_v0  ;;  %v3336_v5 = vmul.f32 %v2674_v21, %v2674_v21 }
 0x3d9   : > { %v12288_v8 = vpop.f32.mrf.mxu1 }
 0x3da   : > { %v12319_v19 = vadd.f32 %v12288_v8, %v12142_v60  ;;  %v2676_v8 = vcombine.high %v2672_v20, %v2672_v20 }
 0x3db   : > { %v13559_v1 = vpop.f32.mrf.mxu1 }
 0x3dc   : > { %v12322_v34 = vadd.f32 %v13559_v1, %v12145_v41  ;;  %v3335_v1 = vmul.f32 %v2672_v20, %v2672_v20  ;;  %v3337_v55 = vmul.f32 %v2676_v8, %v2676_v8 }
 0x3dd   : > { %v12298_v37 = vpop.f32.mrf.mxu1 }
 0x3de   : > { %v12321_v38 = vadd.f32 %v12298_v37, %v12144_v49  ;;  %v3338_v37 = vmul.f32 %v2690_v6, %v2690_v6  ;;  %v5631_v53 = vcombine.low %v3335_v1, %v3336_v5 }
 0x3df   : > { %v13562_v2 = vpop.f32.mrf.mxu1 }
 0x3e0   : > { %v12324_v17 = vadd.f32 %v13562_v2, %v12147_v40  ;;  %v5632_v2 = vcombine.low %v3337_v55, %v3338_v37  ;;  %v5639_v28 = vrot.slane %v5631_v53, %v13875_v7 }
 0x3e1   : > { %v12308_v57 = vpop.f32.mrf.mxu1 }
 0x3e2   : > { %v12323_v62 = vadd.f32 %v12308_v57, %v12146_v13  ;;  %v5646_v48 = vrot.slane %v5632_v2, %v13875_v7 }
 0x3e3   : > { %v13567_v56 = vpop.f32.mrf.mxu1 }
 0x3e4   : > { %v12488_v26 = vadd.f32 %v13567_v56, %v12318_v33  ;;  %v5647_v57 = vcombine.low %v5639_v28, %v5646_v48 }
 0x3e5   : > { %v12448_v39 = vpop.f32.mrf.mxu1 }
 0x3e6   : > { %v12487_v18 = vadd.f32 %v12448_v39, %v12317_v15  ;;  %v5654_v25 = vrot.slane %v5647_v57, %v13875_v7 }
 0x3e7   : > { %v13570_v43 = vpop.f32.mrf.mxu1 }
 0x3e8   : > { %13599 = vmatprep.mubr.msk.f32.mxu1 %vm12608_vm3, %v12487_v18  ;;  %v12490_v46 = vadd.f32 %v13570_v43, %v12320_v24  ;;  %13449 = vmatmul.mubr.msk.f32.gmra.mxu0 %vm5655_vm2, %v5654_v25 }
 0x3e9   : > { %v12458_v63 = vpop.f32.mrf.mxu1  ;;  %13600 = vmatmul.mubr.msk.f32.vlgmr.msra.gmra.mxu1 %vm12608_vm3, %v12488_v26 }
 0x3ea   : > { %v12489_v14 = vadd.f32 %v12458_v63, %v12319_v19 }
 0x3eb   : > { %v13573_v54 = vpop.f32.mrf.mxu1 }
 0x3ec   : > { %13602 = vmatprep.mubr.msk.f32.mxu1 %vm12608_vm3, %v12489_v14  ;;  %v12492_v9 = vadd.f32 %v13573_v54, %v12322_v34 }
 0x3ed   : > { %v12468_v31 = vpop.f32.mrf.mxu1  ;;  %13603 = vmatmul.mubr.msk.f32.gmra.mxu1 %vm12608_vm3, %v12490_v46 }
 0x3ee   : > { %v12491_v4 = vadd.f32 %v12468_v31, %v12321_v38 }
 0x3ef   : > { %v13576_v29 = vpop.f32.mrf.mxu1 }
 0x3f0   : > { %13605 = vmatprep.mubr.msk.f32.mxu1 %vm12608_vm3, %v12491_v4  ;;  %v12494_v35 = vadd.f32 %v13576_v29, %v12324_v17 }
 0x3f1   : > { %v12478_v59 = vpop.f32.mrf.mxu1  ;;  %13606 = vmatmul.mubr.msk.f32.gmra.mxu1 %vm12608_vm3, %v12492_v9 }
 0x3f2   : > { %v12493_v32 = vadd.f32 %v12478_v59, %v12323_v62 }
 0x3f3   : > { %v18884_v3 = vpop.f32.mrf.mxu1 }
 0x3f4   : > { %13608 = vmatprep.mubr.msk.f32.mxu1 %vm12608_vm3, %v12493_v32 }
 0x3f5   : > { %13609 = vmatmul.mubr.msk.f32.gmra.mxu1 %vm12608_vm3, %v12494_v35  ;;  %v18886_v12 = vpop.f32.mrf.mxu1 }
 0x3f7   : > { %v18888_v22 = vpop.f32.mrf.mxu1 }
 0x3f9   : > { %v18890_v56 = vpop.f32.mrf.mxu1 }
 0x3fb   : > { %v18892_v11 = vpop.f32.mrf.mxu1 }
 0x3fd   : > { %v18894_v15 = vpop.f32.mrf.mxu1 }
 0x3ff   : > { %v18896_v50 = vpop.f32.mrf.mxu1 }
 0x401   : > { %v18898_v33 = vpop.f32.mrf.mxu1 }
 0x4a8   : > { %v6008_v37 = vpop.f32.mrf.mxu0 }
 0x4a9   : > { %v13601_v39 = vpop.f32.mrf.mxu1 }
 0x4aa   : > { %v12747_v7 = vmul.f32 0.70710677, %v13601_v39  ;;  %v12739_v38 = vmul.f32 0.5, %v13601_v39  ;;  %v13450_v55 = vpop.f32.mrf.mxu0 }
 0x4ab   : > { %v12699_v51 = vpop.f32.mrf.mxu1 }
 0x4ac   : > { %13783 = verf.f32 %v12747_v7  ;;  %v12746_v60 = vmul.f32 0.70710677, %v12699_v51  ;;  %v12738_v46 = vmul.f32 0.5, %v12699_v51 }
 0x4ad   : > { %v13604_v18 = vpop.f32.mrf.mxu1 }
 0x4ae   : > { %13785 = verf.f32 %v12746_v60  ;;  %v12749_v16 = vmul.f32 0.70710677, %v13604_v18  ;;  %v12741_v29 = vmul.f32 0.5, %v13604_v18 }
 0x4af   : > { %v12709_v0 = vpop.f32.mrf.mxu1 }
 0x4b0   : > { %13787 = verf.f32 %v12749_v16  ;;  %v12748_v26 = vmul.f32 0.70710677, %v12709_v0  ;;  %v12740_v4 = vmul.f32 0.5, %v12709_v0 }
 0x4b1   : > { %v13607_v43 = vpop.f32.mrf.mxu1 }
 0x4b2   : > { %13789 = verf.f32 %v12748_v26  ;;  %v12751_v44 = vmul.f32 0.70710677, %v13607_v43  ;;  %v12743_v23 = vmul.f32 0.5, %v13607_v43 }
 0x4b3   : > { %v12719_v19 = vpop.f32.mrf.mxu1 }
 0x4b4   : > { %13791 = verf.f32 %v12751_v44  ;;  %v12750_v10 = vmul.f32 0.70710677, %v12719_v19  ;;  %v12742_v35 = vmul.f32 0.5, %v12719_v19 }
 0x4b5   : > { %v13610_v24 = vpop.f32.mrf.mxu1 }
 0x4b6   : > { %13793 = verf.f32 %v12750_v10  ;;  %v12753_v63 = vmul.f32 0.70710677, %v13610_v24  ;;  %v12745_v5 = vmul.f32 0.5, %v13610_v24 }
 0x4b7   : > { %v12729_v61 = vpop.f32.mrf.mxu1 }
 0x4b8   : > { %13795 = verf.f32 %v12753_v63  ;;  %v12752_v49 = vmul.f32 0.70710677, %v12729_v61  ;;  %v12744_v6 = vmul.f32 0.5, %v12729_v61 }
 0x4b9   : > { %v13784_v14 = vpop.eup %13783 }
 0x4ba   : > { %13797 = verf.f32 %v12752_v49  ;;  %v12763_v41 = vadd.f32 1.0, %v13784_v14 }
 0x4bb   : > { %v13786_v42 = vpop.eup %13785 }
 0x4bc   : > { %v12762_v54 = vadd.f32 1.0, %v13786_v42  ;;  %v12771_v31 = vmul.f32 %v12763_v41, %v12739_v38 }
 0x4bd   : > { %v13788_v36 = vpop.eup %13787 }
 0x4be   : > { %v12770_v27 = vmul.f32 %v12762_v54, %v12738_v46  ;;  %v12765_v13 = vadd.f32 1.0, %v13788_v36 }
 0x4bf   : > { %v13790_v34 = vpop.eup %13789 }
 0x4c0   : > { %v12764_v40 = vadd.f32 1.0, %v13790_v34  ;;  %13643 = vmatprep.mubr.f32.mxu0 %v12770_v27  ;;  %v12773_v59 = vmul.f32 %v12765_v13, %v12741_v29 }
 0x4c1   : > { %v13792_v9 = vpop.eup %13791  ;;  %13644 = vmatmul.mubr.f32.vlgmr.msra.gmra.mxu0 %v12771_v31 }
 0x4c2   : > { %v12772_v62 = vmul.f32 %v12764_v40, %v12740_v4  ;;  %v12767_v32 = vadd.f32 1.0, %v13792_v9 }
 0x4c3   : > { %v13794_v17 = vpop.eup %13793 }
 0x4c4   : > { %v12766_v30 = vadd.f32 1.0, %v13794_v17  ;;  %13646 = vmatprep.mubr.f32.mxu0 %v12772_v62  ;;  %v12775_v52 = vmul.f32 %v12767_v32, %v12743_v23 }
 0x4c5   : > { %v13796_v45 = vpop.eup %13795  ;;  %13647 = vmatmul.mubr.f32.gmra.mxu0 %v12773_v59 }
 0x4c6   : > { %v12774_v47 = vmul.f32 %v12766_v30, %v12742_v35  ;;  %v12769_v21 = vadd.f32 1.0, %v13796_v45 }
 0x4c7   : > { %v13798_v58 = vpop.eup %13797 }
 0x4c8   : > { %v12768_v20 = vadd.f32 1.0, %v13798_v58  ;;  %13649 = vmatprep.mubr.f32.mxu0 %v12774_v47  ;;  %v12777_v1 = vmul.f32 %v12769_v21, %v12745_v5 }
 0x4c9   : > { %13650 = vmatmul.mubr.f32.gmra.mxu0 %v12775_v52 }
 0x4ca   : > { %v12776_v8 = vmul.f32 %v12768_v20, %v12744_v6 }
 0x4cc   : > { %13652 = vmatprep.mubr.f32.mxu0 %v12776_v8 }
 0x4cd   : > { %13653 = vmatmul.mubr.f32.gmra.mxu0 %v12777_v1 }
 0x581   : > { %v13645_v53 = vpop.f32.mrf.mxu0 }
 0x582   : > { %v12866_v2 = vadd.f32 %v13645_v53, %v18884_v3 }
 0x583   : > { %v12860_v28 = vpop.f32.mrf.mxu0 }
 0x584   : > { %12900 = vst.msk [vmem:[%s278_s17 + $0x8] sm:$0xff] %vm12608_vm3, %v12866_v2  ;;  %v12861_v48 = vadd.f32 %v12860_v28, %v18886_v12 }
 0x585   : > { %v13648_v57 = vpop.f32.mrf.mxu0 }
 0x586   : > { %12899 = vst.msk [vmem:[%s278_s17] sm:$0xff] %vm12608_vm3, %v12861_v48  ;;  %v12876_v25 = vadd.f32 %v13648_v57, %v18888_v22 }
 0x587   : > { %v12870_v39 = vpop.f32.mrf.mxu0 }
 0x588   : > { %12902 = vst.msk [vmem:[%s278_s17 + $0x18] sm:$0xff] %vm12608_vm3, %v12876_v25  ;;  %v12871_v7 = vadd.f32 %v12870_v39, %v18890_v56 }
 0x589   : > { %v13651_v51 = vpop.f32.mrf.mxu0 }
 0x58a   : > { %12901 = vst.msk [vmem:[%s278_s17 + $0x10] sm:$0xff] %vm12608_vm3, %v12871_v7  ;;  %v12886_v3 = vadd.f32 %v13651_v51, %v18892_v11 }
 0x58b   : > { %v12880_v60 = vpop.f32.mrf.mxu0 }
 0x58c   : > { %12904 = vst.msk [vmem:[%s278_s17 + $0x28] sm:$0xff] %vm12608_vm3, %v12886_v3  ;;  %v12881_v12 = vadd.f32 %v12880_v60, %v18894_v15 }
 0x58d   : > { %v13654_v18 = vpop.f32.mrf.mxu0 }
 0x58e   : > { %12903 = vst.msk [vmem:[%s278_s17 + $0x20] sm:$0xff] %vm12608_vm3, %v12881_v12  ;;  %v12896_v22 = vadd.f32 %v13654_v18, %v18896_v50 }
 0x58f   : > { %v12890_v16 = vpop.f32.mrf.mxu0 }
 0x590   : > { %12906 = vst.msk [vmem:[%s278_s17 + $0x38] sm:$0xff] %vm12608_vm3, %v12896_v22  ;;  %v12891_v56 = vadd.f32 %v12890_v16, %v18898_v33 }
 0x592   : > { %12905 = vst.msk [vmem:[%s278_s17 + $0x30] sm:$0xff] %vm12608_vm3, %v12891_v56 }
 0x593 PF: > { %s17_s24 = sadd.s32 1, %s13807_s24  }
 0x594   : > { %p14_p4 = scmp.ge.s32.totalorder %s17_s24, 4  }
 0x596   :  { %16 = sbr.rel (!%p14_p4) target bundleno = 1 (0x1), region = 86 }

</bundles_post_ra>
